<compile_context>
chip_gen: v6e
topology: v6e:2x2x1
jax: 0.10.0
libtpu: 0.0.40
codegen_flags: <defaults>
</compile_context>

<pallas_src>
import math
from functools import partial

import numpy as np
import jax
import jax.numpy as jnp
from jax import lax
from jax.experimental import pallas as pl
from jax.experimental.pallas import tpu as pltpu


# ----------------------------------------------------------------------------
# Host-side constants: per-tap edge-validity masks, stride-2 selection matrix,
# and the fused GroupNorm group-average matrix.  All tiny ((S,1), (So,S), (C,C)).
# ----------------------------------------------------------------------------
def _conv3x3_masks(H, W):
    """(9, S, 1): mask[k, y*W+x] = 1 iff (y+dy, x+dx) is inside the image."""
    S = H * W
    m = np.zeros((9, S, 1), np.float32)
    for k in range(9):
        dy, dx = k // 3 - 1, k % 3 - 1
        for y in range(H):
            for x in range(W):
                if 0 <= y + dy < H and 0 <= x + dx < W:
                    m[k, y * W + x, 0] = 1.0
    return m


def _conv4x4s2_masks_and_sel(H, W):
    """Dense 4x4-tap masks (16,S,1) and the even-row/even-col selection (So,S)."""
    S = H * W
    Ho = (H + 2 - 4) // 2 + 1
    Wo = (W + 2 - 4) // 2 + 1
    So = Ho * Wo
    m = np.zeros((16, S, 1), np.float32)
    for k in range(16):
        dy, dx = k // 4 - 1, k % 4 - 1
        for y in range(H):
            for x in range(W):
                if 0 <= y + dy < H and 0 <= x + dx < W:
                    m[k, y * W + x, 0] = 1.0
    sel = np.zeros((So, S), np.float32)
    for yo in range(Ho):
        for xo in range(Wo):
            sel[yo * Wo + xo, (2 * yo) * W + 2 * xo] = 1.0
    return m, sel, Ho, Wo


def _gn_avg_matrix(C, G, S):
    """(C, C): A[c, c'] = 1/(S*cg) if c, c' are in the same group else 0."""
    cg = C // G
    same = (np.arange(C)[:, None] // cg) == (np.arange(C)[None, :] // cg)
    return same.astype(np.float32) / float(S * cg)


# ----------------------------------------------------------------------------
# Fused per-layer kernel.
# ----------------------------------------------------------------------------
def _make_downblock_layer_kernel(H, W, Cout, nh, eps, do_down, exact_softmax):
    S = H * W
    dh = Cout // nh
    f32 = jnp.float32
    bf16 = jnp.bfloat16

    TAP3 = [(k // 3 - 1, k % 3 - 1) for k in range(9)]
    TAP4 = [(k // 4 - 1, k % 4 - 1) for k in range(16)]

    def shift_rows(h, s):
        # Row i of the result reads flat-source row (i + s) mod S; the circular
        # wrap only ever lands on positions that the edge mask zeroes out.
        if s == 0:
            return h
        return pltpu.roll(h, (-s) % S, axis=0)

    def group_norm(x, gamma, beta, A, silu):
        # x: (S, C) f32.  Two-pass mean/var in f32; A is the fused group-average.
        ch_sum = jnp.sum(x, axis=0, keepdims=True)                    # (1, C)
        mean_c = jnp.dot(ch_sum, A, preferred_element_type=f32)       # (1, C)
        d = x - mean_c
        ch_ss = jnp.sum(d * d, axis=0, keepdims=True)                 # (1, C)
        var_c = jnp.dot(ch_ss, A, preferred_element_type=f32)         # (1, C)
        y = d * lax.rsqrt(var_c + eps) * gamma + beta
        if silu:
            y = y * jax.nn.sigmoid(y)
        return y

    def conv_taps(h, w_ref, mask_ref, taps):
        # sum_k  (roll(h, -s_k) * mask_k) @ W_k  -- rolls on XLU, matmuls on MXU.
        acc = None
        for k, (dy, dx) in enumerate(taps):
            tap = shift_rows(h, dy * W + dx)
            if not (dy == 0 and dx == 0):
                tap = tap * mask_ref[k]                               # (S,1) bcast
            contrib = jnp.dot(tap.astype(bf16), w_ref[k],
                              preferred_element_type=f32)             # (S, Cout)
            acc = contrib if acc is None else acc + contrib
        return acc

    def softmax_rows(sc):
        sc = sc - jnp.max(sc, axis=-1, keepdims=True)
        p = jnp.exp(sc)
        denom = jnp.sum(p, axis=-1, keepdims=True)
        if exact_softmax:
            return p / denom
        return p * pl.reciprocal(denom, approx=True)

    def kernel(x_ref, t_ref, m3_ref,
               Ain_ref, Aout_ref,
               g1_ref, b1_ref, w1_ref, cb1_ref,
               tw_ref, tb_ref,
               g2_ref, b2_ref, w2_ref, cb2_ref,
               rw_ref, rb_ref,
               ag_ref, ab_ref,
               wqkv_ref, bqkv_ref, wo_ref, bo_ref,
               *rest):
        if do_down:
            m4_ref, sel_ref, dw_ref, db_ref, o_ref = rest
        else:
            (o_ref,) = rest

        x = x_ref[0].astype(f32)                                      # (S, Cin)
        Ain = Ain_ref[...]
        Aout = Aout_ref[...]

        # --- resnet_conv_first: GN + SiLU + conv3x3; t-emb projection as bias.
        h = group_norm(x, g1_ref[...], b1_ref[...], Ain, True)
        t = t_ref[0].astype(f32)                                      # (1, Tdim)
        t = t * jax.nn.sigmoid(t)                                     # SiLU
        t_proj = jnp.dot(t, tw_ref[...], preferred_element_type=f32) + tb_ref[...]
        h = conv_taps(h, w1_ref, m3_ref, TAP3) + cb1_ref[...] + t_proj

        # --- resnet_conv_second: GN + SiLU + conv3x3.
        h2 = group_norm(h, g2_ref[...], b2_ref[...], Aout, True)
        h2 = conv_taps(h2, w2_ref, m3_ref, TAP3) + cb2_ref[...]

        # --- 1x1 residual conv on the layer input, fused residual add.
        res = jnp.dot(x.astype(bf16), rw_ref[...],
                      preferred_element_type=f32) + rb_ref[...]
        out = h2 + res                                                # (S, Cout)

        # --- attention: GN (no SiLU) -> MHA -> residual add.
        n = group_norm(out, ag_ref[...], ab_ref[...], Aout, False)
        qkv = jnp.dot(n.astype(bf16), wqkv_ref[...],
                      preferred_element_type=f32) + bqkv_ref[...]     # (S, 3C)
        q = qkv[:, 0:Cout]          # q-scale already folded into wqkv/bqkv
        kk = qkv[:, Cout:2 * Cout]
        v = qkv[:, 2 * Cout:3 * Cout]
        attn = jnp.zeros((S, Cout), f32)
        for hh in range(nh):        # static head loop; out-proj accumulated per head
            s0, s1 = hh * dh, (hh + 1) * dh
            qh = q[:, s0:s1].astype(bf16)
            kh = kk[:, s0:s1].astype(bf16)
            vh = v[:, s0:s1].astype(bf16)
            sc = lax.dot_general(qh, kh, (((1,), (1,)), ((), ())),
                                 preferred_element_type=f32)          # (S, S)
            p = softmax_rows(sc)
            head = jnp.dot(p.astype(bf16), vh, preferred_element_type=f32)
            attn = attn + jnp.dot(head.astype(bf16), wo_ref[hh],
                                  preferred_element_type=f32)
        out = out + attn + bo_ref[...]

        # --- optional fused downsample conv (4x4, stride 2, pad 1):
        #     dense 16-tap roll-conv at all S positions, then one exact (So,S)
        #     0/1 selection matmul picks the even-row/even-col outputs.
        if do_down:
            dense = None
            for k, (dy, dx) in enumerate(TAP4):
                tap = shift_rows(out, dy * W + dx)
                if not (dy == 0 and dx == 0):
                    tap = tap * m4_ref[k]
                contrib = jnp.dot(tap.astype(bf16), dw_ref[k],
                                  preferred_element_type=f32)
                dense = contrib if dense is None else dense + contrib
            down = jnp.dot(sel_ref[...], dense,
                           preferred_element_type=f32) + db_ref[...]  # (So, Cout)
            o_ref[0] = down.astype(o_ref.dtype)
        else:
            o_ref[0] = out.astype(o_ref.dtype)

    return kernel


def _layer_forward(x_seq, t_emb3, lp, H, W, m3, m4, sel, do_down, num_heads,
                   *, num_groups=8, eps=1e-5, exact_softmax=False):
    """x_seq: (B, S, Cin) f32; t_emb3: (B, 1, Tdim); returns (B, S or So, Cout)."""
    B, S, Cin = x_seq.shape
    Cout = lp['c1_b'].shape[0]
    Tdim = t_emb3.shape[-1]
    G = num_groups
    dh = Cout // num_heads
    So = sel.shape[0] if do_down else S
    bf16 = jnp.bfloat16
    f32 = jnp.float32

    # Fused GroupNorm group-average matrices.
    A_in = jnp.asarray(_gn_avg_matrix(Cin, G, S))
    A_out = jnp.asarray(_gn_avg_matrix(Cout, G, S))

    # Fold the attention q-scale into the qkv projection; pre-split out-proj per head.
    scale = 1.0 / math.sqrt(dh)
    qscale = jnp.concatenate([jnp.full((Cout,), scale, f32),
                              jnp.ones((2 * Cout,), f32)])
    wqkv = (lp['wqkv'] * qscale[None, :]).astype(bf16)
    bqkv = (lp['bqkv'] * qscale).reshape(1, 3 * Cout)
    wo_h = lp['wo'].reshape(num_heads, dh, Cout).astype(bf16)

    def const_spec(shape):
        nd = len(shape)
        return pl.BlockSpec(shape, lambda b: (0,) * nd)
        # NOTE: at realistic sizes add pipeline_mode=pl.Buffered(1) here to
        # single-buffer the grid-invariant operands.

    args = [
        x_seq, t_emb3, m3, A_in, A_out,
        lp['gn1_g'].reshape(1, Cin), lp['gn1_b'].reshape(1, Cin),
        lp['c1_w'].reshape(9, Cin, Cout).astype(bf16), lp['c1_b'].reshape(1, Cout),
        lp['t_w'], lp['t_b'].reshape(1, Cout),
        lp['gn2_g'].reshape(1, Cout), lp['gn2_b'].reshape(1, Cout),
        lp['c2_w'].reshape(9, Cout, Cout).astype(bf16), lp['c2_b'].reshape(1, Cout),
        lp['r_w'].astype(bf16), lp['r_b'].reshape(1, Cout),
        lp['agn_g'].reshape(1, Cout), lp['agn_b'].reshape(1, Cout),
        wqkv, bqkv, wo_h, lp['bo'].reshape(1, Cout),
    ]
    in_specs = [
        pl.BlockSpec((1, S, Cin), lambda b: (b, 0, 0)),        # x (per batch)
        pl.BlockSpec((1, 1, Tdim), lambda b: (b, 0, 0)),       # t_emb (per batch)
        const_spec((9, S, 1)),                                 # conv3x3 edge masks
        const_spec((Cin, Cin)),                                # GN group-average (in)
        const_spec((Cout, Cout)),                              # GN group-average (out)
        const_spec((1, Cin)), const_spec((1, Cin)),            # gn1 gamma/beta
        const_spec((9, Cin, Cout)), const_spec((1, Cout)),     # conv1 w/b
        const_spec((Tdim, Cout)), const_spec((1, Cout)),       # t-emb linear w/b
        const_spec((1, Cout)), const_spec((1, Cout)),          # gn2 gamma/beta
        const_spec((9, Cout, Cout)), const_spec((1, Cout)),    # conv2 w/b
        const_spec((Cin, Cout)), const_spec((1, Cout)),        # residual 1x1 w/b
        const_spec((1, Cout)), const_spec((1, Cout)),          # attn GN gamma/beta
        const_spec((Cout, 3 * Cout)), const_spec((1, 3 * Cout)),  # qkv proj w/b
        const_spec((num_heads, dh, Cout)), const_spec((1, Cout)),  # out proj w/b
    ]
    if do_down:
        args += [m4, sel,
                 lp['ds_w'].reshape(16, Cout, Cout).astype(bf16),
                 lp['ds_b'].reshape(1, Cout)]
        in_specs += [
            const_spec((16, S, 1)),                            # 4x4 tap masks
            const_spec((So, S)),                               # stride-2 selection
            const_spec((16, Cout, Cout)), const_spec((1, Cout)),  # down conv w/b
        ]

    kernel = _make_downblock_layer_kernel(H, W, Cout, num_heads, eps, do_down,
                                          exact_softmax)
    return pl.pallas_call(
        kernel,
        out_shape=jax.ShapeDtypeStruct((B, So, Cout), x_seq.dtype),
        grid=(B,),
        in_specs=in_specs,
        out_specs=pl.BlockSpec((1, So, Cout), lambda b: (b, 0, 0)),
        compiler_params=pltpu.CompilerParams(
            dimension_semantics=("parallel",),       # shard batch across TCs on v7x
            vmem_limit_bytes=64 * 1024 * 1024),
    )(*args)


# ----------------------------------------------------------------------------
# DownBlock forward (matches the PyTorch module semantics).
# ----------------------------------------------------------------------------
def downblock_forward(params, x_nchw, t_emb, *, num_layers=1, num_heads=4,
                      down_sample=True, num_groups=8, eps=1e-5,
                      exact_softmax=False):
    B, Cin, H, W = x_nchw.shape
    S = H * W
    # NCHW -> (B, S, C) channels-last sequence layout (host-side layout glue only).
    out = jnp.transpose(x_nchw, (0, 2, 3, 1)).reshape(B, S, Cin)
    t3 = t_emb[:, None, :]                                      # (B, 1, Tdim)

    m3 = jnp.asarray(_conv3x3_masks(H, W))
    if down_sample:
        m4_np, sel_np, Ho, Wo = _conv4x4s2_masks_and_sel(H, W)
        m4, sel = jnp.asarray(m4_np), jnp.asarray(sel_np)
    else:
        m4, sel, Ho, Wo = None, None, H, W

    keys = ('gn1_g', 'gn1_b', 'c1_w', 'c1_b', 't_w', 't_b', 'gn2_g', 'gn2_b',
            'c2_w', 'c2_b', 'r_w', 'r_b', 'agn_g', 'agn_b',
            'wqkv', 'bqkv', 'wo', 'bo')
    for i in range(num_layers):
        do_down = down_sample and (i == num_layers - 1)
        lp = {k: params[f'{k}_{i}'] for k in keys}
        if do_down:
            lp['ds_w'] = params['ds_w']
            lp['ds_b'] = params['ds_b']
        out = _layer_forward(out, t3, lp, H, W, m3, m4, sel, do_down, num_heads,
                             num_groups=num_groups, eps=eps,
                             exact_softmax=exact_softmax)

    C = out.shape[-1]
    return jnp.transpose(out.reshape(B, Ho, Wo, C), (0, 3, 1, 2))   # -> NCHW


# ----------------------------------------------------------------------------
# Deterministic synthetic parameter initialization (shapes from __init__).
# ----------------------------------------------------------------------------
def init_params(key, in_ch, out_ch, t_dim, num_layers, down_sample=True):
    p = {}
    keys = iter(jax.random.split(key, 32 * num_layers + 8))

    def nrm(shape, scale=0.05):
        return scale * jax.random.normal(next(keys), shape, dtype=jnp.float32)

    for i in range(num_layers):
        cin = in_ch if i == 0 else out_ch
        p[f'gn1_g_{i}'] = jnp.ones((cin,), jnp.float32) + nrm((cin,))
        p[f'gn1_b_{i}'] = nrm((cin,))
        p[f'c1_w_{i}'] = nrm((3, 3, cin, out_ch))       # (kh, kw, Cin, Cout)
        p[f'c1_b_{i}'] = nrm((out_ch,))
        p[f't_w_{i}'] = nrm((t_dim, out_ch))            # torch Linear weight.T
        p[f't_b_{i}'] = nrm((out_ch,))
        p[f'gn2_g_{i}'] = jnp.ones((out_ch,), jnp.float32) + nrm((out_ch,))
        p[f'gn2_b_{i}'] = nrm((out_ch,))
        p[f'c2_w_{i}'] = nrm((3, 3, out_ch, out_ch))
        p[f'c2_b_{i}'] = nrm((out_ch,))
        p[f'r_w_{i}'] = nrm((cin, out_ch))              # 1x1 conv weight as (Cin, Cout)
        p[f'r_b_{i}'] = nrm((out_ch,))
        p[f'agn_g_{i}'] = jnp.ones((out_ch,), jnp.float32) + nrm((out_ch,))
        p[f'agn_b_{i}'] = nrm((out_ch,))
        p[f'wqkv_{i}'] = nrm((out_ch, 3 * out_ch))      # torch in_proj_weight.T
        p[f'bqkv_{i}'] = nrm((3 * out_ch,))
        p[f'wo_{i}'] = nrm((out_ch, out_ch))            # torch out_proj.weight.T
        p[f'bo_{i}'] = nrm((out_ch,))
    if down_sample:
        p['ds_w'] = nrm((4, 4, out_ch, out_ch))         # (kh, kw, Cin, Cout)
        p['ds_b'] = nrm((out_ch,))
    return p


if __name__ == "__main__":
    B, IN_CH, OUT_CH, H, W = 2, 8, 16, 8, 8
    T_DIM, NUM_HEAD, NUM_LAYERS = 32, 4, 1

    key = jax.random.PRNGKey(0)
    kx, kt, kp = jax.random.split(key, 3)
    x = jax.random.normal(kx, (B, IN_CH, H, W), dtype=jnp.float32)   # NCHW like PyTorch
    t_emb = jax.random.normal(kt, (B, T_DIM), dtype=jnp.float32)
    params = init_params(kp, IN_CH, OUT_CH, T_DIM, NUM_LAYERS, down_sample=True)

    fwd = jax.jit(partial(downblock_forward, num_layers=NUM_LAYERS,
                          num_heads=NUM_HEAD, down_sample=True))
    out = fwd(params, x, t_emb)
    out = jax.block_until_ready(out)

    assert out.shape == (B, OUT_CH, H // 2, W // 2), out.shape
    assert bool(jnp.all(jnp.isfinite(out)))
    print("KERNEL_OK")
</pallas_src>

<mosaic_0001>
module attributes {stable_mosaic.version = 11 : i64} {
  func.func @kernel(%arg0: i32, %arg1: memref<1x64x8xf32, #tpu.memory_space<vmem>>, %arg2: memref<1x1x32xf32, #tpu.memory_space<vmem>>, %arg3: memref<9x64x1xf32, #tpu.memory_space<vmem>>, %arg4: memref<8x8xf32, #tpu.memory_space<vmem>>, %arg5: memref<16x16xf32, #tpu.memory_space<vmem>>, %arg6: memref<1x8xf32, #tpu.memory_space<vmem>>, %arg7: memref<1x8xf32, #tpu.memory_space<vmem>>, %arg8: memref<9x8x16xbf16, #tpu.memory_space<vmem>>, %arg9: memref<1x16xf32, #tpu.memory_space<vmem>>, %arg10: memref<32x16xf32, #tpu.memory_space<vmem>>, %arg11: memref<1x16xf32, #tpu.memory_space<vmem>>, %arg12: memref<1x16xf32, #tpu.memory_space<vmem>>, %arg13: memref<1x16xf32, #tpu.memory_space<vmem>>, %arg14: memref<9x16x16xbf16, #tpu.memory_space<vmem>>, %arg15: memref<1x16xf32, #tpu.memory_space<vmem>>, %arg16: memref<8x16xbf16, #tpu.memory_space<vmem>>, %arg17: memref<1x16xf32, #tpu.memory_space<vmem>>, %arg18: memref<1x16xf32, #tpu.memory_space<vmem>>, %arg19: memref<1x16xf32, #tpu.memory_space<vmem>>, %arg20: memref<16x48xbf16, #tpu.memory_space<vmem>>, %arg21: memref<1x48xf32, #tpu.memory_space<vmem>>, %arg22: memref<4x4x16xbf16, #tpu.memory_space<vmem>>, %arg23: memref<1x16xf32, #tpu.memory_space<vmem>>, %arg24: memref<16x64x1xf32, #tpu.memory_space<vmem>>, %arg25: memref<16x64xf32, #tpu.memory_space<vmem>>, %arg26: memref<16x16x16xbf16, #tpu.memory_space<vmem>>, %arg27: memref<1x16xf32, #tpu.memory_space<vmem>>, %arg28: memref<1x16x16xf32, #tpu.memory_space<vmem>>) attributes {dimension_semantics = [#tpu.dimension_semantics<parallel>], iteration_bounds = array<i64: 2>, scalar_prefetch = 0 : i64, scratch_operands = 0 : i64, tpu.core_type = #tpu.core_type<tc>, window_params = [{transform_indices = @transform_0, window_bounds = array<i64: 1, 64, 8>}, {transform_indices = @transform_1, window_bounds = array<i64: 1, 1, 32>}, {pipeline_mode = #tpu.pipeline_mode<synchronous>, transform_indices = @transform_2, window_bounds = array<i64: 9, 64, 1>}, {pipeline_mode = #tpu.pipeline_mode<synchronous>, transform_indices = @transform_3, window_bounds = array<i64: 8, 8>}, {pipeline_mode = #tpu.pipeline_mode<synchronous>, transform_indices = @transform_4, window_bounds = array<i64: 16, 16>}, {pipeline_mode = #tpu.pipeline_mode<synchronous>, transform_indices = @transform_5, window_bounds = array<i64: 1, 8>}, {pipeline_mode = #tpu.pipeline_mode<synchronous>, transform_indices = @transform_6, window_bounds = array<i64: 1, 8>}, {pipeline_mode = #tpu.pipeline_mode<synchronous>, transform_indices = @transform_7, window_bounds = array<i64: 9, 8, 16>}, {pipeline_mode = #tpu.pipeline_mode<synchronous>, transform_indices = @transform_8, window_bounds = array<i64: 1, 16>}, {pipeline_mode = #tpu.pipeline_mode<synchronous>, transform_indices = @transform_9, window_bounds = array<i64: 32, 16>}, {pipeline_mode = #tpu.pipeline_mode<synchronous>, transform_indices = @transform_10, window_bounds = array<i64: 1, 16>}, {pipeline_mode = #tpu.pipeline_mode<synchronous>, transform_indices = @transform_11, window_bounds = array<i64: 1, 16>}, {pipeline_mode = #tpu.pipeline_mode<synchronous>, transform_indices = @transform_12, window_bounds = array<i64: 1, 16>}, {pipeline_mode = #tpu.pipeline_mode<synchronous>, transform_indices = @transform_13, window_bounds = array<i64: 9, 16, 16>}, {pipeline_mode = #tpu.pipeline_mode<synchronous>, transform_indices = @transform_14, window_bounds = array<i64: 1, 16>}, {pipeline_mode = #tpu.pipeline_mode<synchronous>, transform_indices = @transform_15, window_bounds = array<i64: 8, 16>}, {pipeline_mode = #tpu.pipeline_mode<synchronous>, transform_indices = @transform_16, window_bounds = array<i64: 1, 16>}, {pipeline_mode = #tpu.pipeline_mode<synchronous>, transform_indices = @transform_17, window_bounds = array<i64: 1, 16>}, {pipeline_mode = #tpu.pipeline_mode<synchronous>, transform_indices = @transform_18, window_bounds = array<i64: 1, 16>}, {pipeline_mode = #tpu.pipeline_mode<synchronous>, transform_indices = @transform_19, window_bounds = array<i64: 16, 48>}, {pipeline_mode = #tpu.pipeline_mode<synchronous>, transform_indices = @transform_20, window_bounds = array<i64: 1, 48>}, {pipeline_mode = #tpu.pipeline_mode<synchronous>, transform_indices = @transform_21, window_bounds = array<i64: 4, 4, 16>}, {pipeline_mode = #tpu.pipeline_mode<synchronous>, transform_indices = @transform_22, window_bounds = array<i64: 1, 16>}, {pipeline_mode = #tpu.pipeline_mode<synchronous>, transform_indices = @transform_23, window_bounds = array<i64: 16, 64, 1>}, {pipeline_mode = #tpu.pipeline_mode<synchronous>, transform_indices = @transform_24, window_bounds = array<i64: 16, 64>}, {pipeline_mode = #tpu.pipeline_mode<synchronous>, transform_indices = @transform_25, window_bounds = array<i64: 16, 16, 16>}, {pipeline_mode = #tpu.pipeline_mode<synchronous>, transform_indices = @transform_26, window_bounds = array<i64: 1, 16>}, {transform_indices = @transform_27, window_bounds = array<i64: 1, 16, 16>}]} {
    %c0 = arith.constant 0 : index
    %c0_0 = arith.constant 0 : index
    %c0_1 = arith.constant 0 : index
    %0 = vector.load %arg1[%c0, %c0_0, %c0_1] : memref<1x64x8xf32, #tpu.memory_space<vmem>>, vector<1x64x8xf32>
    %1 = vector.shape_cast %0 : vector<1x64x8xf32> to vector<64x8xf32>
    %c0_2 = arith.constant 0 : index
    %c0_3 = arith.constant 0 : index
    %2 = vector.load %arg4[%c0_2, %c0_3] : memref<8x8xf32, #tpu.memory_space<vmem>>, vector<8x8xf32>
    %c0_4 = arith.constant 0 : index
    %c0_5 = arith.constant 0 : index
    %3 = vector.load %arg5[%c0_4, %c0_5] : memref<16x16xf32, #tpu.memory_space<vmem>>, vector<16x16xf32>
    %c0_6 = arith.constant 0 : index
    %c0_7 = arith.constant 0 : index
    %4 = vector.load %arg6[%c0_6, %c0_7] : memref<1x8xf32, #tpu.memory_space<vmem>>, vector<1x8xf32>
    %c0_8 = arith.constant 0 : index
    %c0_9 = arith.constant 0 : index
    %5 = vector.load %arg7[%c0_8, %c0_9] : memref<1x8xf32, #tpu.memory_space<vmem>>, vector<1x8xf32>
    %cst = arith.constant dense<0.000000e+00> : vector<8xf32>
    %6 = vector.multi_reduction <add>, %1, %cst [0] : vector<64x8xf32> to vector<8xf32>
    %7 = vector.shape_cast %6 : vector<8xf32> to vector<1x8xf32>
    %cst_10 = arith.constant dense<0.000000e+00> : vector<1x8xf32>
    %8 = tpu.matmul %7, %2, %cst_10 {dimension_numbers = #tpu.dot_dimension_numbers<[1], [0], [0], [1], [0, 0, 1, 1], [], []>} : vector<1x8xf32>, vector<8x8xf32>, vector<1x8xf32> -> vector<1x8xf32>
    %9 = vector.broadcast %8 : vector<1x8xf32> to vector<64x8xf32>
    %10 = arith.subf %1, %9 : vector<64x8xf32>
    %11 = arith.mulf %10, %10 : vector<64x8xf32>
    %cst_11 = arith.constant dense<0.000000e+00> : vector<8xf32>
    %12 = vector.multi_reduction <add>, %11, %cst_11 [0] : vector<64x8xf32> to vector<8xf32>
    %13 = vector.shape_cast %12 : vector<8xf32> to vector<1x8xf32>
    %cst_12 = arith.constant dense<0.000000e+00> : vector<1x8xf32>
    %14 = tpu.matmul %13, %2, %cst_12 {dimension_numbers = #tpu.dot_dimension_numbers<[1], [0], [0], [1], [0, 0, 1, 1], [], []>} : vector<1x8xf32>, vector<8x8xf32>, vector<1x8xf32> -> vector<1x8xf32>
    %cst_13 = arith.constant 9.99999974E-6 : f32
    %15 = vector.broadcast %cst_13 : f32 to vector<1x8xf32>
    %16 = arith.addf %14, %15 : vector<1x8xf32>
    %17 = math.rsqrt %16 : vector<1x8xf32>
    %18 = vector.broadcast %17 : vector<1x8xf32> to vector<64x8xf32>
    %19 = arith.mulf %10, %18 : vector<64x8xf32>
    %20 = vector.broadcast %4 : vector<1x8xf32> to vector<64x8xf32>
    %21 = arith.mulf %19, %20 : vector<64x8xf32>
    %22 = vector.broadcast %5 : vector<1x8xf32> to vector<64x8xf32>
    %23 = arith.addf %21, %22 : vector<64x8xf32>
    %24 = arith.negf %23 : vector<64x8xf32>
    %25 = math.exp %24 : vector<64x8xf32>
    %cst_14 = arith.constant 1.000000e+00 : f32
    %26 = vector.broadcast %cst_14 : f32 to vector<64x8xf32>
    %27 = arith.addf %26, %25 : vector<64x8xf32>
    %28 = arith.divf %26, %27 : vector<64x8xf32>
    %29 = arith.mulf %23, %28 : vector<64x8xf32>
    %c0_15 = arith.constant 0 : index
    %c0_16 = arith.constant 0 : index
    %c0_17 = arith.constant 0 : index
    %30 = vector.load %arg2[%c0_15, %c0_16, %c0_17] : memref<1x1x32xf32, #tpu.memory_space<vmem>>, vector<1x1x32xf32>
    %31 = vector.shape_cast %30 : vector<1x1x32xf32> to vector<1x32xf32>
    %32 = arith.negf %31 : vector<1x32xf32>
    %33 = math.exp %32 : vector<1x32xf32>
    %cst_18 = arith.constant 1.000000e+00 : f32
    %34 = vector.broadcast %cst_18 : f32 to vector<1x32xf32>
    %35 = arith.addf %34, %33 : vector<1x32xf32>
    %36 = arith.divf %34, %35 : vector<1x32xf32>
    %37 = arith.mulf %31, %36 : vector<1x32xf32>
    %c0_19 = arith.constant 0 : index
    %c0_20 = arith.constant 0 : index
    %38 = vector.load %arg10[%c0_19, %c0_20] : memref<32x16xf32, #tpu.memory_space<vmem>>, vector<32x16xf32>
    %cst_21 = arith.constant dense<0.000000e+00> : vector<1x16xf32>
    %39 = tpu.matmul %37, %38, %cst_21 {dimension_numbers = #tpu.dot_dimension_numbers<[1], [0], [0], [1], [0, 0, 1, 1], [], []>} : vector<1x32xf32>, vector<32x16xf32>, vector<1x16xf32> -> vector<1x16xf32>
    %c0_22 = arith.constant 0 : index
    %c0_23 = arith.constant 0 : index
    %40 = vector.load %arg11[%c0_22, %c0_23] : memref<1x16xf32, #tpu.memory_space<vmem>>, vector<1x16xf32>
    %41 = arith.addf %39, %40 : vector<1x16xf32>
    %c9_i32 = arith.constant 9 : i32
    %42 = tpu.dynamic_rotate %29 by %c9_i32 dim 0 : vector<64x8xf32>, i32 -> vector<64x8xf32>
    %c0_24 = arith.constant 0 : index
    %c0_25 = arith.constant 0 : index
    %c0_26 = arith.constant 0 : index
    %43 = vector.load %arg3[%c0_24, %c0_25, %c0_26] : memref<9x64x1xf32, #tpu.memory_space<vmem>>, vector<1x64x1xf32>
    %44 = vector.shape_cast %43 : vector<1x64x1xf32> to vector<64x1xf32>
    %45 = vector.broadcast %44 : vector<64x1xf32> to vector<64x8xf32>
    %46 = arith.mulf %42, %45 : vector<64x8xf32>
    %47 = arith.truncf %46 : vector<64x8xf32> to vector<64x8xbf16>
    %c0_27 = arith.constant 0 : index
    %c0_28 = arith.constant 0 : index
    %c0_29 = arith.constant 0 : index
    %48 = vector.load %arg8[%c0_27, %c0_28, %c0_29] : memref<9x8x16xbf16, #tpu.memory_space<vmem>>, vector<1x8x16xbf16>
    %49 = vector.shape_cast %48 : vector<1x8x16xbf16> to vector<8x16xbf16>
    %cst_30 = arith.constant dense<0.000000e+00> : vector<64x16xf32>
    %50 = tpu.matmul %47, %49, %cst_30 {dimension_numbers = #tpu.dot_dimension_numbers<[1], [0], [0], [1], [0, 0, 1, 1], [], []>} : vector<64x8xbf16>, vector<8x16xbf16>, vector<64x16xf32> -> vector<64x16xf32>
    %c8_i32 = arith.constant 8 : i32
    %51 = tpu.dynamic_rotate %29 by %c8_i32 dim 0 : vector<64x8xf32>, i32 -> vector<64x8xf32>
    %c1 = arith.constant 1 : index
    %c0_31 = arith.constant 0 : index
    %c0_32 = arith.constant 0 : index
    %52 = vector.load %arg3[%c1, %c0_31, %c0_32] : memref<9x64x1xf32, #tpu.memory_space<vmem>>, vector<1x64x1xf32>
    %53 = vector.shape_cast %52 : vector<1x64x1xf32> to vector<64x1xf32>
    %54 = vector.broadcast %53 : vector<64x1xf32> to vector<64x8xf32>
    %55 = arith.mulf %51, %54 : vector<64x8xf32>
    %56 = arith.truncf %55 : vector<64x8xf32> to vector<64x8xbf16>
    %c1_33 = arith.constant 1 : index
    %c0_34 = arith.constant 0 : index
    %c0_35 = arith.constant 0 : index
    %57 = vector.load %arg8[%c1_33, %c0_34, %c0_35] : memref<9x8x16xbf16, #tpu.memory_space<vmem>>, vector<1x8x16xbf16>
    %58 = vector.shape_cast %57 : vector<1x8x16xbf16> to vector<8x16xbf16>
    %cst_36 = arith.constant dense<0.000000e+00> : vector<64x16xf32>
    %59 = tpu.matmul %56, %58, %cst_36 {dimension_numbers = #tpu.dot_dimension_numbers<[1], [0], [0], [1], [0, 0, 1, 1], [], []>} : vector<64x8xbf16>, vector<8x16xbf16>, vector<64x16xf32> -> vector<64x16xf32>
    %60 = arith.addf %50, %59 : vector<64x16xf32>
    %c7_i32 = arith.constant 7 : i32
    %61 = tpu.dynamic_rotate %29 by %c7_i32 dim 0 : vector<64x8xf32>, i32 -> vector<64x8xf32>
    %c2 = arith.constant 2 : index
    %c0_37 = arith.constant 0 : index
    %c0_38 = arith.constant 0 : index
    %62 = vector.load %arg3[%c2, %c0_37, %c0_38] : memref<9x64x1xf32, #tpu.memory_space<vmem>>, vector<1x64x1xf32>
    %63 = vector.shape_cast %62 : vector<1x64x1xf32> to vector<64x1xf32>
    %64 = vector.broadcast %63 : vector<64x1xf32> to vector<64x8xf32>
    %65 = arith.mulf %61, %64 : vector<64x8xf32>
    %66 = arith.truncf %65 : vector<64x8xf32> to vector<64x8xbf16>
    %c2_39 = arith.constant 2 : index
    %c0_40 = arith.constant 0 : index
    %c0_41 = arith.constant 0 : index
    %67 = vector.load %arg8[%c2_39, %c0_40, %c0_41] : memref<9x8x16xbf16, #tpu.memory_space<vmem>>, vector<1x8x16xbf16>
    %68 = vector.shape_cast %67 : vector<1x8x16xbf16> to vector<8x16xbf16>
    %cst_42 = arith.constant dense<0.000000e+00> : vector<64x16xf32>
    %69 = tpu.matmul %66, %68, %cst_42 {dimension_numbers = #tpu.dot_dimension_numbers<[1], [0], [0], [1], [0, 0, 1, 1], [], []>} : vector<64x8xbf16>, vector<8x16xbf16>, vector<64x16xf32> -> vector<64x16xf32>
    %70 = arith.addf %60, %69 : vector<64x16xf32>
    %c1_i32 = arith.constant 1 : i32
    %71 = tpu.dynamic_rotate %29 by %c1_i32 dim 0 : vector<64x8xf32>, i32 -> vector<64x8xf32>
    %c3 = arith.constant 3 : index
    %c0_43 = arith.constant 0 : index
    %c0_44 = arith.constant 0 : index
    %72 = vector.load %arg3[%c3, %c0_43, %c0_44] : memref<9x64x1xf32, #tpu.memory_space<vmem>>, vector<1x64x1xf32>
    %73 = vector.shape_cast %72 : vector<1x64x1xf32> to vector<64x1xf32>
    %74 = vector.broadcast %73 : vector<64x1xf32> to vector<64x8xf32>
    %75 = arith.mulf %71, %74 : vector<64x8xf32>
    %76 = arith.truncf %75 : vector<64x8xf32> to vector<64x8xbf16>
    %c3_45 = arith.constant 3 : index
    %c0_46 = arith.constant 0 : index
    %c0_47 = arith.constant 0 : index
    %77 = vector.load %arg8[%c3_45, %c0_46, %c0_47] : memref<9x8x16xbf16, #tpu.memory_space<vmem>>, vector<1x8x16xbf16>
    %78 = vector.shape_cast %77 : vector<1x8x16xbf16> to vector<8x16xbf16>
    %cst_48 = arith.constant dense<0.000000e+00> : vector<64x16xf32>
    %79 = tpu.matmul %76, %78, %cst_48 {dimension_numbers = #tpu.dot_dimension_numbers<[1], [0], [0], [1], [0, 0, 1, 1], [], []>} : vector<64x8xbf16>, vector<8x16xbf16>, vector<64x16xf32> -> vector<64x16xf32>
    %80 = arith.addf %70, %79 : vector<64x16xf32>
    %81 = arith.truncf %29 : vector<64x8xf32> to vector<64x8xbf16>
    %c4 = arith.constant 4 : index
    %c0_49 = arith.constant 0 : index
    %c0_50 = arith.constant 0 : index
    %82 = vector.load %arg8[%c4, %c0_49, %c0_50] : memref<9x8x16xbf16, #tpu.memory_space<vmem>>, vector<1x8x16xbf16>
    %83 = vector.shape_cast %82 : vector<1x8x16xbf16> to vector<8x16xbf16>
    %cst_51 = arith.constant dense<0.000000e+00> : vector<64x16xf32>
    %84 = tpu.matmul %81, %83, %cst_51 {dimension_numbers = #tpu.dot_dimension_numbers<[1], [0], [0], [1], [0, 0, 1, 1], [], []>} : vector<64x8xbf16>, vector<8x16xbf16>, vector<64x16xf32> -> vector<64x16xf32>
    %85 = arith.addf %80, %84 : vector<64x16xf32>
    %c63_i32 = arith.constant 63 : i32
    %86 = tpu.dynamic_rotate %29 by %c63_i32 dim 0 : vector<64x8xf32>, i32 -> vector<64x8xf32>
    %c5 = arith.constant 5 : index
    %c0_52 = arith.constant 0 : index
    %c0_53 = arith.constant 0 : index
    %87 = vector.load %arg3[%c5, %c0_52, %c0_53] : memref<9x64x1xf32, #tpu.memory_space<vmem>>, vector<1x64x1xf32>
    %88 = vector.shape_cast %87 : vector<1x64x1xf32> to vector<64x1xf32>
    %89 = vector.broadcast %88 : vector<64x1xf32> to vector<64x8xf32>
    %90 = arith.mulf %86, %89 : vector<64x8xf32>
    %91 = arith.truncf %90 : vector<64x8xf32> to vector<64x8xbf16>
    %c5_54 = arith.constant 5 : index
    %c0_55 = arith.constant 0 : index
    %c0_56 = arith.constant 0 : index
    %92 = vector.load %arg8[%c5_54, %c0_55, %c0_56] : memref<9x8x16xbf16, #tpu.memory_space<vmem>>, vector<1x8x16xbf16>
    %93 = vector.shape_cast %92 : vector<1x8x16xbf16> to vector<8x16xbf16>
    %cst_57 = arith.constant dense<0.000000e+00> : vector<64x16xf32>
    %94 = tpu.matmul %91, %93, %cst_57 {dimension_numbers = #tpu.dot_dimension_numbers<[1], [0], [0], [1], [0, 0, 1, 1], [], []>} : vector<64x8xbf16>, vector<8x16xbf16>, vector<64x16xf32> -> vector<64x16xf32>
    %95 = arith.addf %85, %94 : vector<64x16xf32>
    %c57_i32 = arith.constant 57 : i32
    %96 = tpu.dynamic_rotate %29 by %c57_i32 dim 0 : vector<64x8xf32>, i32 -> vector<64x8xf32>
    %c6 = arith.constant 6 : index
    %c0_58 = arith.constant 0 : index
    %c0_59 = arith.constant 0 : index
    %97 = vector.load %arg3[%c6, %c0_58, %c0_59] : memref<9x64x1xf32, #tpu.memory_space<vmem>>, vector<1x64x1xf32>
    %98 = vector.shape_cast %97 : vector<1x64x1xf32> to vector<64x1xf32>
    %99 = vector.broadcast %98 : vector<64x1xf32> to vector<64x8xf32>
    %100 = arith.mulf %96, %99 : vector<64x8xf32>
    %101 = arith.truncf %100 : vector<64x8xf32> to vector<64x8xbf16>
    %c6_60 = arith.constant 6 : index
    %c0_61 = arith.constant 0 : index
    %c0_62 = arith.constant 0 : index
    %102 = vector.load %arg8[%c6_60, %c0_61, %c0_62] : memref<9x8x16xbf16, #tpu.memory_space<vmem>>, vector<1x8x16xbf16>
    %103 = vector.shape_cast %102 : vector<1x8x16xbf16> to vector<8x16xbf16>
    %cst_63 = arith.constant dense<0.000000e+00> : vector<64x16xf32>
    %104 = tpu.matmul %101, %103, %cst_63 {dimension_numbers = #tpu.dot_dimension_numbers<[1], [0], [0], [1], [0, 0, 1, 1], [], []>} : vector<64x8xbf16>, vector<8x16xbf16>, vector<64x16xf32> -> vector<64x16xf32>
    %105 = arith.addf %95, %104 : vector<64x16xf32>
    %c56_i32 = arith.constant 56 : i32
    %106 = tpu.dynamic_rotate %29 by %c56_i32 dim 0 : vector<64x8xf32>, i32 -> vector<64x8xf32>
    %c7 = arith.constant 7 : index
    %c0_64 = arith.constant 0 : index
    %c0_65 = arith.constant 0 : index
    %107 = vector.load %arg3[%c7, %c0_64, %c0_65] : memref<9x64x1xf32, #tpu.memory_space<vmem>>, vector<1x64x1xf32>
    %108 = vector.shape_cast %107 : vector<1x64x1xf32> to vector<64x1xf32>
    %109 = vector.broadcast %108 : vector<64x1xf32> to vector<64x8xf32>
    %110 = arith.mulf %106, %109 : vector<64x8xf32>
    %111 = arith.truncf %110 : vector<64x8xf32> to vector<64x8xbf16>
    %c7_66 = arith.constant 7 : index
    %c0_67 = arith.constant 0 : index
    %c0_68 = arith.constant 0 : index
    %112 = vector.load %arg8[%c7_66, %c0_67, %c0_68] : memref<9x8x16xbf16, #tpu.memory_space<vmem>>, vector<1x8x16xbf16>
    %113 = vector.shape_cast %112 : vector<1x8x16xbf16> to vector<8x16xbf16>
    %cst_69 = arith.constant dense<0.000000e+00> : vector<64x16xf32>
    %114 = tpu.matmul %111, %113, %cst_69 {dimension_numbers = #tpu.dot_dimension_numbers<[1], [0], [0], [1], [0, 0, 1, 1], [], []>} : vector<64x8xbf16>, vector<8x16xbf16>, vector<64x16xf32> -> vector<64x16xf32>
    %115 = arith.addf %105, %114 : vector<64x16xf32>
    %c55_i32 = arith.constant 55 : i32
    %116 = tpu.dynamic_rotate %29 by %c55_i32 dim 0 : vector<64x8xf32>, i32 -> vector<64x8xf32>
    %c8 = arith.constant 8 : index
    %c0_70 = arith.constant 0 : index
    %c0_71 = arith.constant 0 : index
    %117 = vector.load %arg3[%c8, %c0_70, %c0_71] : memref<9x64x1xf32, #tpu.memory_space<vmem>>, vector<1x64x1xf32>
    %118 = vector.shape_cast %117 : vector<1x64x1xf32> to vector<64x1xf32>
    %119 = vector.broadcast %118 : vector<64x1xf32> to vector<64x8xf32>
    %120 = arith.mulf %116, %119 : vector<64x8xf32>
    %121 = arith.truncf %120 : vector<64x8xf32> to vector<64x8xbf16>
    %c8_72 = arith.constant 8 : index
    %c0_73 = arith.constant 0 : index
    %c0_74 = arith.constant 0 : index
    %122 = vector.load %arg8[%c8_72, %c0_73, %c0_74] : memref<9x8x16xbf16, #tpu.memory_space<vmem>>, vector<1x8x16xbf16>
    %123 = vector.shape_cast %122 : vector<1x8x16xbf16> to vector<8x16xbf16>
    %cst_75 = arith.constant dense<0.000000e+00> : vector<64x16xf32>
    %124 = tpu.matmul %121, %123, %cst_75 {dimension_numbers = #tpu.dot_dimension_numbers<[1], [0], [0], [1], [0, 0, 1, 1], [], []>} : vector<64x8xbf16>, vector<8x16xbf16>, vector<64x16xf32> -> vector<64x16xf32>
    %125 = arith.addf %115, %124 : vector<64x16xf32>
    %c0_76 = arith.constant 0 : index
    %c0_77 = arith.constant 0 : index
    %126 = vector.load %arg9[%c0_76, %c0_77] : memref<1x16xf32, #tpu.memory_space<vmem>>, vector<1x16xf32>
    %127 = vector.broadcast %126 : vector<1x16xf32> to vector<64x16xf32>
    %128 = arith.addf %125, %127 : vector<64x16xf32>
    %129 = vector.broadcast %41 : vector<1x16xf32> to vector<64x16xf32>
    %130 = arith.addf %128, %129 : vector<64x16xf32>
    %c0_78 = arith.constant 0 : index
    %c0_79 = arith.constant 0 : index
    %131 = vector.load %arg12[%c0_78, %c0_79] : memref<1x16xf32, #tpu.memory_space<vmem>>, vector<1x16xf32>
    %c0_80 = arith.constant 0 : index
    %c0_81 = arith.constant 0 : index
    %132 = vector.load %arg13[%c0_80, %c0_81] : memref<1x16xf32, #tpu.memory_space<vmem>>, vector<1x16xf32>
    %cst_82 = arith.constant dense<0.000000e+00> : vector<16xf32>
    %133 = vector.multi_reduction <add>, %130, %cst_82 [0] : vector<64x16xf32> to vector<16xf32>
    %134 = vector.shape_cast %133 : vector<16xf32> to vector<1x16xf32>
    %cst_83 = arith.constant dense<0.000000e+00> : vector<1x16xf32>
    %135 = tpu.matmul %134, %3, %cst_83 {dimension_numbers = #tpu.dot_dimension_numbers<[1], [0], [0], [1], [0, 0, 1, 1], [], []>} : vector<1x16xf32>, vector<16x16xf32>, vector<1x16xf32> -> vector<1x16xf32>
    %136 = vector.broadcast %135 : vector<1x16xf32> to vector<64x16xf32>
    %137 = arith.subf %130, %136 : vector<64x16xf32>
    %138 = arith.mulf %137, %137 : vector<64x16xf32>
    %cst_84 = arith.constant dense<0.000000e+00> : vector<16xf32>
    %139 = vector.multi_reduction <add>, %138, %cst_84 [0] : vector<64x16xf32> to vector<16xf32>
    %140 = vector.shape_cast %139 : vector<16xf32> to vector<1x16xf32>
    %cst_85 = arith.constant dense<0.000000e+00> : vector<1x16xf32>
    %141 = tpu.matmul %140, %3, %cst_85 {dimension_numbers = #tpu.dot_dimension_numbers<[1], [0], [0], [1], [0, 0, 1, 1], [], []>} : vector<1x16xf32>, vector<16x16xf32>, vector<1x16xf32> -> vector<1x16xf32>
    %cst_86 = arith.constant 9.99999974E-6 : f32
    %142 = vector.broadcast %cst_86 : f32 to vector<1x16xf32>
    %143 = arith.addf %141, %142 : vector<1x16xf32>
    %144 = math.rsqrt %143 : vector<1x16xf32>
    %145 = vector.broadcast %144 : vector<1x16xf32> to vector<64x16xf32>
    %146 = arith.mulf %137, %145 : vector<64x16xf32>
    %147 = vector.broadcast %131 : vector<1x16xf32> to vector<64x16xf32>
    %148 = arith.mulf %146, %147 : vector<64x16xf32>
    %149 = vector.broadcast %132 : vector<1x16xf32> to vector<64x16xf32>
    %150 = arith.addf %148, %149 : vector<64x16xf32>
    %151 = arith.negf %150 : vector<64x16xf32>
    %152 = math.exp %151 : vector<64x16xf32>
    %cst_87 = arith.constant 1.000000e+00 : f32
    %153 = vector.broadcast %cst_87 : f32 to vector<64x16xf32>
    %154 = arith.addf %153, %152 : vector<64x16xf32>
    %155 = arith.divf %153, %154 : vector<64x16xf32>
    %156 = arith.mulf %150, %155 : vector<64x16xf32>
    %c9_i32_88 = arith.constant 9 : i32
    %157 = tpu.dynamic_rotate %156 by %c9_i32_88 dim 0 : vector<64x16xf32>, i32 -> vector<64x16xf32>
    %c0_89 = arith.constant 0 : index
    %c0_90 = arith.constant 0 : index
    %c0_91 = arith.constant 0 : index
    %158 = vector.load %arg3[%c0_89, %c0_90, %c0_91] : memref<9x64x1xf32, #tpu.memory_space<vmem>>, vector<1x64x1xf32>
    %159 = vector.shape_cast %158 : vector<1x64x1xf32> to vector<64x1xf32>
    %160 = vector.broadcast %159 : vector<64x1xf32> to vector<64x16xf32>
    %161 = arith.mulf %157, %160 : vector<64x16xf32>
    %162 = arith.truncf %161 : vector<64x16xf32> to vector<64x16xbf16>
    %c0_92 = arith.constant 0 : index
    %c0_93 = arith.constant 0 : index
    %c0_94 = arith.constant 0 : index
    %163 = vector.load %arg14[%c0_92, %c0_93, %c0_94] : memref<9x16x16xbf16, #tpu.memory_space<vmem>>, vector<1x16x16xbf16>
    %164 = vector.shape_cast %163 : vector<1x16x16xbf16> to vector<16x16xbf16>
    %cst_95 = arith.constant dense<0.000000e+00> : vector<64x16xf32>
    %165 = tpu.matmul %162, %164, %cst_95 {dimension_numbers = #tpu.dot_dimension_numbers<[1], [0], [0], [1], [0, 0, 1, 1], [], []>} : vector<64x16xbf16>, vector<16x16xbf16>, vector<64x16xf32> -> vector<64x16xf32>
    %c8_i32_96 = arith.constant 8 : i32
    %166 = tpu.dynamic_rotate %156 by %c8_i32_96 dim 0 : vector<64x16xf32>, i32 -> vector<64x16xf32>
    %c1_97 = arith.constant 1 : index
    %c0_98 = arith.constant 0 : index
    %c0_99 = arith.constant 0 : index
    %167 = vector.load %arg3[%c1_97, %c0_98, %c0_99] : memref<9x64x1xf32, #tpu.memory_space<vmem>>, vector<1x64x1xf32>
    %168 = vector.shape_cast %167 : vector<1x64x1xf32> to vector<64x1xf32>
    %169 = vector.broadcast %168 : vector<64x1xf32> to vector<64x16xf32>
    %170 = arith.mulf %166, %169 : vector<64x16xf32>
    %171 = arith.truncf %170 : vector<64x16xf32> to vector<64x16xbf16>
    %c1_100 = arith.constant 1 : index
    %c0_101 = arith.constant 0 : index
    %c0_102 = arith.constant 0 : index
    %172 = vector.load %arg14[%c1_100, %c0_101, %c0_102] : memref<9x16x16xbf16, #tpu.memory_space<vmem>>, vector<1x16x16xbf16>
    %173 = vector.shape_cast %172 : vector<1x16x16xbf16> to vector<16x16xbf16>
    %cst_103 = arith.constant dense<0.000000e+00> : vector<64x16xf32>
    %174 = tpu.matmul %171, %173, %cst_103 {dimension_numbers = #tpu.dot_dimension_numbers<[1], [0], [0], [1], [0, 0, 1, 1], [], []>} : vector<64x16xbf16>, vector<16x16xbf16>, vector<64x16xf32> -> vector<64x16xf32>
    %175 = arith.addf %165, %174 : vector<64x16xf32>
    %c7_i32_104 = arith.constant 7 : i32
    %176 = tpu.dynamic_rotate %156 by %c7_i32_104 dim 0 : vector<64x16xf32>, i32 -> vector<64x16xf32>
    %c2_105 = arith.constant 2 : index
    %c0_106 = arith.constant 0 : index
    %c0_107 = arith.constant 0 : index
    %177 = vector.load %arg3[%c2_105, %c0_106, %c0_107] : memref<9x64x1xf32, #tpu.memory_space<vmem>>, vector<1x64x1xf32>
    %178 = vector.shape_cast %177 : vector<1x64x1xf32> to vector<64x1xf32>
    %179 = vector.broadcast %178 : vector<64x1xf32> to vector<64x16xf32>
    %180 = arith.mulf %176, %179 : vector<64x16xf32>
    %181 = arith.truncf %180 : vector<64x16xf32> to vector<64x16xbf16>
    %c2_108 = arith.constant 2 : index
    %c0_109 = arith.constant 0 : index
    %c0_110 = arith.constant 0 : index
    %182 = vector.load %arg14[%c2_108, %c0_109, %c0_110] : memref<9x16x16xbf16, #tpu.memory_space<vmem>>, vector<1x16x16xbf16>
    %183 = vector.shape_cast %182 : vector<1x16x16xbf16> to vector<16x16xbf16>
    %cst_111 = arith.constant dense<0.000000e+00> : vector<64x16xf32>
    %184 = tpu.matmul %181, %183, %cst_111 {dimension_numbers = #tpu.dot_dimension_numbers<[1], [0], [0], [1], [0, 0, 1, 1], [], []>} : vector<64x16xbf16>, vector<16x16xbf16>, vector<64x16xf32> -> vector<64x16xf32>
    %185 = arith.addf %175, %184 : vector<64x16xf32>
    %c1_i32_112 = arith.constant 1 : i32
    %186 = tpu.dynamic_rotate %156 by %c1_i32_112 dim 0 : vector<64x16xf32>, i32 -> vector<64x16xf32>
    %c3_113 = arith.constant 3 : index
    %c0_114 = arith.constant 0 : index
    %c0_115 = arith.constant 0 : index
    %187 = vector.load %arg3[%c3_113, %c0_114, %c0_115] : memref<9x64x1xf32, #tpu.memory_space<vmem>>, vector<1x64x1xf32>
    %188 = vector.shape_cast %187 : vector<1x64x1xf32> to vector<64x1xf32>
    %189 = vector.broadcast %188 : vector<64x1xf32> to vector<64x16xf32>
    %190 = arith.mulf %186, %189 : vector<64x16xf32>
    %191 = arith.truncf %190 : vector<64x16xf32> to vector<64x16xbf16>
    %c3_116 = arith.constant 3 : index
    %c0_117 = arith.constant 0 : index
    %c0_118 = arith.constant 0 : index
    %192 = vector.load %arg14[%c3_116, %c0_117, %c0_118] : memref<9x16x16xbf16, #tpu.memory_space<vmem>>, vector<1x16x16xbf16>
    %193 = vector.shape_cast %192 : vector<1x16x16xbf16> to vector<16x16xbf16>
    %cst_119 = arith.constant dense<0.000000e+00> : vector<64x16xf32>
    %194 = tpu.matmul %191, %193, %cst_119 {dimension_numbers = #tpu.dot_dimension_numbers<[1], [0], [0], [1], [0, 0, 1, 1], [], []>} : vector<64x16xbf16>, vector<16x16xbf16>, vector<64x16xf32> -> vector<64x16xf32>
    %195 = arith.addf %185, %194 : vector<64x16xf32>
    %196 = arith.truncf %156 : vector<64x16xf32> to vector<64x16xbf16>
    %c4_120 = arith.constant 4 : index
    %c0_121 = arith.constant 0 : index
    %c0_122 = arith.constant 0 : index
    %197 = vector.load %arg14[%c4_120, %c0_121, %c0_122] : memref<9x16x16xbf16, #tpu.memory_space<vmem>>, vector<1x16x16xbf16>
    %198 = vector.shape_cast %197 : vector<1x16x16xbf16> to vector<16x16xbf16>
    %cst_123 = arith.constant dense<0.000000e+00> : vector<64x16xf32>
    %199 = tpu.matmul %196, %198, %cst_123 {dimension_numbers = #tpu.dot_dimension_numbers<[1], [0], [0], [1], [0, 0, 1, 1], [], []>} : vector<64x16xbf16>, vector<16x16xbf16>, vector<64x16xf32> -> vector<64x16xf32>
    %200 = arith.addf %195, %199 : vector<64x16xf32>
    %c63_i32_124 = arith.constant 63 : i32
    %201 = tpu.dynamic_rotate %156 by %c63_i32_124 dim 0 : vector<64x16xf32>, i32 -> vector<64x16xf32>
    %c5_125 = arith.constant 5 : index
    %c0_126 = arith.constant 0 : index
    %c0_127 = arith.constant 0 : index
    %202 = vector.load %arg3[%c5_125, %c0_126, %c0_127] : memref<9x64x1xf32, #tpu.memory_space<vmem>>, vector<1x64x1xf32>
    %203 = vector.shape_cast %202 : vector<1x64x1xf32> to vector<64x1xf32>
    %204 = vector.broadcast %203 : vector<64x1xf32> to vector<64x16xf32>
    %205 = arith.mulf %201, %204 : vector<64x16xf32>
    %206 = arith.truncf %205 : vector<64x16xf32> to vector<64x16xbf16>
    %c5_128 = arith.constant 5 : index
    %c0_129 = arith.constant 0 : index
    %c0_130 = arith.constant 0 : index
    %207 = vector.load %arg14[%c5_128, %c0_129, %c0_130] : memref<9x16x16xbf16, #tpu.memory_space<vmem>>, vector<1x16x16xbf16>
    %208 = vector.shape_cast %207 : vector<1x16x16xbf16> to vector<16x16xbf16>
    %cst_131 = arith.constant dense<0.000000e+00> : vector<64x16xf32>
    %209 = tpu.matmul %206, %208, %cst_131 {dimension_numbers = #tpu.dot_dimension_numbers<[1], [0], [0], [1], [0, 0, 1, 1], [], []>} : vector<64x16xbf16>, vector<16x16xbf16>, vector<64x16xf32> -> vector<64x16xf32>
    %210 = arith.addf %200, %209 : vector<64x16xf32>
    %c57_i32_132 = arith.constant 57 : i32
    %211 = tpu.dynamic_rotate %156 by %c57_i32_132 dim 0 : vector<64x16xf32>, i32 -> vector<64x16xf32>
    %c6_133 = arith.constant 6 : index
    %c0_134 = arith.constant 0 : index
    %c0_135 = arith.constant 0 : index
    %212 = vector.load %arg3[%c6_133, %c0_134, %c0_135] : memref<9x64x1xf32, #tpu.memory_space<vmem>>, vector<1x64x1xf32>
    %213 = vector.shape_cast %212 : vector<1x64x1xf32> to vector<64x1xf32>
    %214 = vector.broadcast %213 : vector<64x1xf32> to vector<64x16xf32>
    %215 = arith.mulf %211, %214 : vector<64x16xf32>
    %216 = arith.truncf %215 : vector<64x16xf32> to vector<64x16xbf16>
    %c6_136 = arith.constant 6 : index
    %c0_137 = arith.constant 0 : index
    %c0_138 = arith.constant 0 : index
    %217 = vector.load %arg14[%c6_136, %c0_137, %c0_138] : memref<9x16x16xbf16, #tpu.memory_space<vmem>>, vector<1x16x16xbf16>
    %218 = vector.shape_cast %217 : vector<1x16x16xbf16> to vector<16x16xbf16>
    %cst_139 = arith.constant dense<0.000000e+00> : vector<64x16xf32>
    %219 = tpu.matmul %216, %218, %cst_139 {dimension_numbers = #tpu.dot_dimension_numbers<[1], [0], [0], [1], [0, 0, 1, 1], [], []>} : vector<64x16xbf16>, vector<16x16xbf16>, vector<64x16xf32> -> vector<64x16xf32>
    %220 = arith.addf %210, %219 : vector<64x16xf32>
    %c56_i32_140 = arith.constant 56 : i32
    %221 = tpu.dynamic_rotate %156 by %c56_i32_140 dim 0 : vector<64x16xf32>, i32 -> vector<64x16xf32>
    %c7_141 = arith.constant 7 : index
    %c0_142 = arith.constant 0 : index
    %c0_143 = arith.constant 0 : index
    %222 = vector.load %arg3[%c7_141, %c0_142, %c0_143] : memref<9x64x1xf32, #tpu.memory_space<vmem>>, vector<1x64x1xf32>
    %223 = vector.shape_cast %222 : vector<1x64x1xf32> to vector<64x1xf32>
    %224 = vector.broadcast %223 : vector<64x1xf32> to vector<64x16xf32>
    %225 = arith.mulf %221, %224 : vector<64x16xf32>
    %226 = arith.truncf %225 : vector<64x16xf32> to vector<64x16xbf16>
    %c7_144 = arith.constant 7 : index
    %c0_145 = arith.constant 0 : index
    %c0_146 = arith.constant 0 : index
    %227 = vector.load %arg14[%c7_144, %c0_145, %c0_146] : memref<9x16x16xbf16, #tpu.memory_space<vmem>>, vector<1x16x16xbf16>
    %228 = vector.shape_cast %227 : vector<1x16x16xbf16> to vector<16x16xbf16>
    %cst_147 = arith.constant dense<0.000000e+00> : vector<64x16xf32>
    %229 = tpu.matmul %226, %228, %cst_147 {dimension_numbers = #tpu.dot_dimension_numbers<[1], [0], [0], [1], [0, 0, 1, 1], [], []>} : vector<64x16xbf16>, vector<16x16xbf16>, vector<64x16xf32> -> vector<64x16xf32>
    %230 = arith.addf %220, %229 : vector<64x16xf32>
    %c55_i32_148 = arith.constant 55 : i32
    %231 = tpu.dynamic_rotate %156 by %c55_i32_148 dim 0 : vector<64x16xf32>, i32 -> vector<64x16xf32>
    %c8_149 = arith.constant 8 : index
    %c0_150 = arith.constant 0 : index
    %c0_151 = arith.constant 0 : index
    %232 = vector.load %arg3[%c8_149, %c0_150, %c0_151] : memref<9x64x1xf32, #tpu.memory_space<vmem>>, vector<1x64x1xf32>
    %233 = vector.shape_cast %232 : vector<1x64x1xf32> to vector<64x1xf32>
    %234 = vector.broadcast %233 : vector<64x1xf32> to vector<64x16xf32>
    %235 = arith.mulf %231, %234 : vector<64x16xf32>
    %236 = arith.truncf %235 : vector<64x16xf32> to vector<64x16xbf16>
    %c8_152 = arith.constant 8 : index
    %c0_153 = arith.constant 0 : index
    %c0_154 = arith.constant 0 : index
    %237 = vector.load %arg14[%c8_152, %c0_153, %c0_154] : memref<9x16x16xbf16, #tpu.memory_space<vmem>>, vector<1x16x16xbf16>
    %238 = vector.shape_cast %237 : vector<1x16x16xbf16> to vector<16x16xbf16>
    %cst_155 = arith.constant dense<0.000000e+00> : vector<64x16xf32>
    %239 = tpu.matmul %236, %238, %cst_155 {dimension_numbers = #tpu.dot_dimension_numbers<[1], [0], [0], [1], [0, 0, 1, 1], [], []>} : vector<64x16xbf16>, vector<16x16xbf16>, vector<64x16xf32> -> vector<64x16xf32>
    %240 = arith.addf %230, %239 : vector<64x16xf32>
    %c0_156 = arith.constant 0 : index
    %c0_157 = arith.constant 0 : index
    %241 = vector.load %arg15[%c0_156, %c0_157] : memref<1x16xf32, #tpu.memory_space<vmem>>, vector<1x16xf32>
    %242 = vector.broadcast %241 : vector<1x16xf32> to vector<64x16xf32>
    %243 = arith.addf %240, %242 : vector<64x16xf32>
    %244 = arith.truncf %1 : vector<64x8xf32> to vector<64x8xbf16>
    %c0_158 = arith.constant 0 : index
    %c0_159 = arith.constant 0 : index
    %245 = vector.load %arg16[%c0_158, %c0_159] : memref<8x16xbf16, #tpu.memory_space<vmem>>, vector<8x16xbf16>
    %cst_160 = arith.constant dense<0.000000e+00> : vector<64x16xf32>
    %246 = tpu.matmul %244, %245, %cst_160 {dimension_numbers = #tpu.dot_dimension_numbers<[1], [0], [0], [1], [0, 0, 1, 1], [], []>} : vector<64x8xbf16>, vector<8x16xbf16>, vector<64x16xf32> -> vector<64x16xf32>
    %c0_161 = arith.constant 0 : index
    %c0_162 = arith.constant 0 : index
    %247 = vector.load %arg17[%c0_161, %c0_162] : memref<1x16xf32, #tpu.memory_space<vmem>>, vector<1x16xf32>
    %248 = vector.broadcast %247 : vector<1x16xf32> to vector<64x16xf32>
    %249 = arith.addf %246, %248 : vector<64x16xf32>
    %250 = arith.addf %243, %249 : vector<64x16xf32>
    %c0_163 = arith.constant 0 : index
    %c0_164 = arith.constant 0 : index
    %251 = vector.load %arg18[%c0_163, %c0_164] : memref<1x16xf32, #tpu.memory_space<vmem>>, vector<1x16xf32>
    %c0_165 = arith.constant 0 : index
    %c0_166 = arith.constant 0 : index
    %252 = vector.load %arg19[%c0_165, %c0_166] : memref<1x16xf32, #tpu.memory_space<vmem>>, vector<1x16xf32>
    %cst_167 = arith.constant dense<0.000000e+00> : vector<16xf32>
    %253 = vector.multi_reduction <add>, %250, %cst_167 [0] : vector<64x16xf32> to vector<16xf32>
    %254 = vector.shape_cast %253 : vector<16xf32> to vector<1x16xf32>
    %cst_168 = arith.constant dense<0.000000e+00> : vector<1x16xf32>
    %255 = tpu.matmul %254, %3, %cst_168 {dimension_numbers = #tpu.dot_dimension_numbers<[1], [0], [0], [1], [0, 0, 1, 1], [], []>} : vector<1x16xf32>, vector<16x16xf32>, vector<1x16xf32> -> vector<1x16xf32>
    %256 = vector.broadcast %255 : vector<1x16xf32> to vector<64x16xf32>
    %257 = arith.subf %250, %256 : vector<64x16xf32>
    %258 = arith.mulf %257, %257 : vector<64x16xf32>
    %cst_169 = arith.constant dense<0.000000e+00> : vector<16xf32>
    %259 = vector.multi_reduction <add>, %258, %cst_169 [0] : vector<64x16xf32> to vector<16xf32>
    %260 = vector.shape_cast %259 : vector<16xf32> to vector<1x16xf32>
    %cst_170 = arith.constant dense<0.000000e+00> : vector<1x16xf32>
    %261 = tpu.matmul %260, %3, %cst_170 {dimension_numbers = #tpu.dot_dimension_numbers<[1], [0], [0], [1], [0, 0, 1, 1], [], []>} : vector<1x16xf32>, vector<16x16xf32>, vector<1x16xf32> -> vector<1x16xf32>
    %cst_171 = arith.constant 9.99999974E-6 : f32
    %262 = vector.broadcast %cst_171 : f32 to vector<1x16xf32>
    %263 = arith.addf %261, %262 : vector<1x16xf32>
    %264 = math.rsqrt %263 : vector<1x16xf32>
    %265 = vector.broadcast %264 : vector<1x16xf32> to vector<64x16xf32>
    %266 = arith.mulf %257, %265 : vector<64x16xf32>
    %267 = vector.broadcast %251 : vector<1x16xf32> to vector<64x16xf32>
    %268 = arith.mulf %266, %267 : vector<64x16xf32>
    %269 = vector.broadcast %252 : vector<1x16xf32> to vector<64x16xf32>
    %270 = arith.addf %268, %269 : vector<64x16xf32>
    %271 = arith.truncf %270 : vector<64x16xf32> to vector<64x16xbf16>
    %c0_172 = arith.constant 0 : index
    %c0_173 = arith.constant 0 : index
    %272 = vector.load %arg20[%c0_172, %c0_173] : memref<16x48xbf16, #tpu.memory_space<vmem>>, vector<16x48xbf16>
    %cst_174 = arith.constant dense<0.000000e+00> : vector<64x48xf32>
    %273 = tpu.matmul %271, %272, %cst_174 {dimension_numbers = #tpu.dot_dimension_numbers<[1], [0], [0], [1], [0, 0, 1, 1], [], []>} : vector<64x16xbf16>, vector<16x48xbf16>, vector<64x48xf32> -> vector<64x48xf32>
    %c0_175 = arith.constant 0 : index
    %c0_176 = arith.constant 0 : index
    %274 = vector.load %arg21[%c0_175, %c0_176] : memref<1x48xf32, #tpu.memory_space<vmem>>, vector<1x48xf32>
    %275 = vector.broadcast %274 : vector<1x48xf32> to vector<64x48xf32>
    %276 = arith.addf %273, %275 : vector<64x48xf32>
    %277 = vector.extract_strided_slice %276 {offsets = [0, 0], sizes = [64, 16], strides = [1, 1]} : vector<64x48xf32> to vector<64x16xf32>
    %278 = vector.extract_strided_slice %276 {offsets = [0, 16], sizes = [64, 16], strides = [1, 1]} : vector<64x48xf32> to vector<64x16xf32>
    %279 = vector.extract_strided_slice %276 {offsets = [0, 32], sizes = [64, 16], strides = [1, 1]} : vector<64x48xf32> to vector<64x16xf32>
    %cst_177 = arith.constant 0.000000e+00 : f32
    %280 = vector.broadcast %cst_177 : f32 to vector<64x16xf32>
    %281 = vector.extract_strided_slice %277 {offsets = [0, 0], sizes = [64, 4], strides = [1, 1]} : vector<64x16xf32> to vector<64x4xf32>
    %282 = arith.truncf %281 : vector<64x4xf32> to vector<64x4xbf16>
    %283 = vector.extract_strided_slice %278 {offsets = [0, 0], sizes = [64, 4], strides = [1, 1]} : vector<64x16xf32> to vector<64x4xf32>
    %284 = arith.truncf %283 : vector<64x4xf32> to vector<64x4xbf16>
    %285 = vector.extract_strided_slice %279 {offsets = [0, 0], sizes = [64, 4], strides = [1, 1]} : vector<64x16xf32> to vector<64x4xf32>
    %286 = arith.truncf %285 : vector<64x4xf32> to vector<64x4xbf16>
    %cst_178 = arith.constant dense<0.000000e+00> : vector<64x64xf32>
    %287 = tpu.matmul %282, %284, %cst_178 {dimension_numbers = #tpu.dot_dimension_numbers<[1], [1], [0], [0], [0, 0, 1, 0], [], []>} : vector<64x4xbf16>, vector<64x4xbf16>, vector<64x64xf32> -> vector<64x64xf32>
    %cst_179 = arith.constant dense<0xFF800000> : vector<64xf32>
    %288 = vector.multi_reduction <maximumf>, %287, %cst_179 [1] : vector<64x64xf32> to vector<64xf32>
    %289 = vector.shape_cast %288 : vector<64xf32> to vector<64x1xf32>
    %290 = vector.broadcast %289 : vector<64x1xf32> to vector<64x64xf32>
    %291 = arith.subf %287, %290 : vector<64x64xf32>
    %292 = math.exp %291 : vector<64x64xf32>
    %cst_180 = arith.constant dense<0.000000e+00> : vector<64xf32>
    %293 = vector.multi_reduction <add>, %292, %cst_180 [1] : vector<64x64xf32> to vector<64xf32>
    %294 = vector.shape_cast %293 : vector<64xf32> to vector<64x1xf32>
    %295 = tpu.reciprocal %294 {approx = true} : vector<64x1xf32> -> vector<64x1xf32>
    %296 = vector.broadcast %295 : vector<64x1xf32> to vector<64x64xf32>
    %297 = arith.mulf %292, %296 : vector<64x64xf32>
    %298 = arith.truncf %297 : vector<64x64xf32> to vector<64x64xbf16>
    %cst_181 = arith.constant dense<0.000000e+00> : vector<64x4xf32>
    %299 = tpu.matmul %298, %286, %cst_181 {dimension_numbers = #tpu.dot_dimension_numbers<[1], [0], [0], [1], [0, 0, 1, 1], [], []>} : vector<64x64xbf16>, vector<64x4xbf16>, vector<64x4xf32> -> vector<64x4xf32>
    %300 = arith.truncf %299 : vector<64x4xf32> to vector<64x4xbf16>
    %c0_182 = arith.constant 0 : index
    %c0_183 = arith.constant 0 : index
    %c0_184 = arith.constant 0 : index
    %301 = vector.load %arg22[%c0_182, %c0_183, %c0_184] : memref<4x4x16xbf16, #tpu.memory_space<vmem>>, vector<1x4x16xbf16>
    %302 = vector.shape_cast %301 : vector<1x4x16xbf16> to vector<4x16xbf16>
    %cst_185 = arith.constant dense<0.000000e+00> : vector<64x16xf32>
    %303 = tpu.matmul %300, %302, %cst_185 {dimension_numbers = #tpu.dot_dimension_numbers<[1], [0], [0], [1], [0, 0, 1, 1], [], []>} : vector<64x4xbf16>, vector<4x16xbf16>, vector<64x16xf32> -> vector<64x16xf32>
    %304 = arith.addf %280, %303 : vector<64x16xf32>
    %305 = vector.extract_strided_slice %277 {offsets = [0, 4], sizes = [64, 4], strides = [1, 1]} : vector<64x16xf32> to vector<64x4xf32>
    %306 = arith.truncf %305 : vector<64x4xf32> to vector<64x4xbf16>
    %307 = vector.extract_strided_slice %278 {offsets = [0, 4], sizes = [64, 4], strides = [1, 1]} : vector<64x16xf32> to vector<64x4xf32>
    %308 = arith.truncf %307 : vector<64x4xf32> to vector<64x4xbf16>
    %309 = vector.extract_strided_slice %279 {offsets = [0, 4], sizes = [64, 4], strides = [1, 1]} : vector<64x16xf32> to vector<64x4xf32>
    %310 = arith.truncf %309 : vector<64x4xf32> to vector<64x4xbf16>
    %cst_186 = arith.constant dense<0.000000e+00> : vector<64x64xf32>
    %311 = tpu.matmul %306, %308, %cst_186 {dimension_numbers = #tpu.dot_dimension_numbers<[1], [1], [0], [0], [0, 0, 1, 0], [], []>} : vector<64x4xbf16>, vector<64x4xbf16>, vector<64x64xf32> -> vector<64x64xf32>
    %cst_187 = arith.constant dense<0xFF800000> : vector<64xf32>
    %312 = vector.multi_reduction <maximumf>, %311, %cst_187 [1] : vector<64x64xf32> to vector<64xf32>
    %313 = vector.shape_cast %312 : vector<64xf32> to vector<64x1xf32>
    %314 = vector.broadcast %313 : vector<64x1xf32> to vector<64x64xf32>
    %315 = arith.subf %311, %314 : vector<64x64xf32>
    %316 = math.exp %315 : vector<64x64xf32>
    %cst_188 = arith.constant dense<0.000000e+00> : vector<64xf32>
    %317 = vector.multi_reduction <add>, %316, %cst_188 [1] : vector<64x64xf32> to vector<64xf32>
    %318 = vector.shape_cast %317 : vector<64xf32> to vector<64x1xf32>
    %319 = tpu.reciprocal %318 {approx = true} : vector<64x1xf32> -> vector<64x1xf32>
    %320 = vector.broadcast %319 : vector<64x1xf32> to vector<64x64xf32>
    %321 = arith.mulf %316, %320 : vector<64x64xf32>
    %322 = arith.truncf %321 : vector<64x64xf32> to vector<64x64xbf16>
    %cst_189 = arith.constant dense<0.000000e+00> : vector<64x4xf32>
    %323 = tpu.matmul %322, %310, %cst_189 {dimension_numbers = #tpu.dot_dimension_numbers<[1], [0], [0], [1], [0, 0, 1, 1], [], []>} : vector<64x64xbf16>, vector<64x4xbf16>, vector<64x4xf32> -> vector<64x4xf32>
    %324 = arith.truncf %323 : vector<64x4xf32> to vector<64x4xbf16>
    %c1_190 = arith.constant 1 : index
    %c0_191 = arith.constant 0 : index
    %c0_192 = arith.constant 0 : index
    %325 = vector.load %arg22[%c1_190, %c0_191, %c0_192] : memref<4x4x16xbf16, #tpu.memory_space<vmem>>, vector<1x4x16xbf16>
    %326 = vector.shape_cast %325 : vector<1x4x16xbf16> to vector<4x16xbf16>
    %cst_193 = arith.constant dense<0.000000e+00> : vector<64x16xf32>
    %327 = tpu.matmul %324, %326, %cst_193 {dimension_numbers = #tpu.dot_dimension_numbers<[1], [0], [0], [1], [0, 0, 1, 1], [], []>} : vector<64x4xbf16>, vector<4x16xbf16>, vector<64x16xf32> -> vector<64x16xf32>
    %328 = arith.addf %304, %327 : vector<64x16xf32>
    %329 = vector.extract_strided_slice %277 {offsets = [0, 8], sizes = [64, 4], strides = [1, 1]} : vector<64x16xf32> to vector<64x4xf32>
    %330 = arith.truncf %329 : vector<64x4xf32> to vector<64x4xbf16>
    %331 = vector.extract_strided_slice %278 {offsets = [0, 8], sizes = [64, 4], strides = [1, 1]} : vector<64x16xf32> to vector<64x4xf32>
    %332 = arith.truncf %331 : vector<64x4xf32> to vector<64x4xbf16>
    %333 = vector.extract_strided_slice %279 {offsets = [0, 8], sizes = [64, 4], strides = [1, 1]} : vector<64x16xf32> to vector<64x4xf32>
    %334 = arith.truncf %333 : vector<64x4xf32> to vector<64x4xbf16>
    %cst_194 = arith.constant dense<0.000000e+00> : vector<64x64xf32>
    %335 = tpu.matmul %330, %332, %cst_194 {dimension_numbers = #tpu.dot_dimension_numbers<[1], [1], [0], [0], [0, 0, 1, 0], [], []>} : vector<64x4xbf16>, vector<64x4xbf16>, vector<64x64xf32> -> vector<64x64xf32>
    %cst_195 = arith.constant dense<0xFF800000> : vector<64xf32>
    %336 = vector.multi_reduction <maximumf>, %335, %cst_195 [1] : vector<64x64xf32> to vector<64xf32>
    %337 = vector.shape_cast %336 : vector<64xf32> to vector<64x1xf32>
    %338 = vector.broadcast %337 : vector<64x1xf32> to vector<64x64xf32>
    %339 = arith.subf %335, %338 : vector<64x64xf32>
    %340 = math.exp %339 : vector<64x64xf32>
    %cst_196 = arith.constant dense<0.000000e+00> : vector<64xf32>
    %341 = vector.multi_reduction <add>, %340, %cst_196 [1] : vector<64x64xf32> to vector<64xf32>
    %342 = vector.shape_cast %341 : vector<64xf32> to vector<64x1xf32>
    %343 = tpu.reciprocal %342 {approx = true} : vector<64x1xf32> -> vector<64x1xf32>
    %344 = vector.broadcast %343 : vector<64x1xf32> to vector<64x64xf32>
    %345 = arith.mulf %340, %344 : vector<64x64xf32>
    %346 = arith.truncf %345 : vector<64x64xf32> to vector<64x64xbf16>
    %cst_197 = arith.constant dense<0.000000e+00> : vector<64x4xf32>
    %347 = tpu.matmul %346, %334, %cst_197 {dimension_numbers = #tpu.dot_dimension_numbers<[1], [0], [0], [1], [0, 0, 1, 1], [], []>} : vector<64x64xbf16>, vector<64x4xbf16>, vector<64x4xf32> -> vector<64x4xf32>
    %348 = arith.truncf %347 : vector<64x4xf32> to vector<64x4xbf16>
    %c2_198 = arith.constant 2 : index
    %c0_199 = arith.constant 0 : index
    %c0_200 = arith.constant 0 : index
    %349 = vector.load %arg22[%c2_198, %c0_199, %c0_200] : memref<4x4x16xbf16, #tpu.memory_space<vmem>>, vector<1x4x16xbf16>
    %350 = vector.shape_cast %349 : vector<1x4x16xbf16> to vector<4x16xbf16>
    %cst_201 = arith.constant dense<0.000000e+00> : vector<64x16xf32>
    %351 = tpu.matmul %348, %350, %cst_201 {dimension_numbers = #tpu.dot_dimension_numbers<[1], [0], [0], [1], [0, 0, 1, 1], [], []>} : vector<64x4xbf16>, vector<4x16xbf16>, vector<64x16xf32> -> vector<64x16xf32>
    %352 = arith.addf %328, %351 : vector<64x16xf32>
    %353 = vector.extract_strided_slice %277 {offsets = [0, 12], sizes = [64, 4], strides = [1, 1]} : vector<64x16xf32> to vector<64x4xf32>
    %354 = arith.truncf %353 : vector<64x4xf32> to vector<64x4xbf16>
    %355 = vector.extract_strided_slice %278 {offsets = [0, 12], sizes = [64, 4], strides = [1, 1]} : vector<64x16xf32> to vector<64x4xf32>
    %356 = arith.truncf %355 : vector<64x4xf32> to vector<64x4xbf16>
    %357 = vector.extract_strided_slice %279 {offsets = [0, 12], sizes = [64, 4], strides = [1, 1]} : vector<64x16xf32> to vector<64x4xf32>
    %358 = arith.truncf %357 : vector<64x4xf32> to vector<64x4xbf16>
    %cst_202 = arith.constant dense<0.000000e+00> : vector<64x64xf32>
    %359 = tpu.matmul %354, %356, %cst_202 {dimension_numbers = #tpu.dot_dimension_numbers<[1], [1], [0], [0], [0, 0, 1, 0], [], []>} : vector<64x4xbf16>, vector<64x4xbf16>, vector<64x64xf32> -> vector<64x64xf32>
    %cst_203 = arith.constant dense<0xFF800000> : vector<64xf32>
    %360 = vector.multi_reduction <maximumf>, %359, %cst_203 [1] : vector<64x64xf32> to vector<64xf32>
    %361 = vector.shape_cast %360 : vector<64xf32> to vector<64x1xf32>
    %362 = vector.broadcast %361 : vector<64x1xf32> to vector<64x64xf32>
    %363 = arith.subf %359, %362 : vector<64x64xf32>
    %364 = math.exp %363 : vector<64x64xf32>
    %cst_204 = arith.constant dense<0.000000e+00> : vector<64xf32>
    %365 = vector.multi_reduction <add>, %364, %cst_204 [1] : vector<64x64xf32> to vector<64xf32>
    %366 = vector.shape_cast %365 : vector<64xf32> to vector<64x1xf32>
    %367 = tpu.reciprocal %366 {approx = true} : vector<64x1xf32> -> vector<64x1xf32>
    %368 = vector.broadcast %367 : vector<64x1xf32> to vector<64x64xf32>
    %369 = arith.mulf %364, %368 : vector<64x64xf32>
    %370 = arith.truncf %369 : vector<64x64xf32> to vector<64x64xbf16>
    %cst_205 = arith.constant dense<0.000000e+00> : vector<64x4xf32>
    %371 = tpu.matmul %370, %358, %cst_205 {dimension_numbers = #tpu.dot_dimension_numbers<[1], [0], [0], [1], [0, 0, 1, 1], [], []>} : vector<64x64xbf16>, vector<64x4xbf16>, vector<64x4xf32> -> vector<64x4xf32>
    %372 = arith.truncf %371 : vector<64x4xf32> to vector<64x4xbf16>
    %c3_206 = arith.constant 3 : index
    %c0_207 = arith.constant 0 : index
    %c0_208 = arith.constant 0 : index
    %373 = vector.load %arg22[%c3_206, %c0_207, %c0_208] : memref<4x4x16xbf16, #tpu.memory_space<vmem>>, vector<1x4x16xbf16>
    %374 = vector.shape_cast %373 : vector<1x4x16xbf16> to vector<4x16xbf16>
    %cst_209 = arith.constant dense<0.000000e+00> : vector<64x16xf32>
    %375 = tpu.matmul %372, %374, %cst_209 {dimension_numbers = #tpu.dot_dimension_numbers<[1], [0], [0], [1], [0, 0, 1, 1], [], []>} : vector<64x4xbf16>, vector<4x16xbf16>, vector<64x16xf32> -> vector<64x16xf32>
    %376 = arith.addf %352, %375 : vector<64x16xf32>
    %377 = arith.addf %250, %376 : vector<64x16xf32>
    %c0_210 = arith.constant 0 : index
    %c0_211 = arith.constant 0 : index
    %378 = vector.load %arg23[%c0_210, %c0_211] : memref<1x16xf32, #tpu.memory_space<vmem>>, vector<1x16xf32>
    %379 = vector.broadcast %378 : vector<1x16xf32> to vector<64x16xf32>
    %380 = arith.addf %377, %379 : vector<64x16xf32>
    %c9_i32_212 = arith.constant 9 : i32
    %381 = tpu.dynamic_rotate %380 by %c9_i32_212 dim 0 : vector<64x16xf32>, i32 -> vector<64x16xf32>
    %c0_213 = arith.constant 0 : index
    %c0_214 = arith.constant 0 : index
    %c0_215 = arith.constant 0 : index
    %382 = vector.load %arg24[%c0_213, %c0_214, %c0_215] : memref<16x64x1xf32, #tpu.memory_space<vmem>>, vector<1x64x1xf32>
    %383 = vector.shape_cast %382 : vector<1x64x1xf32> to vector<64x1xf32>
    %384 = vector.broadcast %383 : vector<64x1xf32> to vector<64x16xf32>
    %385 = arith.mulf %381, %384 : vector<64x16xf32>
    %386 = arith.truncf %385 : vector<64x16xf32> to vector<64x16xbf16>
    %c0_216 = arith.constant 0 : index
    %c0_217 = arith.constant 0 : index
    %c0_218 = arith.constant 0 : index
    %387 = vector.load %arg26[%c0_216, %c0_217, %c0_218] : memref<16x16x16xbf16, #tpu.memory_space<vmem>>, vector<1x16x16xbf16>
    %388 = vector.shape_cast %387 : vector<1x16x16xbf16> to vector<16x16xbf16>
    %cst_219 = arith.constant dense<0.000000e+00> : vector<64x16xf32>
    %389 = tpu.matmul %386, %388, %cst_219 {dimension_numbers = #tpu.dot_dimension_numbers<[1], [0], [0], [1], [0, 0, 1, 1], [], []>} : vector<64x16xbf16>, vector<16x16xbf16>, vector<64x16xf32> -> vector<64x16xf32>
    %c8_i32_220 = arith.constant 8 : i32
    %390 = tpu.dynamic_rotate %380 by %c8_i32_220 dim 0 : vector<64x16xf32>, i32 -> vector<64x16xf32>
    %c1_221 = arith.constant 1 : index
    %c0_222 = arith.constant 0 : index
    %c0_223 = arith.constant 0 : index
    %391 = vector.load %arg24[%c1_221, %c0_222, %c0_223] : memref<16x64x1xf32, #tpu.memory_space<vmem>>, vector<1x64x1xf32>
    %392 = vector.shape_cast %391 : vector<1x64x1xf32> to vector<64x1xf32>
    %393 = vector.broadcast %392 : vector<64x1xf32> to vector<64x16xf32>
    %394 = arith.mulf %390, %393 : vector<64x16xf32>
    %395 = arith.truncf %394 : vector<64x16xf32> to vector<64x16xbf16>
    %c1_224 = arith.constant 1 : index
    %c0_225 = arith.constant 0 : index
    %c0_226 = arith.constant 0 : index
    %396 = vector.load %arg26[%c1_224, %c0_225, %c0_226] : memref<16x16x16xbf16, #tpu.memory_space<vmem>>, vector<1x16x16xbf16>
    %397 = vector.shape_cast %396 : vector<1x16x16xbf16> to vector<16x16xbf16>
    %cst_227 = arith.constant dense<0.000000e+00> : vector<64x16xf32>
    %398 = tpu.matmul %395, %397, %cst_227 {dimension_numbers = #tpu.dot_dimension_numbers<[1], [0], [0], [1], [0, 0, 1, 1], [], []>} : vector<64x16xbf16>, vector<16x16xbf16>, vector<64x16xf32> -> vector<64x16xf32>
    %399 = arith.addf %389, %398 : vector<64x16xf32>
    %c7_i32_228 = arith.constant 7 : i32
    %400 = tpu.dynamic_rotate %380 by %c7_i32_228 dim 0 : vector<64x16xf32>, i32 -> vector<64x16xf32>
    %c2_229 = arith.constant 2 : index
    %c0_230 = arith.constant 0 : index
    %c0_231 = arith.constant 0 : index
    %401 = vector.load %arg24[%c2_229, %c0_230, %c0_231] : memref<16x64x1xf32, #tpu.memory_space<vmem>>, vector<1x64x1xf32>
    %402 = vector.shape_cast %401 : vector<1x64x1xf32> to vector<64x1xf32>
    %403 = vector.broadcast %402 : vector<64x1xf32> to vector<64x16xf32>
    %404 = arith.mulf %400, %403 : vector<64x16xf32>
    %405 = arith.truncf %404 : vector<64x16xf32> to vector<64x16xbf16>
    %c2_232 = arith.constant 2 : index
    %c0_233 = arith.constant 0 : index
    %c0_234 = arith.constant 0 : index
    %406 = vector.load %arg26[%c2_232, %c0_233, %c0_234] : memref<16x16x16xbf16, #tpu.memory_space<vmem>>, vector<1x16x16xbf16>
    %407 = vector.shape_cast %406 : vector<1x16x16xbf16> to vector<16x16xbf16>
    %cst_235 = arith.constant dense<0.000000e+00> : vector<64x16xf32>
    %408 = tpu.matmul %405, %407, %cst_235 {dimension_numbers = #tpu.dot_dimension_numbers<[1], [0], [0], [1], [0, 0, 1, 1], [], []>} : vector<64x16xbf16>, vector<16x16xbf16>, vector<64x16xf32> -> vector<64x16xf32>
    %409 = arith.addf %399, %408 : vector<64x16xf32>
    %c6_i32 = arith.constant 6 : i32
    %410 = tpu.dynamic_rotate %380 by %c6_i32 dim 0 : vector<64x16xf32>, i32 -> vector<64x16xf32>
    %c3_236 = arith.constant 3 : index
    %c0_237 = arith.constant 0 : index
    %c0_238 = arith.constant 0 : index
    %411 = vector.load %arg24[%c3_236, %c0_237, %c0_238] : memref<16x64x1xf32, #tpu.memory_space<vmem>>, vector<1x64x1xf32>
    %412 = vector.shape_cast %411 : vector<1x64x1xf32> to vector<64x1xf32>
    %413 = vector.broadcast %412 : vector<64x1xf32> to vector<64x16xf32>
    %414 = arith.mulf %410, %413 : vector<64x16xf32>
    %415 = arith.truncf %414 : vector<64x16xf32> to vector<64x16xbf16>
    %c3_239 = arith.constant 3 : index
    %c0_240 = arith.constant 0 : index
    %c0_241 = arith.constant 0 : index
    %416 = vector.load %arg26[%c3_239, %c0_240, %c0_241] : memref<16x16x16xbf16, #tpu.memory_space<vmem>>, vector<1x16x16xbf16>
    %417 = vector.shape_cast %416 : vector<1x16x16xbf16> to vector<16x16xbf16>
    %cst_242 = arith.constant dense<0.000000e+00> : vector<64x16xf32>
    %418 = tpu.matmul %415, %417, %cst_242 {dimension_numbers = #tpu.dot_dimension_numbers<[1], [0], [0], [1], [0, 0, 1, 1], [], []>} : vector<64x16xbf16>, vector<16x16xbf16>, vector<64x16xf32> -> vector<64x16xf32>
    %419 = arith.addf %409, %418 : vector<64x16xf32>
    %c1_i32_243 = arith.constant 1 : i32
    %420 = tpu.dynamic_rotate %380 by %c1_i32_243 dim 0 : vector<64x16xf32>, i32 -> vector<64x16xf32>
    %c4_244 = arith.constant 4 : index
    %c0_245 = arith.constant 0 : index
    %c0_246 = arith.constant 0 : index
    %421 = vector.load %arg24[%c4_244, %c0_245, %c0_246] : memref<16x64x1xf32, #tpu.memory_space<vmem>>, vector<1x64x1xf32>
    %422 = vector.shape_cast %421 : vector<1x64x1xf32> to vector<64x1xf32>
    %423 = vector.broadcast %422 : vector<64x1xf32> to vector<64x16xf32>
    %424 = arith.mulf %420, %423 : vector<64x16xf32>
    %425 = arith.truncf %424 : vector<64x16xf32> to vector<64x16xbf16>
    %c4_247 = arith.constant 4 : index
    %c0_248 = arith.constant 0 : index
    %c0_249 = arith.constant 0 : index
    %426 = vector.load %arg26[%c4_247, %c0_248, %c0_249] : memref<16x16x16xbf16, #tpu.memory_space<vmem>>, vector<1x16x16xbf16>
    %427 = vector.shape_cast %426 : vector<1x16x16xbf16> to vector<16x16xbf16>
    %cst_250 = arith.constant dense<0.000000e+00> : vector<64x16xf32>
    %428 = tpu.matmul %425, %427, %cst_250 {dimension_numbers = #tpu.dot_dimension_numbers<[1], [0], [0], [1], [0, 0, 1, 1], [], []>} : vector<64x16xbf16>, vector<16x16xbf16>, vector<64x16xf32> -> vector<64x16xf32>
    %429 = arith.addf %419, %428 : vector<64x16xf32>
    %430 = arith.truncf %380 : vector<64x16xf32> to vector<64x16xbf16>
    %c5_251 = arith.constant 5 : index
    %c0_252 = arith.constant 0 : index
    %c0_253 = arith.constant 0 : index
    %431 = vector.load %arg26[%c5_251, %c0_252, %c0_253] : memref<16x16x16xbf16, #tpu.memory_space<vmem>>, vector<1x16x16xbf16>
    %432 = vector.shape_cast %431 : vector<1x16x16xbf16> to vector<16x16xbf16>
    %cst_254 = arith.constant dense<0.000000e+00> : vector<64x16xf32>
    %433 = tpu.matmul %430, %432, %cst_254 {dimension_numbers = #tpu.dot_dimension_numbers<[1], [0], [0], [1], [0, 0, 1, 1], [], []>} : vector<64x16xbf16>, vector<16x16xbf16>, vector<64x16xf32> -> vector<64x16xf32>
    %434 = arith.addf %429, %433 : vector<64x16xf32>
    %c63_i32_255 = arith.constant 63 : i32
    %435 = tpu.dynamic_rotate %380 by %c63_i32_255 dim 0 : vector<64x16xf32>, i32 -> vector<64x16xf32>
    %c6_256 = arith.constant 6 : index
    %c0_257 = arith.constant 0 : index
    %c0_258 = arith.constant 0 : index
    %436 = vector.load %arg24[%c6_256, %c0_257, %c0_258] : memref<16x64x1xf32, #tpu.memory_space<vmem>>, vector<1x64x1xf32>
    %437 = vector.shape_cast %436 : vector<1x64x1xf32> to vector<64x1xf32>
    %438 = vector.broadcast %437 : vector<64x1xf32> to vector<64x16xf32>
    %439 = arith.mulf %435, %438 : vector<64x16xf32>
    %440 = arith.truncf %439 : vector<64x16xf32> to vector<64x16xbf16>
    %c6_259 = arith.constant 6 : index
    %c0_260 = arith.constant 0 : index
    %c0_261 = arith.constant 0 : index
    %441 = vector.load %arg26[%c6_259, %c0_260, %c0_261] : memref<16x16x16xbf16, #tpu.memory_space<vmem>>, vector<1x16x16xbf16>
    %442 = vector.shape_cast %441 : vector<1x16x16xbf16> to vector<16x16xbf16>
    %cst_262 = arith.constant dense<0.000000e+00> : vector<64x16xf32>
    %443 = tpu.matmul %440, %442, %cst_262 {dimension_numbers = #tpu.dot_dimension_numbers<[1], [0], [0], [1], [0, 0, 1, 1], [], []>} : vector<64x16xbf16>, vector<16x16xbf16>, vector<64x16xf32> -> vector<64x16xf32>
    %444 = arith.addf %434, %443 : vector<64x16xf32>
    %c62_i32 = arith.constant 62 : i32
    %445 = tpu.dynamic_rotate %380 by %c62_i32 dim 0 : vector<64x16xf32>, i32 -> vector<64x16xf32>
    %c7_263 = arith.constant 7 : index
    %c0_264 = arith.constant 0 : index
    %c0_265 = arith.constant 0 : index
    %446 = vector.load %arg24[%c7_263, %c0_264, %c0_265] : memref<16x64x1xf32, #tpu.memory_space<vmem>>, vector<1x64x1xf32>
    %447 = vector.shape_cast %446 : vector<1x64x1xf32> to vector<64x1xf32>
    %448 = vector.broadcast %447 : vector<64x1xf32> to vector<64x16xf32>
    %449 = arith.mulf %445, %448 : vector<64x16xf32>
    %450 = arith.truncf %449 : vector<64x16xf32> to vector<64x16xbf16>
    %c7_266 = arith.constant 7 : index
    %c0_267 = arith.constant 0 : index
    %c0_268 = arith.constant 0 : index
    %451 = vector.load %arg26[%c7_266, %c0_267, %c0_268] : memref<16x16x16xbf16, #tpu.memory_space<vmem>>, vector<1x16x16xbf16>
    %452 = vector.shape_cast %451 : vector<1x16x16xbf16> to vector<16x16xbf16>
    %cst_269 = arith.constant dense<0.000000e+00> : vector<64x16xf32>
    %453 = tpu.matmul %450, %452, %cst_269 {dimension_numbers = #tpu.dot_dimension_numbers<[1], [0], [0], [1], [0, 0, 1, 1], [], []>} : vector<64x16xbf16>, vector<16x16xbf16>, vector<64x16xf32> -> vector<64x16xf32>
    %454 = arith.addf %444, %453 : vector<64x16xf32>
    %c57_i32_270 = arith.constant 57 : i32
    %455 = tpu.dynamic_rotate %380 by %c57_i32_270 dim 0 : vector<64x16xf32>, i32 -> vector<64x16xf32>
    %c8_271 = arith.constant 8 : index
    %c0_272 = arith.constant 0 : index
    %c0_273 = arith.constant 0 : index
    %456 = vector.load %arg24[%c8_271, %c0_272, %c0_273] : memref<16x64x1xf32, #tpu.memory_space<vmem>>, vector<1x64x1xf32>
    %457 = vector.shape_cast %456 : vector<1x64x1xf32> to vector<64x1xf32>
    %458 = vector.broadcast %457 : vector<64x1xf32> to vector<64x16xf32>
    %459 = arith.mulf %455, %458 : vector<64x16xf32>
    %460 = arith.truncf %459 : vector<64x16xf32> to vector<64x16xbf16>
    %c8_274 = arith.constant 8 : index
    %c0_275 = arith.constant 0 : index
    %c0_276 = arith.constant 0 : index
    %461 = vector.load %arg26[%c8_274, %c0_275, %c0_276] : memref<16x16x16xbf16, #tpu.memory_space<vmem>>, vector<1x16x16xbf16>
    %462 = vector.shape_cast %461 : vector<1x16x16xbf16> to vector<16x16xbf16>
    %cst_277 = arith.constant dense<0.000000e+00> : vector<64x16xf32>
    %463 = tpu.matmul %460, %462, %cst_277 {dimension_numbers = #tpu.dot_dimension_numbers<[1], [0], [0], [1], [0, 0, 1, 1], [], []>} : vector<64x16xbf16>, vector<16x16xbf16>, vector<64x16xf32> -> vector<64x16xf32>
    %464 = arith.addf %454, %463 : vector<64x16xf32>
    %c56_i32_278 = arith.constant 56 : i32
    %465 = tpu.dynamic_rotate %380 by %c56_i32_278 dim 0 : vector<64x16xf32>, i32 -> vector<64x16xf32>
    %c9 = arith.constant 9 : index
    %c0_279 = arith.constant 0 : index
    %c0_280 = arith.constant 0 : index
    %466 = vector.load %arg24[%c9, %c0_279, %c0_280] : memref<16x64x1xf32, #tpu.memory_space<vmem>>, vector<1x64x1xf32>
    %467 = vector.shape_cast %466 : vector<1x64x1xf32> to vector<64x1xf32>
    %468 = vector.broadcast %467 : vector<64x1xf32> to vector<64x16xf32>
    %469 = arith.mulf %465, %468 : vector<64x16xf32>
    %470 = arith.truncf %469 : vector<64x16xf32> to vector<64x16xbf16>
    %c9_281 = arith.constant 9 : index
    %c0_282 = arith.constant 0 : index
    %c0_283 = arith.constant 0 : index
    %471 = vector.load %arg26[%c9_281, %c0_282, %c0_283] : memref<16x16x16xbf16, #tpu.memory_space<vmem>>, vector<1x16x16xbf16>
    %472 = vector.shape_cast %471 : vector<1x16x16xbf16> to vector<16x16xbf16>
    %cst_284 = arith.constant dense<0.000000e+00> : vector<64x16xf32>
    %473 = tpu.matmul %470, %472, %cst_284 {dimension_numbers = #tpu.dot_dimension_numbers<[1], [0], [0], [1], [0, 0, 1, 1], [], []>} : vector<64x16xbf16>, vector<16x16xbf16>, vector<64x16xf32> -> vector<64x16xf32>
    %474 = arith.addf %464, %473 : vector<64x16xf32>
    %c55_i32_285 = arith.constant 55 : i32
    %475 = tpu.dynamic_rotate %380 by %c55_i32_285 dim 0 : vector<64x16xf32>, i32 -> vector<64x16xf32>
    %c10 = arith.constant 10 : index
    %c0_286 = arith.constant 0 : index
    %c0_287 = arith.constant 0 : index
    %476 = vector.load %arg24[%c10, %c0_286, %c0_287] : memref<16x64x1xf32, #tpu.memory_space<vmem>>, vector<1x64x1xf32>
    %477 = vector.shape_cast %476 : vector<1x64x1xf32> to vector<64x1xf32>
    %478 = vector.broadcast %477 : vector<64x1xf32> to vector<64x16xf32>
    %479 = arith.mulf %475, %478 : vector<64x16xf32>
    %480 = arith.truncf %479 : vector<64x16xf32> to vector<64x16xbf16>
    %c10_288 = arith.constant 10 : index
    %c0_289 = arith.constant 0 : index
    %c0_290 = arith.constant 0 : index
    %481 = vector.load %arg26[%c10_288, %c0_289, %c0_290] : memref<16x16x16xbf16, #tpu.memory_space<vmem>>, vector<1x16x16xbf16>
    %482 = vector.shape_cast %481 : vector<1x16x16xbf16> to vector<16x16xbf16>
    %cst_291 = arith.constant dense<0.000000e+00> : vector<64x16xf32>
    %483 = tpu.matmul %480, %482, %cst_291 {dimension_numbers = #tpu.dot_dimension_numbers<[1], [0], [0], [1], [0, 0, 1, 1], [], []>} : vector<64x16xbf16>, vector<16x16xbf16>, vector<64x16xf32> -> vector<64x16xf32>
    %484 = arith.addf %474, %483 : vector<64x16xf32>
    %c54_i32 = arith.constant 54 : i32
    %485 = tpu.dynamic_rotate %380 by %c54_i32 dim 0 : vector<64x16xf32>, i32 -> vector<64x16xf32>
    %c11 = arith.constant 11 : index
    %c0_292 = arith.constant 0 : index
    %c0_293 = arith.constant 0 : index
    %486 = vector.load %arg24[%c11, %c0_292, %c0_293] : memref<16x64x1xf32, #tpu.memory_space<vmem>>, vector<1x64x1xf32>
    %487 = vector.shape_cast %486 : vector<1x64x1xf32> to vector<64x1xf32>
    %488 = vector.broadcast %487 : vector<64x1xf32> to vector<64x16xf32>
    %489 = arith.mulf %485, %488 : vector<64x16xf32>
    %490 = arith.truncf %489 : vector<64x16xf32> to vector<64x16xbf16>
    %c11_294 = arith.constant 11 : index
    %c0_295 = arith.constant 0 : index
    %c0_296 = arith.constant 0 : index
    %491 = vector.load %arg26[%c11_294, %c0_295, %c0_296] : memref<16x16x16xbf16, #tpu.memory_space<vmem>>, vector<1x16x16xbf16>
    %492 = vector.shape_cast %491 : vector<1x16x16xbf16> to vector<16x16xbf16>
    %cst_297 = arith.constant dense<0.000000e+00> : vector<64x16xf32>
    %493 = tpu.matmul %490, %492, %cst_297 {dimension_numbers = #tpu.dot_dimension_numbers<[1], [0], [0], [1], [0, 0, 1, 1], [], []>} : vector<64x16xbf16>, vector<16x16xbf16>, vector<64x16xf32> -> vector<64x16xf32>
    %494 = arith.addf %484, %493 : vector<64x16xf32>
    %c49_i32 = arith.constant 49 : i32
    %495 = tpu.dynamic_rotate %380 by %c49_i32 dim 0 : vector<64x16xf32>, i32 -> vector<64x16xf32>
    %c12 = arith.constant 12 : index
    %c0_298 = arith.constant 0 : index
    %c0_299 = arith.constant 0 : index
    %496 = vector.load %arg24[%c12, %c0_298, %c0_299] : memref<16x64x1xf32, #tpu.memory_space<vmem>>, vector<1x64x1xf32>
    %497 = vector.shape_cast %496 : vector<1x64x1xf32> to vector<64x1xf32>
    %498 = vector.broadcast %497 : vector<64x1xf32> to vector<64x16xf32>
    %499 = arith.mulf %495, %498 : vector<64x16xf32>
    %500 = arith.truncf %499 : vector<64x16xf32> to vector<64x16xbf16>
    %c12_300 = arith.constant 12 : index
    %c0_301 = arith.constant 0 : index
    %c0_302 = arith.constant 0 : index
    %501 = vector.load %arg26[%c12_300, %c0_301, %c0_302] : memref<16x16x16xbf16, #tpu.memory_space<vmem>>, vector<1x16x16xbf16>
    %502 = vector.shape_cast %501 : vector<1x16x16xbf16> to vector<16x16xbf16>
    %cst_303 = arith.constant dense<0.000000e+00> : vector<64x16xf32>
    %503 = tpu.matmul %500, %502, %cst_303 {dimension_numbers = #tpu.dot_dimension_numbers<[1], [0], [0], [1], [0, 0, 1, 1], [], []>} : vector<64x16xbf16>, vector<16x16xbf16>, vector<64x16xf32> -> vector<64x16xf32>
    %504 = arith.addf %494, %503 : vector<64x16xf32>
    %c48_i32 = arith.constant 48 : i32
    %505 = tpu.dynamic_rotate %380 by %c48_i32 dim 0 : vector<64x16xf32>, i32 -> vector<64x16xf32>
    %c13 = arith.constant 13 : index
    %c0_304 = arith.constant 0 : index
    %c0_305 = arith.constant 0 : index
    %506 = vector.load %arg24[%c13, %c0_304, %c0_305] : memref<16x64x1xf32, #tpu.memory_space<vmem>>, vector<1x64x1xf32>
    %507 = vector.shape_cast %506 : vector<1x64x1xf32> to vector<64x1xf32>
    %508 = vector.broadcast %507 : vector<64x1xf32> to vector<64x16xf32>
    %509 = arith.mulf %505, %508 : vector<64x16xf32>
    %510 = arith.truncf %509 : vector<64x16xf32> to vector<64x16xbf16>
    %c13_306 = arith.constant 13 : index
    %c0_307 = arith.constant 0 : index
    %c0_308 = arith.constant 0 : index
    %511 = vector.load %arg26[%c13_306, %c0_307, %c0_308] : memref<16x16x16xbf16, #tpu.memory_space<vmem>>, vector<1x16x16xbf16>
    %512 = vector.shape_cast %511 : vector<1x16x16xbf16> to vector<16x16xbf16>
    %cst_309 = arith.constant dense<0.000000e+00> : vector<64x16xf32>
    %513 = tpu.matmul %510, %512, %cst_309 {dimension_numbers = #tpu.dot_dimension_numbers<[1], [0], [0], [1], [0, 0, 1, 1], [], []>} : vector<64x16xbf16>, vector<16x16xbf16>, vector<64x16xf32> -> vector<64x16xf32>
    %514 = arith.addf %504, %513 : vector<64x16xf32>
    %c47_i32 = arith.constant 47 : i32
    %515 = tpu.dynamic_rotate %380 by %c47_i32 dim 0 : vector<64x16xf32>, i32 -> vector<64x16xf32>
    %c14 = arith.constant 14 : index
    %c0_310 = arith.constant 0 : index
    %c0_311 = arith.constant 0 : index
    %516 = vector.load %arg24[%c14, %c0_310, %c0_311] : memref<16x64x1xf32, #tpu.memory_space<vmem>>, vector<1x64x1xf32>
    %517 = vector.shape_cast %516 : vector<1x64x1xf32> to vector<64x1xf32>
    %518 = vector.broadcast %517 : vector<64x1xf32> to vector<64x16xf32>
    %519 = arith.mulf %515, %518 : vector<64x16xf32>
    %520 = arith.truncf %519 : vector<64x16xf32> to vector<64x16xbf16>
    %c14_312 = arith.constant 14 : index
    %c0_313 = arith.constant 0 : index
    %c0_314 = arith.constant 0 : index
    %521 = vector.load %arg26[%c14_312, %c0_313, %c0_314] : memref<16x16x16xbf16, #tpu.memory_space<vmem>>, vector<1x16x16xbf16>
    %522 = vector.shape_cast %521 : vector<1x16x16xbf16> to vector<16x16xbf16>
    %cst_315 = arith.constant dense<0.000000e+00> : vector<64x16xf32>
    %523 = tpu.matmul %520, %522, %cst_315 {dimension_numbers = #tpu.dot_dimension_numbers<[1], [0], [0], [1], [0, 0, 1, 1], [], []>} : vector<64x16xbf16>, vector<16x16xbf16>, vector<64x16xf32> -> vector<64x16xf32>
    %524 = arith.addf %514, %523 : vector<64x16xf32>
    %c46_i32 = arith.constant 46 : i32
    %525 = tpu.dynamic_rotate %380 by %c46_i32 dim 0 : vector<64x16xf32>, i32 -> vector<64x16xf32>
    %c15 = arith.constant 15 : index
    %c0_316 = arith.constant 0 : index
    %c0_317 = arith.constant 0 : index
    %526 = vector.load %arg24[%c15, %c0_316, %c0_317] : memref<16x64x1xf32, #tpu.memory_space<vmem>>, vector<1x64x1xf32>
    %527 = vector.shape_cast %526 : vector<1x64x1xf32> to vector<64x1xf32>
    %528 = vector.broadcast %527 : vector<64x1xf32> to vector<64x16xf32>
    %529 = arith.mulf %525, %528 : vector<64x16xf32>
    %530 = arith.truncf %529 : vector<64x16xf32> to vector<64x16xbf16>
    %c15_318 = arith.constant 15 : index
    %c0_319 = arith.constant 0 : index
    %c0_320 = arith.constant 0 : index
    %531 = vector.load %arg26[%c15_318, %c0_319, %c0_320] : memref<16x16x16xbf16, #tpu.memory_space<vmem>>, vector<1x16x16xbf16>
    %532 = vector.shape_cast %531 : vector<1x16x16xbf16> to vector<16x16xbf16>
    %cst_321 = arith.constant dense<0.000000e+00> : vector<64x16xf32>
    %533 = tpu.matmul %530, %532, %cst_321 {dimension_numbers = #tpu.dot_dimension_numbers<[1], [0], [0], [1], [0, 0, 1, 1], [], []>} : vector<64x16xbf16>, vector<16x16xbf16>, vector<64x16xf32> -> vector<64x16xf32>
    %534 = arith.addf %524, %533 : vector<64x16xf32>
    %c0_322 = arith.constant 0 : index
    %c0_323 = arith.constant 0 : index
    %535 = vector.load %arg25[%c0_322, %c0_323] : memref<16x64xf32, #tpu.memory_space<vmem>>, vector<16x64xf32>
    %cst_324 = arith.constant dense<0.000000e+00> : vector<16x16xf32>
    %536 = tpu.matmul %535, %534, %cst_324 {dimension_numbers = #tpu.dot_dimension_numbers<[1], [0], [0], [1], [0, 0, 1, 1], [], []>} : vector<16x64xf32>, vector<64x16xf32>, vector<16x16xf32> -> vector<16x16xf32>
    %c0_325 = arith.constant 0 : index
    %c0_326 = arith.constant 0 : index
    %537 = vector.load %arg27[%c0_325, %c0_326] : memref<1x16xf32, #tpu.memory_space<vmem>>, vector<1x16xf32>
    %538 = vector.broadcast %537 : vector<1x16xf32> to vector<16x16xf32>
    %539 = arith.addf %536, %538 : vector<16x16xf32>
    %c0_327 = arith.constant 0 : index
    %c0_328 = arith.constant 0 : index
    %c0_329 = arith.constant 0 : index
    %540 = vector.load %arg28[%c0_327, %c0_328, %c0_329] : memref<1x16x16xf32, #tpu.memory_space<vmem>>, vector<1x16x16xf32>
    %541 = vector.shape_cast %540 : vector<1x16x16xf32> to vector<16x16xf32>
    %542 = vector.shape_cast %539 : vector<16x16xf32> to vector<1x16x16xf32>
    tpu.vector_store %arg28[%c0_327, %c0_328, %c0_329], %542 {strides = array<i32>} : memref<1x16x16xf32, #tpu.memory_space<vmem>>, vector<1x16x16xf32>,
    return
  }
  func.func @transform_0(%arg0: i32) -> (i32, i32, i32) {
    %c0_i32 = arith.constant 0 : i32
    %c0_i32_0 = arith.constant 0 : i32
    %c0_i32_1 = arith.constant 0 : i32
    return %arg0, %c0_i32, %c0_i32_0 : i32, i32, i32
  }
  func.func @transform_1(%arg0: i32) -> (i32, i32, i32) {
    %c0_i32 = arith.constant 0 : i32
    %c0_i32_0 = arith.constant 0 : i32
    %c0_i32_1 = arith.constant 0 : i32
    return %arg0, %c0_i32, %c0_i32_0 : i32, i32, i32
  }
  func.func @transform_2(%arg0: i32) -> (i32, i32, i32) {
    %c0_i32 = arith.constant 0 : i32
    %c0_i32_0 = arith.constant 0 : i32
    %c0_i32_1 = arith.constant 0 : i32
    %c0_i32_2 = arith.constant 0 : i32
    return %c0_i32, %c0_i32_0, %c0_i32_1 : i32, i32, i32
  }
  func.func @transform_3(%arg0: i32) -> (i32, i32) {
    %c0_i32 = arith.constant 0 : i32
    %c0_i32_0 = arith.constant 0 : i32
    %c0_i32_1 = arith.constant 0 : i32
    return %c0_i32, %c0_i32_0 : i32, i32
  }
  func.func @transform_4(%arg0: i32) -> (i32, i32) {
    %c0_i32 = arith.constant 0 : i32
    %c0_i32_0 = arith.constant 0 : i32
    %c0_i32_1 = arith.constant 0 : i32
    return %c0_i32, %c0_i32_0 : i32, i32
  }
  func.func @transform_5(%arg0: i32) -> (i32, i32) {
    %c0_i32 = arith.constant 0 : i32
    %c0_i32_0 = arith.constant 0 : i32
    %c0_i32_1 = arith.constant 0 : i32
    return %c0_i32, %c0_i32_0 : i32, i32
  }
  func.func @transform_6(%arg0: i32) -> (i32, i32) {
    %c0_i32 = arith.constant 0 : i32
    %c0_i32_0 = arith.constant 0 : i32
    %c0_i32_1 = arith.constant 0 : i32
    return %c0_i32, %c0_i32_0 : i32, i32
  }
  func.func @transform_7(%arg0: i32) -> (i32, i32, i32) {
    %c0_i32 = arith.constant 0 : i32
    %c0_i32_0 = arith.constant 0 : i32
    %c0_i32_1 = arith.constant 0 : i32
    %c0_i32_2 = arith.constant 0 : i32
    return %c0_i32, %c0_i32_0, %c0_i32_1 : i32, i32, i32
  }
  func.func @transform_8(%arg0: i32) -> (i32, i32) {
    %c0_i32 = arith.constant 0 : i32
    %c0_i32_0 = arith.constant 0 : i32
    %c0_i32_1 = arith.constant 0 : i32
    return %c0_i32, %c0_i32_0 : i32, i32
  }
  func.func @transform_9(%arg0: i32) -> (i32, i32) {
    %c0_i32 = arith.constant 0 : i32
    %c0_i32_0 = arith.constant 0 : i32
    %c0_i32_1 = arith.constant 0 : i32
    return %c0_i32, %c0_i32_0 : i32, i32
  }
  func.func @transform_10(%arg0: i32) -> (i32, i32) {
    %c0_i32 = arith.constant 0 : i32
    %c0_i32_0 = arith.constant 0 : i32
    %c0_i32_1 = arith.constant 0 : i32
    return %c0_i32, %c0_i32_0 : i32, i32
  }
  func.func @transform_11(%arg0: i32) -> (i32, i32) {
    %c0_i32 = arith.constant 0 : i32
    %c0_i32_0 = arith.constant 0 : i32
    %c0_i32_1 = arith.constant 0 : i32
    return %c0_i32, %c0_i32_0 : i32, i32
  }
  func.func @transform_12(%arg0: i32) -> (i32, i32) {
    %c0_i32 = arith.constant 0 : i32
    %c0_i32_0 = arith.constant 0 : i32
    %c0_i32_1 = arith.constant 0 : i32
    return %c0_i32, %c0_i32_0 : i32, i32
  }
  func.func @transform_13(%arg0: i32) -> (i32, i32, i32) {
    %c0_i32 = arith.constant 0 : i32
    %c0_i32_0 = arith.constant 0 : i32
    %c0_i32_1 = arith.constant 0 : i32
    %c0_i32_2 = arith.constant 0 : i32
    return %c0_i32, %c0_i32_0, %c0_i32_1 : i32, i32, i32
  }
  func.func @transform_14(%arg0: i32) -> (i32, i32) {
    %c0_i32 = arith.constant 0 : i32
    %c0_i32_0 = arith.constant 0 : i32
    %c0_i32_1 = arith.constant 0 : i32
    return %c0_i32, %c0_i32_0 : i32, i32
  }
  func.func @transform_15(%arg0: i32) -> (i32, i32) {
    %c0_i32 = arith.constant 0 : i32
    %c0_i32_0 = arith.constant 0 : i32
    %c0_i32_1 = arith.constant 0 : i32
    return %c0_i32, %c0_i32_0 : i32, i32
  }
  func.func @transform_16(%arg0: i32) -> (i32, i32) {
    %c0_i32 = arith.constant 0 : i32
    %c0_i32_0 = arith.constant 0 : i32
    %c0_i32_1 = arith.constant 0 : i32
    return %c0_i32, %c0_i32_0 : i32, i32
  }
  func.func @transform_17(%arg0: i32) -> (i32, i32) {
    %c0_i32 = arith.constant 0 : i32
    %c0_i32_0 = arith.constant 0 : i32
    %c0_i32_1 = arith.constant 0 : i32
    return %c0_i32, %c0_i32_0 : i32, i32
  }
  func.func @transform_18(%arg0: i32) -> (i32, i32) {
    %c0_i32 = arith.constant 0 : i32
    %c0_i32_0 = arith.constant 0 : i32
    %c0_i32_1 = arith.constant 0 : i32
    return %c0_i32, %c0_i32_0 : i32, i32
  }
  func.func @transform_19(%arg0: i32) -> (i32, i32) {
    %c0_i32 = arith.constant 0 : i32
    %c0_i32_0 = arith.constant 0 : i32
    %c0_i32_1 = arith.constant 0 : i32
    return %c0_i32, %c0_i32_0 : i32, i32
  }
  func.func @transform_20(%arg0: i32) -> (i32, i32) {
    %c0_i32 = arith.constant 0 : i32
    %c0_i32_0 = arith.constant 0 : i32
    %c0_i32_1 = arith.constant 0 : i32
    return %c0_i32, %c0_i32_0 : i32, i32
  }
  func.func @transform_21(%arg0: i32) -> (i32, i32, i32) {
    %c0_i32 = arith.constant 0 : i32
    %c0_i32_0 = arith.constant 0 : i32
    %c0_i32_1 = arith.constant 0 : i32
    %c0_i32_2 = arith.constant 0 : i32
    return %c0_i32, %c0_i32_0, %c0_i32_1 : i32, i32, i32
  }
  func.func @transform_22(%arg0: i32) -> (i32, i32) {
    %c0_i32 = arith.constant 0 : i32
    %c0_i32_0 = arith.constant 0 : i32
    %c0_i32_1 = arith.constant 0 : i32
    return %c0_i32, %c0_i32_0 : i32, i32
  }
  func.func @transform_23(%arg0: i32) -> (i32, i32, i32) {
    %c0_i32 = arith.constant 0 : i32
    %c0_i32_0 = arith.constant 0 : i32
    %c0_i32_1 = arith.constant 0 : i32
    %c0_i32_2 = arith.constant 0 : i32
    return %c0_i32, %c0_i32_0, %c0_i32_1 : i32, i32, i32
  }
  func.func @transform_24(%arg0: i32) -> (i32, i32) {
    %c0_i32 = arith.constant 0 : i32
    %c0_i32_0 = arith.constant 0 : i32
    %c0_i32_1 = arith.constant 0 : i32
    return %c0_i32, %c0_i32_0 : i32, i32
  }
  func.func @transform_25(%arg0: i32) -> (i32, i32, i32) {
    %c0_i32 = arith.constant 0 : i32
    %c0_i32_0 = arith.constant 0 : i32
    %c0_i32_1 = arith.constant 0 : i32
    %c0_i32_2 = arith.constant 0 : i32
    return %c0_i32, %c0_i32_0, %c0_i32_1 : i32, i32, i32
  }
  func.func @transform_26(%arg0: i32) -> (i32, i32) {
    %c0_i32 = arith.constant 0 : i32
    %c0_i32_0 = arith.constant 0 : i32
    %c0_i32_1 = arith.constant 0 : i32
    return %c0_i32, %c0_i32_0 : i32, i32
  }
  func.func @transform_27(%arg0: i32) -> (i32, i32, i32) {
    %c0_i32 = arith.constant 0 : i32
    %c0_i32_0 = arith.constant 0 : i32
    %c0_i32_1 = arith.constant 0 : i32
    return %arg0, %c0_i32, %c0_i32_0 : i32, i32, i32
  }
}

</mosaic_0001>

<bundles_post_ra>
// kernel: downblock_forward.1
= control target key start
LH: loop header
LB: loop body
LE: loop exit
PB: predicated region body
PF: predicated region fallthrough
CT: control target
= control target key end

     0   :  { %s13856_s0 = inlined_call_operand.vmem [shape: f32[2,64,8], index: 0, kind: input, shape index: {}]   ;;  %s13857_s1 = inlined_call_operand.vmem [shape: f32[2,1,32], index: 1, kind: input, shape index: {}]   ;;  %s13858_s2 = inlined_call_operand.hbm [shape: f32[9,64,1], index: 2, kind: input, shape index: {}]   ;;  %s13859_s3 = inlined_call_operand.vmem [shape: f32[8,8], index: 3, kind: input, shape index: {}]   ;;  %s13860_s4 = inlined_call_operand.vmem [shape: f32[16,16], index: 4, kind: input, shape index: {}]   ;;  %s13861_s5 = inlined_call_operand.vmem [shape: f32[1,8], index: 5, kind: input, shape index: {}]   ;;  %s13862_s6 = inlined_call_operand.vmem [shape: f32[1,8], index: 6, kind: input, shape index: {}]   ;;  %s13863_s7 = inlined_call_operand.vmem [shape: bf16[9,8,16], index: 7, kind: input, shape index: {}]   ;;  %s13864_s8 = inlined_call_operand.vmem [shape: f32[1,16], index: 8, kind: input, shape index: {}]   ;;  %s13865_s9 = inlined_call_operand.vmem [shape: f32[32,16], index: 9, kind: input, shape index: {}]   ;;  %s13866_s10 = inlined_call_operand.vmem [shape: f32[1,16], index: 10, kind: input, shape index: {}]   ;;  %s13867_s11 = inlined_call_operand.vmem [shape: f32[1,16], index: 11, kind: input, shape index: {}]   ;;  %s13868_s12 = inlined_call_operand.vmem [shape: f32[1,16], index: 12, kind: input, shape index: {}]   ;;  %s13869_s13 = inlined_call_operand.vmem [shape: bf16[9,16,16], index: 13, kind: input, shape index: {}]   ;;  %s13870_s14 = inlined_call_operand.vmem [shape: f32[1,16], index: 14, kind: input, shape index: {}]   ;;  %s13871_s15 = inlined_call_operand.vmem [shape: bf16[8,16], index: 15, kind: input, shape index: {}]   ;;  %s13872_s16 = inlined_call_operand.vmem [shape: f32[1,16], index: 16, kind: input, shape index: {}]   ;;  %s13873_s17 = inlined_call_operand.vmem [shape: f32[1,16], index: 17, kind: input, shape index: {}]   ;;  %s13874_s18 = inlined_call_operand.vmem [shape: f32[1,16], index: 18, kind: input, shape index: {}]   ;;  %s13875_s19 = inlined_call_operand.vmem [shape: bf16[16,48], index: 19, kind: input, shape index: {}]   ;;  %s13876_s20 = inlined_call_operand.vmem [shape: f32[1,48], index: 20, kind: input, shape index: {}]   ;;  %s13877_s21 = inlined_call_operand.vmem [shape: bf16[4,4,16], index: 21, kind: input, shape index: {}]   ;;  %s13878_s22 = inlined_call_operand.vmem [shape: f32[1,16], index: 22, kind: input, shape index: {}]   ;;  %s13879_s23 = inlined_call_operand.vmem [shape: f32[16,64,1], index: 23, kind: input, shape index: {}]   ;;  %s13880_s24 = inlined_call_operand.vmem [shape: f32[16,64], index: 24, kind: input, shape index: {}]   ;;  %s13881_s25 = inlined_call_operand.vmem [shape: bf16[16,16,16], index: 25, kind: input, shape index: {}]   ;;  %s13882_s26 = inlined_call_operand.vmem [shape: f32[1,16], index: 26, kind: input, shape index: {}]   ;;  %s13883_s27 = inlined_call_operand.hbm [shape: f32[2,16,16], index: 27, kind: output, shape index: {}]  }
   0x1   :  { %14010 = sst [smem:[#allocation87_spill]] %s13856_s0 }
   0x2   :  { %14011 = sst [smem:[#allocation88_spill]] %s13857_s1 }
   0x3   :  { %14012 = sst [smem:[#allocation89_spill]] %s13858_s2 }
   0x4   :  { %14013 = sst [smem:[#allocation90_spill]] %s13859_s3 }
   0x5   :  { %14014 = sst [smem:[#allocation91_spill]] %s13860_s4 }
   0x6   :  { %14015 = sst [smem:[#allocation92_spill]] %s13861_s5 }
   0x7   :  { %14016 = sst [smem:[#allocation93_spill]] %s13862_s6 }
   0x8   :  { %14017 = sst [smem:[#allocation94_spill]] %s13863_s7 }
   0x9   :  { %14018 = sst [smem:[#allocation95_spill]] %s13864_s8 }
   0xa   :  { %14019 = sst [smem:[#allocation96_spill]] %s13865_s9 }
   0xb   :  { %14020 = sst [smem:[#allocation97_spill]] %s13866_s10 }
   0xc   :  { %14021 = sst [smem:[#allocation98_spill]] %s13867_s11 }
   0xd   :  { %14022 = sst [smem:[#allocation99_spill]] %s13868_s12 }
   0xe   :  { %32 = vsyncpa [#allocation3], 0 }
   0xf   :  { %33 = vsyncpa [#allocation4], 0 }
  0x10   :  { %35 = vsyncpa [#allocation4 + $0x1], 0  ;;  %s10426_s7 = smov 0   ;;  %s10428_s4 = smov 0  }
  0x11   :  { %s10430_s8 = smov 0   ;;  %s10432_s30 = smov 0  }
  0x12 LB: > { %14023 = sst [smem:[#allocation8_spill]] %s10260_s8  ;;  %s10447_s9 = sadd.s32 4294967295, %s10264_s30   ;;  %s10264_s30 = sphi %s10432_s30, %s14493_s30   ;;  %s10260_s8 = sphi %s10430_s8, %s14495_s8   ;;  %s10256_s4 = sphi %s10428_s4, %s14497_s4   ;;  %s10252_s7 = sphi %s10426_s7, %s14496_s7  }
  0x13   : > { %s8504_s5 = sadd.s32 4294967294, %s10264_s30   ;;  %s10451_s28 = sadd.s32 1, %s10264_s30  }
  0x14   : > { %14024 = sst [smem:[#allocation9_spill]] %s10451_s28  ;;  %s625_s0 = sadd.s32 1, %s10260_s8 }
  0x15   : > { %s622_s10 = ssub.s32 %s10264_s30, %s10451_s28  ;;  %p635_p0 = scmp.ne.s32.totalorder %s10260_s8, %s10256_s4 }
  0x16   : > { %p623_p1 = scmp.eq.s32.totalorder %s622_s10, 0  ;;  %p636_p2 = scmp.eq.s32.totalorder %s10447_s9, 1 }
  0x17   : > { %p641_p3 = scmp.ne.s32.totalorder %s10256_s4, %s10252_s7  ;;  %p642_p4 = scmp.eq.s32.totalorder %s8504_s5, 1 }
  0x18   : > { %s10462_s29 = scalar_select %p623_p1, %s10260_s8, %s625_s0  }
  0x19   : > { %p10464_p5 = por %p636_p2, %p635_p0  ;;  %p10468_p6 = por %p642_p4, %p641_p3 }
  0x1a   : > { %14025 = sst [smem:[#allocation10_spill]] %s10462_s29  ;;  %p8505_p7 = scmp.ge.s32.totalorder %s10264_s30, 1 }
  0x1b   : > { %s14027_s6 = scalar_select %p10468_p6, 1, 0 }
  0x1c   : > { %p649_p8 = scmp.lt.s32.totalorder %s10264_s30, 3  ;;  %p9880_p9 = scmp.eq.s32.totalorder %s10447_s9, 0 }
  0x1d   : > { %14028 = sst [smem:[#allocation11_spill]] %s14027_s6  ;;  %s10266_s2 = smov [#allocation2]  }
  0x1e   : > { %p10475_p10 = pnand %p8505_p7, %p649_p8  ;;  %s661_s3 = sshll.u32 %s10266_s2, 4  ;;  %s662_s3 = int_to_ptr.vmem [resolvable:$true] %s661_s3 }
  0x1f   : > { %s10185_s5 = scalar_lea.vmem %s662_s3, 9216  ;;  %p10193_p3 = scmp.lt.s32.totalorder %s662_s3, %s662_s3 }
  0x20   : > { %p9872_p11 = pneg %p10475_p10  ;;  %p10186_p0 = scmp.ne.s32.totalorder %s662_s3, %s10185_s5 }
  0x21   : > { %p10194_p4 = scmp.lt.s32.totalorder %s10185_s5, %s10185_s5 }
  0x22   : > { %p9873_p12 = pnand %p9880_p9, %p9872_p11 }
  0x23   : > { %p10195_p6 = por %p10194_p4, %p10193_p3 }
  0x24   : > { %p10176_p13 = pneg %p9873_p12 }
  0x26   : > { %p10188_p1 = pnand %p10186_p0, %p10176_p13 }
  0x28   : > { %p10189_p2 = pneg %p10188_p1 }
  0x2a   : > { %p10196_p7 = pnand %p10195_p6, %p10189_p2 }
  0x2c   : > { %10199 = shalt.err (!%p10196_p7)
}
  0x2d   : > { %s10267_s0 = smov 128   ;;  %s10268_s10 = smov 8  }
  0x2e   : > { %s14030_s2 = sld [smem:[#allocation89_spill]] }
  0x30   : > { %763 = sbr.rel (%p10475_p10) target bundleno = 5531 (0x159b), region = 128 }
  0x34   : > { %9875 = dma.hbm_to_vmem [thread:$0]  (!%p9873_p12), %s14030_s2, 9216, %s662_s3, [#allocation3], %s10267_s0, %s10267_s0, %s10268_s10  }
  0x35   : > { %10243 = dma.done.wait (%p9880_p9), [#allocation3], 9216  }
  0x36   : > { %10245 = vsyncadd (%p9880_p9), [#allocation3], 4294958080  ;;  %p838_p8 = scmp.lt.s32.totalorder %s10447_s9, 1  ;;  %v13891_v0 = vmov 0.0   ;;  %vm10270_vm0 = vmmov 0   ;;  %v10271_v1 = vmov 0  }
  0x37   : > { %9240 = vmatprep.subr.mxu0 %v13891_v0  ;;  %9242 = vmatprep.mubr.msk.f32.mxu0 %vm10270_vm0, %v13891_v0  ;;  %s14031_s5 = sld [smem:[#allocation87_spill]]  ;;  %vm860_vm1 = vcmask 64512   ;;  %v1336_v16 = vld [vmem:[#allocation2 + $0x50] sm:$0xff]  ;;  %v1334_v17 = vld [vmem:[#allocation2 + $0x40] sm:$0xff]  ;;  %v1337_v23 = vld [vmem:[#allocation2 + $0x58] sm:$0xff]  ;;  %vm1408_vm2 = vcmask 1043456  }
  0x38   : > { %s10497_s8 = scalar_select %p838_p8, %s10447_s9, 1  ;;  %9935 = vset.pattern.permute.xlu1 %v10271_v1  ;;  %9934 = vset.pattern.permute.xlu0 %v10271_v1  ;;  %v1335_v24 = vld [vmem:[#allocation2 + $0x48] sm:$0xff]  ;;  %v1338_v27 = vld [vmem:[#allocation2 + $0x60] sm:$0xff]  ;;  %v1341_v30 = vld [vmem:[#allocation2 + $0x78] sm:$0xff]  ;;  %vm1179_vm3 = vcmask 261120   ;;  %vm2603_vm6 = vcmask 130048  }
  0x39   : > { %9245 = vmatprep.subr.mxu1 %v13891_v0  ;;  %9247 = vmatprep.mubr.msk.f32.mxu1 %vm10270_vm0, %v13891_v0  ;;  %s14032_s28 = sld [smem:[#allocation90_spill]]  ;;  %v1339_v26 = vld [vmem:[#allocation2 + $0x68] sm:$0xff]  ;;  %v1340_v31 = vld [vmem:[#allocation2 + $0x70] sm:$0xff]  ;;  %v1272_v41 = vld [vmem:[#allocation2] sm:$0xff]  ;;  %vm4348_vm7 = vcmask 31744   ;;  %vm4438_vm8 = vcmask 523264  }
  0x3a   : > { %s8943_s29 = sshll.u32 %s10497_s8, 6  ;;  %1354 = vperm.xlu1 %9935, %v1336_v16   ;;  %1344 = vperm.xlu0 %9934, %v1334_v17   ;;  %v1273_v40 = vld [vmem:[#allocation2 + $0x8] sm:$0xff]  ;;  %v1275_v42 = vld [vmem:[#allocation2 + $0x18] sm:$0xff]  ;;  %v1274_v43 = vld [vmem:[#allocation2 + $0x10] sm:$0xff]  ;;  %s14035_s11 = sld [smem:[#allocation88_spill]]  ;;  %vm4929_vm9 = vcmask 1041408  }
  0x3b   : > { %v1576_v44 = vld [vmem:[#allocation2 + $0x88] sm:$0xff]  ;;  %v1575_v45 = vld [vmem:[#allocation2 + $0x80] sm:$0xff]  ;;  %v1578_v46 = vld [vmem:[#allocation2 + $0x98] sm:$0xff]  ;;  %s14042_s10 = sld [smem:[#allocation96_spill]] }
  0x3c   : > { %v1577_v47 = vld [vmem:[#allocation2 + $0x90] sm:$0xff]  ;;  %v1277_v48 = vld [vmem:[#allocation2 + $0x28] sm:$0xff]  ;;  %v1276_v49 = vld [vmem:[#allocation2 + $0x20] sm:$0xff]  ;;  %s14132_s2 = sld [smem:[#allocation95_spill]] }
  0x3d   : > { %s10506_s0 = scalar_lea.vmem %s14031_s5, %s8943_s29  ;;  %v1279_v50 = vld [vmem:[#allocation2 + $0x38] sm:$0xff]  ;;  %v1278_v51 = vld [vmem:[#allocation2 + $0x30] sm:$0xff]  ;;  %v1580_v52 = vld [vmem:[#allocation2 + $0xa8] sm:$0xff]  ;;  %s14126_s5 = sld [smem:[#allocation91_spill]] }
  0x3e   : > { %v10512_v3 = vld [vmem:[%s10506_s0] sm:$0xff]  ;;  %v10515_v4 = vld [vmem:[%s10506_s0 + $0x8] sm:$0xff]  ;;  %v10518_v5 = vld [vmem:[%s10506_s0 + $0x10] sm:$0xff]  ;;  %1359 = vperm.xlu1 %9935, %v1337_v23   ;;  %1349 = vperm.xlu0 %9934, %v1335_v24   ;;  %s14138_s12 = sld [smem:[#allocation99_spill]]  ;;  %s10274_s29 = smov 108  }
  0x3f   : > { %v855_v2 = vld [vmem:[%s14032_s28] sm:$0xff]  ;;  %v10521_v6 = vld [vmem:[%s10506_s0 + $0x18] sm:$0xff]  ;;  %v861_v8 = vsel %vm860_vm1, %v10512_v3, 0.0  ;;  %v862_v9 = vsel %vm860_vm1, %v10515_v4, 0.0  ;;  %v10531_v10 = vld [vmem:[%s10506_s0 + $0x28] sm:$0xff]  ;;  %v864_v14 = vsel %vm860_vm1, %v10518_v5, 0.0 }
  0x40   : > { %9241 = vmatpush3.msra.mxu0 %v855_v2  ;;  %v10524_v7 = vld [vmem:[%s10506_s0 + $0x20] sm:$0xff]  ;;  %9246 = vmatpush3.msra.mxu1 %v855_v2  ;;  %v10534_v11 = vld [vmem:[%s10506_s0 + $0x30] sm:$0xff]  ;;  %v10537_v12 = vld [vmem:[%s10506_s0 + $0x38] sm:$0xff]  ;;  %v863_v13 = vadd.f32 %v862_v9, %v861_v8  ;;  %v866_v15 = vsel %vm860_vm1, %v10521_v6, 0.0  ;;  %v870_v20 = vsel %vm860_vm1, %v10531_v10, 0.0  ;;  %s845_s3 = scalar_lea.vmem %s14035_s11, %s10497_s8  ;;  %s14045_s8 = sld [smem:[#allocation94_spill]] }
  0x41   : > { %9250 = vmatprep.subr.mxu0 %v13891_v0  ;;  %v868_v19 = vsel %vm860_vm1, %v10524_v7, 0.0  ;;  %v872_v21 = vsel %vm860_vm1, %v10534_v11, 0.0  ;;  %v874_v22 = vsel %vm860_vm1, %v10537_v12, 0.0  ;;  %v1579_v53 = vld [vmem:[#allocation2 + $0xa0] sm:$0xff]  ;;  %v1582_v54 = vld [vmem:[#allocation2 + $0xb8] sm:$0xff]  ;;  %v1581_v55 = vld [vmem:[#allocation2 + $0xb0] sm:$0xff] }
  0x42   : > { %v865_v18 = vadd.f32 %v864_v14, %v863_v13  ;;  %1369 = vperm.xlu1 %9935, %v1339_v26   ;;  %1364 = vperm.xlu0 %9934, %v1338_v27   ;;  %v1727_v56 = vld [vmem:[#allocation2 + $0xc8] sm:$0xff]  ;;  %v1726_v57 = vld [vmem:[#allocation2 + $0xc0] sm:$0xff]  ;;  %v1729_v58 = vld [vmem:[#allocation2 + $0xd8] sm:$0xff]  ;;  %s14073_s11 = sld [smem:[#allocation92_spill]]  ;;  %s10273_s28 = smov 96  }
  0x43   : > { %v1728_v59 = vld [vmem:[#allocation2 + $0xd0] sm:$0xff]  ;;  %v1731_v60 = vld [vmem:[#allocation2 + $0xe8] sm:$0xff]  ;;  %v1730_v61 = vld [vmem:[#allocation2 + $0xe0] sm:$0xff] }
  0x44   : > { %v867_v25 = vadd.f32 %v866_v15, %v865_v18  ;;  %v1733_v62 = vld [vmem:[#allocation2 + $0xf8] sm:$0xff]  ;;  %v1732_v63 = vld [vmem:[#allocation2 + $0xf0] sm:$0xff]  ;;  %v1972_v1 = vld [vmem:[#allocation2 + $0x148] sm:$0xff] }
  0x45   : > { %v1971_v2 = vld [vmem:[#allocation2 + $0x140] sm:$0xff]  ;;  %v1974_v8 = vld [vmem:[#allocation2 + $0x158] sm:$0xff]  ;;  %v1973_v9 = vld [vmem:[#allocation2 + $0x150] sm:$0xff] }
  0x46   : > { %v869_v28 = vadd.f32 %v868_v19, %v867_v25  ;;  %1379 = vperm.xlu1 %9935, %v1341_v30   ;;  %1374 = vperm.xlu0 %9934, %v1340_v31   ;;  %v2123_v13 = vld [vmem:[#allocation2 + $0x188] sm:$0xff]  ;;  %v2122_v14 = vld [vmem:[#allocation2 + $0x180] sm:$0xff]  ;;  %v2125_v15 = vld [vmem:[#allocation2 + $0x198] sm:$0xff]  ;;  %s14046_s6 = smov %s14045_s8 }
  0x47   : > { %v2124_v16 = vld [vmem:[#allocation2 + $0x190] sm:$0xff]  ;;  %v1976_v17 = vld [vmem:[#allocation2 + $0x168] sm:$0xff]  ;;  %v1975_v18 = vld [vmem:[#allocation2 + $0x160] sm:$0xff] }
  0x48   : > { %v871_v29 = vadd.f32 %v870_v20, %v869_v28  ;;  %v1978_v19 = vld [vmem:[#allocation2 + $0x178] sm:$0xff]  ;;  %v1977_v20 = vld [vmem:[#allocation2 + $0x170] sm:$0xff]  ;;  %v2274_v25 = vld [vmem:[#allocation2 + $0x1c8] sm:$0xff] }
  0x49   : > { %v2129_v23 = vld [vmem:[#allocation2 + $0x1b8] sm:$0xff]  ;;  %v2128_v24 = vld [vmem:[#allocation2 + $0x1b0] sm:$0xff]  ;;  %v2273_v26 = vld [vmem:[#allocation2 + $0x1c0] sm:$0xff] }
  0x4a   : > { %v873_v32 = vadd.f32 %v872_v21, %v871_v29  ;;  %1287 = vperm.xlu1 %9935, %v1273_v40   ;;  %1282 = vperm.xlu0 %9934, %v1272_v41   ;;  %v2127_v21 = vld [vmem:[#allocation2 + $0x1a8] sm:$0xff]  ;;  %v2276_v27 = vld [vmem:[#allocation2 + $0x1d8] sm:$0xff]  ;;  %v2275_v28 = vld [vmem:[#allocation2 + $0x1d0] sm:$0xff]  ;;  %v955_v41 = vlaneseq }
  0x4b   : > { %v2425_v29 = vld [vmem:[#allocation2 + $0x208] sm:$0xff]  ;;  %v2424_v30 = vld [vmem:[#allocation2 + $0x200] sm:$0xff]  ;;  %v2427_v31 = vld [vmem:[#allocation2 + $0x218] sm:$0xff] }
  0x4c   : > { %v875_v33 = vadd.f32 %v874_v22, %v873_v32  ;;  %v2126_v22 = vld [vmem:[#allocation2 + $0x1a0] sm:$0xff]  ;;  %v2426_v32 = vld [vmem:[#allocation2 + $0x210] sm:$0xff] }
  0x4d   : > { %v2430_v40 = vld [vmem:[#allocation2 + $0x230] sm:$0xff] }
  0x4e   : > { %v876_v34 = vrot.slane %v875_v33, 4  ;;  %1297 = vperm.xlu1 %9935, %v1275_v42   ;;  %1292 = vperm.xlu0 %9934, %v1274_v43   ;;  %v10555_v42 = vshrl.u32 %v955_v41, 7  ;;  %v1332_v41 = vld [vmem:[%s14046_s6] sm:$0xf] }
  0x50   : > { %v877_v35 = vadd.f32 %v876_v34, %v875_v33  ;;  %v2278_v33 = vld [vmem:[#allocation2 + $0x1e8] sm:$0xff]  ;;  %v2277_v34 = vld [vmem:[#allocation2 + $0x1e0] sm:$0xff]  ;;  %14033 = vst [vmem:[#allocation12_spill] sm:$0xff] %v10555_v42  ;;  %v10558_v43 = vsub.s32 0, %v10555_v42  ;;  %vm1565_vm4 = vcmp.lt.s32.totalorder %v10555_v42, 7  ;;  %vm1263_vm5 = vcmp.lt.s32.totalorder %v10555_v42, 1 }
  0x52   : > { %v878_v36 = vrot.slane %v877_v35, 2  ;;  %1590 = vperm.xlu1 %9935, %v1576_v44   ;;  %1585 = vperm.xlu0 %9934, %v1575_v45   ;;  %14034 = vst [vmem:[#allocation13_spill] sm:$0xff] %v10558_v43 }
  0x54   : > { %v879_v37 = vadd.f32 %v878_v36, %v877_v35  ;;  %v2280_v35 = vld [vmem:[#allocation2 + $0x1f8] sm:$0xff]  ;;  %v2279_v36 = vld [vmem:[#allocation2 + $0x1f0] sm:$0xff] }
  0x56   : > { %v880_v38 = vrot.slane %v879_v37, 1  ;;  %1600 = vperm.xlu1 %9935, %v1578_v46   ;;  %1595 = vperm.xlu0 %9934, %v1577_v47  }
  0x58   : > { %v881_v39 = vadd.f32 %v880_v38, %v879_v37  ;;  %v2429_v37 = vld [vmem:[#allocation2 + $0x228] sm:$0xff]  ;;  %v2428_v38 = vld [vmem:[#allocation2 + $0x220] sm:$0xff] }
  0x5a   : > { %9243 = vmatmul.mubr.msk.f32.vlgmr.msra.gmra.mxu0 %vm860_vm1, %v881_v39  ;;  %1307 = vperm.xlu1 %9935, %v1277_v48   ;;  %v2431_v39 = vld [vmem:[#allocation2 + $0x238] sm:$0xff] }
  0x5b   : > { %9258 = vmatprep.mubr.msk.f32.mxu0 %vm10270_vm0, %v13891_v0  ;;  %1302 = vperm.xlu0 %9934, %v1276_v49  }
  0x5e   : > { %1317 = vperm.xlu1 %9935, %v1279_v50  }
  0x5f   : > { %1312 = vperm.xlu0 %9934, %v1278_v51  }
  0x62   : > { %1610 = vperm.xlu1 %9935, %v1580_v52  }
  0x63   : > { %1605 = vperm.xlu0 %9934, %v1579_v53  }
  0x66   : > { %1620 = vperm.xlu1 %9935, %v1582_v54  }
  0x67   : > { %1615 = vperm.xlu0 %9934, %v1581_v55  }
  0x6a   : > { %1741 = vperm.xlu1 %9935, %v1727_v56  }
  0x6b   : > { %1736 = vperm.xlu0 %9934, %v1726_v57  }
  0x6e   : > { %1751 = vperm.xlu1 %9935, %v1729_v58  }
  0x6f   : > { %1746 = vperm.xlu0 %9934, %v1728_v59  }
  0x72   : > { %1761 = vperm.xlu1 %9935, %v1731_v60  }
  0x73   : > { %1756 = vperm.xlu0 %9934, %v1730_v61  }
  0x76   : > { %1771 = vperm.xlu1 %9935, %v1733_v62  }
  0x77   : > { %1766 = vperm.xlu0 %9934, %v1732_v63  }
  0x7a   : > { %1986 = vperm.xlu1 %9935, %v1972_v1  }
  0x7b   : > { %1981 = vperm.xlu0 %9934, %v1971_v2  }
  0x7e   : > { %1996 = vperm.xlu1 %9935, %v1974_v8  }
  0x7f   : > { %1991 = vperm.xlu0 %9934, %v1973_v9  }
  0x82   : > { %2137 = vperm.xlu1 %9935, %v2123_v13  }
  0x83   : > { %2132 = vperm.xlu0 %9934, %v2122_v14  }
  0x86   : > { %2147 = vperm.xlu1 %9935, %v2125_v15  }
  0x87   : > { %2142 = vperm.xlu0 %9934, %v2124_v16  }
  0x8a   : > { %2006 = vperm.xlu1 %9935, %v1976_v17  }
  0x8b   : > { %2001 = vperm.xlu0 %9934, %v1975_v18  }
  0x8e   : > { %2016 = vperm.xlu1 %9935, %v1978_v19  }
  0x8f   : > { %2011 = vperm.xlu0 %9934, %v1977_v20  }
  0x92   : > { %2157 = vperm.xlu1 %9935, %v2127_v21   ;;  %v1166_v21 = vld [vmem:[%s845_s3] sm:$0x1]  ;;  %s10277_s3 = smov 104  }
  0x93   : > { %2152 = vperm.xlu0 %9934, %v2126_v22   ;;  %v8525_v22 = vmul.f32 -1.442695, %v1166_v21 }
  0x95   : > { %9962 = vpow2.f32 %v8525_v22 }
  0x96   : > { %2167 = vperm.xlu1 %9935, %v2129_v23  }
  0x97   : > { %2162 = vperm.xlu0 %9934, %v2128_v24  }
  0x9a   : > { %2288 = vperm.xlu1 %9935, %v2274_v25  }
  0x9b   : > { %2283 = vperm.xlu0 %9934, %v2273_v26  }
  0x9e   : > { %2298 = vperm.xlu1 %9935, %v2276_v27  }
  0x9f   : > { %2293 = vperm.xlu0 %9934, %v2275_v28  }
  0xa2   : > { %2439 = vperm.xlu1 %9935, %v2425_v29   ;;  %v9963_v25 = vpop.eup %9962 }
  0xa3   : > { %2434 = vperm.xlu0 %9934, %v2424_v30   ;;  %v1170_v28 = vadd.f32 1.0, %v9963_v25  ;;  %v8515_v25 = vld [vmem:[%s14073_s11] ss:$0 sm:$0xff]  ;;  %s14130_s11 = sld [smem:[#allocation97_spill]] }
  0xa5   : > { %9964 = vrcp.f32 %v1170_v28 }
  0xa6   : > { %2449 = vperm.xlu1 %9935, %v2427_v31   ;;  %v1177_v31 = vld [vmem:[%s14042_s10 + $0x18] sm:$0xff] }
  0xa7   : > { %2444 = vperm.xlu0 %9934, %v2426_v32   ;;  %9251 = vmatpush3.msra.mxu0 %v1177_v31 }
  0xa8   : > { %9252 = vmatprep.subr.mxu0 %v13891_v0 }
  0xaa   : > { %2308 = vperm.xlu1 %9935, %v2278_v33  }
  0xab   : > { %2303 = vperm.xlu0 %9934, %v2277_v34   ;;  %v1176_v34 = vld [vmem:[%s14042_s10 + $0x10] sm:$0xff] }
  0xac   : > { %9253 = vmatpush3.msra.mxu0 %v1176_v34 }
  0xad   : > { %9254 = vmatprep.subr.mxu0 %v13891_v0 }
  0xae   : > { %2318 = vperm.xlu1 %9935, %v2280_v35   ;;  %v1175_v35 = vld [vmem:[%s14042_s10 + $0x8] sm:$0xff] }
  0xaf   : > { %2313 = vperm.xlu0 %9934, %v2279_v36   ;;  %v8527_v36 = vld [vmem:[%s14045_s8 + $0x4] sm:$0xf]  ;;  %9255 = vmatpush3.msra.mxu0 %v1175_v35  ;;  %s14076_s8 = sld [smem:[#allocation93_spill]] }
  0xb0   : > { %9836 = vmatprep.subr.msk.bf16.mxu1 %vm1408_vm2, %v8527_v36  ;;  %9256 = vmatprep.subr.mxu0 %v13891_v0 }
  0xb2   : > { %2459 = vperm.xlu1 %9935, %v2429_v37   ;;  %v9965_v37 = vpop.eup %9964 }
  0xb3   : > { %2454 = vperm.xlu0 %9934, %v2428_v38   ;;  %v1410_v38 = vsel %vm1408_vm2, %v8527_v36, 0 }
  0xb5   : > { %v10614_v23 = vpop.permute.xlu1 %1354  ;;  %v10616_v24 = vpop.permute.xlu0 %1344 }
  0xb6   : > { %2469 = vperm.xlu1 %9935, %v2431_v39   ;;  %14036 = vst [vmem:[#allocation14_spill] sm:$0xff] %v10614_v23  ;;  %14037 = vst [vmem:[#allocation15_spill] sm:$0xff] %v10616_v24  ;;  %v1174_v39 = vld [vmem:[%s14042_s10] sm:$0xff]  ;;  %s10282_s10 = smov 84  }
  0xb7   : > { %2464 = vperm.xlu0 %9934, %v2430_v40   ;;  %v1173_v40 = vmul.f32 %v9965_v37, %v1166_v21  ;;  %9257 = vmatpush3.msra.mxu0 %v1174_v39 }
  0xb8   : > { %9837 = vmatprep.subr.msk.bf16.mxu0 %vm1408_vm2, %v1332_v41 }
  0xb9   : > { %v10618_v26 = vpop.permute.xlu1 %1359  ;;  %v10620_v27 = vpop.permute.xlu0 %1349  ;;  %9259 = vmatmul.mubr.msk.f32.vlgmr.msra.gmra.mxu0 %vm1179_vm3, %v1173_v40 }
  0xba   : > { %14038 = vst [vmem:[#allocation16_spill] sm:$0xff] %v10618_v26  ;;  %14039 = vst [vmem:[#allocation17_spill] sm:$0xff] %v10620_v27 }
  0xbd   : > { %v10622_v29 = vpop.permute.xlu1 %1369  ;;  %v10624_v30 = vpop.permute.xlu0 %1364 }
  0xbe   : > { %14040 = vst [vmem:[#allocation18_spill] sm:$0xff] %v10622_v29  ;;  %14041 = vst [vmem:[#allocation19_spill] sm:$0xff] %v10624_v30 }
  0xc1   : > { %v10629_v32 = vpop.permute.xlu1 %1379  ;;  %v10631_v33 = vpop.permute.xlu0 %1374 }
  0xc2   : > { %14043 = vst [vmem:[#allocation20_spill] sm:$0xff] %v10629_v32  ;;  %14044 = vst [vmem:[#allocation21_spill] sm:$0xff] %v10631_v33 }
 0x11a   : > { %v951_v44 = vpop.f32.mrf.mxu0 }
 0x11b   : > { %v958_v45 = vrot.slane %v951_v44, %v10558_v43  ;;  %v10653_v44 = vpop.permute.xlu1 %1287 }
 0x11c   : > { %v9244_v46 = vpop.f32.mrf.mxu0  ;;  %14047 = vst [vmem:[#allocation22_spill] sm:$0xff] %v10653_v44 }
 0x11d   : > { %v10562_v47 = vsub.f32 %v10512_v3, %v958_v45  ;;  %v10565_v48 = vsub.f32 %v10515_v4, %v958_v45  ;;  %v10568_v49 = vsub.f32 %v10518_v5, %v958_v45  ;;  %v10571_v50 = vsub.f32 %v10521_v6, %v958_v45 }
 0x11e   : > { %v10574_v51 = vsub.f32 %v10524_v7, %v958_v45  ;;  %v10583_v4 = vsub.f32 %v10531_v10, %v958_v45  ;;  %v10590_v55 = vsub.f32 %v10534_v11, %v958_v45  ;;  %v10596_v10 = vsub.f32 %v10537_v12, %v958_v45  ;;  %v10655_v45 = vpop.permute.xlu0 %1282 }
 0x11f   : > { %v967_v52 = vmul.f32 %v10562_v47, %v10562_v47  ;;  %v968_v53 = vmul.f32 %v10565_v48, %v10565_v48  ;;  %v969_v3 = vmul.f32 %v10568_v49, %v10568_v49  ;;  %v970_v5 = vmul.f32 %v10571_v50, %v10571_v50  ;;  %14048 = vst [vmem:[#allocation23_spill] sm:$0xff] %v10655_v45 }
 0x120   : > { %v971_v56 = vmul.f32 %v10574_v51, %v10574_v51  ;;  %v972_v59 = vmul.f32 %v10583_v4, %v10583_v4  ;;  %v973_v62 = vmul.f32 %v10590_v55, %v10590_v55  ;;  %v974_v1 = vmul.f32 %v10596_v10, %v10596_v10 }
 0x121   : > { %v975_v6 = vsel %vm860_vm1, %v967_v52, 0.0  ;;  %v976_v7 = vsel %vm860_vm1, %v968_v53, 0.0  ;;  %v978_v57 = vsel %vm860_vm1, %v969_v3, 0.0  ;;  %v980_v60 = vsel %vm860_vm1, %v970_v5, 0.0  ;;  %v10662_v52 = vld [vmem:[%s14046_s6 + $0x8] sm:$0xf]  ;;  %v10666_v53 = vpop.permute.xlu1 %1297 }
 0x122   : > { %v977_v54 = vadd.f32 %v976_v7, %v975_v6  ;;  %v982_v11 = vsel %vm860_vm1, %v971_v56, 0.0  ;;  %v984_v2 = vsel %vm860_vm1, %v972_v59, 0.0  ;;  %v986_v8 = vsel %vm860_vm1, %v973_v62, 0.0  ;;  %14049 = vst [vmem:[#allocation24_spill] sm:$0xff] %v10666_v53  ;;  %v10668_v3 = vpop.permute.xlu0 %1292  ;;  %v10681_v56 = vld [vmem:[%s14046_s6 + $0xc] sm:$0xf] }
 0x123   : > { %v988_v13 = vsel %vm860_vm1, %v974_v1, 0.0  ;;  %v1490_v46 = vsel %vm1408_vm2, %v1332_v41, 0  ;;  %14050 = vst [vmem:[#allocation25_spill] sm:$0xff] %v10668_v3 }
 0x124   : > { %v979_v58 = vadd.f32 %v978_v57, %v977_v54  ;;  %9272 = vmatpush3.bf16.msra.mxu0 %v1490_v46 }
 0x125   : > { %v10670_v5 = vpop.permute.xlu1 %1590  ;;  %9839 = vmatprep.subr.msk.bf16.mxu0 %vm1408_vm2, %v10681_v56 }
 0x126   : > { %v981_v61 = vadd.f32 %v980_v60, %v979_v58  ;;  %14051 = vst [vmem:[#allocation26_spill] sm:$0xff] %v10670_v5  ;;  %v10672_v6 = vpop.permute.xlu0 %1585 }
 0x127   : > { %14052 = vst [vmem:[#allocation27_spill] sm:$0xff] %v10672_v6 }
 0x128   : > { %v983_v63 = vadd.f32 %v982_v11, %v981_v61 }
 0x129   : > { %v10674_v7 = vpop.permute.xlu1 %1600 }
 0x12a   : > { %v985_v12 = vadd.f32 %v984_v2, %v983_v63  ;;  %14053 = vst [vmem:[#allocation28_spill] sm:$0xff] %v10674_v7  ;;  %v10676_v54 = vpop.permute.xlu0 %1595 }
 0x12b   : > { %14054 = vst [vmem:[#allocation29_spill] sm:$0xff] %v10676_v54 }
 0x12c   : > { %v987_v9 = vadd.f32 %v986_v8, %v985_v12 }
 0x12d   : > { %v10685_v57 = vpop.permute.xlu1 %1307 }
 0x12e   : > { %v989_v14 = vadd.f32 %v988_v13, %v987_v9  ;;  %14055 = vst [vmem:[#allocation30_spill] sm:$0xff] %v10685_v57  ;;  %v10687_v58 = vpop.permute.xlu0 %1302 }
 0x12f   : > { %14056 = vst [vmem:[#allocation31_spill] sm:$0xff] %v10687_v58 }
 0x130   : > { %v990_v15 = vrot.slane %v989_v14, 4 }
 0x131   : > { %v10689_v59 = vpop.permute.xlu1 %1317 }
 0x132   : > { %v991_v16 = vadd.f32 %v990_v15, %v989_v14  ;;  %14057 = vst [vmem:[#allocation32_spill] sm:$0xff] %v10689_v59  ;;  %v10691_v60 = vpop.permute.xlu0 %1312 }
 0x133   : > { %14058 = vst [vmem:[#allocation33_spill] sm:$0xff] %v10691_v60 }
 0x134   : > { %v992_v17 = vrot.slane %v991_v16, 2 }
 0x135   : > { %v10693_v61 = vpop.permute.xlu1 %1610 }
 0x136   : > { %v993_v18 = vadd.f32 %v992_v17, %v991_v16  ;;  %14059 = vst [vmem:[#allocation34_spill] sm:$0xff] %v10693_v61  ;;  %v10695_v62 = vpop.permute.xlu0 %1605 }
 0x137   : > { %14060 = vst [vmem:[#allocation35_spill] sm:$0xff] %v10695_v62 }
 0x138   : > { %v994_v19 = vrot.slane %v993_v18, 1 }
 0x139   : > { %v10697_v11 = vpop.permute.xlu1 %1620 }
 0x13a   : > { %v995_v20 = vadd.f32 %v994_v19, %v993_v18  ;;  %14061 = vst [vmem:[#allocation36_spill] sm:$0xff] %v10697_v11  ;;  %v10699_v63 = vpop.permute.xlu0 %1615 }
 0x13b   : > { %14062 = vst [vmem:[#allocation37_spill] sm:$0xff] %v10699_v63 }
 0x13c   : > { %9248 = vmatmul.mubr.msk.f32.vlgmr.msra.gmra.mxu1 %vm860_vm1, %v995_v20 }
 0x13d   : > { %9262 = vmatpush3.bf16.msra.mxu1 %v1410_v38  ;;  %v10701_v1 = vpop.permute.xlu1 %1741  ;;  %v8516_v38 = vld [vmem:[%s14076_s8] ss:$0 sm:$0xff]  ;;  %s10278_s8 = smov 120  }
 0x13e   : > { %9838 = vmatprep.subr.msk.bf16.mxu1 %vm1408_vm2, %v10662_v52  ;;  %14063 = vst [vmem:[#allocation38_spill] sm:$0xff] %v10701_v1  ;;  %v10703_v2 = vpop.permute.xlu0 %1736 }
 0x13f   : > { %14064 = vst [vmem:[#allocation39_spill] sm:$0xff] %v10703_v2 }
 0x141   : > { %v10705_v12 = vpop.permute.xlu1 %1751 }
 0x142   : > { %14065 = vst [vmem:[#allocation40_spill] sm:$0xff] %v10705_v12  ;;  %v10707_v8 = vpop.permute.xlu0 %1746 }
 0x143   : > { %14066 = vst [vmem:[#allocation41_spill] sm:$0xff] %v10707_v8 }
 0x145   : > { %v10709_v13 = vpop.permute.xlu1 %1761 }
 0x146   : > { %14067 = vst [vmem:[#allocation42_spill] sm:$0xff] %v10709_v13  ;;  %v10711_v14 = vpop.permute.xlu0 %1756 }
 0x147   : > { %14068 = vst [vmem:[#allocation43_spill] sm:$0xff] %v10711_v14 }
 0x149   : > { %v10713_v17 = vpop.permute.xlu1 %1771 }
 0x14a   : > { %14069 = vst [vmem:[#allocation44_spill] sm:$0xff] %v10713_v17  ;;  %v10715_v18 = vpop.permute.xlu0 %1766 }
 0x14b   : > { %14070 = vst [vmem:[#allocation45_spill] sm:$0xff] %v10715_v18 }
 0x14d   : > { %v10717_v19 = vpop.permute.xlu1 %1986 }
 0x14e   : > { %14071 = vst [vmem:[#allocation46_spill] sm:$0xff] %v10717_v19  ;;  %v10719_v20 = vpop.permute.xlu0 %1981 }
 0x14f   : > { %14072 = vst [vmem:[#allocation47_spill] sm:$0xff] %v10719_v20 }
 0x151   : > { %v10725_v28 = vpop.permute.xlu1 %1996 }
 0x152   : > { %14074 = vst [vmem:[#allocation48_spill] sm:$0xff] %v10725_v28  ;;  %v10727_v31 = vpop.permute.xlu0 %1991 }
 0x153   : > { %14075 = vst [vmem:[#allocation49_spill] sm:$0xff] %v10727_v31 }
 0x1fc   : > { %v1065_v9 = vpop.f32.mrf.mxu1 }
 0x1fd   : > { %v1066_v15 = vadd.f32 1e-05, %v1065_v9 }
 0x1fe   : > { %v9249_v16 = vpop.f32.mrf.mxu1 }
 0x1ff   : > { %9966 = vrsqrt.f32 %v1066_v15 }
 0x20c   : > { %v9967_v21 = vpop.eup %9966 }
 0x20d   : > { %v1073_v22 = vrot.slane %v9967_v21, %v10558_v43 }
 0x20f   : > { %v1080_v34 = vmul.f32 %v1073_v22, %v10590_v55  ;;  %v1081_v35 = vmul.f32 %v1073_v22, %v10596_v10  ;;  %v1079_v36 = vmul.f32 %v1073_v22, %v10583_v4  ;;  %v1074_v37 = vmul.f32 %v1073_v22, %v10562_v47 }
 0x210   : > { %v1075_v39 = vmul.f32 %v1073_v22, %v10565_v48  ;;  %v1076_v40 = vmul.f32 %v1073_v22, %v10568_v49  ;;  %v1077_v41 = vmul.f32 %v1073_v22, %v10571_v50  ;;  %v1078_v46 = vmul.f32 %v1073_v22, %v10574_v51  ;;  %v10750_v51 = vpop.permute.xlu1 %2137  ;;  %v10752_v22 = vpop.permute.xlu0 %2132 }
 0x211   : > { %v1094_v9 = vmul.f32 %v8515_v25, %v1080_v34  ;;  %v1095_v55 = vmul.f32 %v8515_v25, %v1081_v35  ;;  %v1093_v15 = vmul.f32 %v8515_v25, %v1079_v36  ;;  %v1088_v10 = vmul.f32 %v8515_v25, %v1074_v37  ;;  %14077 = vst [vmem:[#allocation50_spill] sm:$0xff] %v10750_v51 }
 0x212   : > { %v1089_v16 = vmul.f32 %v8515_v25, %v1075_v39  ;;  %v1090_v4 = vmul.f32 %v8515_v25, %v1076_v40  ;;  %v1091_v21 = vmul.f32 %v8515_v25, %v1077_v41  ;;  %v1092_v47 = vmul.f32 %v8515_v25, %v1078_v46  ;;  %14078 = vst [vmem:[#allocation51_spill] sm:$0xff] %v10752_v22 }
 0x213   : > { %v10740_v0 = vadd.f32 %v8516_v38, %v1094_v9  ;;  %v1109_v43 = vadd.f32 %v8516_v38, %v1095_v55  ;;  %v10742_v28 = vadd.f32 %v8516_v38, %v1093_v15  ;;  %v10744_v48 = vadd.f32 %v8516_v38, %v1088_v10 }
 0x214   : > { %v10746_v49 = vadd.f32 %v8516_v38, %v1089_v16  ;;  %v10748_v50 = vadd.f32 %v8516_v38, %v1090_v4  ;;  %v10756_v36 = vadd.f32 %v8516_v38, %v1091_v21  ;;  %v10759_v39 = vadd.f32 %v8516_v38, %v1092_v47  ;;  %v10765_v55 = vpop.permute.xlu1 %2147  ;;  %v10767_v15 = vpop.permute.xlu0 %2142 }
 0x215   : > { %v8523_v34 = vmul.f32 -1.442695, %v10740_v0  ;;  %v8524_v35 = vmul.f32 -1.442695, %v1109_v43  ;;  %v8522_v25 = vmul.f32 -1.442695, %v10742_v28 }
 0x216   : > { %v8517_v37 = vmul.f32 -1.442695, %v10744_v48  ;;  %v8518_v40 = vmul.f32 -1.442695, %v10746_v49  ;;  %v8519_v41 = vmul.f32 -1.442695, %v10748_v50 }
 0x217   : > { %9968 = vpow2.f32 %v8523_v34  ;;  %v8520_v46 = vmul.f32 -1.442695, %v10756_v36  ;;  %v8521_v9 = vmul.f32 -1.442695, %v10759_v39  ;;  %14079 = vst [vmem:[#allocation52_spill] sm:$0xff] %v10765_v55  ;;  %14080 = vst [vmem:[#allocation53_spill] sm:$0xff] %v10767_v15 }
 0x218   : > { %9970 = vpow2.f32 %v8524_v35  ;;  %v10769_v38 = vpop.permute.xlu1 %2006  ;;  %v10771_v10 = vpop.permute.xlu0 %2001 }
 0x219   : > { %9972 = vpow2.f32 %v8522_v25  ;;  %14081 = vst [vmem:[#allocation54_spill] sm:$0xff] %v10769_v38  ;;  %14082 = vst [vmem:[#allocation55_spill] sm:$0xff] %v10771_v10 }
 0x21a   : > { %9974 = vpow2.f32 %v8517_v37 }
 0x21b   : > { %9976 = vpow2.f32 %v8518_v40 }
 0x21c   : > { %9978 = vpow2.f32 %v8519_v41  ;;  %v10773_v25 = vpop.permute.xlu1 %2016  ;;  %v10775_v37 = vpop.permute.xlu0 %2011 }
 0x21d   : > { %9980 = vpow2.f32 %v8520_v46  ;;  %14083 = vst [vmem:[#allocation56_spill] sm:$0xff] %v10773_v25  ;;  %14084 = vst [vmem:[#allocation57_spill] sm:$0xff] %v10775_v37 }
 0x21e   : > { %9982 = vpow2.f32 %v8521_v9 }
 0x220   : > { %v10779_v25 = vpop.permute.xlu0 %2152 }
 0x221   : > { %14086 = vst [vmem:[#allocation59_spill] sm:$0xff] %v10779_v25 }
 0x224   : > { %v9969_v16 = vpop.eup %9968 }
 0x225   : > { %v9971_v4 = vpop.eup %9970  ;;  %v1140_v21 = vadd.f32 1.0, %v9969_v16 }
 0x226   : > { %v9973_v47 = vpop.eup %9972  ;;  %v1141_v34 = vadd.f32 1.0, %v9971_v4  ;;  %v10777_v4 = vpop.permute.xlu1 %2157 }
 0x227   : > { %v9975_v35 = vpop.eup %9974  ;;  %9984 = vrcp.f32 %v1140_v21  ;;  %v1139_v55 = vadd.f32 1.0, %v9973_v47  ;;  %14085 = vst [vmem:[#allocation58_spill] sm:$0xff] %v10777_v4  ;;  %v10783_v47 = vpop.permute.xlu0 %2162 }
 0x228   : > { %v9977_v40 = vpop.eup %9976  ;;  %9986 = vrcp.f32 %v1141_v34  ;;  %v1134_v41 = vadd.f32 1.0, %v9975_v35  ;;  %14088 = vst [vmem:[#allocation61_spill] sm:$0xff] %v10783_v47 }
 0x229   : > { %v9979_v46 = vpop.eup %9978  ;;  %9988 = vrcp.f32 %v1139_v55  ;;  %v1135_v9 = vadd.f32 1.0, %v9977_v40 }
 0x22a   : > { %v9981_v15 = vpop.eup %9980  ;;  %v1136_v51 = vadd.f32 1.0, %v9979_v46  ;;  %9990 = vrcp.f32 %v1134_v41  ;;  %v10781_v21 = vpop.permute.xlu1 %2167 }
 0x22b   : > { %v9983_v22 = vpop.eup %9982  ;;  %9992 = vrcp.f32 %v1135_v9  ;;  %v1137_v16 = vadd.f32 1.0, %v9981_v15  ;;  %14087 = vst [vmem:[#allocation60_spill] sm:$0xff] %v10781_v21 }
 0x22c   : > { %9994 = vrcp.f32 %v1136_v51  ;;  %v1138_v37 = vadd.f32 1.0, %v9983_v22  ;;  %v10792_v22 = vpop.permute.xlu0 %2283 }
 0x22d   : > { %9996 = vrcp.f32 %v1137_v16  ;;  %14090 = vst [vmem:[#allocation63_spill] sm:$0xff] %v10792_v22 }
 0x22e   : > { %9998 = vrcp.f32 %v1138_v37  ;;  %v10790_v9 = vpop.permute.xlu1 %2288 }
 0x22f   : > { %14089 = vst [vmem:[#allocation62_spill] sm:$0xff] %v10790_v9 }
 0x234   : > { %v9985_v55 = vpop.eup %9984 }
 0x235   : > { %v9987_v34 = vpop.eup %9986  ;;  %v10795_v37 = vmul.f32 %v9985_v55, %v10740_v0 }
 0x236   : > { %v9989_v35 = vpop.eup %9988  ;;  %v10785_v40 = vmul.f32 %v9987_v34, %v1109_v43 }
 0x237   : > { %v9991_v41 = vpop.eup %9990  ;;  %v10806_v34 = vmul.f32 %v9989_v35, %v10742_v28  ;;  %v10821_v35 = vpop.permute.xlu0 %2293 }
 0x238   : > { %v9993_v46 = vpop.eup %9992  ;;  %v10788_v51 = vmul.f32 %v9991_v41, %v10744_v48  ;;  %v1382_v16 = vmul.f32 %v10616_v24, %v10785_v40  ;;  %14092 = vst [vmem:[#allocation65_spill] sm:$0xff] %v10821_v35 }
 0x239   : > { %v9995_v15 = vpop.eup %9994  ;;  %v10800_v21 = vmul.f32 %v9993_v46, %v10746_v49  ;;  %v1259_v49 = vrot.slane %v10795_v37, 7  ;;  %v1260_v46 = vrot.slane %v10785_v40, 7 }
 0x23a   : > { %v1383_v43 = vmul.f32 %v10620_v27, %v10788_v51  ;;  %v10809_v41 = vmul.f32 %v9995_v15, %v10748_v50  ;;  %v1557_v0 = vrot.slane %v10788_v51, 1  ;;  %v9997_v55 = vpop.eup %9996  ;;  %v10819_v50 = vpop.permute.xlu1 %2298  ;;  %v1650_v15 = vsel %vm1408_vm2, %v10662_v52, 0 }
 0x23b   : > { %v9999_v47 = vpop.eup %9998  ;;  %v1558_v48 = vrot.slane %v10800_v21, 1  ;;  %v1384_v28 = vmul.f32 %v10614_v23, %v10800_v21  ;;  %14091 = vst [vmem:[#allocation64_spill] sm:$0xff] %v10819_v50  ;;  %v10837_v50 = vmul.f32 %v9997_v55, %v10756_v36  ;;  %v10847_v35 = vsel %vm1263_vm5, %v1259_v49, %v1260_v46 }
 0x23c   : > { %v1390_v24 = vpack.c.bf16 %v1383_v43, %v1382_v16  ;;  %v1389_v16 = vmul.f32 %v10629_v32, %v10795_v37  ;;  %v14093_v43 = vrot.slane %v10785_v40, 1  ;;  %v1385_v23 = vmul.f32 %v10618_v26, %v10809_v41 }
 0x23d   : > { %v10842_v52 = vmul.f32 %v9999_v47, %v10759_v39  ;;  %v1253_v32 = vrot.slane %v10788_v51, 7  ;;  %v10852_v26 = vsel %vm1565_vm4, %v1557_v0, %v1558_v48  ;;  %v1386_v55 = vmul.f32 %v10624_v30, %v10837_v50 }
 0x23e   : > { %9263 = vmatprep.mubr.msk.bf16.mxu1 %vm860_vm1, %v1390_v24  ;;  %v10832_v27 = vsel %vm1565_vm4, %v14093_v43, %v1557_v0  ;;  %v1388_v24 = vmul.f32 %v10631_v33, %v10806_v34  ;;  %v1254_v43 = vrot.slane %v10800_v21, 7  ;;  %v1391_v36 = vpack.c.bf16 %v1385_v23, %v1384_v28  ;;  %v8546_v23 = vld [vmem:[%s14046_s6 + $0x10] sm:$0xf]  ;;  %v10879_v30 = vpop.permute.xlu1 %2439 }
 0x23f   : > { %v1320_v39 = vmul.f32 %v10655_v45, %v10847_v35  ;;  %v1387_v47 = vmul.f32 %v10622_v29, %v10842_v52  ;;  %v10862_v33 = vsel %vm1263_vm5, %v1260_v46, %v1253_v32  ;;  %v1255_v4 = vrot.slane %v10809_v41, 7  ;;  %14094 = vst [vmem:[#allocation66_spill] sm:$0xff] %v10879_v30 }
 0x240   : > { %v10867_v0 = vsel %vm1263_vm5, %v1253_v32, %v1254_v43  ;;  %9264 = vmatmul.mubr.msk.bf16.vlgmr.msra.gmra.mxu1 %vm860_vm1, %v1391_v36  ;;  %v1321_v28 = vmul.f32 %v10653_v44, %v10862_v33  ;;  %v1256_v46 = vrot.slane %v10837_v50, 7  ;;  %v1257_v29 = vrot.slane %v10842_v52, 7  ;;  %v10881_v32 = vpop.permute.xlu0 %2434 }
 0x241   : > { %v1322_v45 = vmul.f32 %v10668_v3, %v10867_v0  ;;  %14095 = vst [vmem:[#allocation67_spill] sm:$0xff] %v10881_v32  ;;  %v1559_v25 = vrot.slane %v10809_v41, 1  ;;  %v1392_v9 = vpack.c.bf16 %v1387_v47, %v1386_v55  ;;  %9282 = vmatpush3.bf16.msra.mxu1 %v1650_v15  ;;  %v10886_v36 = vsel %vm1263_vm5, %v1254_v43, %v1255_v4 }
 0x242   : > { %v1258_v44 = vrot.slane %v10806_v34, 7  ;;  %v1328_v22 = vpack.c.bf16 %v1321_v28, %v1320_v39  ;;  %v1323_v3 = vmul.f32 %v10666_v53, %v10886_v36  ;;  %v10893_v10 = vsel %vm1263_vm5, %v1256_v46, %v1257_v29  ;;  %9840 = vmatprep.subr.msk.bf16.mxu1 %vm1408_vm2, %v8546_v23 }
 0x243   : > { %v10897_v30 = vsel %vm1263_vm5, %v1255_v4, %v1256_v46  ;;  %v1624_v15 = vmul.f32 %v10670_v5, %v10852_v26  ;;  %v1623_v43 = vmul.f32 %v10672_v6, %v10832_v27  ;;  %9267 = vmatprep.mubr.msk.bf16.mxu1 %vm860_vm1, %v1392_v9  ;;  %v1325_v39 = vmul.f32 %v10685_v57, %v10893_v10  ;;  %v10922_v57 = vpop.permute.xlu1 %2449 }
 0x244   : > { %v1324_v55 = vmul.f32 %v10687_v58, %v10897_v30  ;;  %9273 = vmatprep.mubr.msk.bf16.mxu0 %vm860_vm1, %v1328_v22  ;;  %v1329_v4 = vpack.c.bf16 %v1323_v3, %v1322_v45  ;;  %v1801_v47 = vsel %vm1408_vm2, %v10681_v56, 0  ;;  %v1562_v28 = vrot.slane %v10806_v34, 1  ;;  %14096 = vst [vmem:[#allocation68_spill] sm:$0xff] %v10922_v57  ;;  %v10924_v45 = vpop.permute.xlu0 %2444 }
 0x245   : > { %v10915_v5 = vsel %vm1263_vm5, %v1258_v44, %v1259_v49  ;;  %v10919_v9 = vsel %vm1263_vm5, %v1257_v29, %v1258_v44  ;;  %v1393_v6 = vpack.c.bf16 %v1389_v16, %v1388_v24  ;;  %14097 = vst [vmem:[#allocation69_spill] sm:$0xff] %v10924_v45  ;;  %v10928_v3 = vsel %vm1565_vm4, %v1558_v48, %v1559_v25  ;;  %v8551_v44 = vld [vmem:[%s14046_s6 + $0x14] sm:$0xf] }
 0x246   : > { %v1330_v46 = vpack.c.bf16 %v1325_v39, %v1324_v55  ;;  %9274 = vmatmul.mubr.msk.bf16.vlgmr.msra.gmra.mxu0 %vm860_vm1, %v1329_v4  ;;  %v1631_v56 = vpack.c.bf16 %v1624_v15, %v1623_v43  ;;  %v1560_v22 = vrot.slane %v10837_v50, 1  ;;  %v1561_v29 = vrot.slane %v10842_v52, 1 }
 0x247   : > { %9292 = vmatpush3.bf16.msra.mxu0 %v1801_v47  ;;  %v1326_v49 = vmul.f32 %v10691_v60, %v10919_v9  ;;  %v1327_v48 = vmul.f32 %v10689_v59, %v10915_v5  ;;  %v1774_v16 = vmul.f32 %v10703_v2, %v10862_v33  ;;  %v1775_v24 = vmul.f32 %v10701_v1, %v10867_v0 }
 0x248   : > { %9277 = vmatprep.mubr.msk.bf16.mxu0 %vm860_vm1, %v1330_v46  ;;  %9268 = vmatmul.mubr.msk.bf16.gmra.mxu1 %vm860_vm1, %v1393_v6  ;;  %v10948_v15 = vsel %vm1565_vm4, %v1559_v25, %v1560_v22  ;;  %v10952_v6 = vsel %vm1565_vm4, %v1561_v29, %v1562_v28  ;;  %v10956_v43 = vsel %vm1565_vm4, %v1560_v22, %v1561_v29  ;;  %v1563_v4 = vrot.slane %v10795_v37, 1  ;;  %v10970_v22 = vpop.permute.xlu0 %2303 }
 0x249   : > { %9283 = vmatprep.mubr.msk.bf16.mxu1 %vm860_vm1, %v1631_v56  ;;  %v1625_v55 = vmul.f32 %v10676_v54, %v10928_v3  ;;  %v1626_v39 = vmul.f32 %v10674_v7, %v10948_v15  ;;  %9841 = vmatprep.subr.msk.bf16.mxu0 %vm1408_vm2, %v8551_v44  ;;  %v1627_v25 = vmul.f32 %v10695_v62, %v10956_v43  ;;  %v10968_v56 = vpop.permute.xlu1 %2308  ;;  %v1895_v7 = vsel %vm1408_vm2, %v8546_v23, 0 }
 0x24a   : > { %v1628_v47 = vmul.f32 %v10693_v61, %v10952_v6  ;;  %v1331_v46 = vpack.c.bf16 %v1327_v48, %v1326_v49  ;;  %14098 = vst [vmem:[#allocation70_spill] sm:$0xff] %v10968_v56  ;;  %14099 = vst [vmem:[#allocation71_spill] sm:$0xff] %v10970_v22  ;;  %v1782_v29 = vpack.c.bf16 %v1775_v24, %v1774_v16  ;;  %v14100_v1 = vrot.slane %v10785_v40, 1  ;;  %v8556_v48 = vld [vmem:[%s14046_s6 + $0x18] sm:$0xf] }
 0x24b   : > { %v1632_v54 = vpack.c.bf16 %v1626_v39, %v1625_v55  ;;  %v10982_v61 = vsel %vm1565_vm4, %v1562_v28, %v1563_v4  ;;  %v1776_v23 = vmul.f32 %v10707_v8, %v10886_v36  ;;  %v1777_v16 = vmul.f32 %v10705_v12, %v10897_v30 }
 0x24c   : > { %v10978_v2 = vsel %vm1565_vm4, %v1563_v4, %v14100_v1  ;;  %v1633_v49 = vpack.c.bf16 %v1628_v47, %v1627_v25  ;;  %v1778_v1 = vmul.f32 %v10711_v14, %v10893_v10  ;;  %v1779_v28 = vmul.f32 %v10709_v13, %v10919_v9 }
 0x24d   : > { %v1630_v24 = vmul.f32 %v10697_v11, %v10978_v2  ;;  %v1629_v55 = vmul.f32 %v10699_v63, %v10982_v61  ;;  %v11003_v39 = vpop.permute.xlu1 %2318  ;;  %v1783_v4 = vpack.c.bf16 %v1777_v16, %v1776_v23  ;;  %v1780_v16 = vmul.f32 %v10715_v18, %v10915_v5  ;;  %v14106_v23 = vld [vmem:[#allocation50_spill] sm:$0xff] }
 0x24e   : > { %9278 = vmatmul.mubr.msk.bf16.gmra.mxu0 %vm860_vm1, %v1331_v46  ;;  %14101 = vst [vmem:[#allocation72_spill] sm:$0xff] %v11003_v39  ;;  %v11014_v47 = vmul.f32 %v11003_v39, %v10788_v51  ;;  %v1784_v46 = vpack.c.bf16 %v1779_v28, %v1778_v1  ;;  %v1781_v1 = vmul.f32 %v10713_v17, %v10847_v35 }
 0x24f   : > { %9293 = vmatprep.mubr.msk.bf16.mxu0 %vm860_vm1, %v1782_v29  ;;  %v8561_v29 = vld [vmem:[%s14046_s6 + $0x1c] sm:$0xf]  ;;  %v2019_v28 = vmul.f32 %v10719_v20, %v10852_v26 }
 0x250   : > { %9284 = vmatmul.mubr.msk.bf16.vlgmr.msra.gmra.mxu1 %vm860_vm1, %v1632_v54  ;;  %v11005_v54 = vpop.permute.xlu0 %2313 }
 0x251   : > { %9287 = vmatprep.mubr.msk.bf16.mxu1 %vm860_vm1, %v1633_v49  ;;  %9302 = vmatpush3.bf16.msra.mxu1 %v1895_v7  ;;  %14102 = vst [vmem:[#allocation73_spill] sm:$0xff] %v11005_v54  ;;  %v2046_v7 = vsel %vm1408_vm2, %v8551_v44, 0  ;;  %v11010_v25 = vmul.f32 %v11005_v54, %v10785_v40  ;;  %v1634_v49 = vpack.c.bf16 %v1630_v24, %v1629_v55 }
 0x252   : > { %9842 = vmatprep.subr.msk.bf16.mxu1 %vm1408_vm2, %v8556_v48  ;;  %v1876_v44 = vpack.c.bf16 %v10800_v21, %v10788_v51  ;;  %v2020_v24 = vmul.f32 %v10717_v19, %v10928_v3  ;;  %v1785_v51 = vpack.c.bf16 %v1781_v1, %v1780_v16  ;;  %v14103_v16 = vld [vmem:[#allocation48_spill] sm:$0xff] }
 0x253   : > { %v2022_v1 = vmul.f32 %v14103_v16, %v10956_v43 }
 0x254   : > { %v2027_v55 = vpack.c.bf16 %v2020_v24, %v2019_v28  ;;  %v14104_v28 = vld [vmem:[#allocation55_spill] sm:$0xff] }
 0x255   : > { %v2023_v24 = vmul.f32 %v14104_v28, %v10952_v6 }
 0x256   : > { %9294 = vmatmul.mubr.msk.bf16.vlgmr.msra.gmra.mxu0 %vm860_vm1, %v1783_v4  ;;  %v1877_v4 = vpack.c.bf16 %v10837_v50, %v10809_v41 }
 0x257   : > { %9297 = vmatprep.mubr.msk.bf16.mxu0 %vm860_vm1, %v1784_v46  ;;  %9312 = vmatpush3.bf16.msra.mxu0 %v2046_v7  ;;  %v2197_v7 = vsel %vm1408_vm2, %v8556_v48, 0  ;;  %v1878_v46 = vpack.c.bf16 %v10806_v34, %v10842_v52  ;;  %v2024_v48 = vmul.f32 %v10769_v38, %v10982_v61  ;;  %v14107_v38 = vld [vmem:[#allocation57_spill] sm:$0xff] }
 0x258   : > { %9288 = vmatmul.mubr.msk.bf16.gmra.mxu1 %vm860_vm1, %v1634_v49  ;;  %9843 = vmatprep.subr.msk.bf16.mxu0 %vm1408_vm2, %v8561_v29  ;;  %v8566_v49 = vld [vmem:[%s14046_s6 + $0x20] sm:$0xf]  ;;  %v2025_v28 = vmul.f32 %v14107_v38, %v10978_v2  ;;  %s10281_s6 = smov 88  }
 0x259   : > { %9303 = vmatprep.mubr.msk.bf16.mxu1 %vm860_vm1, %v1876_v44  ;;  %v2021_v44 = vmul.f32 %v10727_v31, %v10948_v15  ;;  %v2171_v31 = vmul.f32 %v14106_v23, %v10886_v36  ;;  %v2029_v39 = vpack.c.bf16 %v2024_v48, %v2023_v24  ;;  %v14109_v36 = vmov 0.0   ;;  %v14114_v24 = vld [vmem:[#allocation59_spill] sm:$0xff] }
 0x25b   : > { %v2028_v16 = vpack.c.bf16 %v2022_v1, %v2021_v44  ;;  %v14113_v1 = vld [vmem:[#allocation52_spill] sm:$0xff] }
 0x25c   : > { %v2173_v48 = vmul.f32 %v14113_v1, %v10893_v10 }
 0x25e   : > { %9298 = vmatmul.mubr.msk.bf16.gmra.mxu0 %vm860_vm1, %v1785_v51  ;;  %v14105_v51 = vld [vmem:[#allocation51_spill] sm:$0xff] }
 0x25f   : > { %9313 = vmatprep.mubr.msk.bf16.mxu0 %vm860_vm1, %v2027_v55  ;;  %v2170_v55 = vmul.f32 %v14105_v51, %v10867_v0  ;;  %v14108_v0 = vld [vmem:[#allocation56_spill] sm:$0xff] }
 0x260   : > { %9304 = vmatmul.mubr.msk.bf16.vlgmr.msra.gmra.mxu1 %vm860_vm1, %v1877_v4  ;;  %v2348_v4 = vsel %vm1408_vm2, %v8561_v29, 0  ;;  %v2026_v51 = vmul.f32 %v14108_v0, %v10832_v27  ;;  %v14110_v29 = vld [vmem:[#allocation63_spill] sm:$0xff] }
 0x261   : > { %9307 = vmatprep.mubr.msk.bf16.mxu1 %vm860_vm1, %v1878_v46  ;;  %9322 = vmatpush3.bf16.msra.mxu1 %v2197_v7  ;;  %v1879_v7 = vpack.c.bf16 %v10785_v40, %v10795_v37  ;;  %v2178_v46 = vpack.c.bf16 %v2171_v31, %v2170_v55  ;;  %v2321_v44 = vmul.f32 %v14110_v29, %v10800_v21  ;;  %v14111_v40 = vld [vmem:[#allocation62_spill] sm:$0xff]  ;;  %v14112_v31 = vld [vmem:[#allocation53_spill] sm:$0xff]  ;;  %v2499_v21 = vsel %vm1408_vm2, %v8566_v49, 0 }
 0x262   : > { %9844 = vmatprep.subr.msk.bf16.mxu1 %vm1408_vm2, %v8566_v49  ;;  %v2174_v55 = vmul.f32 %v14114_v24, %v10919_v9  ;;  %v2030_v0 = vpack.c.bf16 %v2026_v51, %v2025_v28  ;;  %v14117_v9 = vld [vmem:[#allocation64_spill] sm:$0xff]  ;;  %v2326_v49 = vmul.f32 %v10968_v56, %v10795_v37  ;;  %v14118_v28 = vld [vmem:[#allocation61_spill] sm:$0xff] }
 0x263   : > { %v2324_v24 = vmul.f32 %v14117_v9, %v10842_v52  ;;  %v2176_v51 = vmul.f32 %v14118_v28, %v10847_v35  ;;  %v14120_v52 = vld [vmem:[#allocation66_spill] sm:$0xff]  ;;  %v11110_v35 = vpop.permute.xlu1 %2459 }
 0x264   : > { %14121 = vst [vmem:[#allocation74_spill] sm:$0xff] %v11110_v35 }
 0x266   : > { %9314 = vmatmul.mubr.msk.bf16.vlgmr.msra.gmra.mxu0 %vm860_vm1, %v2028_v16  ;;  %v2172_v16 = vmul.f32 %v14112_v31, %v10897_v30  ;;  %v14116_v30 = vld [vmem:[#allocation65_spill] sm:$0xff] }
 0x267   : > { %9317 = vmatprep.mubr.msk.bf16.mxu0 %vm860_vm1, %v2029_v39  ;;  %9332 = vmatpush3.bf16.msra.mxu0 %v2348_v4  ;;  %v2322_v39 = vmul.f32 %v14111_v40, %v10809_v41  ;;  %v14115_v4 = vld [vmem:[#allocation58_spill] sm:$0xff]  ;;  %v2323_v10 = vmul.f32 %v14116_v30, %v10837_v50  ;;  %v2472_v50 = vmul.f32 %v10881_v32, %v10928_v3 }
 0x268   : > { %9308 = vmatmul.mubr.msk.bf16.gmra.mxu1 %vm860_vm1, %v1879_v7  ;;  %9351 = vmatprep.subr.mxu0 %v14109_v36  ;;  %v2175_v7 = vmul.f32 %v14115_v4, %v10915_v5  ;;  %v2179_v38 = vpack.c.bf16 %v2173_v48, %v2172_v16  ;;  %v2325_v5 = vmul.f32 %v10970_v22, %v10806_v34 }
 0x269   : > { %9323 = vmatprep.mubr.msk.bf16.mxu1 %vm860_vm1, %v2178_v46  ;;  %v2329_v46 = vpack.c.bf16 %v2322_v39, %v2321_v44  ;;  %v2473_v44 = vmul.f32 %v14120_v52, %v10948_v15  ;;  %v2330_v39 = vpack.c.bf16 %v2324_v24, %v2323_v10  ;;  %v2474_v3 = vmul.f32 %v10924_v45, %v10956_v43  ;;  %v11149_v10 = vld [vmem:[%s14126_s5] sm:$0xff] }
 0x26a   : > { %v2180_v41 = vpack.c.bf16 %v2175_v7, %v2174_v55  ;;  %v2331_v16 = vpack.c.bf16 %v2326_v49, %v2325_v5  ;;  %v2475_v15 = vmul.f32 %v10922_v57, %v10952_v6  ;;  %v2477_v48 = vmul.f32 %v11110_v35, %v10978_v2  ;;  %v11122_v55 = vpop.f32.mrf.mxu0  ;;  %v11131_v6 = vpop.permute.xlu1 %2469  ;;  %14128 = vst [vmem:[#allocation79_spill] sm:$0xff] %v11149_v10 }
 0x26b   : > { %v2480_v37 = vpack.c.bf16 %v2473_v44, %v2472_v50  ;;  %14124 = vst [vmem:[#allocation76_spill] sm:$0xff] %v11131_v6 }
 0x26c   : > { %v2481_v7 = vpack.c.bf16 %v2475_v15, %v2474_v3 }
 0x26e   : > { %9318 = vmatmul.mubr.msk.bf16.gmra.mxu0 %vm860_vm1, %v2030_v0 }
 0x26f   : > { %9333 = vmatprep.mubr.msk.bf16.mxu0 %vm860_vm1, %v2329_v46  ;;  %v14123_v46 = vpack.c.bf16 %v11014_v47, %v11010_v25  ;;  %v11144_v47 = vld [vmem:[%s14126_s5 + $0x8] sm:$0xff] }
 0x270   : > { %9324 = vmatmul.mubr.msk.bf16.vlgmr.msra.gmra.mxu1 %vm860_vm1, %v2179_v38  ;;  %v14119_v38 = vld [vmem:[#allocation60_spill] sm:$0xff]  ;;  %14127 = vst [vmem:[#allocation78_spill] sm:$0xff] %v11144_v47 }
 0x271   : > { %9327 = vmatprep.mubr.msk.bf16.mxu1 %vm860_vm1, %v2180_v41  ;;  %9342 = vmatpush3.bf16.msra.mxu1 %v2499_v21  ;;  %v2177_v0 = vmul.f32 %v14119_v38, %v10862_v33  ;;  %v11112_v33 = vpop.permute.xlu0 %2454  ;;  %v9260_v41 = vpop.f32.mrf.mxu0 }
 0x272   : > { %14122 = vst [vmem:[#allocation75_spill] sm:$0xff] %v11112_v33  ;;  %v2476_v24 = vmul.f32 %v11112_v33, %v10982_v61  ;;  %v2479_v61 = vmul.f32 %v11131_v6, %v10852_v26 }
 0x273   : > { %v2181_v34 = vpack.c.bf16 %v2177_v0, %v2176_v51 }
 0x274   : > { %v2482_v21 = vpack.c.bf16 %v2477_v48, %v2476_v24 }
 0x275   : > { %v11133_v2 = vpop.permute.xlu0 %2464 }
 0x276   : > { %9334 = vmatmul.mubr.msk.bf16.vlgmr.msra.gmra.mxu0 %vm860_vm1, %v2330_v39  ;;  %14125 = vst [vmem:[#allocation77_spill] sm:$0xff] %v11133_v2  ;;  %v2478_v43 = vmul.f32 %v11133_v2, %v10832_v27 }
 0x277   : > { %9337 = vmatprep.mubr.msk.bf16.mxu0 %vm860_vm1, %v2331_v16  ;;  %9352 = vmatpush3.msra.mxu0 %v11144_v47 }
 0x278   : > { %9328 = vmatmul.mubr.msk.bf16.gmra.mxu1 %vm860_vm1, %v2181_v34  ;;  %v2483_v25 = vpack.c.bf16 %v2479_v61, %v2478_v43  ;;  %9353 = vmatprep.subr.mxu0 %v14109_v36 }
 0x279   : > { %9343 = vmatprep.mubr.msk.bf16.mxu1 %vm860_vm1, %v2480_v37  ;;  %9354 = vmatpush3.msra.mxu0 %v11149_v10 }
 0x27a   : > { %9358 = vmatprep.subr.mxu0 %v14109_v36 }
 0x27e   : > { %9338 = vmatmul.mubr.msk.bf16.gmra.mxu0 %vm860_vm1, %v14123_v46 }
 0x27f   : > { %9355 = vmatprep.mubr.msk.f32.mxu0 %vm10270_vm0, %v14109_v36 }
 0x280   : > { %9344 = vmatmul.mubr.msk.bf16.vlgmr.msra.gmra.mxu1 %vm860_vm1, %v2481_v7 }
 0x281   : > { %9347 = vmatprep.mubr.msk.bf16.mxu1 %vm860_vm1, %v2482_v21 }
 0x288   : > { %9348 = vmatmul.mubr.msk.bf16.gmra.mxu1 %vm860_vm1, %v2483_v25 }
 0x300   : > { %v9265_v26 = vpop.f32.mrf.mxu1 }
 0x302   : > { %v1446_v27 = vpop.f32.mrf.mxu1 }
 0x304   : > { %v9266_v5 = vpop.f32.mrf.mxu1 }
 0x306   : > { %v9275_v49 = vpop.f32.mrf.mxu0  ;;  %v1449_v51 = vpop.f32.mrf.mxu1 }
 0x307   : > { %v1535_v54 = vadd.f32 %v9275_v49, %v9265_v26 }
 0x308   : > { %v1526_v0 = vpop.f32.mrf.mxu0  ;;  %v9269_v50 = vpop.f32.mrf.mxu1 }
 0x309   : > { %v1527_v17 = vadd.f32 %v1526_v0, %v1446_v27 }
 0x30a   : > { %v9276_v44 = vpop.f32.mrf.mxu0  ;;  %v1462_v39 = vpop.f32.mrf.mxu1 }
 0x30b   : > { %v1538_v63 = vadd.f32 %v9276_v44, %v9266_v5 }
 0x30c   : > { %v1529_v16 = vpop.f32.mrf.mxu0  ;;  %v9270_v34 = vpop.f32.mrf.mxu1 }
 0x30d   : > { %v1530_v62 = vadd.f32 %v1529_v16, %v1449_v51 }
 0x30e   : > { %v9279_v37 = vpop.f32.mrf.mxu0  ;;  %v11155_v3 = vpop.f32.mrf.mxu1 }
 0x30f   : > { %v1551_v36 = vadd.f32 %v9279_v37, %v9269_v50 }
 0x310   : > { %v1542_v15 = vpop.f32.mrf.mxu0  ;;  %v9285_v48 = vpop.f32.mrf.mxu1 }
 0x311   : > { %v1719_v13 = vadd.f32 %v9285_v48, %v1535_v54  ;;  %v1543_v26 = vadd.f32 %v1542_v15, %v1462_v39 }
 0x312   : > { %v9280_v24 = vpop.f32.mrf.mxu0  ;;  %v1686_v7 = vpop.f32.mrf.mxu1 }
 0x313   : > { %v1717_v14 = vadd.f32 %v1686_v7, %v1527_v17  ;;  %v1554_v5 = vadd.f32 %v9280_v24, %v9270_v34 }
 0x314   : > { %v1545_v46 = vpop.f32.mrf.mxu0  ;;  %v9286_v21 = vpop.f32.mrf.mxu1 }
 0x315   : > { %v1720_v59 = vadd.f32 %v9286_v21, %v1538_v63  ;;  %v1546_v16 = vadd.f32 %v1545_v46, %v11155_v3 }
 0x316   : > { %v9295_v41 = vpop.f32.mrf.mxu0  ;;  %v1689_v61 = vpop.f32.mrf.mxu1 }
 0x317   : > { %v1870_v53 = vadd.f32 %v9295_v41, %v1719_v13  ;;  %v1718_v10 = vadd.f32 %v1689_v61, %v1530_v62 }
 0x318   : > { %v1837_v43 = vpop.f32.mrf.mxu0  ;;  %v9289_v25 = vpop.f32.mrf.mxu1 }
 0x319   : > { %v1868_v42 = vadd.f32 %v1837_v43, %v1717_v14  ;;  %v1723_v54 = vadd.f32 %v9289_v25, %v1551_v36 }
 0x31a   : > { %v9296_v6 = vpop.f32.mrf.mxu0  ;;  %v1702_v2 = vpop.f32.mrf.mxu1 }
 0x31b   : > { %v1871_v27 = vadd.f32 %v9296_v6, %v1720_v59  ;;  %v1721_v51 = vadd.f32 %v1702_v2, %v1543_v26 }
 0x31c   : > { %v1840_v35 = vpop.f32.mrf.mxu0  ;;  %v9290_v33 = vpop.f32.mrf.mxu1 }
 0x31d   : > { %v1869_v48 = vadd.f32 %v1840_v35, %v1718_v10  ;;  %v1724_v7 = vadd.f32 %v9290_v33, %v1554_v5  ;;  %v1178_v33 = vld [vmem:[%s14130_s11] sm:$0x1]  ;;  %s14137_s11 = sld [smem:[#allocation98_spill]] }
 0x31e   : > { %v9299_v57 = vpop.f32.mrf.mxu0  ;;  %v1705_v45 = vpop.f32.mrf.mxu1 }
 0x31f   : > { %v1874_v21 = vadd.f32 %v9299_v57, %v1723_v54  ;;  %v1722_v39 = vadd.f32 %v1705_v45, %v1546_v16 }
 0x320   : > { %v1853_v52 = vpop.f32.mrf.mxu0  ;;  %v9305_v32 = vpop.f32.mrf.mxu1 }
 0x321   : > { %v1964_v49 = vadd.f32 %v9305_v32, %v1870_v53 }
 0x322   : > { %v9300_v38 = vpop.f32.mrf.mxu0  ;;  %v1931_v28 = vpop.f32.mrf.mxu1 }
 0x323   : > { %v1962_v0 = vadd.f32 %v1931_v28, %v1868_v42  ;;  %v1872_v42 = vadd.f32 %v1853_v52, %v1721_v51  ;;  %v1875_v6 = vadd.f32 %v9300_v38, %v1724_v7 }
 0x324   : > { %v11157_v56 = vpop.f32.mrf.mxu0  ;;  %v9306_v22 = vpop.f32.mrf.mxu1 }
 0x325   : > { %v1965_v63 = vadd.f32 %v9306_v22, %v1871_v27  ;;  %v1873_v57 = vadd.f32 %v11157_v56, %v1722_v39  ;;  %v8571_v56 = vld [vmem:[%s14132_s2] ss:$0 sm:$0xff]  ;;  %s10272_s2 = smov 112  }
 0x326   : > { %v9315_v9 = vpop.f32.mrf.mxu0  ;;  %v1934_v30 = vpop.f32.mrf.mxu1 }
 0x327   : > { %v2115_v62 = vadd.f32 %v9315_v9, %v1964_v49  ;;  %v1963_v37 = vadd.f32 %v1934_v30, %v1869_v48 }
 0x328   : > { %v2082_v4 = vpop.f32.mrf.mxu0  ;;  %v9309_v1 = vpop.f32.mrf.mxu1 }
 0x329   : > { %v2113_v50 = vadd.f32 %v2082_v4, %v1962_v0  ;;  %v1968_v35 = vadd.f32 %v9309_v1, %v1874_v21 }
 0x32a   : > { %v9316_v31 = vpop.f32.mrf.mxu0  ;;  %v1947_v40 = vpop.f32.mrf.mxu1 }
 0x32b   : > { %v2116_v32 = vadd.f32 %v9316_v31, %v1965_v63  ;;  %v1966_v9 = vadd.f32 %v1947_v40, %v1872_v42 }
 0x32c   : > { %v2085_v29 = vpop.f32.mrf.mxu0  ;;  %v9310_v23 = vpop.f32.mrf.mxu1 }
 0x32d   : > { %v2114_v10 = vadd.f32 %v2085_v29, %v1963_v37  ;;  %v1969_v45 = vadd.f32 %v9310_v23, %v1875_v6 }
 0x32e   : > { %v11159_v19 = vpop.f32.mrf.mxu0  ;;  %v11161_v20 = vpop.f32.mrf.mxu1 }
 0x32f   : > { %14129 = vst [vmem:[#allocation80_spill] sm:$0xff] %v11161_v20  ;;  %v2119_v1 = vadd.f32 %v11159_v19, %v1968_v35  ;;  %v14133_v19 = vld [vmem:[#allocation13_spill] sm:$0xff] }
 0x330   : > { %v2098_v18 = vpop.f32.mrf.mxu0  ;;  %v9325_v11 = vpop.f32.mrf.mxu1 }
 0x331   : > { %v2266_v36 = vadd.f32 %v9325_v11, %v2115_v62  ;;  %v2117_v24 = vadd.f32 %v2098_v18, %v1966_v9 }
 0x332   : > { %v9320_v12 = vpop.f32.mrf.mxu0  ;;  %v2233_v8 = vpop.f32.mrf.mxu1 }
 0x333   : > { %v2264_v28 = vadd.f32 %v2233_v8, %v2113_v50  ;;  %v1250_v8 = vadd.f32 %v11122_v55, %v1178_v33 }
 0x334   : > { %v11163_v60 = vpop.f32.mrf.mxu0  ;;  %v9326_v58 = vpop.f32.mrf.mxu1 }
 0x335   : > { %v2267_v4 = vadd.f32 %v9326_v58, %v2116_v32  ;;  %v2120_v58 = vadd.f32 %v9320_v12, %v1969_v45  ;;  %v2592_v25 = vrot.slane %v1250_v8, %v14133_v19 }
 0x336   : > { %v9335_v47 = vpop.f32.mrf.mxu0  ;;  %v2236_v20 = vpop.f32.mrf.mxu1  ;;  %v14131_v38 = vld [vmem:[#allocation80_spill] sm:$0xff] }
 0x337   : > { %v2417_v34 = vadd.f32 %v9335_v47, %v2266_v36  ;;  %v2265_v31 = vadd.f32 %v2236_v20, %v2114_v10  ;;  %v1967_v3 = vadd.f32 %v14131_v38, %v1873_v57 }
 0x338   : > { %v2384_v17 = vpop.f32.mrf.mxu0  ;;  %v9329_v44 = vpop.f32.mrf.mxu1 }
 0x339   : > { %v2415_v52 = vadd.f32 %v2384_v17, %v2264_v28  ;;  %v2270_v41 = vadd.f32 %v9329_v44, %v2119_v1  ;;  %v2118_v26 = vadd.f32 %v11163_v60, %v1967_v3 }
 0x33a   : > { %v9336_v13 = vpop.f32.mrf.mxu0  ;;  %v2249_v14 = vpop.f32.mrf.mxu1 }
 0x33b   : > { %v2418_v46 = vadd.f32 %v9336_v13, %v2267_v4  ;;  %v2268_v47 = vadd.f32 %v2249_v14, %v2117_v24 }
 0x33c   : > { %v2387_v59 = vpop.f32.mrf.mxu0  ;;  %v9330_v53 = vpop.f32.mrf.mxu1 }
 0x33d   : > { %v2416_v20 = vadd.f32 %v2387_v59, %v2265_v31  ;;  %v2271_v18 = vadd.f32 %v9330_v53, %v2120_v58 }
 0x33e   : > { %v9339_v2 = vpop.f32.mrf.mxu0  ;;  %v2252_v22 = vpop.f32.mrf.mxu1 }
 0x33f   : > { %v2269_v12 = vadd.f32 %v2252_v22, %v2118_v26  ;;  %v2421_v17 = vadd.f32 %v9339_v2, %v2270_v41  ;;  %v14134_v41 = vld [vmem:[#allocation78_spill] sm:$0xff] }
 0x340   : > { %v9345_v30 = vpop.f32.mrf.mxu1  ;;  %v2400_v11 = vpop.f32.mrf.mxu0 }
 0x341   : > { %v2568_v29 = vadd.f32 %v9345_v30, %v2417_v34  ;;  %v2419_v44 = vadd.f32 %v2400_v11, %v2268_v47 }
 0x342   : > { %v2535_v15 = vpop.f32.mrf.mxu1  ;;  %v9340_v61 = vpop.f32.mrf.mxu0 }
 0x343   : > { %v2566_v40 = vadd.f32 %v2535_v15, %v2415_v52  ;;  %v2583_v49 = vadd.f32 %v8571_v56, %v2568_v29  ;;  %v2422_v16 = vadd.f32 %v9340_v61, %v2271_v18 }
 0x344   : > { %v9346_v23 = vpop.f32.mrf.mxu1  ;;  %v2403_v48 = vpop.f32.mrf.mxu0 }
 0x345   : > { %v2581_v55 = vadd.f32 %v8571_v56, %v2566_v40  ;;  %v2569_v43 = vadd.f32 %v9346_v23, %v2418_v46  ;;  %v2595_v13 = vadd.f32 %v2592_v25, %v2583_v49  ;;  %v2420_v60 = vadd.f32 %v2403_v48, %v2269_v12  ;;  %v14136_v23 = vld [vmem:[#allocation79_spill] sm:$0xff] }
 0x346   : > { %v2538_v27 = vpop.f32.mrf.mxu1 }
 0x347   : > { %v2567_v0 = vadd.f32 %v2538_v27, %v2416_v20  ;;  %v2593_v5 = vadd.f32 %v2592_v25, %v2581_v55  ;;  %v2584_v51 = vadd.f32 %v8571_v56, %v2569_v43  ;;  %v2607_v28 = vsel %vm2603_vm6, %v2595_v13, 0.0 }
 0x348   : > { %v9349_v54 = vpop.f32.mrf.mxu1 }
 0x349   : > { %v2582_v63 = vadd.f32 %v8571_v56, %v2567_v0  ;;  %v2572_v62 = vadd.f32 %v9349_v54, %v2421_v17  ;;  %v2604_v37 = vsel %vm2603_vm6, %v2593_v5, 0.0  ;;  %v2596_v39 = vadd.f32 %v2592_v25, %v2584_v51 }
 0x34a   : > { %v2551_v7 = vpop.f32.mrf.mxu1 }
 0x34b   : > { %v2594_v14 = vadd.f32 %v2592_v25, %v2582_v63  ;;  %v2570_v50 = vadd.f32 %v2551_v7, %v2419_v44  ;;  %v2587_v6 = vadd.f32 %v8571_v56, %v2572_v62  ;;  %v2609_v33 = vsel %vm2603_vm6, %v2596_v39, 0.0 }
 0x34c   : > { %v9350_v21 = vpop.f32.mrf.mxu1 }
 0x34d   : > { %v2605_v59 = vsel %vm2603_vm6, %v2594_v14, 0.0  ;;  %v2585_v53 = vadd.f32 %v8571_v56, %v2570_v50  ;;  %v2573_v42 = vadd.f32 %v9350_v21, %v2422_v16  ;;  %v2599_v57 = vadd.f32 %v2592_v25, %v2587_v6 }
 0x34e   : > { %v2606_v32 = vadd.f32 %v2605_v59, %v2604_v37  ;;  %v2554_v36 = vpop.f32.mrf.mxu1 }
 0x34f   : > { %v2597_v35 = vadd.f32 %v2592_v25, %v2585_v53  ;;  %v2571_v2 = vadd.f32 %v2554_v36, %v2420_v60  ;;  %v2588_v10 = vadd.f32 %v8571_v56, %v2573_v42  ;;  %v2615_v8 = vsel %vm2603_vm6, %v2599_v57, 0.0 }
 0x350   : > { %v2608_v22 = vadd.f32 %v2607_v28, %v2606_v32 }
 0x351   : > { %v2586_v9 = vadd.f32 %v8571_v56, %v2571_v2  ;;  %v2611_v45 = vsel %vm2603_vm6, %v2597_v35, 0.0  ;;  %v2600_v52 = vadd.f32 %v2592_v25, %v2588_v10  ;;  %v14135_v56 = vmov 0.0   ;;  %v9936_v10 = vld [vmem:[%s13869_s13] sm:$0xff]  }
 0x352   : > { %v2610_v4 = vadd.f32 %v2609_v33, %v2608_v22  ;;  %9375 = vmatprep.subr.bf16.mxu1 %v9936_v10 }
 0x353   : > { %v2598_v30 = vadd.f32 %v2592_v25, %v2586_v9  ;;  %v2617_v38 = vsel %vm2603_vm6, %v2600_v52, 0.0  ;;  %v9937_v9 = vld [vmem:[%s13869_s13 + $0x8] sm:$0xff]   ;;  %9376 = vmatpush3.bf16.msra.mxu1 %v9936_v10 }
 0x354   : > { %v2612_v34 = vadd.f32 %v2611_v45, %v2610_v4  ;;  %v11211_v4 = vld [vmem:[%s13869_s13 + $0x10] sm:$0xff]  }
 0x355   : > { %v2613_v31 = vsel %vm2603_vm6, %v2598_v30, 0.0 }
 0x356   : > { %v2614_v11 = vadd.f32 %v2613_v31, %v2612_v34 }
 0x358   : > { %v2616_v1 = vadd.f32 %v2615_v8, %v2614_v11  ;;  %v8574_v11 = vld [vmem:[%s14137_s11] ss:$0 sm:$0xff]  ;;  %s10275_s11 = smov 124  }
 0x35a   : > { %v2618_v3 = vadd.f32 %v2617_v38, %v2616_v1 }
 0x35c   : > { %v2619_v15 = vrot.slane %v2618_v3, 4 }
 0x35e   : > { %v2620_v24 = vadd.f32 %v2619_v15, %v2618_v3  ;;  %v8575_v15 = vld [vmem:[%s14138_s12] ss:$0 sm:$0xff] }
 0x360   : > { %v2621_v46 = vrot.slane %v2620_v24, 2 }
 0x362   : > { %v2622_v29 = vadd.f32 %v2621_v46, %v2620_v24 }
 0x364   : > { %v2623_v40 = vrot.slane %v2622_v29, 1 }
 0x366   : > { %v2624_v58 = vadd.f32 %v2623_v40, %v2622_v29 }
 0x368   : > { %9356 = vmatmul.mubr.msk.f32.vlgmr.msra.gmra.mxu0 %vm2603_vm6, %v2624_v58 }
 0x369   : > { %9359 = vmatpush3.msra.mxu0 %v14134_v41  ;;  %9362 = vmatprep.mubr.msk.f32.mxu0 %vm10270_vm0, %v14135_v56 }
 0x36a   : > { %9360 = vmatprep.subr.mxu0 %v14135_v56 }
 0x36b   : > { %9361 = vmatpush3.msra.mxu0 %v14136_v23 }
 0x36c   : > { %9365 = vmatprep.subr.bf16.mxu0 %v9937_v9 }
 0x428   : > { %v2694_v20 = vpop.f32.mrf.mxu0 }
 0x429   : > { %v2701_v47 = vrot.slane %v2694_v20, %v14133_v19 }
 0x42a   : > { %v9357_v61 = vpop.f32.mrf.mxu0 }
 0x42b   : > { %v2702_v55 = vsub.f32 %v2593_v5, %v2701_v47  ;;  %v2703_v43 = vsub.f32 %v2594_v14, %v2701_v47  ;;  %v2704_v25 = vsub.f32 %v2595_v13, %v2701_v47  ;;  %v2705_v26 = vsub.f32 %v2596_v39, %v2701_v47 }
 0x42c   : > { %v2706_v18 = vsub.f32 %v2597_v35, %v2701_v47  ;;  %v2707_v12 = vsub.f32 %v2598_v30, %v2701_v47  ;;  %v2708_v51 = vsub.f32 %v2599_v57, %v2701_v47  ;;  %v2709_v5 = vsub.f32 %v2600_v52, %v2701_v47  ;;  %v11217_v57 = vld [vmem:[%s13869_s13 + $0x18] sm:$0xff]  }
 0x42d   : > { %v2710_v27 = vmul.f32 %v2702_v55, %v2702_v55  ;;  %v2711_v49 = vmul.f32 %v2703_v43, %v2703_v43  ;;  %v2712_v0 = vmul.f32 %v2704_v25, %v2704_v25  ;;  %v2713_v54 = vmul.f32 %v2705_v26, %v2705_v26  ;;  %9395 = vmatprep.subr.bf16.mxu1 %v11217_v57 }
 0x42e   : > { %v2714_v63 = vmul.f32 %v2706_v18, %v2706_v18  ;;  %v2715_v14 = vmul.f32 %v2707_v12, %v2707_v12  ;;  %v2716_v50 = vmul.f32 %v2708_v51, %v2708_v51  ;;  %v2717_v21 = vmul.f32 %v2709_v5, %v2709_v5 }
 0x42f   : > { %v2718_v17 = vsel %vm2603_vm6, %v2710_v27, 0.0  ;;  %v2719_v44 = vsel %vm2603_vm6, %v2711_v49, 0.0  ;;  %v2721_v16 = vsel %vm2603_vm6, %v2712_v0, 0.0  ;;  %v2723_v13 = vsel %vm2603_vm6, %v2713_v54, 0.0 }
 0x430   : > { %v2720_v48 = vadd.f32 %v2719_v44, %v2718_v17  ;;  %v2725_v60 = vsel %vm2603_vm6, %v2714_v63, 0.0  ;;  %v2727_v39 = vsel %vm2603_vm6, %v2715_v14, 0.0  ;;  %v2729_v53 = vsel %vm2603_vm6, %v2716_v50, 0.0 }
 0x431   : > { %v2731_v32 = vsel %vm2603_vm6, %v2717_v21, 0.0 }
 0x432   : > { %v2722_v7 = vadd.f32 %v2721_v16, %v2720_v48 }
 0x434   : > { %v2724_v62 = vadd.f32 %v2723_v13, %v2722_v7 }
 0x436   : > { %v2726_v37 = vadd.f32 %v2725_v60, %v2724_v62 }
 0x438   : > { %v2728_v59 = vadd.f32 %v2727_v39, %v2726_v37 }
 0x43a   : > { %v2730_v42 = vadd.f32 %v2729_v53, %v2728_v59 }
 0x43c   : > { %v2732_v36 = vadd.f32 %v2731_v32, %v2730_v42 }
 0x43e   : > { %v2733_v28 = vrot.slane %v2732_v36, 4 }
 0x440   : > { %v2734_v6 = vadd.f32 %v2733_v28, %v2732_v36 }
 0x442   : > { %v2735_v35 = vrot.slane %v2734_v6, 2 }
 0x444   : > { %v2736_v2 = vadd.f32 %v2735_v35, %v2734_v6 }
 0x446   : > { %v2737_v22 = vrot.slane %v2736_v2, 1 }
 0x448   : > { %v2738_v33 = vadd.f32 %v2737_v22, %v2736_v2 }
 0x44a   : > { %9363 = vmatmul.mubr.msk.f32.vlgmr.msra.gmra.mxu0 %vm2603_vm6, %v2738_v33 }
 0x44b   : > { %9366 = vmatpush3.bf16.msra.mxu0 %v9937_v9 }
 0x44c   : > { %9385 = vmatprep.subr.bf16.mxu0 %v11211_v4 }
 0x50a   : > { %v2808_v45 = vpop.f32.mrf.mxu0 }
 0x50b   : > { %v2809_v30 = vadd.f32 1e-05, %v2808_v45 }
 0x50c   : > { %v9364_v34 = vpop.f32.mrf.mxu0 }
 0x50d   : > { %10000 = vrsqrt.f32 %v2809_v30  ;;  %v14139_v30 = vld [vmem:[#allocation17_spill] sm:$0xff] }
 0x51a   : > { %v10001_v52 = vpop.eup %10000 }
 0x51b   : > { %v2816_v31 = vrot.slane %v10001_v52, %v14133_v19 }
 0x51d   : > { %v2817_v8 = vmul.f32 %v2816_v31, %v2702_v55  ;;  %v2824_v1 = vmul.f32 %v2816_v31, %v2709_v5  ;;  %v2818_v38 = vmul.f32 %v2816_v31, %v2703_v43  ;;  %v2819_v3 = vmul.f32 %v2816_v31, %v2704_v25 }
 0x51e   : > { %v2820_v24 = vmul.f32 %v2816_v31, %v2705_v26  ;;  %v2821_v46 = vmul.f32 %v2816_v31, %v2706_v18  ;;  %v2823_v29 = vmul.f32 %v2816_v31, %v2708_v51  ;;  %v2822_v40 = vmul.f32 %v2816_v31, %v2707_v12 }
 0x51f   : > { %v2831_v58 = vmul.f32 %v8574_v11, %v2817_v8  ;;  %v2838_v41 = vmul.f32 %v8574_v11, %v2824_v1  ;;  %v2832_v23 = vmul.f32 %v8574_v11, %v2818_v38  ;;  %v2833_v20 = vmul.f32 %v8574_v11, %v2819_v3  ;;  %v14140_v8 = vld [vmem:[#allocation15_spill] sm:$0xff] }
 0x520   : > { %v2834_v47 = vmul.f32 %v8574_v11, %v2820_v24  ;;  %v2835_v61 = vmul.f32 %v8574_v11, %v2821_v46  ;;  %v2837_v27 = vmul.f32 %v8574_v11, %v2823_v29  ;;  %v2836_v49 = vmul.f32 %v8574_v11, %v2822_v40  ;;  %v14141_v24 = vld [vmem:[#allocation14_spill] sm:$0xff] }
 0x521   : > { %v2845_v55 = vadd.f32 %v8575_v15, %v2831_v58  ;;  %v2852_v0 = vadd.f32 %v8575_v15, %v2838_v41  ;;  %v2846_v43 = vadd.f32 %v8575_v15, %v2832_v23  ;;  %v2847_v25 = vadd.f32 %v8575_v15, %v2833_v20  ;;  %v14142_v20 = vld [vmem:[#allocation16_spill] sm:$0xff] }
 0x522   : > { %v2848_v54 = vadd.f32 %v8575_v15, %v2834_v47  ;;  %v11227_v17 = vadd.f32 %v8575_v15, %v2835_v61  ;;  %v11229_v48 = vadd.f32 %v8575_v15, %v2837_v27  ;;  %v11231_v51 = vadd.f32 %v8575_v15, %v2836_v49 }
 0x523   : > { %v8576_v44 = vmul.f32 -1.442695, %v2845_v55  ;;  %v8583_v26 = vmul.f32 -1.442695, %v2852_v0  ;;  %v8577_v18 = vmul.f32 -1.442695, %v2846_v43 }
 0x524   : > { %v8578_v12 = vmul.f32 -1.442695, %v2847_v25  ;;  %v8579_v63 = vmul.f32 -1.442695, %v2848_v54  ;;  %v8580_v16 = vmul.f32 -1.442695, %v11227_v17 }
 0x525   : > { %10002 = vpow2.f32 %v8576_v44  ;;  %v8582_v7 = vmul.f32 -1.442695, %v11229_v48  ;;  %v8581_v5 = vmul.f32 -1.442695, %v11231_v51 }
 0x526   : > { %10004 = vpow2.f32 %v8583_v26  ;;  %v14145_v26 = vld [vmem:[#allocation18_spill] sm:$0xff] }
 0x527   : > { %10006 = vpow2.f32 %v8577_v18 }
 0x528   : > { %10008 = vpow2.f32 %v8578_v12 }
 0x529   : > { %10010 = vpow2.f32 %v8579_v63 }
 0x52a   : > { %10012 = vpow2.f32 %v8580_v16  ;;  %v14146_v16 = vld [vmem:[#allocation25_spill] sm:$0xff] }
 0x52b   : > { %10014 = vpow2.f32 %v8582_v7 }
 0x52c   : > { %10016 = vpow2.f32 %v8581_v5 }
 0x532   : > { %v10003_v14 = vpop.eup %10002 }
 0x533   : > { %v10005_v13 = vpop.eup %10004  ;;  %v2877_v62 = vadd.f32 1.0, %v10003_v14 }
 0x534   : > { %v10007_v50 = vpop.eup %10006  ;;  %v2884_v60 = vadd.f32 1.0, %v10005_v13  ;;  %v11288_v13 = vld [vmem:[%s13869_s13 + $0x20] sm:$0xff]  }
 0x535   : > { %v10009_v37 = vpop.eup %10008  ;;  %10018 = vrcp.f32 %v2877_v62  ;;  %v2878_v21 = vadd.f32 1.0, %v10007_v50  ;;  %v14147_v50 = vld [vmem:[#allocation22_spill] sm:$0xff] }
 0x536   : > { %v10011_v39 = vpop.eup %10010  ;;  %10020 = vrcp.f32 %v2884_v60  ;;  %v2879_v59 = vadd.f32 1.0, %v10009_v37 }
 0x537   : > { %v10013_v53 = vpop.eup %10012  ;;  %10022 = vrcp.f32 %v2878_v21  ;;  %v2880_v42 = vadd.f32 1.0, %v10011_v39 }
 0x538   : > { %v10015_v32 = vpop.eup %10014  ;;  %10024 = vrcp.f32 %v2879_v59  ;;  %v2881_v36 = vadd.f32 1.0, %v10013_v53  ;;  %v14148_v59 = vld [vmem:[#allocation24_spill] sm:$0xff] }
 0x539   : > { %v10017_v28 = vpop.eup %10016  ;;  %10026 = vrcp.f32 %v2880_v42  ;;  %v2883_v6 = vadd.f32 1.0, %v10015_v32 }
 0x53a   : > { %10028 = vrcp.f32 %v2881_v36  ;;  %v2882_v35 = vadd.f32 1.0, %v10017_v28  ;;  %v14150_v28 = vld [vmem:[#allocation31_spill] sm:$0xff] }
 0x53b   : > { %10030 = vrcp.f32 %v2883_v6 }
 0x53c   : > { %10032 = vrcp.f32 %v2882_v35 }
 0x542   : > { %v10019_v2 = vpop.eup %10018 }
 0x543   : > { %v10021_v22 = vpop.eup %10020  ;;  %v11236_v33 = vmul.f32 %v10019_v2, %v2845_v55  ;;  %v14143_v55 = vld [vmem:[#allocation19_spill] sm:$0xff] }
 0x544   : > { %v10023_v10 = vpop.eup %10022  ;;  %v11238_v9 = vmul.f32 %v10021_v22, %v2852_v0  ;;  %v14152_v22 = vld [vmem:[#allocation20_spill] sm:$0xff] }
 0x545   : > { %v10025_v45 = vpop.eup %10024  ;;  %v2940_v34 = vmul.f32 %v11236_v33, %v14139_v30  ;;  %v11242_v52 = vmul.f32 %v10023_v10, %v2846_v43  ;;  %v2909_v31 = vrot.slane %v11236_v33, 7  ;;  %v3120_v58 = vrot.slane %v11236_v33, 1 }
 0x546   : > { %v10027_v11 = vpop.eup %10026  ;;  %v2939_v1 = vmul.f32 %v11238_v9, %v14140_v8  ;;  %v11247_v38 = vmul.f32 %v10025_v45, %v2847_v25  ;;  %v2916_v3 = vrot.slane %v11238_v9, 7  ;;  %v3127_v27 = vrot.slane %v11238_v9, 1 }
 0x547   : > { %v10029_v15 = vpop.eup %10028  ;;  %v2941_v46 = vmul.f32 %v11242_v52, %v14141_v24  ;;  %v11252_v29 = vmul.f32 %v10027_v11, %v2848_v54  ;;  %v2910_v40 = vrot.slane %v11242_v52, 7  ;;  %v3121_v63 = vrot.slane %v11242_v52, 1  ;;  %v14155_v24 = vld [vmem:[#allocation26_spill] sm:$0xff] }
 0x548   : > { %v10031_v41 = vpop.eup %10030  ;;  %v2947_v23 = vpack.c.bf16 %v2940_v34, %v2939_v1  ;;  %v2942_v47 = vmul.f32 %v11247_v38, %v14142_v20  ;;  %v11259_v61 = vmul.f32 %v10029_v15, %v11227_v17  ;;  %v11273_v44 = vsel %vm1263_vm5, %v2916_v3, %v2909_v31  ;;  %v14153_v34 = vld [vmem:[#allocation21_spill] sm:$0xff] }
 0x549   : > { %v10033_v49 = vpop.eup %10032  ;;  %v2943_v0 = vmul.f32 %v11252_v29, %v14143_v55  ;;  %v11265_v43 = vmul.f32 %v10031_v41, %v11229_v48  ;;  %v11269_v54 = vsel %vm1263_vm5, %v2909_v31, %v2910_v40  ;;  %v2911_v12 = vrot.slane %v11247_v38, 7  ;;  %v9941_v41 = vld [vmem:[%s13869_s13 + $0x28] sm:$0xff]  }
 0x54a   : > { %9367 = vmatprep.mubr.msk.bf16.mxu0 %vm2603_vm6, %v2947_v23  ;;  %v2948_v17 = vpack.c.bf16 %v2942_v47, %v2941_v46  ;;  %v2944_v18 = vmul.f32 %v11259_v61, %v14145_v26  ;;  %v2927_v7 = vmul.f32 %v11269_v54, %v14146_v16  ;;  %v2912_v5 = vrot.slane %v11252_v29, 7  ;;  %v14159_v16 = vld [vmem:[#allocation38_spill] sm:$0xff] }
 0x54b   : > { %v2915_v48 = vrot.slane %v11265_v43, 7  ;;  %v2913_v14 = vrot.slane %v11259_v61, 7  ;;  %v2926_v60 = vmul.f32 %v11273_v44, %v14147_v50  ;;  %v11295_v37 = vsel %vm1263_vm5, %v2910_v40, %v2911_v12 }
 0x54c   : > { %9368 = vmatmul.mubr.msk.bf16.vlgmr.msra.gmra.mxu0 %vm2603_vm6, %v2948_v17  ;;  %v2949_v62 = vpack.c.bf16 %v2944_v18, %v2943_v0  ;;  %v11298_v21 = vmul.f32 %v10033_v49, %v11231_v51  ;;  %v2928_v53 = vmul.f32 %v11295_v37, %v14148_v59  ;;  %v11313_v32 = vsel %vm1263_vm5, %v2911_v12, %v2912_v5  ;;  %v14149_v51 = vld [vmem:[#allocation23_spill] sm:$0xff]  ;;  %v14156_v17 = vld [vmem:[#allocation33_spill] sm:$0xff]  ;;  %v14157_v18 = vld [vmem:[#allocation32_spill] sm:$0xff] }
 0x54d   : > { %v11302_v39 = vsel %vm1263_vm5, %v2915_v48, %v2916_v3  ;;  %9386 = vmatpush3.bf16.msra.mxu0 %v11211_v4  ;;  %v11309_v42 = vsel %vm1263_vm5, %v2912_v5, %v2913_v14  ;;  %v2929_v6 = vmul.f32 %v11313_v32, %v14150_v28  ;;  %v14151_v4 = vld [vmem:[#allocation30_spill] sm:$0xff]  ;;  %v2946_v10 = vmul.f32 %v11265_v43, %v14152_v22  ;;  %v14154_v3 = vld [vmem:[#allocation27_spill] sm:$0xff] }
 0x54e   : > { %9371 = vmatprep.mubr.msk.bf16.mxu0 %vm2603_vm6, %v2949_v62  ;;  %v2925_v36 = vmul.f32 %v11302_v39, %v14149_v51  ;;  %v2930_v35 = vmul.f32 %v11309_v42, %v14151_v4  ;;  %v2934_v2 = vpack.c.bf16 %v2928_v53, %v2927_v7  ;;  %v3122_v45 = vrot.slane %v11247_v38, 1  ;;  %9405 = vmatprep.subr.bf16.mxu0 %v11288_v13  ;;  %v14160_v62 = vld [vmem:[#allocation29_spill] sm:$0xff]  ;;  %v14162_v51 = vld [vmem:[#allocation35_spill] sm:$0xff] }
 0x54f   : > { %v2945_v31 = vmul.f32 %v11298_v21, %v14153_v34  ;;  %v11330_v11 = vsel %vm1565_vm4, %v3120_v58, %v3121_v63  ;;  %v11336_v8 = vsel %vm1565_vm4, %v3127_v27, %v3120_v58  ;;  %v2914_v40 = vrot.slane %v11298_v21, 7 }
 0x550   : > { %v2933_v30 = vpack.c.bf16 %v2926_v60, %v2925_v36  ;;  %v2935_v1 = vpack.c.bf16 %v2930_v35, %v2929_v6  ;;  %v3136_v15 = vmul.f32 %v11336_v8, %v14154_v3  ;;  %v3137_v46 = vmul.f32 %v11330_v11, %v14155_v24  ;;  %v14161_v60 = vld [vmem:[#allocation28_spill] sm:$0xff]  ;;  %v14163_v6 = vld [vmem:[#allocation34_spill] sm:$0xff]  ;;  %v14166_v24 = vld [vmem:[#allocation43_spill] sm:$0xff] }
 0x551   : > { %v2950_v23 = vpack.c.bf16 %v2946_v10, %v2945_v31  ;;  %v11350_v58 = vsel %vm1565_vm4, %v3121_v63, %v3122_v45  ;;  %v3123_v20 = vrot.slane %v11252_v29, 1  ;;  %v11357_v49 = vsel %vm1263_vm5, %v2914_v40, %v2915_v48  ;;  %v14158_v63 = vld [vmem:[#allocation39_spill] sm:$0xff]  ;;  %v9942_v10 = vld [vmem:[%s13869_s13 + $0x30] sm:$0xff]   ;;  %v14164_v31 = vld [vmem:[#allocation41_spill] sm:$0xff] }
 0x552   : > { %9377 = vmatprep.mubr.msk.bf16.mxu1 %vm2603_vm6, %v2933_v30  ;;  %v3144_v47 = vpack.c.bf16 %v3137_v46, %v3136_v15  ;;  %v11361_v55 = vsel %vm1263_vm5, %v2913_v14, %v2914_v40  ;;  %v3124_v0 = vrot.slane %v11259_v61, 1  ;;  %v2932_v12 = vmul.f32 %v11357_v49, %v14157_v18  ;;  %v14165_v3 = vld [vmem:[#allocation40_spill] sm:$0xff]  ;;  %v14167_v46 = vld [vmem:[#allocation42_spill] sm:$0xff] }
 0x553   : > { %9378 = vmatmul.mubr.msk.bf16.vlgmr.msra.gmra.mxu1 %vm2603_vm6, %v2934_v2  ;;  %v2931_v26 = vmul.f32 %v11361_v55, %v14156_v17  ;;  %v3242_v48 = vmul.f32 %v11273_v44, %v14158_v63  ;;  %v3243_v7 = vmul.f32 %v11269_v54, %v14159_v16  ;;  %v3125_v5 = vrot.slane %v11298_v21, 1  ;;  %v14170_v63 = vld [vmem:[#allocation45_spill] sm:$0xff]  ;;  %v14171_v16 = vld [vmem:[#allocation44_spill] sm:$0xff] }
 0x554   : > { %9381 = vmatprep.mubr.msk.bf16.mxu1 %vm2603_vm6, %v2935_v1  ;;  %9396 = vmatpush3.bf16.msra.mxu1 %v11217_v57  ;;  %v11371_v57 = vsel %vm1565_vm4, %v3122_v45, %v3123_v20  ;;  %v11381_v14 = vsel %vm1565_vm4, %v3123_v20, %v3124_v0  ;;  %v3138_v50 = vmul.f32 %v11350_v58, %v14160_v62  ;;  %v3126_v35 = vrot.slane %v11265_v43, 1 }
 0x555   : > { %9372 = vmatmul.mubr.msk.bf16.gmra.mxu0 %vm2603_vm6, %v2950_v23  ;;  %9415 = vmatprep.subr.bf16.mxu1 %v9941_v41  ;;  %v3139_v59 = vmul.f32 %v11371_v57, %v14161_v60  ;;  %v11389_v53 = vsel %vm1565_vm4, %v3124_v0, %v3125_v5  ;;  %v3140_v36 = vmul.f32 %v11381_v14, %v14162_v51  ;;  %v14168_v23 = vld [vmem:[#allocation37_spill] sm:$0xff]  ;;  %v14174_v60 = vld [vmem:[#allocation46_spill] sm:$0xff]  ;;  %v14175_v51 = vld [vmem:[#allocation72_spill] sm:$0xff] }
 0x556   : > { %9387 = vmatprep.mubr.msk.bf16.mxu0 %vm2603_vm6, %v3144_v47  ;;  %v2936_v28 = vpack.c.bf16 %v2932_v12, %v2931_v26  ;;  %v3141_v4 = vmul.f32 %v11389_v53, %v14163_v6  ;;  %v3250_v2 = vpack.c.bf16 %v3243_v7, %v3242_v48  ;;  %v11405_v30 = vsel %vm1565_vm4, %v3126_v35, %v3127_v27  ;;  %v14169_v47 = vld [vmem:[#allocation36_spill] sm:$0xff]  ;;  %v9943_v26 = vld [vmem:[%s13869_s13 + $0x38] sm:$0xff]  }
 0x557   : > { %v3145_v22 = vpack.c.bf16 %v3139_v59, %v3138_v50  ;;  %v11409_v34 = vsel %vm1565_vm4, %v3125_v5, %v3126_v35  ;;  %v3244_v1 = vmul.f32 %v11295_v37, %v14164_v31  ;;  %v3245_v15 = vmul.f32 %v11313_v32, %v14165_v3  ;;  %v14172_v5 = vld [vmem:[#allocation73_spill] sm:$0xff]  ;;  %v14173_v50 = vld [vmem:[#allocation47_spill] sm:$0xff]  ;;  %v14177_v31 = vld [vmem:[#allocation48_spill] sm:$0xff] }
 0x558   : > { %v3146_v45 = vpack.c.bf16 %v3141_v4, %v3140_v36  ;;  %v3246_v27 = vmul.f32 %v11309_v42, %v14166_v24  ;;  %v3247_v40 = vmul.f32 %v11361_v55, %v14167_v46  ;;  %v3142_v20 = vmul.f32 %v11409_v34, %v14168_v23  ;;  %v14178_v3 = vld [vmem:[#allocation55_spill] sm:$0xff]  ;;  %v14179_v24 = vld [vmem:[#allocation54_spill] sm:$0xff] }
 0x559   : > { %v3143_v0 = vmul.f32 %v11405_v30, %v14169_v47  ;;  %v3251_v17 = vpack.c.bf16 %v3245_v15, %v3244_v1  ;;  %v3348_v12 = vpack.c.bf16 %v11242_v52, %v11236_v33  ;;  %v3248_v48 = vmul.f32 %v11357_v49, %v14170_v63  ;;  %v14180_v46 = vld [vmem:[#allocation51_spill] sm:$0xff]  ;;  %v14181_v23 = vld [vmem:[#allocation50_spill] sm:$0xff] }
 0x55a   : > { %v3252_v18 = vpack.c.bf16 %v3247_v40, %v3246_v27  ;;  %v3249_v7 = vmul.f32 %v11302_v39, %v14171_v16  ;;  %v11440_v62 = vmul.f32 %v11238_v9, %v14172_v5  ;;  %v3447_v59 = vmul.f32 %v11350_v58, %v14174_v60  ;;  %v14184_v63 = vld [vmem:[#allocation63_spill] sm:$0xff]  ;;  %v14187_v5 = vld [vmem:[#allocation52_spill] sm:$0xff] }
 0x55b   : > { %9382 = vmatmul.mubr.msk.bf16.gmra.mxu1 %vm2603_vm6, %v2936_v28  ;;  %v11449_v36 = vmul.f32 %v11236_v33, %v14175_v51  ;;  %v3349_v35 = vpack.c.bf16 %v11252_v29, %v11247_v38  ;;  %v3350_v33 = vpack.c.bf16 %v11298_v21, %v11259_v61  ;;  %v3449_v1 = vmul.f32 %v11381_v14, %v14177_v31  ;;  %v14194_v31 = vld [vmem:[#allocation61_spill] sm:$0xff] }
 0x55c   : > { %9397 = vmatprep.mubr.msk.bf16.mxu1 %vm2603_vm6, %v3250_v2  ;;  %v3253_v6 = vpack.c.bf16 %v3249_v7, %v3248_v48  ;;  %v9944_v2 = vld [vmem:[%s13869_s13 + $0x40] sm:$0xff]   ;;  %v3450_v15 = vmul.f32 %v11389_v53, %v14178_v3  ;;  %v3451_v27 = vmul.f32 %v11409_v34, %v14179_v24  ;;  %v3552_v40 = vmul.f32 %v11269_v54, %v14180_v46  ;;  %v14182_v54 = vld [vmem:[#allocation57_spill] sm:$0xff]  ;;  %v14197_v24 = vld [vmem:[#allocation66_spill] sm:$0xff] }
 0x55d   : > { %9388 = vmatmul.mubr.msk.bf16.vlgmr.msra.gmra.mxu0 %vm2603_vm6, %v3145_v22  ;;  %v3669_v28 = vpack.c.bf16 %v11449_v36, %v11440_v62  ;;  %v14176_v22 = vld [vmem:[#allocation49_spill] sm:$0xff]  ;;  %v3658_v48 = vmul.f32 %v11242_v52, %v14184_v63  ;;  %v14195_v3 = vld [vmem:[#allocation60_spill] sm:$0xff] }
 0x55e   : > { %9391 = vmatprep.mubr.msk.bf16.mxu0 %vm2603_vm6, %v3146_v45  ;;  %9406 = vmatpush3.bf16.msra.mxu0 %v11288_v13  ;;  %v3147_v13 = vpack.c.bf16 %v3143_v0, %v3142_v20  ;;  %v3448_v45 = vmul.f32 %v11371_v57, %v14176_v22  ;;  %v3553_v20 = vmul.f32 %v11295_v37, %v14181_v23  ;;  %v14193_v22 = vld [vmem:[#allocation70_spill] sm:$0xff]  ;;  %v14199_v46 = vld [vmem:[#allocation68_spill] sm:$0xff]  ;;  %v14200_v23 = vld [vmem:[#allocation75_spill] sm:$0xff] }
 0x55f   : > { %9425 = vmatprep.subr.bf16.mxu0 %v9942_v10  ;;  %v3456_v0 = vpack.c.bf16 %v3451_v27, %v3450_v15  ;;  %v3452_v37 = vmul.f32 %v11405_v30, %v14182_v54  ;;  %v3559_v15 = vmul.f32 %v11273_v44, %v14195_v3  ;;  %v14203_v36 = vld [vmem:[#allocation76_spill] sm:$0xff]  ;;  %v10170_v63 = vld [vmem:[%s10506_s0 + $0x28] sm:$0xff] }
 0x560   : > { %v3455_v47 = vpack.c.bf16 %v3449_v1, %v3448_v45  ;;  %v3663_v45 = vmul.f32 %v11265_v43, %v14193_v22  ;;  %v3558_v1 = vmul.f32 %v11302_v39, %v14194_v31 }
 0x562   : > { %v3563_v39 = vpack.c.bf16 %v3559_v15, %v3558_v1 }
 0x563   : > { %9398 = vmatmul.mubr.msk.bf16.vlgmr.msra.gmra.mxu1 %vm2603_vm6, %v3251_v17  ;;  %v3889_v17 = vld [vmem:[%s13871_s15] sm:$0xf] }
 0x564   : > { %9401 = vmatprep.mubr.msk.bf16.mxu1 %vm2603_vm6, %v3252_v18  ;;  %9416 = vmatpush3.bf16.msra.mxu1 %v9941_v41  ;;  %v3446_v41 = vmul.f32 %v11330_v11, %v14173_v50  ;;  %v3560_v18 = vpack.c.bf16 %v3553_v20, %v3552_v40  ;;  %v3555_v50 = vmul.f32 %v11309_v42, %v14187_v5  ;;  %v14191_v42 = vld [vmem:[#allocation64_spill] sm:$0xff] }
 0x565   : > { %9392 = vmatmul.mubr.msk.bf16.gmra.mxu0 %vm2603_vm6, %v3147_v13  ;;  %9435 = vmatprep.subr.bf16.mxu1 %v9943_v26  ;;  %v14183_v13 = vld [vmem:[#allocation56_spill] sm:$0xff]  ;;  %v3767_v40 = vmul.f32 %v11389_v53, %v14199_v46  ;;  %v3768_v20 = vmul.f32 %v11409_v34, %v14200_v23  ;;  %v10166_v53 = vld [vmem:[%s14126_s5 + $0x8] sm:$0xff]  ;;  %v10168_v34 = vld [vmem:[%s10506_s0 + $0x18] sm:$0xff] }
 0x566   : > { %9407 = vmatprep.mubr.msk.bf16.mxu0 %vm2603_vm6, %v3348_v12  ;;  %v3454_v4 = vpack.c.bf16 %v3447_v59, %v3446_v41  ;;  %v3453_v12 = vmul.f32 %v11336_v8, %v14183_v13  ;;  %v14188_v41 = vld [vmem:[#allocation59_spill] sm:$0xff]  ;;  %v14189_v59 = vld [vmem:[#allocation58_spill] sm:$0xff]  ;;  %v14202_v13 = vld [vmem:[#allocation77_spill] sm:$0xff] }
 0x567   : > { %v3556_v60 = vmul.f32 %v11361_v55, %v14188_v41  ;;  %v3557_v51 = vmul.f32 %v11357_v49, %v14189_v59  ;;  %v14192_v49 = vld [vmem:[#allocation71_spill] sm:$0xff]  ;;  %v3770_v62 = vmul.f32 %v11336_v8, %v14202_v13 }
 0x568   : > { %v3662_v55 = vmul.f32 %v11298_v21, %v14192_v49  ;;  %v3910_v21 = vsel %vm1408_vm2, %v3889_v17, 0  ;;  %v10173_v8 = vld [vmem:[%s10506_s0 + $0x38] sm:$0xff] }
 0x569   : > { %v3562_v52 = vpack.c.bf16 %v3557_v51, %v3556_v60 }
 0x56b   : > { %9402 = vmatmul.mubr.msk.bf16.gmra.mxu1 %vm2603_vm6, %v3253_v6  ;;  %v3457_v6 = vpack.c.bf16 %v3453_v12, %v3452_v37  ;;  %v10169_v12 = vld [vmem:[%s10506_s0 + $0x20] sm:$0xff] }
 0x56c   : > { %9417 = vmatprep.mubr.msk.bf16.mxu1 %vm2603_vm6, %v3454_v4 }
 0x56d   : > { %9408 = vmatmul.mubr.msk.bf16.vlgmr.msra.gmra.mxu0 %vm2603_vm6, %v3349_v35 }
 0x56e   : > { %9411 = vmatprep.mubr.msk.bf16.mxu0 %vm2603_vm6, %v3350_v33  ;;  %9426 = vmatpush3.bf16.msra.mxu0 %v9942_v10  ;;  %v3351_v10 = vpack.c.bf16 %v11238_v9, %v11265_v43  ;;  %v14185_v9 = vld [vmem:[#allocation62_spill] sm:$0xff]  ;;  %v3661_v33 = vmul.f32 %v11259_v61, %v14191_v42  ;;  %v3668_v43 = vpack.c.bf16 %v3663_v45, %v3662_v55 }
 0x56f   : > { %9445 = vmatprep.subr.bf16.mxu0 %v9944_v2  ;;  %v3659_v16 = vmul.f32 %v11247_v38, %v14185_v9  ;;  %v14190_v38 = vld [vmem:[#allocation65_spill] sm:$0xff]  ;;  %v10171_v9 = vld [vmem:[%s14126_s5] sm:$0xff]  ;;  %s835_s5 = sand.u32 1, %s10256_s4  }
 0x571   : > { %v3666_v4 = vpack.c.bf16 %v3659_v16, %v3658_v48  ;;  %v3887_v48 = vpack.c.bf16 %v10170_v63, %v10169_v12 }
 0x573   : > { %9418 = vmatmul.mubr.msk.bf16.vlgmr.msra.gmra.mxu1 %vm2603_vm6, %v3455_v47  ;;  %v14201_v47 = vld [vmem:[#allocation74_spill] sm:$0xff] }
 0x574   : > { %9421 = vmatprep.mubr.msk.bf16.mxu1 %vm2603_vm6, %v3456_v0  ;;  %9436 = vmatpush3.bf16.msra.mxu1 %v9943_v26  ;;  %v14186_v26 = vld [vmem:[#allocation53_spill] sm:$0xff]  ;;  %v3769_v0 = vmul.f32 %v11405_v30, %v14201_v47  ;;  %v10167_v30 = vld [vmem:[%s10506_s0 + $0x10] sm:$0xff] }
 0x575   : > { %9412 = vmatmul.mubr.msk.bf16.gmra.mxu0 %vm2603_vm6, %v3351_v10  ;;  %9845 = vmatprep.subr.msk.bf16.mxu1 %vm1408_vm2, %v3889_v17  ;;  %v3554_v7 = vmul.f32 %v11313_v32, %v14186_v26  ;;  %v3660_v32 = vmul.f32 %v11252_v29, %v14190_v38  ;;  %v14196_v29 = vld [vmem:[#allocation67_spill] sm:$0xff]  ;;  %v10164_v17 = vld [vmem:[%s10506_s0] sm:$0xff]  ;;  %v10165_v10 = vld [vmem:[%s10506_s0 + $0x8] sm:$0xff]  ;;  %v3886_v37 = vpack.c.bf16 %v10168_v34, %v10167_v30 }
 0x576   : > { %9427 = vmatprep.mubr.msk.bf16.mxu0 %vm2603_vm6, %v3560_v18  ;;  %v3764_v61 = vmul.f32 %v11350_v58, %v14196_v29  ;;  %v14198_v58 = vld [vmem:[#allocation69_spill] sm:$0xff]  ;;  %v3885_v18 = vpack.c.bf16 %v10165_v10, %v10164_v17 }
 0x577   : > { %v3561_v35 = vpack.c.bf16 %v3555_v50, %v3554_v7  ;;  %v3667_v27 = vpack.c.bf16 %v3661_v33, %v3660_v32 }
 0x57b   : > { %9422 = vmatmul.mubr.msk.bf16.gmra.mxu1 %vm2603_vm6, %v3457_v6 }
 0x57c   : > { %9437 = vmatprep.mubr.msk.bf16.mxu1 %vm2603_vm6, %v3666_v4 }
 0x57d   : > { %9428 = vmatmul.mubr.msk.bf16.vlgmr.msra.gmra.mxu0 %vm2603_vm6, %v3561_v35 }
 0x57e   : > { %9431 = vmatprep.mubr.msk.bf16.mxu0 %vm2603_vm6, %v3562_v52  ;;  %9446 = vmatpush3.bf16.msra.mxu0 %v9944_v2  ;;  %v3765_v2 = vmul.f32 %v11371_v57, %v14197_v24  ;;  %v3766_v57 = vmul.f32 %v11381_v14, %v14198_v58  ;;  %v3774_v14 = vpack.c.bf16 %v3769_v0, %v3768_v20 }
 0x57f   : > { %9465 = vmatprep.subr.mxu0 %v14135_v56 }
 0x580   : > { %v3772_v44 = vpack.c.bf16 %v3765_v2, %v3764_v61  ;;  %v3773_v54 = vpack.c.bf16 %v3767_v40, %v3766_v57 }
 0x583   : > { %9438 = vmatmul.mubr.msk.bf16.vlgmr.msra.gmra.mxu1 %vm2603_vm6, %v3667_v27 }
 0x584   : > { %9441 = vmatprep.mubr.msk.bf16.mxu1 %vm2603_vm6, %v3668_v43  ;;  %9456 = vmatpush3.bf16.msra.mxu1 %v3910_v21 }
 0x585   : > { %9432 = vmatmul.mubr.msk.bf16.gmra.mxu0 %vm2603_vm6, %v3563_v39  ;;  %9472 = vmatprep.subr.mxu1 %v14135_v56 }
 0x586   : > { %9447 = vmatprep.mubr.msk.bf16.mxu0 %vm2603_vm6, %v3772_v44 }
 0x58b   : > { %9442 = vmatmul.mubr.msk.bf16.gmra.mxu1 %vm2603_vm6, %v3669_v28  ;;  %v3771_v28 = vmul.f32 %v11330_v11, %v14203_v36  ;;  %v10172_v11 = vld [vmem:[%s10506_s0 + $0x30] sm:$0xff]  ;;  %s10276_s0 = smov 92  }
 0x58c   : > { %9457 = vmatprep.mubr.msk.bf16.mxu1 %vm860_vm1, %v3885_v18  ;;  %v3888_v26 = vpack.c.bf16 %v10173_v8, %v10172_v11 }
 0x58d   : > { %9448 = vmatmul.mubr.msk.bf16.vlgmr.msra.gmra.mxu0 %vm2603_vm6, %v3773_v54  ;;  %v3775_v16 = vpack.c.bf16 %v3771_v28, %v3770_v62 }
 0x58e   : > { %9451 = vmatprep.mubr.msk.bf16.mxu0 %vm2603_vm6, %v3774_v14  ;;  %9466 = vmatpush3.msra.mxu0 %v10166_v53 }
 0x58f   : > { %9467 = vmatprep.subr.mxu0 %v14135_v56 }
 0x590   : > { %9468 = vmatpush3.msra.mxu0 %v10171_v9 }
 0x593   : > { %9458 = vmatmul.mubr.msk.bf16.vlgmr.msra.gmra.mxu1 %vm860_vm1, %v3886_v37 }
 0x594   : > { %9461 = vmatprep.mubr.msk.bf16.mxu1 %vm860_vm1, %v3887_v48  ;;  %9473 = vmatpush3.msra.mxu1 %v10166_v53 }
 0x595   : > { %9452 = vmatmul.mubr.msk.bf16.gmra.mxu0 %vm2603_vm6, %v3775_v16  ;;  %9474 = vmatprep.subr.mxu1 %v14135_v56 }
 0x596   : > { %9469 = vmatprep.mubr.msk.f32.mxu0 %vm10270_vm0, %v14135_v56  ;;  %9475 = vmatpush3.msra.mxu1 %v10171_v9 }
 0x59b   : > { %9462 = vmatmul.mubr.msk.bf16.gmra.mxu1 %vm860_vm1, %v3888_v26 }
 0x59c   : > { %9476 = vmatprep.mubr.msk.f32.mxu1 %vm10270_vm0, %v14135_v56 }
 0x60c   : > { %v9369_v7 = vpop.f32.mrf.mxu0 }
 0x60e   : > { %v3006_v5 = vpop.f32.mrf.mxu0 }
 0x610   : > { %v9370_v50 = vpop.f32.mrf.mxu0 }
 0x612   : > { %v3009_v41 = vpop.f32.mrf.mxu0 }
 0x613   : > { %v9379_v60 = vpop.f32.mrf.mxu1 }
 0x614   : > { %v3098_v34 = vadd.f32 %v9379_v60, %v9369_v7 }
 0x615   : > { %v3089_v59 = vpop.f32.mrf.mxu1  ;;  %v11572_v51 = vpop.f32.mrf.mxu0 }
 0x616   : > { %v3090_v14 = vadd.f32 %v3089_v59, %v3006_v5 }
 0x617   : > { %v9380_v6 = vpop.f32.mrf.mxu1  ;;  %v3022_v4 = vpop.f32.mrf.mxu0 }
 0x618   : > { %v3101_v48 = vadd.f32 %v9380_v6, %v9370_v50 }
 0x619   : > { %v3092_v35 = vpop.f32.mrf.mxu1  ;;  %v11574_v52 = vpop.f32.mrf.mxu0 }
 0x61a   : > { %v3093_v36 = vadd.f32 %v3092_v35, %v3009_v41 }
 0x61b   : > { %v9383_v38 = vpop.f32.mrf.mxu1  ;;  %v11576_v32 = vpop.f32.mrf.mxu0 }
 0x61c   : > { %v3114_v35 = vadd.f32 %v9383_v38, %v11572_v51 }
 0x61d   : > { %v3105_v42 = vpop.f32.mrf.mxu1  ;;  %v9389_v33 = vpop.f32.mrf.mxu0 }
 0x61e   : > { %v3236_v28 = vadd.f32 %v9389_v33, %v3098_v34  ;;  %v3106_v25 = vadd.f32 %v3105_v42, %v3022_v4 }
 0x61f   : > { %v11578_v49 = vpop.f32.mrf.mxu1  ;;  %v3203_v56 = vpop.f32.mrf.mxu0 }
 0x620   : > { %v3234_v37 = vadd.f32 %v3203_v56, %v3090_v14  ;;  %v3117_v4 = vadd.f32 %v11578_v49, %v11574_v52 }
 0x621   : > { %v3108_v55 = vpop.f32.mrf.mxu1  ;;  %v9390_v22 = vpop.f32.mrf.mxu0 }
 0x622   : > { %v3237_v26 = vadd.f32 %v9390_v22, %v3101_v48  ;;  %v3109_v50 = vadd.f32 %v3108_v55, %v11576_v32 }
 0x623   : > { %v9399_v45 = vpop.f32.mrf.mxu1  ;;  %v3206_v31 = vpop.f32.mrf.mxu0 }
 0x624   : > { %v3235_v9 = vadd.f32 %v3206_v31, %v3093_v36  ;;  %v3342_v5 = vadd.f32 %v9399_v45, %v3236_v28 }
 0x625   : > { %v3309_v1 = vpop.f32.mrf.mxu1  ;;  %v9393_v3 = vpop.f32.mrf.mxu0 }
 0x626   : > { %v3340_v16 = vadd.f32 %v3309_v1, %v3234_v37  ;;  %v3240_v42 = vadd.f32 %v9393_v3, %v3114_v35 }
 0x627   : > { %v9400_v15 = vpop.f32.mrf.mxu1  ;;  %v3219_v29 = vpop.f32.mrf.mxu0 }
 0x628   : > { %v3238_v56 = vadd.f32 %v3219_v29, %v3106_v25  ;;  %v3343_v33 = vadd.f32 %v9400_v15, %v3237_v26 }
 0x629   : > { %v3312_v61 = vpop.f32.mrf.mxu1  ;;  %v9394_v24 = vpop.f32.mrf.mxu0 }
 0x62a   : > { %v3341_v60 = vadd.f32 %v3312_v61, %v3235_v9  ;;  %v3241_v37 = vadd.f32 %v9394_v24, %v3117_v4 }
 0x62b   : > { %v11580_v2 = vpop.f32.mrf.mxu1  ;;  %v3222_v27 = vpop.f32.mrf.mxu0 }
 0x62c   : > { %v3239_v61 = vadd.f32 %v3222_v27, %v3109_v50  ;;  %v3346_v55 = vadd.f32 %v11580_v2, %v3240_v42 }
 0x62d   : > { %v3325_v21 = vpop.f32.mrf.mxu1  ;;  %v9409_v43 = vpop.f32.mrf.mxu0 }
 0x62e   : > { %v3440_v14 = vadd.f32 %v9409_v43, %v3342_v5  ;;  %v3344_v45 = vadd.f32 %v3325_v21, %v3238_v56 }
 0x62f   : > { %v11582_v39 = vpop.f32.mrf.mxu1  ;;  %v3407_v44 = vpop.f32.mrf.mxu0 }
 0x630   : > { %v3438_v59 = vadd.f32 %v3407_v44, %v3340_v16  ;;  %v3347_v27 = vadd.f32 %v11582_v39, %v3241_v37  ;;  %v8645_v39 = vld [vmem:[%s13870_s14] ss:$0 sm:$0xff] }
 0x631   : > { %v11584_v58 = vpop.f32.mrf.mxu1  ;;  %v9410_v57 = vpop.f32.mrf.mxu0 }
 0x632   : > { %v3441_v22 = vadd.f32 %v9410_v57, %v3343_v33  ;;  %v3345_v52 = vadd.f32 %v11584_v58, %v3239_v61 }
 0x633   : > { %v9419_v46 = vpop.f32.mrf.mxu1  ;;  %v3410_v40 = vpop.f32.mrf.mxu0 }
 0x634   : > { %v3439_v34 = vadd.f32 %v3410_v40, %v3341_v60  ;;  %v3546_v25 = vadd.f32 %v9419_v46, %v3440_v14 }
 0x635   : > { %v3513_v23 = vpop.f32.mrf.mxu1  ;;  %v11586_v20 = vpop.f32.mrf.mxu0 }
 0x636   : > { %v3544_v6 = vadd.f32 %v3513_v23, %v3438_v59  ;;  %v3444_v57 = vadd.f32 %v11586_v20, %v3346_v55  ;;  %v8646_v20 = vld [vmem:[%s13872_s16] ss:$0 sm:$0xff] }
 0x637   : > { %v9420_v47 = vpop.f32.mrf.mxu1  ;;  %v3423_v0 = vpop.f32.mrf.mxu0 }
 0x638   : > { %v3442_v38 = vadd.f32 %v3423_v0, %v3344_v45  ;;  %v3547_v23 = vadd.f32 %v9420_v47, %v3441_v22 }
 0x639   : > { %v3516_v17 = vpop.f32.mrf.mxu1  ;;  %v11588_v10 = vpop.f32.mrf.mxu0 }
 0x63a   : > { %v3545_v51 = vadd.f32 %v3516_v17, %v3439_v34  ;;  %v3445_v2 = vadd.f32 %v11588_v10, %v3347_v27 }
 0x63b   : > { %v11590_v18 = vpop.f32.mrf.mxu1  ;;  %v3426_v54 = vpop.f32.mrf.mxu0 }
 0x63c   : > { %v3443_v17 = vadd.f32 %v3426_v54, %v3345_v52  ;;  %v3550_v16 = vadd.f32 %v11590_v18, %v3444_v57 }
 0x63d   : > { %v3529_v53 = vpop.f32.mrf.mxu1  ;;  %v9429_v30 = vpop.f32.mrf.mxu0 }
 0x63e   : > { %v3652_v15 = vadd.f32 %v9429_v30, %v3546_v25  ;;  %v3548_v24 = vadd.f32 %v3529_v53, %v3442_v38 }
 0x63f   : > { %v11592_v13 = vpop.f32.mrf.mxu1  ;;  %v3619_v62 = vpop.f32.mrf.mxu0 }
 0x640   : > { %14204 = vst [vmem:[#allocation80_spill] sm:$0xff] %v11592_v13  ;;  %v3650_v29 = vadd.f32 %v3619_v62, %v3544_v6 }
 0x641   : > { %v11594_v12 = vpop.f32.mrf.mxu1  ;;  %v9430_v63 = vpop.f32.mrf.mxu0 }
 0x642   : > { %v3653_v46 = vadd.f32 %v9430_v63, %v3547_v23  ;;  %v3549_v53 = vadd.f32 %v11594_v12, %v3443_v17 }
 0x643   : > { %v9439_v11 = vpop.f32.mrf.mxu1  ;;  %v3622_v8 = vpop.f32.mrf.mxu0 }
 0x644   : > { %v3651_v36 = vadd.f32 %v3622_v8, %v3545_v51  ;;  %v3758_v0 = vadd.f32 %v9439_v11, %v3652_v15 }
 0x645   : > { %v3725_v19 = vpop.f32.mrf.mxu1  ;;  %v9433_v7 = vpop.f32.mrf.mxu0 }
 0x646   : > { %v3756_v49 = vadd.f32 %v3725_v19, %v3650_v29  ;;  %v3656_v59 = vadd.f32 %v9433_v7, %v3550_v16 }
 0x647   : > { %v9440_v13 = vpop.f32.mrf.mxu1  ;;  %v3635_v41 = vpop.f32.mrf.mxu0  ;;  %v14205_v26 = vld [vmem:[#allocation80_spill] sm:$0xff] }
 0x648   : > { %v3654_v48 = vadd.f32 %v3635_v41, %v3548_v24  ;;  %v3759_v8 = vadd.f32 %v9440_v13, %v3653_v46  ;;  %v3551_v5 = vadd.f32 %v14205_v26, %v3445_v2 }
 0x649   : > { %v3728_v31 = vpop.f32.mrf.mxu1  ;;  %v9434_v1 = vpop.f32.mrf.mxu0 }
 0x64a   : > { %v3757_v47 = vadd.f32 %v3728_v31, %v3651_v36  ;;  %v3657_v34 = vadd.f32 %v9434_v1, %v3551_v5 }
 0x64b   : > { %v9443_v43 = vpop.f32.mrf.mxu1  ;;  %v3638_v44 = vpop.f32.mrf.mxu0 }
 0x64c   : > { %v3655_v56 = vadd.f32 %v3638_v44, %v3549_v53  ;;  %v3762_v42 = vadd.f32 %v9443_v43, %v3656_v59 }
 0x64d   : > { %v3741_v40 = vpop.f32.mrf.mxu1  ;;  %v9449_v32 = vpop.f32.mrf.mxu0 }
 0x64e   : > { %v3864_v9 = vadd.f32 %v9449_v32, %v3758_v0  ;;  %v3760_v13 = vadd.f32 %v3741_v40, %v3654_v48 }
 0x64f   : > { %v9444_v3 = vpop.f32.mrf.mxu1  ;;  %v3831_v21 = vpop.f32.mrf.mxu0 }
 0x650   : > { %v3862_v62 = vadd.f32 %v3831_v21, %v3756_v49  ;;  %v3879_v14 = vadd.f32 %v8645_v39, %v3864_v9  ;;  %v3763_v37 = vadd.f32 %v9444_v3, %v3657_v34 }
 0x651   : > { %v3744_v30 = vpop.f32.mrf.mxu1  ;;  %v9450_v28 = vpop.f32.mrf.mxu0 }
 0x652   : > { %v3877_v10 = vadd.f32 %v8645_v39, %v3862_v62  ;;  %v3865_v60 = vadd.f32 %v9450_v28, %v3759_v8  ;;  %v3761_v7 = vadd.f32 %v3744_v30, %v3655_v56 }
 0x653   : > { %v9459_v58 = vpop.f32.mrf.mxu1  ;;  %v3834_v19 = vpop.f32.mrf.mxu0 }
 0x654   : > { %v3863_v54 = vadd.f32 %v3834_v19, %v3757_v47  ;;  %v3955_v41 = vadd.f32 %v9459_v58, %v8646_v20  ;;  %v3880_v22 = vadd.f32 %v8645_v39, %v3865_v60 }
 0x655   : > { %v3946_v63 = vpop.f32.mrf.mxu1  ;;  %v9453_v11 = vpop.f32.mrf.mxu0 }
 0x656   : > { %v3947_v18 = vadd.f32 %v8646_v20, %v3946_v63  ;;  %v3878_v50 = vadd.f32 %v8645_v39, %v3863_v54  ;;  %v11616_v25 = vadd.f32 %v3955_v41, %v3879_v14  ;;  %v3868_v51 = vadd.f32 %v9453_v11, %v3762_v42 }
 0x657   : > { %v9460_v35 = vpop.f32.mrf.mxu1  ;;  %v3847_v33 = vpop.f32.mrf.mxu0 }
 0x658   : > { %v11614_v6 = vadd.f32 %v3947_v18, %v3877_v10  ;;  %v3866_v12 = vadd.f32 %v3847_v33, %v3760_v13  ;;  %v3958_v45 = vadd.f32 %v9460_v35, %v8646_v20  ;;  %v3990_v52 = vsel %vm2603_vm6, %v11616_v25, 0.0  ;;  %v14206_v18 = vld [vmem:[#allocation13_spill] sm:$0xff] }
 0x659   : > { %v3949_v31 = vpop.f32.mrf.mxu1  ;;  %v9454_v4 = vpop.f32.mrf.mxu0  ;;  %v3883_v21 = vadd.f32 %v8645_v39, %v3868_v51 }
 0x65a   : > { %v3950_v61 = vadd.f32 %v8646_v20, %v3949_v31  ;;  %v3881_v1 = vadd.f32 %v8645_v39, %v3866_v12  ;;  %v3987_v15 = vsel %vm2603_vm6, %v11614_v6, 0.0  ;;  %v11622_v55 = vadd.f32 %v3958_v45, %v3880_v22 }
 0x65b   : > { %v9463_v29 = vpop.f32.mrf.mxu1  ;;  %v3850_v44 = vpop.f32.mrf.mxu0  ;;  %v3869_v23 = vadd.f32 %v9454_v4, %v3763_v37 }
 0x65c   : > { %v11618_v38 = vadd.f32 %v3950_v61, %v3878_v50  ;;  %v3867_v32 = vadd.f32 %v3850_v44, %v3761_v7  ;;  %v3971_v27 = vadd.f32 %v9463_v29, %v8646_v20  ;;  %v3992_v0 = vsel %vm2603_vm6, %v11622_v55, 0.0 }
 0x65d   : > { %v3962_v40 = vpop.f32.mrf.mxu1  ;;  %v3884_v30 = vadd.f32 %v8645_v39, %v3869_v23 }
 0x65e   : > { %v3988_v43 = vsel %vm2603_vm6, %v11618_v38, 0.0  ;;  %v3963_v36 = vadd.f32 %v8646_v20, %v3962_v40  ;;  %v3882_v46 = vadd.f32 %v8645_v39, %v3867_v32  ;;  %v11632_v47 = vadd.f32 %v3971_v27, %v3883_v21 }
 0x65f   : > { %v3989_v49 = vadd.f32 %v3988_v43, %v3987_v15  ;;  %v9464_v3 = vpop.f32.mrf.mxu1 }
 0x660   : > { %v11628_v57 = vadd.f32 %v3963_v36, %v3881_v1  ;;  %v3974_v62 = vadd.f32 %v9464_v3, %v8646_v20  ;;  %v3998_v39 = vsel %vm2603_vm6, %v11632_v47, 0.0 }
 0x661   : > { %v3991_v24 = vadd.f32 %v3990_v52, %v3989_v49  ;;  %v3965_v17 = vpop.f32.mrf.mxu1 }
 0x662   : > { %v3966_v28 = vadd.f32 %v8646_v20, %v3965_v17  ;;  %v3994_v48 = vsel %vm2603_vm6, %v11628_v57, 0.0  ;;  %v11638_v19 = vadd.f32 %v3974_v62, %v3884_v30 }
 0x663   : > { %v3993_v2 = vadd.f32 %v3992_v0, %v3991_v24 }
 0x664   : > { %v11636_v9 = vadd.f32 %v3966_v28, %v3882_v46  ;;  %v4000_v20 = vsel %vm2603_vm6, %v11638_v19, 0.0 }
 0x665   : > { %v3995_v58 = vadd.f32 %v3994_v48, %v3993_v2  ;;  %v9945_v2 = vld [vmem:[%s13875_s19] sm:$0xff]  }
 0x666   : > { %v3996_v16 = vsel %vm2603_vm6, %v11636_v9, 0.0  ;;  %9479 = vmatprep.subr.bf16.mxu0 %v9945_v2 }
 0x667   : > { %v3997_v8 = vadd.f32 %v3996_v16, %v3995_v58 }
 0x669   : > { %v3999_v54 = vadd.f32 %v3998_v39, %v3997_v8 }
 0x66b   : > { %v4001_v53 = vadd.f32 %v4000_v20, %v3999_v54  ;;  %v8653_v54 = vld [vmem:[%s13873_s17] ss:$0 sm:$0xff] }
 0x66d   : > { %v4002_v10 = vrot.slane %v4001_v53, 4 }
 0x66f   : > { %v4003_v63 = vadd.f32 %v4002_v10, %v4001_v53 }
 0x671   : > { %v4004_v11 = vrot.slane %v4003_v63, 2 }
 0x673   : > { %v4005_v26 = vadd.f32 %v4004_v11, %v4003_v63  ;;  %v8654_v11 = vld [vmem:[%s13874_s18] ss:$0 sm:$0xff] }
 0x675   : > { %v4006_v5 = vrot.slane %v4005_v26, 1 }
 0x677   : > { %v4007_v59 = vadd.f32 %v4006_v5, %v4005_v26 }
 0x679   : > { %9470 = vmatmul.mubr.msk.f32.vlgmr.msra.gmra.mxu0 %vm2603_vm6, %v4007_v59 }
 0x67a   : > { %9480 = vmatpush3.bf16.msra.mxu0 %v9945_v2 }
 0x739   : > { %v4077_v60 = vpop.f32.mrf.mxu0 }
 0x73a   : > { %v4084_v13 = vrot.slane %v4077_v60, %v14206_v18 }
 0x73b   : > { %v9471_v56 = vpop.f32.mrf.mxu0 }
 0x73c   : > { %v4085_v14 = vsub.f32 %v11614_v6, %v4084_v13  ;;  %v4086_v41 = vsub.f32 %v11618_v38, %v4084_v13  ;;  %v4087_v35 = vsub.f32 %v11616_v25, %v4084_v13  ;;  %v4088_v33 = vsub.f32 %v11622_v55, %v4084_v13 }
 0x73d   : > { %v4089_v34 = vsub.f32 %v11628_v57, %v4084_v13  ;;  %v4090_v4 = vsub.f32 %v11636_v9, %v4084_v13  ;;  %v4091_v7 = vsub.f32 %v11632_v47, %v4084_v13  ;;  %v4092_v51 = vsub.f32 %v11638_v19, %v4084_v13 }
 0x73e   : > { %v4093_v50 = vmul.f32 %v4085_v14, %v4085_v14  ;;  %v4094_v31 = vmul.f32 %v4086_v41, %v4086_v41  ;;  %v4095_v12 = vmul.f32 %v4087_v35, %v4087_v35  ;;  %v4096_v42 = vmul.f32 %v4088_v33, %v4088_v33 }
 0x73f   : > { %v4097_v29 = vmul.f32 %v4089_v34, %v4089_v34  ;;  %v4098_v1 = vmul.f32 %v4090_v4, %v4090_v4  ;;  %v4099_v32 = vmul.f32 %v4091_v7, %v4091_v7  ;;  %v4100_v36 = vmul.f32 %v4092_v51, %v4092_v51 }
 0x740   : > { %v4101_v22 = vsel %vm2603_vm6, %v4093_v50, 0.0  ;;  %v4102_v45 = vsel %vm2603_vm6, %v4094_v31, 0.0  ;;  %v4104_v44 = vsel %vm2603_vm6, %v4095_v12, 0.0  ;;  %v4106_v15 = vsel %vm2603_vm6, %v4096_v42, 0.0 }
 0x741   : > { %v4103_v61 = vadd.f32 %v4102_v45, %v4101_v22  ;;  %v4108_v43 = vsel %vm2603_vm6, %v4097_v29, 0.0  ;;  %v4110_v52 = vsel %vm2603_vm6, %v4098_v1, 0.0  ;;  %v4112_v3 = vsel %vm2603_vm6, %v4099_v32, 0.0 }
 0x742   : > { %v4114_v27 = vsel %vm2603_vm6, %v4100_v36, 0.0 }
 0x743   : > { %v4105_v37 = vadd.f32 %v4104_v44, %v4103_v61 }
 0x745   : > { %v4107_v40 = vadd.f32 %v4106_v15, %v4105_v37 }
 0x747   : > { %v4109_v23 = vadd.f32 %v4108_v43, %v4107_v40  ;;  %v8655_v40 = vld [vmem:[%s13876_s20] ss:$0 sm:$0xff] }
 0x749   : > { %v4111_v49 = vadd.f32 %v4110_v52, %v4109_v23 }
 0x74b   : > { %v4113_v21 = vadd.f32 %v4112_v3, %v4111_v49 }
 0x74d   : > { %v4115_v46 = vadd.f32 %v4114_v27, %v4113_v21 }
 0x74f   : > { %v4116_v24 = vrot.slane %v4115_v46, 4 }
 0x751   : > { %v4117_v17 = vadd.f32 %v4116_v24, %v4115_v46 }
 0x753   : > { %v4118_v0 = vrot.slane %v4117_v17, 2 }
 0x755   : > { %v4119_v30 = vadd.f32 %v4118_v0, %v4117_v17 }
 0x757   : > { %v4120_v62 = vrot.slane %v4119_v30, 1 }
 0x759   : > { %v4121_v28 = vadd.f32 %v4120_v62, %v4119_v30 }
 0x75b   : > { %9477 = vmatmul.mubr.msk.f32.vlgmr.msra.gmra.mxu1 %vm2603_vm6, %v4121_v28 }
 0x81b   : > { %v4191_v48 = vpop.f32.mrf.mxu1 }
 0x81c   : > { %v4192_v58 = vadd.f32 1e-05, %v4191_v48 }
 0x81d   : > { %v9478_v16 = vpop.f32.mrf.mxu1 }
 0x81e   : > { %10034 = vrsqrt.f32 %v4192_v58 }
 0x82b   : > { %v10035_v8 = vpop.eup %10034 }
 0x82c   : > { %v4199_v39 = vrot.slane %v10035_v8, %v14206_v18 }
 0x82e   : > { %v4200_v20 = vmul.f32 %v4199_v39, %v4085_v14  ;;  %v4201_v53 = vmul.f32 %v4199_v39, %v4086_v41  ;;  %v4202_v10 = vmul.f32 %v4199_v39, %v4087_v35  ;;  %v4203_v63 = vmul.f32 %v4199_v39, %v4088_v33 }
 0x82f   : > { %v4204_v26 = vmul.f32 %v4199_v39, %v4089_v34  ;;  %v4205_v5 = vmul.f32 %v4199_v39, %v4090_v4  ;;  %v4206_v31 = vmul.f32 %v4199_v39, %v4091_v7  ;;  %v4207_v12 = vmul.f32 %v4199_v39, %v4092_v51 }
 0x830   : > { %v4214_v59 = vmul.f32 %v8653_v54, %v4200_v20  ;;  %v4215_v60 = vmul.f32 %v8653_v54, %v4201_v53  ;;  %v4216_v13 = vmul.f32 %v8653_v54, %v4202_v10  ;;  %v4217_v56 = vmul.f32 %v8653_v54, %v4203_v63 }
 0x831   : > { %v4218_v50 = vmul.f32 %v8653_v54, %v4204_v26  ;;  %v4219_v18 = vmul.f32 %v8653_v54, %v4205_v5  ;;  %v4220_v29 = vmul.f32 %v8653_v54, %v4206_v31  ;;  %v4221_v44 = vmul.f32 %v8653_v54, %v4207_v12 }
 0x832   : > { %v4228_v42 = vadd.f32 %v8654_v11, %v4214_v59  ;;  %v4229_v22 = vadd.f32 %v8654_v11, %v4215_v60  ;;  %v4230_v14 = vadd.f32 %v8654_v11, %v4216_v13  ;;  %v4231_v41 = vadd.f32 %v8654_v11, %v4217_v56 }
 0x833   : > { %v4232_v35 = vadd.f32 %v8654_v11, %v4218_v50  ;;  %v4233_v33 = vadd.f32 %v8654_v11, %v4219_v18  ;;  %v4234_v4 = vadd.f32 %v8654_v11, %v4220_v29  ;;  %v4235_v7 = vadd.f32 %v8654_v11, %v4221_v44 }
 0x834   : > { %v4236_v45 = vpack.c.bf16 %v4229_v22, %v4228_v42  ;;  %v4237_v61 = vpack.c.bf16 %v4231_v41, %v4230_v14 }
 0x835   : > { %v4238_v34 = vpack.c.bf16 %v4233_v33, %v4232_v35  ;;  %v4239_v37 = vpack.c.bf16 %v4235_v7, %v4234_v4 }
 0x836   : > { %9481 = vmatprep.mubr.msk.bf16.mxu0 %vm2603_vm6, %v4236_v45 }
 0x837   : > { %9482 = vmatmul.mubr.msk.bf16.vlgmr.msra.gmra.mxu0 %vm2603_vm6, %v4237_v61 }
 0x838   : > { %9485 = vmatprep.mubr.msk.bf16.mxu0 %vm2603_vm6, %v4238_v34 }
 0x83f   : > { %9486 = vmatmul.mubr.msk.bf16.gmra.mxu0 %vm2603_vm6, %v4239_v37 }
 0x8f7   : > { %v9483_v51 = vpop.f32.mrf.mxu0 }
 0x8f8   : > { %v4310_v62 = vadd.f32 %v9483_v51, %v8655_v40 }
 0x8f9   : > { %v4301_v1 = vpop.f32.mrf.mxu0 }
 0x8fa   : > { %v4302_v43 = vadd.f32 %v8655_v40, %v4301_v1 }
 0x8fb   : > { %v9484_v15 = vpop.f32.mrf.mxu0 }
 0x8fc   : > { %v4313_v24 = vadd.f32 %v9484_v15, %v8655_v40 }
 0x8fd   : > { %v4304_v32 = vpop.f32.mrf.mxu0 }
 0x8fe   : > { %v4305_v23 = vadd.f32 %v8655_v40, %v4304_v32  ;;  %v11691_v2 = vpack.c.bf16 %v4313_v24, %v4310_v62 }
 0x8ff   : > { %v9487_v36 = vpop.f32.mrf.mxu0 }
 0x900   : > { %v11682_v52 = vpack.c.bf16 %v4305_v23, %v4302_v43  ;;  %v4326_v21 = vadd.f32 %v9487_v36, %v8655_v40 }
 0x901   : > { %v4317_v49 = vpop.f32.mrf.mxu0 }
 0x902   : > { %9497 = vmatprep.mubr.msk.bf16.mxu1 %vm4348_vm7, %v11682_v52  ;;  %v4318_v17 = vadd.f32 %v8655_v40, %v4317_v49 }
 0x903   : > { %v9488_v3 = vpop.f32.mrf.mxu0 }
 0x904   : > { %v4329_v27 = vadd.f32 %v9488_v3, %v8655_v40 }
 0x905   : > { %v4320_v46 = vpop.f32.mrf.mxu0 }
 0x906   : > { %v11686_v0 = vpack.c.bf16 %v4329_v27, %v4326_v21  ;;  %v4321_v30 = vadd.f32 %v8655_v40, %v4320_v46 }
 0x908   : > { %v11688_v28 = vpack.c.bf16 %v4321_v30, %v4318_v17  ;;  %4346 = vrot.lane.b32.xlu0 %v11686_v0, %s10272_s2 }
 0x90a   : > { %4344 = vrot.lane.b32.xlu1 %v11688_v28, %s10272_s2 }
 0x90c   : > { %4342 = vrot.lane.b32.xlu0 %v11691_v2, %s10272_s2 }
 0x90e   : > { %4340 = vrot.lane.b32.xlu1 %v11682_v52, %s10272_s2  ;;  %s10279_s2 = smov 100  }
 0x912   : > { %4537 = vrot.lane.b32.xlu1 %v11686_v0, %s10273_s28 }
 0x97a   : > { %v4347_v48 = vpop.permute.xlu0 %4346 }
 0x97b   : > { %9846 = vmatprep.subr.msk.bf16.mxu1 %vm4348_vm7, %v4347_v48  ;;  %v4371_v58 = vsel %vm4348_vm7, %v4347_v48, 0 }
 0x97c   : > { %9490 = vmatpush3.bf16.xpose.msra.mxu1 %v4371_v58  ;;  %v4345_v16 = vpop.permute.xlu1 %4344 }
 0x97d   : > { %9847 = vmatprep.subr.msk.bf16.mxu1 %vm4348_vm7, %v4345_v16  ;;  %v4368_v39 = vsel %vm4348_vm7, %v4345_v16, 0 }
 0x97e   : > { %v4343_v54 = vpop.permute.xlu0 %4342 }
 0x97f   : > { %v4365_v53 = vsel %vm4348_vm7, %v4343_v54, 0 }
 0x980   : > { %v4341_v8 = vpop.permute.xlu1 %4340 }
 0x981   : > { %v4362_v10 = vsel %vm4348_vm7, %v4341_v8, 0 }
 0x984   : > { %9492 = vmatpush3.bf16.xpose.msra.mxu1 %v4368_v39  ;;  %v4538_v20 = vpop.permute.xlu1 %4537 }
 0x985   : > { %9848 = vmatprep.subr.msk.bf16.mxu1 %vm4348_vm7, %v4343_v54  ;;  %9505 = vmatprep.subr.bf16.mxu0 %v4538_v20 }
 0x986   : > { %9506 = vmatpush3.bf16.msra.mxu0 %v4538_v20 }
 0x98c   : > { %9494 = vmatpush3.bf16.xpose.msra.mxu1 %v4365_v53 }
 0x98d   : > { %9849 = vmatprep.subr.msk.bf16.mxu1 %vm4348_vm7, %v4341_v8 }
 0x994   : > { %9496 = vmatpush3.bf16.xpose.msra.mxu1 %v4362_v10 }
 0x99b   : > { %9498 = vmatmul.mubr.msk.bf16.vlgmr.msra.gmra.mxu1 %vm4348_vm7, %v11691_v2 }
 0x99c   : > { %9501 = vmatprep.mubr.msk.bf16.mxu1 %vm4348_vm7, %v11688_v28 }
 0x9a3   : > { %9502 = vmatmul.mubr.msk.bf16.gmra.mxu1 %vm4348_vm7, %v11686_v0 }
 0xa5b   : > { %v9499_v63 = vpop.f32.mrf.mxu1 }
 0xa5c   : > { %v4445_v11 = vsel %vm4438_vm8, %v9499_v63, -inf }
 0xa5d   : > { %4446 = vmax.xlane.f32.xlu0 %v4445_v11  ;;  %v4407_v26 = vpop.f32.mrf.mxu1 }
 0xa5e   : > { %v4439_v59 = vsel %vm4438_vm8, %v4407_v26, -inf }
 0xa5f   : > { %v9500_v5 = vpop.f32.mrf.mxu1 }
 0xa60   : > { %v4448_v50 = vsel %vm4438_vm8, %v9500_v5, -inf }
 0xa61   : > { %4440 = vmax.xlane.f32.xlu0 %v4439_v59  ;;  %v4410_v60 = vpop.f32.mrf.mxu1 }
 0xa62   : > { %v4442_v13 = vsel %vm4438_vm8, %v4410_v60, -inf }
 0xa63   : > { %4443 = vmax.xlane.f32.xlu1 %v4442_v13  ;;  %v9503_v56 = vpop.f32.mrf.mxu1 }
 0xa64   : > { %v4457_v31 = vsel %vm4438_vm8, %v9503_v56, -inf }
 0xa65   : > { %4449 = vmax.xlane.f32.xlu0 %v4448_v50  ;;  %v4423_v18 = vpop.f32.mrf.mxu1 }
 0xa66   : > { %v4451_v14 = vsel %vm4438_vm8, %v4423_v18, -inf }
 0xa67   : > { %4458 = vmax.xlane.f32.xlu1 %v4457_v31  ;;  %v9504_v12 = vpop.f32.mrf.mxu1 }
 0xa68   : > { %v4460_v42 = vsel %vm4438_vm8, %v9504_v12, -inf }
 0xa69   : > { %4461 = vmax.xlane.f32.xlu0 %v4460_v42  ;;  %v4426_v22 = vpop.f32.mrf.mxu1 }
 0xa6a   : > { %v4454_v41 = vsel %vm4438_vm8, %v4426_v22, -inf }
 0xa6b   : > { %4452 = vmax.xlane.f32.xlu1 %v4451_v14 }
 0xa6d   : > { %4455 = vmax.xlane.f32.xlu0 %v4454_v41 }
 0xa7c   : > { %4533 = vrot.lane.b32.xlu1 %v11691_v2, %s10273_s28 }
 0xa83   : > { %4535 = vrot.lane.b32.xlu0 %v11688_v28, %s10273_s28 }
 0xae6   : > { %v4447_v35 = vpop.xlane.xlu0 %4446 }
 0xae7   : > { %v4465_v33 = vsub.f32 %v9499_v63, %v4447_v35 }
 0xae9   : > { %v4475_v45 = vmul.f32 1.442695, %v4465_v33 }
 0xaea   : > { %v4441_v61 = vpop.xlane.xlu0 %4440 }
 0xaeb   : > { %10036 = vpow2.f32 %v4475_v45  ;;  %v4463_v29 = vsub.f32 %v4407_v26, %v4441_v61 }
 0xaec   : > { %v4444_v44 = vpop.xlane.xlu1 %4443 }
 0xaed   : > { %v4471_v34 = vmul.f32 1.442695, %v4463_v29  ;;  %v4464_v4 = vsub.f32 %v4410_v60, %v4444_v44 }
 0xaee   : > { %v4450_v7 = vpop.xlane.xlu0 %4449 }
 0xaef   : > { %10038 = vpow2.f32 %v4471_v34  ;;  %v4466_v37 = vsub.f32 %v9500_v5, %v4450_v7  ;;  %v4473_v1 = vmul.f32 1.442695, %v4464_v4 }
 0xaf0   : > { %v4459_v51 = vpop.xlane.xlu1 %4458 }
 0xaf1   : > { %v4477_v15 = vmul.f32 1.442695, %v4466_v37  ;;  %v4469_v48 = vsub.f32 %v9503_v56, %v4459_v51 }
 0xaf2   : > { %v4462_v40 = vpop.xlane.xlu0 %4461 }
 0xaf3   : > { %10040 = vpow2.f32 %v4477_v15  ;;  %v4470_v58 = vsub.f32 %v9504_v12, %v4462_v40  ;;  %v4483_v8 = vmul.f32 1.442695, %v4469_v48 }
 0xaf4   : > { %10042 = vpow2.f32 %v4473_v1  ;;  %v4453_v32 = vpop.xlane.xlu1 %4452 }
 0xaf5   : > { %v4467_v62 = vsub.f32 %v4423_v18, %v4453_v32  ;;  %v4485_v39 = vmul.f32 1.442695, %v4470_v58 }
 0xaf6   : > { %v4456_v43 = vpop.xlane.xlu0 %4455 }
 0xaf7   : > { %v4479_v16 = vmul.f32 1.442695, %v4467_v62  ;;  %v4468_v54 = vsub.f32 %v4426_v22, %v4456_v43 }
 0xaf8   : > { %v11724_v23 = vpop.eup %10036  ;;  %v4534_v21 = vpop.permute.xlu1 %4533 }
 0xaf9   : > { %v4493_v36 = vsel %vm4438_vm8, %v11724_v23, 0.0  ;;  %10044 = vpow2.f32 %v4479_v16  ;;  %v4481_v20 = vmul.f32 1.442695, %v4468_v54 }
 0xafa   : > { %4494 = vadd.xlane.f32.xlu1 %v4493_v36  ;;  %v4536_v49 = vpop.permute.xlu0 %4535  ;;  %10046 = vpow2.f32 %v4483_v8  ;;  %v4624_v8 = vld [vmem:[%s13877_s21] sm:$0x3] }
 0xafb   : > { %9507 = vmatprep.subr.bf16.mxu0 %v4536_v49  ;;  %10048 = vpow2.f32 %v4485_v39  ;;  %v5011_v54 = vsel %vm4929_vm9, %v4624_v8, 0 }
 0xafc   : > { %v11728_v3 = vpop.eup %10038  ;;  %9508 = vmatpush3.bf16.msra.mxu0 %v4536_v49  ;;  %10050 = vpow2.f32 %v4481_v20 }
 0xafd   : > { %9509 = vmatprep.subr.bf16.mxu0 %v4534_v21  ;;  %v4487_v27 = vsel %vm4438_vm8, %v11728_v3, 0.0 }
 0xafe   : > { %4488 = vadd.xlane.f32.xlu1 %v4487_v27 }
 0xb00   : > { %v10041_v46 = vpop.eup %10040  ;;  %9510 = vmatpush3.bf16.msra.mxu0 %v4534_v21 }
 0xb01   : > { %v4496_v24 = vsel %vm4438_vm8, %v10041_v46, 0.0  ;;  %v10043_v17 = vpop.eup %10042 }
 0xb02   : > { %4497 = vadd.xlane.f32.xlu0 %v4496_v24  ;;  %v4490_v30 = vsel %vm4438_vm8, %v10043_v17, 0.0 }
 0xb06   : > { %4491 = vadd.xlane.f32.xlu0 %v4490_v30  ;;  %v11740_v53 = vpop.eup %10044 }
 0xb07   : > { %v11742_v10 = vpop.eup %10046  ;;  %v4499_v63 = vsel %vm4438_vm8, %v11740_v53, 0.0 }
 0xb08   : > { %v11746_v11 = vpop.eup %10048  ;;  %v4505_v5 = vsel %vm4438_vm8, %v11742_v10, 0.0 }
 0xb09   : > { %v4508_v26 = vsel %vm4438_vm8, %v11746_v11, 0.0  ;;  %v11752_v59 = vpop.eup %10050 }
 0xb0a   : > { %v4502_v60 = vsel %vm4438_vm8, %v11752_v59, 0.0 }
 0xb0f   : > { %4639 = vrot.lane.b32.xlu1 %v11686_v0, %s10274_s29 }
 0xb13   : > { %4637 = vrot.lane.b32.xlu1 %v11688_v28, %s10274_s29 }
 0xb1c   : > { %4531 = vrot.lane.b32.xlu0 %v11682_v52, %s10273_s28  ;;  %s10280_s28 = smov 116  }
 0xb37   : > { %4500 = vadd.xlane.f32.xlu1 %v4499_v63 }
 0xb3b   : > { %4509 = vadd.xlane.f32.xlu1 %v4508_v26  ;;  %4506 = vadd.xlane.f32.xlu0 %v4505_v5 }
 0xb3f   : > { %4503 = vadd.xlane.f32.xlu0 %v4502_v60 }
 0xb4c   : > { %4633 = vrot.lane.b32.xlu1 %v11682_v52, %s10274_s29 }
 0xb50   : > { %4627 = vrot.lane.b32.xlu1 %v11691_v2, %s10275_s11 }
 0xb54   : > { %4631 = vrot.lane.b32.xlu1 %v11686_v0, %s10275_s11 }
 0xb55   : > { %4635 = vrot.lane.b32.xlu0 %v11691_v2, %s10274_s29 }
 0xb59   : > { %4625 = vrot.lane.b32.xlu0 %v11682_v52, %s10275_s11 }
 0xb5d   : > { %4629 = vrot.lane.b32.xlu0 %v11688_v28, %s10275_s11 }
 0xb83   : > { %v4495_v13 = vpop.xlane.xlu1 %4494 }
 0xb87   : > { %v4489_v56 = vpop.xlane.xlu1 %4488 }
 0xb8b   : > { %v4498_v50 = vpop.xlane.xlu0 %4497  ;;  %v4640_v12 = vpop.permute.xlu1 %4639 }
 0xb8c   : > { %10052 = vrcp.f32 %v4498_v50  ;;  %v4663_v34 = vsel %vm4348_vm7, %v4640_v12, 0 }
 0xb8d   : > { %10054 = vrcp.f32 %v4489_v56 }
 0xb8e   : > { %10056 = vrcp.f32 %v4495_v13 }
 0xb8f   : > { %v4492_v18 = vpop.xlane.xlu0 %4491  ;;  %v4638_v4 = vpop.permute.xlu1 %4637 }
 0xb90   : > { %10058 = vrcp.f32 %v4492_v18  ;;  %v4660_v7 = vsel %vm4348_vm7, %v4638_v4, 0 }
 0xb93   : > { %v4532_v31 = vpop.permute.xlu0 %4531 }
 0xb94   : > { %9511 = vmatprep.subr.bf16.mxu0 %v4532_v31 }
 0xb95   : > { %9512 = vmatpush3.bf16.msra.mxu0 %v4532_v31 }
 0xb96   : > { %9850 = vmatprep.subr.msk.bf16.mxu0 %vm4348_vm7, %v4640_v12 }
 0xb99   : > { %v10053_v42 = vpop.eup %10052 }
 0xb9a   : > { %v10055_v22 = vpop.eup %10054  ;;  %v4522_v35 = vmul.f32 %v10053_v42, %v10041_v46 }
 0xb9b   : > { %v10057_v14 = vpop.eup %10056  ;;  %v4519_v33 = vmul.f32 %v10055_v22, %v11728_v3 }
 0xb9c   : > { %v4521_v61 = vmul.f32 %v10057_v14, %v11724_v23 }
 0xb9d   : > { %v10059_v41 = vpop.eup %10058 }
 0xb9e   : > { %v4520_v45 = vmul.f32 %v10059_v41, %v10043_v17  ;;  %v4528_v44 = vpack.c.bf16 %v4522_v35, %v4521_v61 }
 0xba0   : > { %v4527_v29 = vpack.c.bf16 %v4520_v45, %v4519_v33 }
 0xba2   : > { %9513 = vmatprep.mubr.msk.bf16.mxu0 %vm4438_vm8, %v4527_v29 }
 0xba3   : > { %9514 = vmatmul.mubr.msk.bf16.vlgmr.msra.gmra.mxu0 %vm4438_vm8, %v4528_v44 }
 0xba4   : > { %9522 = vmatpush3.bf16.xpose.msra.mxu0 %v4663_v34 }
 0xba5   : > { %9851 = vmatprep.subr.msk.bf16.mxu0 %vm4348_vm7, %v4638_v4 }
 0xbac   : > { %9524 = vmatpush3.bf16.xpose.msra.mxu0 %v4660_v7 }
 0xbc0   : > { %v4501_v37 = vpop.xlane.xlu1 %4500 }
 0xbc4   : > { %v4510_v51 = vpop.xlane.xlu1 %4509  ;;  %v4507_v1 = vpop.xlane.xlu0 %4506 }
 0xbc5   : > { %10060 = vrcp.f32 %v4510_v51 }
 0xbc6   : > { %10062 = vrcp.f32 %v4507_v1 }
 0xbc7   : > { %10064 = vrcp.f32 %v4501_v37 }
 0xbc8   : > { %v4504_v15 = vpop.xlane.xlu0 %4503  ;;  %v4634_v43 = vpop.permute.xlu1 %4633 }
 0xbc9   : > { %10066 = vrcp.f32 %v4504_v15  ;;  %v4654_v3 = vsel %vm4348_vm7, %v4634_v43, 0 }
 0xbcc   : > { %v4636_v40 = vpop.permute.xlu0 %4635  ;;  %v4628_v58 = vpop.permute.xlu1 %4627 }
 0xbcd   : > { %9852 = vmatprep.subr.msk.bf16.mxu0 %vm4348_vm7, %v4636_v40  ;;  %v4657_v32 = vsel %vm4348_vm7, %v4636_v40, 0 }
 0xbce   : > { %9526 = vmatpush3.bf16.xpose.msra.mxu0 %v4657_v32 }
 0xbcf   : > { %9853 = vmatprep.subr.msk.bf16.mxu0 %vm4348_vm7, %v4634_v43 }
 0xbd0   : > { %v4626_v48 = vpop.permute.xlu0 %4625  ;;  %v4632_v39 = vpop.permute.xlu1 %4631 }
 0xbd2   : > { %v10061_v23 = vpop.eup %10060 }
 0xbd3   : > { %v10063_v36 = vpop.eup %10062  ;;  %v4526_v46 = vmul.f32 %v10061_v23, %v11746_v11 }
 0xbd4   : > { %v10065_v49 = vpop.eup %10064  ;;  %v4525_v27 = vmul.f32 %v10063_v36, %v11742_v10  ;;  %v4630_v16 = vpop.permute.xlu0 %4629 }
 0xbd5   : > { %v4523_v24 = vmul.f32 %v10065_v49, %v11740_v53 }
 0xbd6   : > { %v10067_v21 = vpop.eup %10066  ;;  %9528 = vmatpush3.bf16.xpose.msra.mxu0 %v4654_v3  ;;  %v4530_v62 = vpack.c.bf16 %v4526_v46, %v4525_v27 }
 0xbd7   : > { %v4524_v17 = vmul.f32 %v10067_v21, %v11752_v59  ;;  %9855 = vmatprep.subr.msk.bf16.mxu0 %vm4929_vm9, %v4624_v8 }
 0xbd9   : > { %v4529_v30 = vpack.c.bf16 %v4524_v17, %v4523_v24 }
 0xbdb   : > { %9517 = vmatprep.mubr.msk.bf16.mxu0 %vm4438_vm8, %v4529_v30 }
 0xbdc   : > { %9518 = vmatmul.mubr.msk.bf16.gmra.mxu0 %vm4438_vm8, %v4530_v62 }
 0xbdd   : > { %9529 = vmatprep.mubr.msk.bf16.mxu0 %vm4348_vm7, %v4626_v48 }
 0xbe4   : > { %9530 = vmatmul.mubr.msk.bf16.vlgmr.msra.gmra.mxu0 %vm4348_vm7, %v4628_v58 }
 0xbe5   : > { %9533 = vmatprep.mubr.msk.bf16.mxu0 %vm4348_vm7, %v4630_v16  ;;  %9564 = vmatpush3.bf16.msra.mxu0 %v5011_v54 }
 0xbec   : > { %9534 = vmatmul.mubr.msk.bf16.gmra.mxu0 %vm4348_vm7, %v4632_v39 }
 0xc63   : > { %v9515_v20 = vpop.f32.mrf.mxu0 }
 0xc65   : > { %v4589_v53 = vpop.f32.mrf.mxu0 }
 0xc67   : > { %v9516_v10 = vpop.f32.mrf.mxu0 }
 0xc68   : > { %v4621_v26 = vpack.c.bf16 %v9516_v10, %v9515_v20 }
 0xc69   : > { %v4592_v63 = vpop.f32.mrf.mxu0 }
 0xc6a   : > { %v4620_v11 = vpack.c.bf16 %v4592_v63, %v4589_v53 }
 0xc6c   : > { %9565 = vmatprep.mubr.msk.bf16.mxu0 %vm4348_vm7, %v4620_v11 }
 0xc6d   : > { %9566 = vmatmul.mubr.msk.bf16.vlgmr.msra.gmra.mxu0 %vm4348_vm7, %v4621_v26 }
 0xc9c   : > { %v9519_v5 = vpop.f32.mrf.mxu0 }
 0xc9e   : > { %v4605_v59 = vpop.f32.mrf.mxu0 }
 0xca0   : > { %v9520_v60 = vpop.f32.mrf.mxu0 }
 0xca1   : > { %v4623_v50 = vpack.c.bf16 %v9520_v60, %v9519_v5 }
 0xca2   : > { %v4608_v13 = vpop.f32.mrf.mxu0 }
 0xca3   : > { %v4622_v56 = vpack.c.bf16 %v4608_v13, %v4605_v59 }
 0xca4   : > { %v9531_v18 = vpop.f32.mrf.mxu0 }
 0xca5   : > { %9569 = vmatprep.mubr.msk.bf16.mxu0 %vm4348_vm7, %v4622_v56  ;;  %v4736_v14 = vsel %vm4438_vm8, %v9531_v18, -inf }
 0xca6   : > { %v4699_v31 = vpop.f32.mrf.mxu0  ;;  %9570 = vmatmul.mubr.msk.bf16.gmra.mxu0 %vm4348_vm7, %v4623_v50 }
 0xca7   : > { %v4730_v12 = vsel %vm4438_vm8, %v4699_v31, -inf }
 0xca8   : > { %4731 = vmax.xlane.f32.xlu0 %v4730_v12  ;;  %v9532_v42 = vpop.f32.mrf.mxu0 }
 0xca9   : > { %v4739_v45 = vsel %vm4438_vm8, %v9532_v42, -inf }
 0xcaa   : > { %v4702_v22 = vpop.f32.mrf.mxu0 }
 0xcab   : > { %v4733_v41 = vsel %vm4438_vm8, %v4702_v22, -inf }
 0xcac   : > { %4737 = vmax.xlane.f32.xlu0 %v4736_v14  ;;  %4734 = vmax.xlane.f32.xlu1 %v4733_v41  ;;  %v9535_v35 = vpop.f32.mrf.mxu0 }
 0xcad   : > { %v4748_v61 = vsel %vm4438_vm8, %v9535_v35, -inf }
 0xcae   : > { %v4715_v33 = vpop.f32.mrf.mxu0 }
 0xcaf   : > { %v4742_v44 = vsel %vm4438_vm8, %v4715_v33, -inf }
 0xcb0   : > { %4740 = vmax.xlane.f32.xlu0 %v4739_v45  ;;  %4749 = vmax.xlane.f32.xlu1 %v4748_v61  ;;  %v9536_v29 = vpop.f32.mrf.mxu0 }
 0xcb1   : > { %v4751_v34 = vsel %vm4438_vm8, %v9536_v29, -inf }
 0xcb2   : > { %v4718_v4 = vpop.f32.mrf.mxu0 }
 0xcb3   : > { %v4745_v7 = vsel %vm4438_vm8, %v4718_v4, -inf }
 0xcb4   : > { %4743 = vmax.xlane.f32.xlu1 %v4742_v44  ;;  %4752 = vmax.xlane.f32.xlu0 %v4751_v34 }
 0xcb8   : > { %4746 = vmax.xlane.f32.xlu0 %v4745_v7 }
 0xcc5   : > { %4828 = vrot.lane.b32.xlu1 %v11686_v0, %s10276_s0 }
 0xcce   : > { %4826 = vrot.lane.b32.xlu0 %v11688_v28, %s10276_s0 }
 0xd31   : > { %v4732_v37 = vpop.xlane.xlu0 %4731 }
 0xd32   : > { %v4754_v51 = vsub.f32 %v4699_v31, %v4732_v37 }
 0xd34   : > { %v4762_v43 = vmul.f32 1.442695, %v4754_v51 }
 0xd35   : > { %v4735_v1 = vpop.xlane.xlu1 %4734  ;;  %v4738_v15 = vpop.xlane.xlu0 %4737 }
 0xd36   : > { %v4756_v40 = vsub.f32 %v9531_v18, %v4738_v15  ;;  %v4755_v23 = vsub.f32 %v4702_v22, %v4735_v1 }
 0xd38   : > { %v4766_v32 = vmul.f32 1.442695, %v4756_v40  ;;  %v4764_v27 = vmul.f32 1.442695, %v4755_v23  ;;  %v8677_v23 = vld [vmem:[%s13877_s21 + $0x2] sm:$0x3] }
 0xd39   : > { %v4750_v36 = vpop.xlane.xlu1 %4749  ;;  %v4741_v49 = vpop.xlane.xlu0 %4740 }
 0xd3a   : > { %v4757_v3 = vsub.f32 %v9532_v42, %v4741_v49  ;;  %10068 = vpow2.f32 %v4766_v32  ;;  %v4760_v46 = vsub.f32 %v9535_v35, %v4750_v36 }
 0xd3b   : > { %10070 = vpow2.f32 %v4762_v43 }
 0xd3c   : > { %v4768_v21 = vmul.f32 1.442695, %v4757_v3  ;;  %v4774_v48 = vmul.f32 1.442695, %v4760_v46 }
 0xd3d   : > { %v4744_v24 = vpop.xlane.xlu1 %4743  ;;  %v4753_v17 = vpop.xlane.xlu0 %4752 }
 0xd3e   : > { %v4758_v30 = vsub.f32 %v4715_v33, %v4744_v24  ;;  %10072 = vpow2.f32 %v4768_v21  ;;  %v4761_v58 = vsub.f32 %v9536_v29, %v4753_v17  ;;  %v4931_v21 = vsel %vm4929_vm9, %v8677_v23, 0 }
 0xd3f   : > { %10074 = vpow2.f32 %v4764_v27 }
 0xd40   : > { %v4770_v62 = vmul.f32 1.442695, %v4758_v30  ;;  %v4776_v39 = vmul.f32 1.442695, %v4761_v58 }
 0xd41   : > { %v4829_v16 = vpop.permute.xlu1 %4828  ;;  %v4747_v8 = vpop.xlane.xlu0 %4746 }
 0xd42   : > { %10076 = vpow2.f32 %v4770_v62  ;;  %9537 = vmatprep.subr.bf16.mxu1 %v4829_v16  ;;  %v4759_v54 = vsub.f32 %v4718_v4, %v4747_v8 }
 0xd43   : > { %9538 = vmatpush3.bf16.msra.mxu1 %v4829_v16  ;;  %10078 = vpow2.f32 %v4774_v48 }
 0xd44   : > { %10080 = vpow2.f32 %v4776_v39  ;;  %v4772_v10 = vmul.f32 1.442695, %v4759_v54 }
 0xd45   : > { %v4827_v20 = vpop.permute.xlu0 %4826 }
 0xd46   : > { %9539 = vmatprep.subr.bf16.mxu1 %v4827_v20  ;;  %10082 = vpow2.f32 %v4772_v10 }
 0xd47   : > { %9540 = vmatpush3.bf16.msra.mxu1 %v4827_v20  ;;  %v11807_v53 = vpop.eup %10068 }
 0xd48   : > { %v4784_v63 = vsel %vm4438_vm8, %v11807_v53, 0.0  ;;  %v11811_v11 = vpop.eup %10070 }
 0xd49   : > { %4785 = vadd.xlane.f32.xlu1 %v4784_v63  ;;  %v4778_v5 = vsel %vm4438_vm8, %v11811_v11, 0.0 }
 0xd4b   : > { %v11813_v26 = vpop.eup %10072 }
 0xd4c   : > { %v4787_v59 = vsel %vm4438_vm8, %v11813_v26, 0.0  ;;  %v11819_v60 = vpop.eup %10074 }
 0xd4d   : > { %4779 = vadd.xlane.f32.xlu1 %v4778_v5  ;;  %4788 = vadd.xlane.f32.xlu0 %v4787_v59  ;;  %v4781_v50 = vsel %vm4438_vm8, %v11819_v60, 0.0 }
 0xd4f   : > { %v11821_v13 = vpop.eup %10076 }
 0xd50   : > { %v4790_v56 = vsel %vm4438_vm8, %v11821_v13, 0.0  ;;  %v11827_v18 = vpop.eup %10078 }
 0xd51   : > { %4791 = vadd.xlane.f32.xlu1 %v4790_v56  ;;  %4782 = vadd.xlane.f32.xlu0 %v4781_v50  ;;  %v4796_v31 = vsel %vm4438_vm8, %v11827_v18, 0.0  ;;  %v11831_v12 = vpop.eup %10080 }
 0xd52   : > { %v4799_v42 = vsel %vm4438_vm8, %v11831_v12, 0.0 }
 0xd53   : > { %v11835_v22 = vpop.eup %10082 }
 0xd54   : > { %v4793_v14 = vsel %vm4438_vm8, %v11835_v22, 0.0 }
 0xd55   : > { %4797 = vadd.xlane.f32.xlu0 %v4796_v31 }
 0xd59   : > { %4800 = vadd.xlane.f32.xlu0 %v4799_v42 }
 0xd5d   : > { %4794 = vadd.xlane.f32.xlu0 %v4793_v14 }
 0xd62   : > { %4824 = vrot.lane.b32.xlu1 %v11691_v2, %s10276_s0 }
 0xd66   : > { %5092 = vrot.lane.b32.xlu1 %v11686_v0, %s10277_s3 }
 0xd6a   : > { %5090 = vrot.lane.b32.xlu1 %v11688_v28, %s10277_s3 }
 0xd6e   : > { %5088 = vrot.lane.b32.xlu1 %v11691_v2, %s10277_s3 }
 0xd72   : > { %5086 = vrot.lane.b32.xlu1 %v11682_v52, %s10277_s3 }
 0xd73   : > { %4822 = vrot.lane.b32.xlu0 %v11682_v52, %s10276_s0  ;;  %s8944_s0 = sshll.u32 %s10447_s9, 8 }
 0xd76   : > { %5080 = vrot.lane.b32.xlu1 %v11691_v2, %s10278_s8 }
 0xd77   : > { %5078 = vrot.lane.b32.xlu0 %v11682_v52, %s10278_s8 }
 0xd7a   : > { %5084 = vrot.lane.b32.xlu1 %v11686_v0, %s10278_s8 }
 0xd7b   : > { %5082 = vrot.lane.b32.xlu0 %v11688_v28, %s10278_s8 }
 0xd7e   : > { %5470 = vrot.lane.b32.xlu1 %v11688_v28, %s10279_s2 }
 0xd7f   : > { %5472 = vrot.lane.b32.xlu0 %v11686_v0, %s10279_s2 }
 0xd82   : > { %5466 = vrot.lane.b32.xlu1 %v11682_v52, %s10279_s2 }
 0xd83   : > { %5468 = vrot.lane.b32.xlu0 %v11691_v2, %s10279_s2  ;;  %s13813_s2 = scalar_lea.hbm %s13883_s27, %s8944_s0 }
 0xd86   : > { %5460 = vrot.lane.b32.xlu1 %v11691_v2, %s10280_s28 }
 0xd87   : > { %5458 = vrot.lane.b32.xlu0 %v11682_v52, %s10280_s28 }
 0xd8a   : > { %5464 = vrot.lane.b32.xlu1 %v11686_v0, %s10280_s28 }
 0xd8b   : > { %5462 = vrot.lane.b32.xlu0 %v11688_v28, %s10280_s28  ;;  %s10283_s28 = smov [#allocation5]  }
 0xd8c   : > { %s10204_s29 = sshll.u32 %s10283_s28, 4  ;;  %s10205_s29 = int_to_ptr.vmem [resolvable:$false] %s10204_s29 }
 0xd8d   : > { %s10206_s12 = scalar_lea.vmem %s10205_s29, 512 }
 0xdd2   : > { %v4786_v41 = vpop.xlane.xlu1 %4785 }
 0xdd6   : > { %v4780_v35 = vpop.xlane.xlu1 %4779  ;;  %v4789_v33 = vpop.xlane.xlu0 %4788 }
 0xdd7   : > { %10084 = vrcp.f32 %v4789_v33 }
 0xdd8   : > { %10086 = vrcp.f32 %v4780_v35 }
 0xdd9   : > { %10088 = vrcp.f32 %v4786_v41 }
 0xdda   : > { %v4792_v45 = vpop.xlane.xlu1 %4791  ;;  %v4783_v61 = vpop.xlane.xlu0 %4782 }
 0xddb   : > { %10090 = vrcp.f32 %v4783_v61 }
 0xdde   : > { %v4825_v29 = vpop.permute.xlu1 %4824  ;;  %v4798_v44 = vpop.xlane.xlu0 %4797 }
 0xddf   : > { %9541 = vmatprep.subr.bf16.mxu1 %v4825_v29 }
 0xde0   : > { %9542 = vmatpush3.bf16.msra.mxu1 %v4825_v29 }
 0xde2   : > { %v4801_v34 = vpop.xlane.xlu0 %4800  ;;  %v5093_v27 = vpop.permute.xlu1 %5092 }
 0xde3   : > { %10092 = vrcp.f32 %v4801_v34 }
 0xde4   : > { %10094 = vrcp.f32 %v4792_v45  ;;  %v10085_v4 = vpop.eup %10084 }
 0xde5   : > { %10096 = vrcp.f32 %v4798_v44  ;;  %v10087_v37 = vpop.eup %10086  ;;  %v4813_v15 = vmul.f32 %v10085_v4, %v11813_v26  ;;  %v5116_v26 = vsel %vm4348_vm7, %v5093_v27, 0 }
 0xde6   : > { %v4795_v7 = vpop.xlane.xlu0 %4794  ;;  %v10089_v51 = vpop.eup %10088  ;;  %v4810_v32 = vmul.f32 %v10087_v37, %v11811_v11 }
 0xde7   : > { %10098 = vrcp.f32 %v4795_v7  ;;  %v4812_v36 = vmul.f32 %v10089_v51, %v11807_v53  ;;  %v5091_v5 = vpop.permute.xlu1 %5090 }
 0xde8   : > { %v10091_v1 = vpop.eup %10090 }
 0xde9   : > { %v4811_v43 = vmul.f32 %v10091_v1, %v11819_v60  ;;  %v4819_v3 = vpack.c.bf16 %v4813_v15, %v4812_v36 }
 0xdea   : > { %v4823_v40 = vpop.permute.xlu0 %4822 }
 0xdeb   : > { %9543 = vmatprep.subr.bf16.mxu1 %v4823_v40  ;;  %v4818_v49 = vpack.c.bf16 %v4811_v43, %v4810_v32  ;;  %v5089_v31 = vpop.permute.xlu1 %5088 }
 0xdec   : > { %9544 = vmatpush3.bf16.msra.mxu1 %v4823_v40  ;;  %v5110_v14 = vsel %vm4348_vm7, %v5089_v31, 0 }
 0xded   : > { %9854 = vmatprep.subr.msk.bf16.mxu1 %vm4929_vm9, %v8677_v23  ;;  %9545 = vmatprep.mubr.msk.bf16.mxu1 %vm4438_vm8, %v4818_v49 }
 0xdee   : > { %v5079_v42 = vpop.permute.xlu0 %5078 }
 0xdef   : > { %9546 = vmatmul.mubr.msk.bf16.vlgmr.msra.gmra.mxu1 %vm4438_vm8, %v4819_v3 }
 0xdf0   : > { %9554 = vmatpush3.bf16.msra.mxu1 %v4931_v21  ;;  %v10093_v46 = vpop.eup %10092 }
 0xdf1   : > { %9856 = vmatprep.subr.msk.bf16.mxu1 %vm4348_vm7, %v5093_v27  ;;  %v10095_v24 = vpop.eup %10094  ;;  %v4817_v62 = vmul.f32 %v10093_v46, %v11831_v12 }
 0xdf2   : > { %v10097_v17 = vpop.eup %10096  ;;  %v4814_v48 = vmul.f32 %v10095_v24, %v11821_v13  ;;  %v5083_v41 = vpop.permute.xlu0 %5082 }
 0xdf3   : > { %v4816_v16 = vmul.f32 %v10097_v17, %v11827_v18  ;;  %v5113_v18 = vsel %vm4348_vm7, %v5091_v5, 0 }
 0xdf4   : > { %v10099_v30 = vpop.eup %10098 }
 0xdf5   : > { %v4815_v58 = vmul.f32 %v10099_v30, %v11835_v22  ;;  %v4821_v39 = vpack.c.bf16 %v4817_v62, %v4816_v16  ;;  %v5087_v22 = vpop.permute.xlu1 %5086 }
 0xdf6   : > { %v5107_v33 = vsel %vm4348_vm7, %v5087_v22, 0  ;;  %v5473_v45 = vpop.permute.xlu0 %5472 }
 0xdf7   : > { %v4820_v8 = vpack.c.bf16 %v4815_v58, %v4814_v48  ;;  %v5496_v29 = vsel %vm4348_vm7, %v5473_v45, 0 }
 0xdf9   : > { %9549 = vmatprep.mubr.msk.bf16.mxu1 %vm4438_vm8, %v4820_v8  ;;  %v5081_v35 = vpop.permute.xlu1 %5080 }
 0xdfa   : > { %9550 = vmatmul.mubr.msk.bf16.gmra.mxu1 %vm4438_vm8, %v4821_v39  ;;  %v5469_v34 = vpop.permute.xlu0 %5468 }
 0xdfb   : > { %v5490_v37 = vsel %vm4348_vm7, %v5469_v34, 0 }
 0xdfd   : > { %v5085_v61 = vpop.permute.xlu1 %5084 }
 0xdfe   : > { %v5459_v4 = vpop.permute.xlu0 %5458 }
 0xe01   : > { %v5471_v44 = vpop.permute.xlu1 %5470 }
 0xe02   : > { %v5493_v7 = vsel %vm4348_vm7, %v5471_v44, 0  ;;  %v5463_v40 = vpop.permute.xlu0 %5462 }
 0xe05   : > { %v5467_v51 = vpop.permute.xlu1 %5466 }
 0xe06   : > { %v5487_v1 = vsel %vm4348_vm7, %v5467_v51, 0 }
 0xe09   : > { %v5461_v15 = vpop.permute.xlu1 %5460 }
 0xe0d   : > { %v5465_v32 = vpop.permute.xlu1 %5464 }
 0xeaf   : > { %v9547_v54 = vpop.f32.mrf.mxu1 }
 0xeb1   : > { %v4880_v20 = vpop.f32.mrf.mxu1 }
 0xeb3   : > { %v9548_v53 = vpop.f32.mrf.mxu1 }
 0xeb4   : > { %v4912_v11 = vpack.c.bf16 %v9548_v53, %v9547_v54 }
 0xeb5   : > { %v4883_v10 = vpop.f32.mrf.mxu1 }
 0xeb6   : > { %v4911_v63 = vpack.c.bf16 %v4883_v10, %v4880_v20 }
 0xeb8   : > { %9555 = vmatprep.mubr.msk.bf16.mxu1 %vm4348_vm7, %v4911_v63 }
 0xeb9   : > { %9556 = vmatmul.mubr.msk.bf16.vlgmr.msra.gmra.mxu1 %vm4348_vm7, %v4912_v11 }
 0xeba   : > { %9574 = vmatpush3.bf16.xpose.msra.mxu1 %v5116_v26  ;;  %v9551_v59 = vpop.f32.mrf.mxu1 }
 0xebb   : > { %9857 = vmatprep.subr.msk.bf16.mxu1 %vm4348_vm7, %v5091_v5 }
 0xebc   : > { %v4896_v60 = vpop.f32.mrf.mxu1 }
 0xebe   : > { %v9552_v13 = vpop.f32.mrf.mxu1 }
 0xebf   : > { %v4914_v12 = vpack.c.bf16 %v9552_v13, %v9551_v59 }
 0xec0   : > { %v4899_v56 = vpop.f32.mrf.mxu1 }
 0xec1   : > { %v4913_v50 = vpack.c.bf16 %v4899_v56, %v4896_v60 }
 0xec2   : > { %9576 = vmatpush3.bf16.xpose.msra.mxu1 %v5113_v18 }
 0xec3   : > { %9858 = vmatprep.subr.msk.bf16.mxu1 %vm4348_vm7, %v5089_v31  ;;  %9559 = vmatprep.mubr.msk.bf16.mxu1 %vm4348_vm7, %v4913_v50 }
 0xec4   : > { %9560 = vmatmul.mubr.msk.bf16.gmra.mxu1 %vm4348_vm7, %v4914_v12 }
 0xec5   : > { %9581 = vmatprep.mubr.msk.bf16.mxu1 %vm4348_vm7, %v5079_v42 }
 0xeca   : > { %9578 = vmatpush3.bf16.xpose.msra.mxu1 %v5110_v14 }
 0xecb   : > { %9859 = vmatprep.subr.msk.bf16.mxu1 %vm4348_vm7, %v5087_v22 }
 0xed2   : > { %9580 = vmatpush3.bf16.xpose.msra.mxu1 %v5107_v33 }
 0xed3   : > { %9861 = vmatprep.subr.msk.bf16.mxu1 %vm4348_vm7, %v5473_v45 }
 0xed9   : > { %9582 = vmatmul.mubr.msk.bf16.vlgmr.msra.gmra.mxu1 %vm4348_vm7, %v5081_v35 }
 0xeda   : > { %9585 = vmatprep.mubr.msk.bf16.mxu1 %vm4348_vm7, %v5083_v41  ;;  %9616 = vmatpush3.bf16.xpose.msra.mxu1 %v5496_v29 }
 0xedb   : > { %9862 = vmatprep.subr.msk.bf16.mxu1 %vm4348_vm7, %v5471_v44 }
 0xee1   : > { %9586 = vmatmul.mubr.msk.bf16.gmra.mxu1 %vm4348_vm7, %v5085_v61 }
 0xee2   : > { %9618 = vmatpush3.bf16.xpose.msra.mxu1 %v5493_v7  ;;  %9623 = vmatprep.mubr.msk.bf16.mxu1 %vm4348_vm7, %v5459_v4 }
 0xee3   : > { %9863 = vmatprep.subr.msk.bf16.mxu1 %vm4348_vm7, %v5469_v34 }
 0xeea   : > { %9620 = vmatpush3.bf16.xpose.msra.mxu1 %v5490_v37 }
 0xeeb   : > { %9864 = vmatprep.subr.msk.bf16.mxu1 %vm4348_vm7, %v5467_v51 }
 0xef2   : > { %9622 = vmatpush3.bf16.xpose.msra.mxu1 %v5487_v1 }
 0xef9   : > { %9624 = vmatmul.mubr.msk.bf16.vlgmr.msra.gmra.mxu1 %vm4348_vm7, %v5461_v15 }
 0xefa   : > { %9627 = vmatprep.mubr.msk.bf16.mxu1 %vm4348_vm7, %v5463_v40 }
 0xf01   : > { %9628 = vmatmul.mubr.msk.bf16.gmra.mxu1 %vm4348_vm7, %v5465_v32 }
 0xf79   : > { %v11904_v43 = vpop.f32.mrf.mxu1 }
 0xf7b   : > { %v11906_v23 = vpop.f32.mrf.mxu1 }
 0xf7d   : > { %v11908_v36 = vpop.f32.mrf.mxu1 }
 0xf7f   : > { %v11910_v49 = vpop.f32.mrf.mxu1 }
 0xf84   : > { %v11912_v3 = vpop.f32.mrf.mxu1 }
 0xf86   : > { %v11914_v21 = vpop.f32.mrf.mxu1 }
 0xf88   : > { %v11916_v27 = vpop.f32.mrf.mxu1 }
 0xf8a   : > { %v11918_v46 = vpop.f32.mrf.mxu1 }
 0xf99   : > { %v9583_v24 = vpop.f32.mrf.mxu1 }
 0xf9a   : > { %v5189_v58 = vsel %vm4438_vm8, %v9583_v24, -inf }
 0xf9b   : > { %v5152_v17 = vpop.f32.mrf.mxu1 }
 0xf9c   : > { %v5183_v30 = vsel %vm4438_vm8, %v5152_v17, -inf }
 0xf9d   : > { %5184 = vmax.xlane.f32.xlu0 %v5183_v30  ;;  %v9584_v62 = vpop.f32.mrf.mxu1 }
 0xf9e   : > { %v5192_v54 = vsel %vm4438_vm8, %v9584_v62, -inf }
 0xf9f   : > { %v5155_v48 = vpop.f32.mrf.mxu1 }
 0xfa0   : > { %v5186_v16 = vsel %vm4438_vm8, %v5155_v48, -inf }
 0xfa1   : > { %5190 = vmax.xlane.f32.xlu0 %v5189_v58  ;;  %5187 = vmax.xlane.f32.xlu1 %v5186_v16  ;;  %v9587_v8 = vpop.f32.mrf.mxu1 }
 0xfa2   : > { %v5201_v63 = vsel %vm4438_vm8, %v9587_v8, -inf }
 0xfa3   : > { %v5168_v39 = vpop.f32.mrf.mxu1 }
 0xfa4   : > { %v5195_v20 = vsel %vm4438_vm8, %v5168_v39, -inf }
 0xfa5   : > { %5193 = vmax.xlane.f32.xlu0 %v5192_v54  ;;  %5196 = vmax.xlane.f32.xlu1 %v5195_v20  ;;  %v9588_v53 = vpop.f32.mrf.mxu1 }
 0xfa6   : > { %v5204_v26 = vsel %vm4438_vm8, %v9588_v53, -inf }
 0xfa7   : > { %v5171_v10 = vpop.f32.mrf.mxu1 }
 0xfa8   : > { %v5198_v11 = vsel %vm4438_vm8, %v5171_v10, -inf }
 0xfa9   : > { %5202 = vmax.xlane.f32.xlu1 %v5201_v63  ;;  %5199 = vmax.xlane.f32.xlu0 %v5198_v11 }
 0xfad   : > { %5205 = vmax.xlane.f32.xlu0 %v5204_v26 }
 0xfb9   : > { %v11968_v63 = vpop.f32.mrf.mxu1 }
 0xfba   : > { %5281 = vrot.lane.b32.xlu1 %v11686_v0, %s10281_s6 }
 0xfbb   : > { %v11970_v11 = vpop.f32.mrf.mxu1 }
 0xfbd   : > { %v11972_v26 = vpop.f32.mrf.mxu1 }
0x1026   : > { %v5185_v5 = vpop.xlane.xlu0 %5184 }
0x1027   : > { %v5207_v59 = vsub.f32 %v5152_v17, %v5185_v5  ;;  %v11974_v5 = vpop.f32.mrf.mxu1 }
0x1029   : > { %v5215_v18 = vmul.f32 1.442695, %v5207_v59  ;;  %v11976_v59 = vpop.f32.mrf.mxu1 }
0x102a   : > { %v5188_v60 = vpop.xlane.xlu1 %5187  ;;  %v5191_v13 = vpop.xlane.xlu0 %5190 }
0x102b   : > { %v5209_v56 = vsub.f32 %v9583_v24, %v5191_v13  ;;  %v5208_v31 = vsub.f32 %v5155_v48, %v5188_v60  ;;  %v5566_v60 = vsel %vm4438_vm8, %v11974_v5, -inf  ;;  %v5563_v13 = vsel %vm4438_vm8, %v11970_v11, -inf }
0x102d   : > { %v5219_v50 = vmul.f32 1.442695, %v5209_v56  ;;  %v5217_v41 = vmul.f32 1.442695, %v5208_v31  ;;  %v11982_v56 = vpop.f32.mrf.mxu1 }
0x102e   : > { %v5197_v12 = vpop.xlane.xlu1 %5196  ;;  %v5194_v42 = vpop.xlane.xlu0 %5193 }
0x102f   : > { %v5210_v22 = vsub.f32 %v9584_v62, %v5194_v42  ;;  %10100 = vpow2.f32 %v5219_v50  ;;  %v5211_v35 = vsub.f32 %v5168_v39, %v5197_v12  ;;  %v5575_v50 = vsel %vm4438_vm8, %v11982_v56, -inf  ;;  %v11988_v31 = vpop.f32.mrf.mxu1 }
0x1030   : > { %10102 = vpow2.f32 %v5215_v18  ;;  %v5569_v18 = vsel %vm4438_vm8, %v11968_v63, -inf  ;;  %v5581_v12 = vsel %vm4438_vm8, %v11976_v59, -inf  ;;  %v5572_v42 = vsel %vm4438_vm8, %v11972_v26, -inf }
0x1031   : > { %v5221_v14 = vmul.f32 1.442695, %v5210_v22  ;;  %v5223_v44 = vmul.f32 1.442695, %v5211_v35  ;;  %v11994_v22 = vpop.f32.mrf.mxu1 }
0x1032   : > { %v5203_v33 = vpop.xlane.xlu1 %5202  ;;  %v5200_v45 = vpop.xlane.xlu0 %5199 }
0x1033   : > { %v5213_v61 = vsub.f32 %v9587_v8, %v5203_v33  ;;  %10104 = vpow2.f32 %v5221_v14  ;;  %v5212_v34 = vsub.f32 %v5171_v10, %v5200_v45  ;;  %v5578_v14 = vsel %vm4438_vm8, %v11994_v22, -inf }
0x1034   : > { %10106 = vpow2.f32 %v5217_v41  ;;  %v5584_v41 = vsel %vm4438_vm8, %v11988_v31, -inf }
0x1035   : > { %v5227_v29 = vmul.f32 1.442695, %v5213_v61  ;;  %v5225_v1 = vmul.f32 1.442695, %v5212_v34 }
0x1036   : > { %v5282_v4 = vpop.permute.xlu1 %5281  ;;  %v5206_v7 = vpop.xlane.xlu0 %5205 }
0x1037   : > { %10108 = vpow2.f32 %v5227_v29  ;;  %v5214_v37 = vsub.f32 %v9588_v53, %v5206_v7  ;;  %9589 = vmatprep.subr.bf16.mxu0 %v5282_v4 }
0x1038   : > { %9590 = vmatpush3.bf16.msra.mxu0 %v5282_v4  ;;  %10110 = vpow2.f32 %v5223_v44 }
0x1039   : > { %v5229_v51 = vmul.f32 1.442695, %v5214_v37 }
0x103b   : > { %10112 = vpow2.f32 %v5229_v51 }
0x103c   : > { %v11930_v15 = vpop.eup %10100  ;;  %10114 = vpow2.f32 %v5225_v1 }
0x103d   : > { %v5237_v40 = vsel %vm4438_vm8, %v11930_v15, 0.0  ;;  %v11934_v32 = vpop.eup %10102 }
0x103e   : > { %5238 = vadd.xlane.f32.xlu1 %v5237_v40  ;;  %v5231_v17 = vsel %vm4438_vm8, %v11934_v32, 0.0 }
0x1040   : > { %v11936_v24 = vpop.eup %10104 }
0x1041   : > { %v5240_v30 = vsel %vm4438_vm8, %v11936_v24, 0.0  ;;  %v11942_v62 = vpop.eup %10106 }
0x1042   : > { %5232 = vadd.xlane.f32.xlu1 %v5231_v17  ;;  %5241 = vadd.xlane.f32.xlu0 %v5240_v30  ;;  %v5234_v16 = vsel %vm4438_vm8, %v11942_v62, 0.0 }
0x1044   : > { %v11944_v48 = vpop.eup %10108 }
0x1045   : > { %v5249_v58 = vsel %vm4438_vm8, %v11944_v48, 0.0  ;;  %v11950_v8 = vpop.eup %10110 }
0x1046   : > { %5250 = vadd.xlane.f32.xlu1 %v5249_v58  ;;  %5235 = vadd.xlane.f32.xlu0 %v5234_v16  ;;  %v5243_v20 = vsel %vm4438_vm8, %v11950_v8, 0.0 }
0x1048   : > { %v11952_v39 = vpop.eup %10112 }
0x1049   : > { %v5252_v54 = vsel %vm4438_vm8, %v11952_v39, 0.0  ;;  %v11958_v53 = vpop.eup %10114 }
0x104a   : > { %5244 = vadd.xlane.f32.xlu1 %v5243_v20  ;;  %5253 = vadd.xlane.f32.xlu0 %v5252_v54  ;;  %v5246_v10 = vsel %vm4438_vm8, %v11958_v53, 0.0 }
0x104e   : > { %5247 = vadd.xlane.f32.xlu0 %v5246_v10  ;;  %v8694_v10 = vld [vmem:[%s13877_s21 + $0x4] sm:$0x3] }
0x105b   : > { %5277 = vrot.lane.b32.xlu1 %v11691_v2, %s10281_s6 }
0x105f   : > { %5275 = vrot.lane.b32.xlu1 %v11682_v52, %s10281_s6 }
0x1064   : > { %5279 = vrot.lane.b32.xlu0 %v11688_v28, %s10281_s6 }
0x1083   : > { %5567 = vmax.xlane.f32.xlu1 %v5566_v60  ;;  %5564 = vmax.xlane.f32.xlu0 %v5563_v13 }
0x1087   : > { %5576 = vmax.xlane.f32.xlu1 %v5575_v50  ;;  %5570 = vmax.xlane.f32.xlu0 %v5569_v18 }
0x108b   : > { %5582 = vmax.xlane.f32.xlu1 %v5581_v12  ;;  %5573 = vmax.xlane.f32.xlu0 %v5572_v42 }
0x108f   : > { %5579 = vmax.xlane.f32.xlu0 %v5578_v14 }
0x1093   : > { %5585 = vmax.xlane.f32.xlu0 %v5584_v41 }
0x109c   : > { %5661 = vrot.lane.b32.xlu1 %v11686_v0, %s10282_s10 }
0x10c7   : > { %v5239_v35 = vpop.xlane.xlu1 %5238 }
0x10cb   : > { %v5233_v33 = vpop.xlane.xlu1 %5232  ;;  %v5242_v45 = vpop.xlane.xlu0 %5241 }
0x10cc   : > { %10116 = vrcp.f32 %v5233_v33 }
0x10cf   : > { %v5251_v61 = vpop.xlane.xlu1 %5250  ;;  %v5236_v29 = vpop.xlane.xlu0 %5235 }
0x10d0   : > { %10118 = vrcp.f32 %v5236_v29 }
0x10d1   : > { %10120 = vrcp.f32 %v5242_v45 }
0x10d2   : > { %10122 = vrcp.f32 %v5239_v35 }
0x10d3   : > { %v5245_v44 = vpop.xlane.xlu1 %5244  ;;  %v5254_v34 = vpop.xlane.xlu0 %5253 }
0x10d4   : > { %10124 = vrcp.f32 %v5245_v44 }
0x10d7   : > { %v5248_v4 = vpop.xlane.xlu0 %5247  ;;  %v5278_v7 = vpop.permute.xlu1 %5277 }
0x10d8   : > { %10126 = vrcp.f32 %v5248_v4 }
0x10d9   : > { %10128 = vrcp.f32 %v5254_v34  ;;  %v10117_v51 = vpop.eup %10116 }
0x10da   : > { %10130 = vrcp.f32 %v5251_v61  ;;  %v5263_v40 = vmul.f32 %v10117_v51, %v11934_v32 }
0x10db   : > { %v5280_v37 = vpop.permute.xlu0 %5279  ;;  %v5276_v58 = vpop.permute.xlu1 %5275 }
0x10dc   : > { %9591 = vmatprep.subr.bf16.mxu0 %v5280_v37 }
0x10dd   : > { %9592 = vmatpush3.bf16.msra.mxu0 %v5280_v37  ;;  %v10119_v0 = vpop.eup %10118 }
0x10de   : > { %9593 = vmatprep.subr.bf16.mxu0 %v5278_v7  ;;  %v10121_v1 = vpop.eup %10120  ;;  %v5264_v17 = vmul.f32 %v10119_v0, %v11942_v62 }
0x10df   : > { %v10123_v30 = vpop.eup %10122  ;;  %v5266_v54 = vmul.f32 %v10121_v1, %v11936_v24  ;;  %v5383_v24 = vsel %vm4929_vm9, %v8694_v10, 0 }
0x10e0   : > { %v5271_v16 = vpack.c.bf16 %v5264_v17, %v5263_v40  ;;  %v5265_v60 = vmul.f32 %v10123_v30, %v11930_v15 }
0x10e1   : > { %9594 = vmatpush3.bf16.msra.mxu0 %v5278_v7  ;;  %v10125_v20 = vpop.eup %10124 }
0x10e2   : > { %9595 = vmatprep.subr.bf16.mxu0 %v5276_v58  ;;  %9597 = vmatprep.mubr.msk.bf16.mxu0 %vm4438_vm8, %v5271_v16  ;;  %v5272_v32 = vpack.c.bf16 %v5266_v54, %v5265_v60  ;;  %v5267_v62 = vmul.f32 %v10125_v20, %v11950_v8 }
0x10e5   : > { %v10127_v13 = vpop.eup %10126  ;;  %9596 = vmatpush3.bf16.msra.mxu0 %v5276_v58 }
0x10e6   : > { %v5268_v50 = vmul.f32 %v10127_v13, %v11958_v53  ;;  %9860 = vmatprep.subr.msk.bf16.mxu0 %vm4929_vm9, %v8694_v10  ;;  %v10129_v18 = vpop.eup %10128 }
0x10e7   : > { %v10131_v42 = vpop.eup %10130  ;;  %v5270_v15 = vmul.f32 %v10129_v18, %v11952_v39 }
0x10e8   : > { %9598 = vmatmul.mubr.msk.bf16.vlgmr.msra.gmra.mxu0 %vm4438_vm8, %v5272_v32  ;;  %v5273_v12 = vpack.c.bf16 %v5268_v50, %v5267_v62  ;;  %v5269_v14 = vmul.f32 %v10131_v42, %v11944_v48  ;;  %v8714_v42 = vld [vmem:[%s13879_s23 + $0x48] sm:$0xff] }
0x10e9   : > { %9606 = vmatpush3.bf16.msra.mxu0 %v5383_v24 }
0x10ea   : > { %9601 = vmatprep.mubr.msk.bf16.mxu0 %vm4438_vm8, %v5273_v12  ;;  %v5274_v41 = vpack.c.bf16 %v5270_v15, %v5269_v14  ;;  %v8716_v15 = vld [vmem:[%s13879_s23 + $0x58] sm:$0xff]  ;;  %v8713_v14 = vld [vmem:[%s13879_s23 + $0x40] sm:$0xff] }
0x10f0   : > { %9602 = vmatmul.mubr.msk.bf16.gmra.mxu0 %vm4438_vm8, %v5274_v41  ;;  %v5877_v41 = vld [vmem:[%s13879_s23] sm:$0xff] }
0x110c   : > { %v5568_v8 = vpop.xlane.xlu1 %5567  ;;  %v5565_v53 = vpop.xlane.xlu0 %5564 }
0x110d   : > { %v5587_v35 = vsub.f32 %v11970_v11, %v5565_v53  ;;  %v5588_v29 = vsub.f32 %v11974_v5, %v5568_v8  ;;  %v8718_v8 = vld [vmem:[%s13879_s23 + $0x68] sm:$0xff]  ;;  %v5879_v53 = vld [vmem:[%s13879_s23 + $0x10] sm:$0xff] }
0x110f   : > { %v5595_v34 = vmul.f32 1.442695, %v5587_v35  ;;  %v5597_v37 = vmul.f32 1.442695, %v5588_v29  ;;  %v8720_v35 = vld [vmem:[%s13879_s23 + $0x78] sm:$0xff] }
0x1110   : > { %v5577_v33 = vpop.xlane.xlu1 %5576  ;;  %v5571_v45 = vpop.xlane.xlu0 %5570  ;;  %v5884_v29 = vld [vmem:[%s13879_s23 + $0x38] sm:$0xff] }
0x1111   : > { %v5589_v61 = vsub.f32 %v11968_v63, %v5571_v45  ;;  %v5591_v11 = vsub.f32 %v11982_v56, %v5577_v33  ;;  %v8717_v33 = vld [vmem:[%s13879_s23 + $0x60] sm:$0xff]  ;;  %v5882_v45 = vld [vmem:[%s13879_s23 + $0x28] sm:$0xff] }
0x1113   : > { %v5599_v44 = vmul.f32 1.442695, %v5589_v61  ;;  %v5603_v5 = vmul.f32 1.442695, %v5591_v11  ;;  %v8719_v61 = vld [vmem:[%s13879_s23 + $0x70] sm:$0xff]  ;;  %v8748_v11 = vld [vmem:[%s13879_s23 + $0xc0] sm:$0xff] }
0x1114   : > { %v5583_v4 = vpop.xlane.xlu1 %5582  ;;  %v5574_v7 = vpop.xlane.xlu0 %5573 }
0x1115   : > { %v5593_v39 = vsub.f32 %v11976_v59, %v5583_v4  ;;  %v5590_v48 = vsub.f32 %v11972_v26, %v5574_v7  ;;  %10132 = vpow2.f32 %v5599_v44  ;;  %v5881_v44 = vld [vmem:[%s13879_s23 + $0x20] sm:$0xff]  ;;  %v5883_v4 = vld [vmem:[%s13879_s23 + $0x30] sm:$0xff]  ;;  %v8736_v7 = vld [vmem:[%s13879_s23 + $0x98] sm:$0xff] }
0x1116   : > { %10134 = vpow2.f32 %v5595_v34  ;;  %v8734_v34 = vld [vmem:[%s13879_s23 + $0x88] sm:$0xff] }
0x1117   : > { %v5601_v51 = vmul.f32 1.442695, %v5590_v48  ;;  %v5607_v0 = vmul.f32 1.442695, %v5593_v39  ;;  %v8733_v39 = vld [vmem:[%s13879_s23 + $0x80] sm:$0xff]  ;;  %v8749_v48 = vld [vmem:[%s13879_s23 + $0xc8] sm:$0xff] }
0x1118   : > { %v12025_v1 = vpop.permute.xlu1 %5661  ;;  %v5580_v63 = vpop.xlane.xlu0 %5579 }
0x1119   : > { %9631 = vmatprep.subr.bf16.mxu0 %v12025_v1  ;;  %10136 = vpow2.f32 %v5601_v51  ;;  %v5592_v59 = vsub.f32 %v11994_v22, %v5580_v63  ;;  %v8751_v51 = vld [vmem:[%s13879_s23 + $0xd8] sm:$0xff]  ;;  %v8750_v63 = vld [vmem:[%s13879_s23 + $0xd0] sm:$0xff] }
0x111a   : > { %10138 = vpow2.f32 %v5597_v37  ;;  %v8735_v37 = vld [vmem:[%s13879_s23 + $0x90] sm:$0xff] }
0x111b   : > { %10140 = vpow2.f32 %v5607_v0  ;;  %v5605_v30 = vmul.f32 1.442695, %v5592_v59  ;;  %v8738_v0 = vld [vmem:[%s13879_s23 + $0xa8] sm:$0xff]  ;;  %v8737_v59 = vld [vmem:[%s13879_s23 + $0xa0] sm:$0xff] }
0x111c   : > { %v5586_v40 = vpop.xlane.xlu0 %5585  ;;  %10142 = vpow2.f32 %v5603_v5  ;;  %v8740_v5 = vld [vmem:[%s13879_s23 + $0xb8] sm:$0xff] }
0x111d   : > { %v5594_v26 = vsub.f32 %v11988_v31, %v5586_v40  ;;  %v8753_v40 = vld [vmem:[%s13879_s23 + $0xe8] sm:$0xff] }
0x111f   : > { %v5609_v17 = vmul.f32 1.442695, %v5594_v26  ;;  %v8739_v26 = vld [vmem:[%s13879_s23 + $0xb0] sm:$0xff] }
0x1121   : > { %10144 = vpow2.f32 %v5609_v17  ;;  %v8755_v17 = vld [vmem:[%s13879_s23 + $0xf8] sm:$0xff] }
0x1122   : > { %v12030_v56 = vpop.eup %10132  ;;  %10146 = vpow2.f32 %v5605_v30  ;;  %v8752_v30 = vld [vmem:[%s13879_s23 + $0xe0] sm:$0xff] }
0x1123   : > { %v5617_v58 = vsel %vm4438_vm8, %v12030_v56, 0.0  ;;  %v12034_v16 = vpop.eup %10134 }
0x1124   : > { %5618 = vadd.xlane.f32.xlu1 %v5617_v58  ;;  %v5611_v31 = vsel %vm4438_vm8, %v12034_v16, 0.0  ;;  %v8764_v58 = vld [vmem:[%s13879_s23 + $0x108] sm:$0xff] }
0x1126   : > { %v12036_v54 = vpop.eup %10136 }
0x1127   : > { %v12038_v20 = vpop.eup %10138  ;;  %v5620_v22 = vsel %vm4438_vm8, %v12036_v54, 0.0 }
0x1128   : > { %v12044_v10 = vpop.eup %10140  ;;  %5612 = vadd.xlane.f32.xlu1 %v5611_v31  ;;  %5621 = vadd.xlane.f32.xlu0 %v5620_v22  ;;  %v5614_v13 = vsel %vm4438_vm8, %v12038_v20, 0.0  ;;  %v8754_v31 = vld [vmem:[%s13879_s23 + $0xf0] sm:$0xff]  ;;  %v8766_v22 = vld [vmem:[%s13879_s23 + $0x118] sm:$0xff] }
0x1129   : > { %v5629_v60 = vsel %vm4438_vm8, %v12044_v10, 0.0  ;;  %v12050_v32 = vpop.eup %10142 }
0x112a   : > { %v5623_v24 = vsel %vm4438_vm8, %v12050_v32, 0.0 }
0x112c   : > { %5630 = vadd.xlane.f32.xlu1 %v5629_v60  ;;  %5615 = vadd.xlane.f32.xlu0 %v5614_v13  ;;  %v12170_v60 = vpop.f32.mrf.mxu0  ;;  %v8763_v13 = vld [vmem:[%s13879_s23 + $0x100] sm:$0xff] }
0x112e   : > { %v12052_v62 = vpop.eup %10144 }
0x112f   : > { %v5632_v50 = vsel %vm4438_vm8, %v12052_v62, 0.0  ;;  %v12058_v18 = vpop.eup %10146 }
0x1130   : > { %5624 = vadd.xlane.f32.xlu1 %v5623_v24  ;;  %5633 = vadd.xlane.f32.xlu0 %v5632_v50  ;;  %v5626_v12 = vsel %vm4438_vm8, %v12058_v18, 0.0  ;;  %v8768_v50 = vld [vmem:[%s13879_s23 + $0x128] sm:$0xff]  ;;  %v12178_v24 = vpop.f32.mrf.mxu0 }
0x1134   : > { %5627 = vadd.xlane.f32.xlu0 %v5626_v12  ;;  %v8765_v12 = vld [vmem:[%s13879_s23 + $0x110] sm:$0xff] }
0x1141   : > { %5657 = vrot.lane.b32.xlu1 %v11691_v2, %s10282_s10  ;;  %v8715_v2 = vld [vmem:[%s13879_s23 + $0x50] sm:$0xff] }
0x1145   : > { %5655 = vrot.lane.b32.xlu1 %v11682_v52, %s10282_s10  ;;  %v5878_v52 = vld [vmem:[%s13879_s23 + $0x8] sm:$0xff] }
0x1149   : > { %5955 = vperm.xlu1 %9935, %v8714_v42   ;;  %v8770_v42 = vld [vmem:[%s13879_s23 + $0x138] sm:$0xff] }
0x114a   : > { %5659 = vrot.lane.b32.xlu0 %v11688_v28, %s10282_s10  ;;  %v5880_v28 = vld [vmem:[%s13879_s23 + $0x18] sm:$0xff]  ;;  %s8510_s10 = sshll.u32 %s835_s5, 4 }
0x114b   : > { %s837_s11 = scalar_lea.vmem [#allocation5], %s8510_s10  ;;  %s13816_s10 = scalar_lea.sflag [#allocation4], %s835_s5 }
0x114c   : > { %s8421_s6 = sshll.u32 %s837_s11, 4  ;;  %s13807_s6 = int_to_ptr.vmem [resolvable:$true] %s8421_s6 }
0x114d   : > { %5965 = vperm.xlu1 %9935, %v8716_v15   ;;  %v12186_v15 = vpop.f32.mrf.mxu0  ;;  %s10200_s9 = scalar_lea.vmem %s13807_s6, 256  ;;  %p10207_p11 = scmp.lt.s32.totalorder %s13807_s6, %s10205_s29 }
0x114e   : > { %5950 = vperm.xlu0 %9934, %v8713_v14   ;;  %v8767_v14 = vld [vmem:[%s13879_s23 + $0x120] sm:$0xff]  ;;  %p10201_p6 = scmp.ne.s32.totalorder %s13807_s6, %s10200_s9  ;;  %p10208_p12 = scmp.lt.s32.totalorder %s10206_s12, %s10200_s9 }
0x1150   : > { %p10202_p9 = pnand %p10201_p6, %p10464_p5  ;;  %p10209_p13 = por %p10208_p12, %p10207_p11 }
0x1151   : > { %5892 = vperm.xlu1 %9935, %v5878_v52   ;;  %v8786_v52 = vld [vmem:[%s13879_s23 + $0x188] sm:$0xff] }
0x1152   : > { %5960 = vperm.xlu0 %9934, %v8715_v2   ;;  %v12194_v2 = vpop.f32.mrf.mxu0  ;;  %p10203_p10 = pneg %p10202_p9 }
0x1154   : > { %p10210_p0 = pnand %p10209_p13, %p10203_p10 }
0x1155   : > { %5902 = vperm.xlu1 %9935, %v5880_v28   ;;  %v8769_v28 = vld [vmem:[%s13879_s23 + $0x130] sm:$0xff] }
0x1156   : > { %5887 = vperm.xlu0 %9934, %v5877_v41   ;;  %v12199_v41 = vpop.f32.mrf.mxu0 }
0x1159   : > { %5975 = vperm.xlu1 %9935, %v8718_v8   ;;  %v8788_v8 = vld [vmem:[%s13879_s23 + $0x198] sm:$0xff] }
0x115a   : > { %5897 = vperm.xlu0 %9934, %v5879_v53   ;;  %v8785_v53 = vld [vmem:[%s13879_s23 + $0x180] sm:$0xff] }
0x115d   : > { %5985 = vperm.xlu1 %9935, %v8720_v35   ;;  %v12207_v35 = vpop.f32.mrf.mxu0 }
0x115e   : > { %5970 = vperm.xlu0 %9934, %v8717_v33   ;;  %v8801_v33 = vld [vmem:[%s13879_s23 + $0x1c8] sm:$0xff] }
0x1161   : > { %5912 = vperm.xlu1 %9935, %v5882_v45   ;;  %v8787_v45 = vld [vmem:[%s13879_s23 + $0x190] sm:$0xff] }
0x1162   : > { %5980 = vperm.xlu0 %9934, %v8719_v61   ;;  %v12215_v61 = vpop.f32.mrf.mxu0 }
0x1165   : > { %5922 = vperm.xlu1 %9935, %v5884_v29   ;;  %v8803_v29 = vld [vmem:[%s13879_s23 + $0x1d8] sm:$0xff] }
0x1166   : > { %5907 = vperm.xlu0 %9934, %v5881_v44   ;;  %v8800_v44 = vld [vmem:[%s13879_s23 + $0x1c0] sm:$0xff] }
0x1169   : > { %6201 = vperm.xlu1 %9935, %v8734_v34   ;;  %v12223_v34 = vpop.f32.mrf.mxu0 }
0x116a   : > { %5917 = vperm.xlu0 %9934, %v5883_v4   ;;  %v8790_v4 = vld [vmem:[%s13879_s23 + $0x1a8] sm:$0xff] }
0x116d   : > { %6211 = vperm.xlu1 %9935, %v8736_v7  }
0x116e   : > { %6196 = vperm.xlu0 %9934, %v8733_v39   ;;  %v8802_v39 = vld [vmem:[%s13879_s23 + $0x1d0] sm:$0xff] }
0x1171   : > { %6373 = vperm.xlu1 %9935, %v8749_v48  }
0x1172   : > { %6206 = vperm.xlu0 %9934, %v8735_v37   ;;  %v8792_v37 = vld [vmem:[%s13879_s23 + $0x1b8] sm:$0xff] }
0x1175   : > { %6383 = vperm.xlu1 %9935, %v8751_v51  }
0x1176   : > { %6368 = vperm.xlu0 %9934, %v8748_v11   ;;  %v8789_v11 = vld [vmem:[%s13879_s23 + $0x1a0] sm:$0xff] }
0x1179   : > { %6221 = vperm.xlu1 %9935, %v8738_v0  }
0x117a   : > { %6378 = vperm.xlu0 %9934, %v8750_v63  }
0x117d   : > { %6231 = vperm.xlu1 %9935, %v8740_v5  }
0x117e   : > { %6216 = vperm.xlu0 %9934, %v8737_v59   ;;  %v8805_v59 = vld [vmem:[%s13879_s23 + $0x1e8] sm:$0xff] }
0x1181   : > { %6393 = vperm.xlu1 %9935, %v8753_v40  }
0x1182   : > { %6226 = vperm.xlu0 %9934, %v8739_v26  }
0x1185   : > { %6403 = vperm.xlu1 %9935, %v8755_v17   ;;  %v8791_v17 = vld [vmem:[%s13879_s23 + $0x1b0] sm:$0xff] }
0x1186   : > { %6388 = vperm.xlu0 %9934, %v8752_v30  }
0x1189   : > { %6528 = vperm.xlu1 %9935, %v8764_v58  }
0x118a   : > { %6398 = vperm.xlu0 %9934, %v8754_v31  }
0x118d   : > { %6538 = vperm.xlu1 %9935, %v8766_v22   ;;  %v8807_v22 = vld [vmem:[%s13879_s23 + $0x1f8] sm:$0xff] }
0x118e   : > { %6523 = vperm.xlu0 %9934, %v8763_v13   ;;  %v8804_v13 = vld [vmem:[%s13879_s23 + $0x1e0] sm:$0xff] }
0x1191   : > { %6548 = vperm.xlu1 %9935, %v8768_v50  }
0x1192   : > { %6533 = vperm.xlu0 %9934, %v8765_v12  }
0x1195   : > { %6558 = vperm.xlu1 %9935, %v8770_v42  }
0x1196   : > { %6543 = vperm.xlu0 %9934, %v8767_v14  }
0x1199   : > { %6781 = vperm.xlu1 %9935, %v8786_v52  }
0x119a   : > { %6553 = vperm.xlu0 %9934, %v8769_v28   ;;  %v8806_v28 = vld [vmem:[%s13879_s23 + $0x1f0] sm:$0xff] }
0x119d   : > { %6791 = vperm.xlu1 %9935, %v8788_v8  }
0x119e   : > { %6776 = vperm.xlu0 %9934, %v8785_v53  }
0x11a1   : > { %6936 = vperm.xlu1 %9935, %v8801_v33  }
0x11a2   : > { %6786 = vperm.xlu0 %9934, %v8787_v45   ;;  %v8818_v45 = vld [vmem:[%s13879_s23 + $0x218] sm:$0xff] }
0x11a5   : > { %6946 = vperm.xlu1 %9935, %v8803_v29   ;;  %v8815_v29 = vld [vmem:[%s13879_s23 + $0x200] sm:$0xff] }
0x11a6   : > { %6931 = vperm.xlu0 %9934, %v8800_v44  }
0x11a8   : > { %v9599_v7 = vpop.f32.mrf.mxu0 }
0x11a9   : > { %6801 = vperm.xlu1 %9935, %v8790_v4   ;;  %v8831_v4 = vld [vmem:[%s13879_s23 + $0x248] sm:$0xff] }
0x11aa   : > { %v5333_v48 = vpop.f32.mrf.mxu0  ;;  %6941 = vperm.xlu0 %9934, %v8802_v39  }
0x11ac   : > { %v9600_v51 = vpop.f32.mrf.mxu0 }
0x11ad   : > { %6811 = vperm.xlu1 %9935, %v8792_v37   ;;  %v5619_v0 = vpop.xlane.xlu1 %5618  ;;  %v5365_v40 = vpack.c.bf16 %v9600_v51, %v9599_v7  ;;  %v8817_v7 = vld [vmem:[%s13879_s23 + $0x210] sm:$0xff]  ;;  %v8833_v51 = vld [vmem:[%s13879_s23 + $0x258] sm:$0xff] }
0x11ae   : > { %v5336_v63 = vpop.f32.mrf.mxu0  ;;  %6796 = vperm.xlu0 %9934, %v8789_v11   ;;  %v8830_v11 = vld [vmem:[%s13879_s23 + $0x240] sm:$0xff] }
0x11af   : > { %v5364_v5 = vpack.c.bf16 %v5336_v63, %v5333_v48 }
0x11b0   : > { %v9603_v26 = vpop.f32.mrf.mxu0 }
0x11b1   : > { %9607 = vmatprep.mubr.msk.bf16.mxu0 %vm4348_vm7, %v5364_v5  ;;  %6956 = vperm.xlu1 %9935, %v8805_v59   ;;  %v5613_v30 = vpop.xlane.xlu1 %5612  ;;  %v5622_v58 = vpop.xlane.xlu0 %5621 }
0x11b2   : > { %9608 = vmatmul.mubr.msk.bf16.vlgmr.msra.gmra.mxu0 %vm4348_vm7, %v5365_v40  ;;  %v5349_v31 = vpop.f32.mrf.mxu0  ;;  %6806 = vperm.xlu0 %9934, %v8791_v17   ;;  %10148 = vrcp.f32 %v5613_v30  ;;  %v8820_v40 = vld [vmem:[%s13879_s23 + $0x228] sm:$0xff] }
0x11b3   : > { %9632 = vmatpush3.bf16.msra.mxu0 %v12025_v1  ;;  %v8816_v1 = vld [vmem:[%s13879_s23 + $0x208] sm:$0xff] }
0x11b4   : > { %v9604_v50 = vpop.f32.mrf.mxu0 }
0x11b5   : > { %6966 = vperm.xlu1 %9935, %v8807_v22   ;;  %v5631_v12 = vpop.xlane.xlu1 %5630  ;;  %v5616_v42 = vpop.xlane.xlu0 %5615  ;;  %v5367_v8 = vpack.c.bf16 %v9604_v50, %v9603_v26  ;;  %v8819_v50 = vld [vmem:[%s13879_s23 + $0x220] sm:$0xff] }
0x11b6   : > { %v5352_v14 = vpop.f32.mrf.mxu0  ;;  %6951 = vperm.xlu0 %9934, %v8804_v13   ;;  %10150 = vrcp.f32 %v5616_v42 }
0x11b7   : > { %v5366_v52 = vpack.c.bf16 %v5352_v14, %v5349_v31  ;;  %10152 = vrcp.f32 %v5622_v58  ;;  %v8832_v58 = vld [vmem:[%s13879_s23 + $0x250] sm:$0xff] }
0x11b8   : > { %10154 = vrcp.f32 %v5619_v0 }
0x11b9   : > { %9611 = vmatprep.mubr.msk.bf16.mxu0 %vm4348_vm7, %v5366_v52  ;;  %7091 = vperm.xlu1 %9935, %v8816_v1   ;;  %v5625_v53 = vpop.xlane.xlu1 %5624  ;;  %v5634_v33 = vpop.xlane.xlu0 %5633  ;;  %v8835_v1 = vld [vmem:[%s13879_s23 + $0x268] sm:$0xff] }
0x11ba   : > { %9612 = vmatmul.mubr.msk.bf16.gmra.mxu0 %vm4348_vm7, %v5367_v8  ;;  %6961 = vperm.xlu0 %9934, %v8806_v28   ;;  %10156 = vrcp.f32 %v5625_v53  ;;  %v8821_v28 = vld [vmem:[%s13879_s23 + $0x230] sm:$0xff]  ;;  %v8834_v53 = vld [vmem:[%s13879_s23 + $0x260] sm:$0xff] }
0x11bd   : > { %7101 = vperm.xlu1 %9935, %v8818_v45   ;;  %v5628_v44 = vpop.xlane.xlu0 %5627  ;;  %v5658_v39 = vpop.permute.xlu1 %5657  ;;  %v8836_v45 = vld [vmem:[%s13879_s23 + $0x270] sm:$0xff] }
0x11be   : > { %10158 = vrcp.f32 %v5628_v44  ;;  %7086 = vperm.xlu0 %9934, %v8815_v29   ;;  %v8845_v29 = vld [vmem:[%s13879_s23 + $0x280] sm:$0xff]  ;;  %v8861_v44 = vld [vmem:[%s13879_s23 + $0x2c8] sm:$0xff] }
0x11bf   : > { %10160 = vrcp.f32 %v5634_v33  ;;  %v10149_v37 = vpop.eup %10148 }
0x11c0   : > { %10162 = vrcp.f32 %v5631_v12  ;;  %v5643_v5 = vmul.f32 %v10149_v37, %v12034_v16  ;;  %v8862_v37 = vld [vmem:[%s13879_s23 + $0x2d0] sm:$0xff] }
0x11c1   : > { %7246 = vperm.xlu1 %9935, %v8831_v4   ;;  %v5660_v48 = vpop.permute.xlu0 %5659  ;;  %v5656_v17 = vpop.permute.xlu1 %5655  ;;  %v8847_v4 = vld [vmem:[%s13879_s23 + $0x290] sm:$0xff] }
0x11c2   : > { %7096 = vperm.xlu0 %9934, %v8817_v7   ;;  %9633 = vmatprep.subr.bf16.mxu0 %v5660_v48  ;;  %v8863_v7 = vld [vmem:[%s13879_s23 + $0x2d8] sm:$0xff] }
0x11c3   : > { %9634 = vmatpush3.bf16.msra.mxu0 %v5660_v48  ;;  %v10151_v0 = vpop.eup %10150  ;;  %v8850_v48 = vld [vmem:[%s13879_s23 + $0x2a8] sm:$0xff] }
0x11c4   : > { %9635 = vmatprep.subr.bf16.mxu0 %v5658_v39  ;;  %v10153_v63 = vpop.eup %10152  ;;  %v5644_v59 = vmul.f32 %v10151_v0, %v12038_v20  ;;  %v8822_v20 = vld [vmem:[%s13879_s23 + $0x238] sm:$0xff]  ;;  %v8865_v0 = vld [vmem:[%s13879_s23 + $0x2e8] sm:$0xff] }
0x11c5   : > { %7256 = vperm.xlu1 %9935, %v8833_v51   ;;  %v10155_v26 = vpop.eup %10154  ;;  %v5646_v31 = vmul.f32 %v10153_v63, %v12036_v54  ;;  %v8852_v51 = vld [vmem:[%s13879_s23 + $0x2b8] sm:$0xff]  ;;  %v8851_v63 = vld [vmem:[%s13879_s23 + $0x2b0] sm:$0xff] }
0x11c6   : > { %7241 = vperm.xlu0 %9934, %v8830_v11   ;;  %v5651_v30 = vpack.c.bf16 %v5644_v59, %v5643_v5  ;;  %v5645_v16 = vmul.f32 %v10155_v26, %v12030_v56  ;;  %v8849_v11 = vld [vmem:[%s13879_s23 + $0x2a0] sm:$0xff]  ;;  %v8867_v5 = vld [vmem:[%s13879_s23 + $0x2f8] sm:$0xff]  ;;  %v8866_v26 = vld [vmem:[%s13879_s23 + $0x2f0] sm:$0xff] }
0x11c7   : > { %9636 = vmatpush3.bf16.msra.mxu0 %v5658_v39  ;;  %v10157_v22 = vpop.eup %10156  ;;  %v8860_v39 = vld [vmem:[%s13879_s23 + $0x2c0] sm:$0xff] }
0x11c8   : > { %9637 = vmatprep.subr.bf16.mxu0 %v5656_v17  ;;  %9639 = vmatprep.mubr.msk.bf16.mxu0 %vm4438_vm8, %v5651_v30  ;;  %v5652_v12 = vpack.c.bf16 %v5646_v31, %v5645_v16  ;;  %v5647_v54 = vmul.f32 %v10157_v22, %v12050_v32  ;;  %v8864_v59 = vld [vmem:[%s13879_s23 + $0x2e0] sm:$0xff]  ;;  %v8878_v30 = vld [vmem:[%s13879_s23 + $0x318] sm:$0xff]  ;;  %v8891_v22 = vld [vmem:[%s13879_s23 + $0x348] sm:$0xff] }
0x11c9   : > { %7111 = vperm.xlu1 %9935, %v8820_v40   ;;  %v8876_v40 = vld [vmem:[%s13879_s23 + $0x308] sm:$0xff]  ;;  %v12376_v31 = vpop.permute.xlu0 %5950 }
0x11ca   : > { %7251 = vperm.xlu0 %9934, %v8832_v58   ;;  %v8875_v58 = vld [vmem:[%s13879_s23 + $0x300] sm:$0xff] }
0x11cb   : > { %v10159_v13 = vpop.eup %10158  ;;  %9638 = vmatpush3.bf16.msra.mxu0 %v5656_v17  ;;  %v12368_v17 = vpop.permute.xlu1 %5955 }
0x11cc   : > { %v5648_v42 = vmul.f32 %v10159_v13, %v12058_v18  ;;  %v10161_v14 = vpop.eup %10160  ;;  %v8837_v18 = vld [vmem:[%s13879_s23 + $0x278] sm:$0xff] }
0x11cd   : > { %7121 = vperm.xlu1 %9935, %v8822_v20   ;;  %v10163_v52 = vpop.eup %10162  ;;  %v5650_v32 = vmul.f32 %v10161_v14, %v12052_v62  ;;  %v8846_v62 = vld [vmem:[%s13879_s23 + $0x288] sm:$0xff]  ;;  %v8877_v20 = vld [vmem:[%s13879_s23 + $0x310] sm:$0xff]  ;;  %v8893_v13 = vld [vmem:[%s13879_s23 + $0x358] sm:$0xff] }
0x11ce   : > { %7106 = vperm.xlu0 %9934, %v8819_v50   ;;  %9640 = vmatmul.mubr.msk.bf16.vlgmr.msra.gmra.mxu0 %vm4438_vm8, %v5652_v12  ;;  %v5653_v56 = vpack.c.bf16 %v5648_v42, %v5647_v54  ;;  %v5649_v8 = vmul.f32 %v10163_v52, %v12044_v10  ;;  %v8848_v10 = vld [vmem:[%s13879_s23 + $0x298] sm:$0xff]  ;;  %v8890_v50 = vld [vmem:[%s13879_s23 + $0x340] sm:$0xff]  ;;  %v12392_v12 = vpop.permute.xlu0 %5960  ;;  %v8880_v14 = vld [vmem:[%s13879_s23 + $0x328] sm:$0xff] }
0x11cf   : > { %v12381_v16 = vpop.permute.xlu1 %5965  ;;  %v8707_v42 = vld [vmem:[%s13877_s21 + $0x6] sm:$0x3] }
0x11d0   : > { %9643 = vmatprep.mubr.msk.bf16.mxu0 %vm4438_vm8, %v5653_v56  ;;  %v5654_v33 = vpack.c.bf16 %v5650_v32, %v5649_v8  ;;  %9865 = vmatprep.subr.msk.bf16.mxu0 %vm4929_vm9, %v8707_v42  ;;  %v8892_v56 = vld [vmem:[%s13879_s23 + $0x350] sm:$0xff]  ;;  %v8895_v8 = vld [vmem:[%s13879_s23 + $0x368] sm:$0xff] }
0x11d1   : > { %7266 = vperm.xlu1 %9935, %v8835_v1   ;;  %v5763_v1 = vsel %vm4929_vm9, %v8707_v42, 0  ;;  %v8925_v42 = vld [vmem:[%s13879_s23 + $0x3e8] sm:$0xff] }
0x11d2   : > { %7116 = vperm.xlu0 %9934, %v8821_v28   ;;  %v12407_v52 = vpop.permute.xlu0 %5887  ;;  %v8882_v28 = vld [vmem:[%s13879_s23 + $0x338] sm:$0xff]  ;;  %9648 = vmatpush3.bf16.msra.mxu0 %v5763_v1 }
0x11d3   : > { %v12394_v54 = vpop.permute.xlu1 %5892  ;;  %v8927_v1 = vld [vmem:[%s13879_s23 + $0x3f8] sm:$0xff] }
0x11d5   : > { %7276 = vperm.xlu1 %9935, %v8837_v18   ;;  %v8879_v18 = vld [vmem:[%s13879_s23 + $0x320] sm:$0xff] }
0x11d6   : > { %7261 = vperm.xlu0 %9934, %v8834_v53   ;;  %9644 = vmatmul.mubr.msk.bf16.gmra.mxu0 %vm4438_vm8, %v5654_v33  ;;  %v8881_v53 = vld [vmem:[%s13879_s23 + $0x330] sm:$0xff]  ;;  %v12423_v33 = vpop.permute.xlu0 %5897 }
0x11d7   : > { %v12412_v32 = vpop.permute.xlu1 %5902 }
0x11d9   : > { %7401 = vperm.xlu1 %9935, %v8846_v62  }
0x11da   : > { %7271 = vperm.xlu0 %9934, %v8836_v45   ;;  %v8897_v45 = vld [vmem:[%s13879_s23 + $0x378] sm:$0xff] }
0x11db   : > { %v12425_v62 = vpop.permute.xlu1 %5975 }
0x11dd   : > { %7411 = vperm.xlu1 %9935, %v8848_v10   ;;  %v8894_v10 = vld [vmem:[%s13879_s23 + $0x360] sm:$0xff] }
0x11de   : > { %7396 = vperm.xlu0 %9934, %v8845_v29   ;;  %v12433_v29 = vpop.permute.xlu0 %5970 }
0x11e1   : > { %7556 = vperm.xlu1 %9935, %v8861_v44   ;;  %v8906_v44 = vld [vmem:[%s13879_s23 + $0x388] sm:$0xff] }
0x11e2   : > { %7406 = vperm.xlu0 %9934, %v8847_v4   ;;  %v12438_v4 = vpop.permute.xlu1 %5985 }
0x11e5   : > { %7566 = vperm.xlu1 %9935, %v8863_v7   ;;  %v8896_v7 = vld [vmem:[%s13879_s23 + $0x370] sm:$0xff] }
0x11e6   : > { %7551 = vperm.xlu0 %9934, %v8860_v39   ;;  %v8908_v39 = vld [vmem:[%s13879_s23 + $0x398] sm:$0xff] }
0x11e9   : > { %7421 = vperm.xlu1 %9935, %v8850_v48   ;;  %v8905_v48 = vld [vmem:[%s13879_s23 + $0x380] sm:$0xff] }
0x11ea   : > { %7561 = vperm.xlu0 %9934, %v8862_v37   ;;  %v12449_v37 = vpop.permute.xlu0 %5980 }
0x11ed   : > { %7431 = vperm.xlu1 %9935, %v8852_v51   ;;  %v12451_v51 = vpop.permute.xlu1 %5912 }
0x11ee   : > { %7416 = vperm.xlu0 %9934, %v8849_v11   ;;  %v8921_v11 = vld [vmem:[%s13879_s23 + $0x3c8] sm:$0xff] }
0x11f1   : > { %7576 = vperm.xlu1 %9935, %v8865_v0   ;;  %v8907_v0 = vld [vmem:[%s13879_s23 + $0x390] sm:$0xff] }
0x11f2   : > { %7426 = vperm.xlu0 %9934, %v8851_v63   ;;  %v12459_v63 = vpop.permute.xlu0 %5907 }
0x11f5   : > { %7586 = vperm.xlu1 %9935, %v8867_v5   ;;  %v8923_v5 = vld [vmem:[%s13879_s23 + $0x3d8] sm:$0xff] }
0x11f6   : > { %7571 = vperm.xlu0 %9934, %v8864_v59   ;;  %v12464_v59 = vpop.permute.xlu1 %5922 }
0x11f9   : > { %7711 = vperm.xlu1 %9935, %v8876_v40   ;;  %v8920_v40 = vld [vmem:[%s13879_s23 + $0x3c0] sm:$0xff] }
0x11fa   : > { %7581 = vperm.xlu0 %9934, %v8866_v26   ;;  %v8910_v26 = vld [vmem:[%s13879_s23 + $0x3a8] sm:$0xff] }
0x11fd   : > { %7721 = vperm.xlu1 %9935, %v8878_v30   ;;  %v8922_v30 = vld [vmem:[%s13879_s23 + $0x3d0] sm:$0xff] }
0x11fe   : > { %7706 = vperm.xlu0 %9934, %v8875_v58   ;;  %v12475_v58 = vpop.permute.xlu0 %5917 }
0x1201   : > { %7866 = vperm.xlu1 %9935, %v8891_v22   ;;  %v12477_v22 = vpop.permute.xlu1 %6201 }
0x1202   : > { %7716 = vperm.xlu0 %9934, %v8877_v20   ;;  %v8912_v20 = vld [vmem:[%s13879_s23 + $0x3b8] sm:$0xff] }
0x1205   : > { %7876 = vperm.xlu1 %9935, %v8893_v13   ;;  %v8909_v13 = vld [vmem:[%s13879_s23 + $0x3a0] sm:$0xff] }
0x1206   : > { %7861 = vperm.xlu0 %9934, %v8890_v50   ;;  %v12485_v50 = vpop.permute.xlu0 %6196 }
0x1209   : > { %7731 = vperm.xlu1 %9935, %v8880_v14   ;;  %v12490_v14 = vpop.permute.xlu1 %6211 }
0x120a   : > { %7871 = vperm.xlu0 %9934, %v8892_v56   ;;  %v8911_v56 = vld [vmem:[%s13879_s23 + $0x3b0] sm:$0xff] }
0x120d   : > { %7741 = vperm.xlu1 %9935, %v8882_v28   ;;  %v8924_v28 = vld [vmem:[%s13879_s23 + $0x3e0] sm:$0xff] }
0x120e   : > { %7726 = vperm.xlu0 %9934, %v8879_v18   ;;  %v12501_v18 = vpop.permute.xlu0 %6206 }
0x1211   : > { %7886 = vperm.xlu1 %9935, %v8895_v8   ;;  %v12503_v8 = vpop.permute.xlu1 %6373 }
0x1212   : > { %7736 = vperm.xlu0 %9934, %v8881_v53   ;;  %v8926_v53 = vld [vmem:[%s13879_s23 + $0x3f0] sm:$0xff] }
0x1215   : > { %7896 = vperm.xlu1 %9935, %v8897_v45   ;;  %v12508_v45 = vpop.permute.xlu0 %6368 }
0x1216   : > { %7881 = vperm.xlu0 %9934, %v8894_v10   ;;  %v5056_v10 = vadd.f32 %v12170_v60, %v11904_v43 }
0x1219   : > { %8021 = vperm.xlu1 %9935, %v8906_v44  }
0x121a   : > { %7891 = vperm.xlu0 %9934, %v8896_v7   ;;  %v5048_v7 = vadd.f32 %v12178_v24, %v11906_v23  ;;  %v5072_v23 = vadd.f32 %v12199_v41, %v11912_v3  ;;  %v12530_v24 = vpop.permute.xlu1 %6383  ;;  %v5067_v3 = vadd.f32 %v12223_v34, %v11918_v46 }
0x121b   : > { %14208 = vst [vmem:[#allocation79_spill] sm:$0xff] %v12530_v24 }
0x121d   : > { %8031 = vperm.xlu1 %9935, %v8908_v39  }
0x121e   : > { %8016 = vperm.xlu0 %9934, %v8905_v48  }
0x1221   : > { %8176 = vperm.xlu1 %9935, %v8921_v11   ;;  %v5059_v11 = vadd.f32 %v12186_v15, %v11908_v36  ;;  %v5064_v36 = vadd.f32 %v12207_v35, %v11914_v21 }
0x1222   : > { %8026 = vperm.xlu0 %9934, %v8907_v0   ;;  %v12518_v0 = vpop.permute.xlu0 %6378 }
0x1223   : > { %14207 = vst [vmem:[#allocation78_spill] sm:$0xff] %v12518_v0  ;;  %v12720_v0 = vld [vmem:[%s13878_s22] ss:$0 sm:$0xff] }
0x1225   : > { %8186 = vperm.xlu1 %9935, %v8923_v5  }
0x1226   : > { %8171 = vperm.xlu0 %9934, %v8920_v40   ;;  %v12534_v15 = vpop.permute.xlu0 %6216 }
0x1229   : > { %8041 = vperm.xlu1 %9935, %v8910_v26   ;;  %v5051_v26 = vadd.f32 %v12194_v2, %v11910_v49  ;;  %v5075_v49 = vadd.f32 %v12215_v61, %v11916_v27 }
0x122a   : > { %8181 = vperm.xlu0 %9934, %v8922_v30   ;;  %v12548_v21 = vpop.permute.xlu0 %6226 }
0x122b   : > { %14210 = vst [vmem:[#allocation15_spill] sm:$0xff] %v12548_v21 }
0x122d   : > { %8051 = vperm.xlu1 %9935, %v8912_v20  }
0x122e   : > { %8036 = vperm.xlu0 %9934, %v8909_v13  }
0x1231   : > { %8196 = vperm.xlu1 %9935, %v8925_v42  }
0x1232   : > { %8046 = vperm.xlu0 %9934, %v8911_v56  }
0x1235   : > { %8206 = vperm.xlu1 %9935, %v8927_v1   ;;  %v12546_v1 = vpop.permute.xlu1 %6221 }
0x1236   : > { %8191 = vperm.xlu0 %9934, %v8924_v28   ;;  %14209 = vst [vmem:[#allocation17_spill] sm:$0xff] %v12546_v1 }
0x123a   : > { %8201 = vperm.xlu0 %9934, %v8926_v53   ;;  %v12552_v53 = vpop.permute.xlu1 %6231 }
0x123b   : > { %14211 = vst [vmem:[#allocation14_spill] sm:$0xff] %v12552_v53 }
0x123e   : > { %v12556_v27 = vpop.permute.xlu1 %6393 }
0x123f   : > { %14213 = vst [vmem:[#allocation19_spill] sm:$0xff] %v12556_v27 }
0x1242   : > { %v12560_v46 = vpop.permute.xlu1 %6403 }
0x1243   : > { %14215 = vst [vmem:[#allocation25_spill] sm:$0xff] %v12560_v46 }
0x1272   : > { %v9609_v44 = vpop.f32.mrf.mxu0 }
0x1273   : > { %v12514_v39 = vadd.f32 %v9609_v44, %v5056_v10  ;;  %v12554_v10 = vpop.permute.xlu0 %6388 }
0x1274   : > { %v5419_v48 = vpop.f32.mrf.mxu0  ;;  %14212 = vst [vmem:[#allocation16_spill] sm:$0xff] %v12554_v10 }
0x1275   : > { %v12520_v5 = vadd.f32 %v5419_v48, %v5048_v7 }
0x1276   : > { %v9610_v40 = vpop.f32.mrf.mxu0 }
0x1277   : > { %v12524_v30 = vadd.f32 %v9610_v40, %v5059_v11  ;;  %v12558_v61 = vpop.permute.xlu0 %6398 }
0x1278   : > { %v5422_v43 = vpop.f32.mrf.mxu0  ;;  %14214 = vst [vmem:[#allocation18_spill] sm:$0xff] %v12558_v61 }
0x1279   : > { %v12528_v60 = vadd.f32 %v5422_v43, %v5051_v26 }
0x127a   : > { %v9613_v20 = vpop.f32.mrf.mxu0 }
0x127b   : > { %v12536_v13 = vadd.f32 %v9613_v20, %v5072_v23  ;;  %v12562_v48 = vpop.permute.xlu0 %6523  ;;  %v12565_v23 = vpop.permute.xlu1 %6528 }
0x127c   : > { %v5435_v42 = vpop.f32.mrf.mxu0  ;;  %14216 = vst [vmem:[#allocation22_spill] sm:$0xff] %v12562_v48  ;;  %14217 = vst [vmem:[#allocation24_spill] sm:$0xff] %v12565_v23 }
0x127d   : > { %v12540_v2 = vadd.f32 %v5435_v42, %v5064_v36 }
0x127e   : > { %v9614_v56 = vpop.f32.mrf.mxu0 }
0x127f   : > { %v12544_v41 = vadd.f32 %v9614_v56, %v5075_v49  ;;  %v12568_v36 = vpop.permute.xlu0 %6533 }
0x1280   : > { %v5438_v28 = vpop.f32.mrf.mxu0 }
0x1281   : > { %v12550_v35 = vadd.f32 %v5438_v28, %v5067_v3  ;;  %v12570_v3 = vpop.permute.xlu1 %6538 }
0x1283   : > { %v12572_v46 = vpop.permute.xlu0 %6543 }
0x1284   : > { %14218 = vst [vmem:[#allocation23_spill] sm:$0xff] %v12572_v46 }
0x128e   : > { %v9641_v44 = vpop.f32.mrf.mxu0 }
0x1290   : > { %v5713_v7 = vpop.f32.mrf.mxu0 }
0x1292   : > { %v9642_v34 = vpop.f32.mrf.mxu0 }
0x1293   : > { %v5745_v26 = vpack.c.bf16 %v9642_v34, %v9641_v44  ;;  %v12576_v44 = vpop.permute.xlu1 %6548 }
0x1294   : > { %v5716_v11 = vpop.f32.mrf.mxu0  ;;  %14219 = vst [vmem:[#allocation31_spill] sm:$0xff] %v12576_v44 }
0x1295   : > { %v5744_v40 = vpack.c.bf16 %v5716_v11, %v5713_v7  ;;  %v12578_v7 = vpop.permute.xlu0 %6553 }
0x1296   : > { %v9645_v43 = vpop.f32.mrf.mxu0  ;;  %14220 = vst [vmem:[#allocation30_spill] sm:$0xff] %v12578_v7 }
0x1297   : > { %9649 = vmatprep.mubr.msk.bf16.mxu0 %vm4348_vm7, %v5744_v40  ;;  %v12580_v34 = vpop.permute.xlu1 %6558 }
0x1298   : > { %v5729_v20 = vpop.f32.mrf.mxu0  ;;  %9650 = vmatmul.mubr.msk.bf16.vlgmr.msra.gmra.mxu0 %vm4348_vm7, %v5745_v26  ;;  %14221 = vst [vmem:[#allocation20_spill] sm:$0xff] %v12580_v34 }
0x1299   : > { %v12582_v11 = vpop.permute.xlu0 %6776 }
0x129a   : > { %v9646_v42 = vpop.f32.mrf.mxu0  ;;  %14222 = vst [vmem:[#allocation21_spill] sm:$0xff] %v12582_v11 }
0x129b   : > { %v5747_v28 = vpack.c.bf16 %v9646_v42, %v9645_v43  ;;  %v12584_v40 = vpop.permute.xlu1 %6781 }
0x129c   : > { %v5732_v49 = vpop.f32.mrf.mxu0  ;;  %14223 = vst [vmem:[#allocation27_spill] sm:$0xff] %v12584_v40 }
0x129d   : > { %v5746_v56 = vpack.c.bf16 %v5732_v49, %v5729_v20  ;;  %v12586_v26 = vpop.permute.xlu0 %6786 }
0x129f   : > { %9653 = vmatprep.mubr.msk.bf16.mxu0 %vm4348_vm7, %v5746_v56  ;;  %v12588_v20 = vpop.permute.xlu1 %6791 }
0x12a0   : > { %9654 = vmatmul.mubr.msk.bf16.gmra.mxu0 %vm4348_vm7, %v5747_v28 }
0x12a1   : > { %v12590_v43 = vpop.permute.xlu0 %6931 }
0x12a2   : > { %14224 = vst [vmem:[#allocation26_spill] sm:$0xff] %v12590_v43 }
0x12a3   : > { %v12592_v42 = vpop.permute.xlu1 %6936 }
0x12a4   : > { %14225 = vst [vmem:[#allocation33_spill] sm:$0xff] %v12592_v42 }
0x12a5   : > { %v12594_v49 = vpop.permute.xlu0 %6941 }
0x12a6   : > { %14226 = vst [vmem:[#allocation32_spill] sm:$0xff] %v12594_v49 }
0x12a7   : > { %v12596_v56 = vpop.permute.xlu1 %6946 }
0x12a8   : > { %14227 = vst [vmem:[#allocation39_spill] sm:$0xff] %v12596_v56 }
0x12a9   : > { %v12598_v28 = vpop.permute.xlu0 %6796 }
0x12aa   : > { %14228 = vst [vmem:[#allocation38_spill] sm:$0xff] %v12598_v28 }
0x12ab   : > { %v12600_v7 = vpop.permute.xlu1 %6801 }
0x12ac   : > { %14229 = vst [vmem:[#allocation29_spill] sm:$0xff] %v12600_v7 }
0x12ad   : > { %v12602_v34 = vpop.permute.xlu0 %6806 }
0x12ae   : > { %14230 = vst [vmem:[#allocation28_spill] sm:$0xff] %v12602_v34  ;;  %v9946_v34 = vld [vmem:[%s13881_s25 + $0x8] sm:$0xff]  }
0x12af   : > { %v12604_v11 = vpop.permute.xlu1 %6811  ;;  %9657 = vmatprep.subr.bf16.mxu1 %v9946_v34 }
0x12b0   : > { %14231 = vst [vmem:[#allocation35_spill] sm:$0xff] %v12604_v11  ;;  %9658 = vmatpush3.bf16.msra.mxu1 %v9946_v34  ;;  %v12647_v34 = vld [vmem:[%s13881_s25 + $0x18] sm:$0xff]  }
0x12b1   : > { %v12606_v40 = vpop.permute.xlu0 %6951 }
0x12b2   : > { %14232 = vst [vmem:[#allocation34_spill] sm:$0xff] %v12606_v40 }
0x12b3   : > { %v12608_v61 = vpop.permute.xlu1 %6956 }
0x12b4   : > { %14233 = vst [vmem:[#allocation41_spill] sm:$0xff] %v12608_v61 }
0x12b5   : > { %v12610_v44 = vpop.permute.xlu0 %6961 }
0x12b6   : > { %14234 = vst [vmem:[#allocation40_spill] sm:$0xff] %v12610_v44 }
0x12b7   : > { %v12612_v43 = vpop.permute.xlu1 %6966 }
0x12b8   : > { %14235 = vst [vmem:[#allocation43_spill] sm:$0xff] %v12612_v43  ;;  %v9947_v43 = vld [vmem:[%s13881_s25] sm:$0xff]  }
0x12b9   : > { %v12614_v42 = vpop.permute.xlu0 %7086  ;;  %9667 = vmatprep.subr.bf16.mxu0 %v9947_v43 }
0x12ba   : > { %14236 = vst [vmem:[#allocation42_spill] sm:$0xff] %v12614_v42  ;;  %9668 = vmatpush3.bf16.msra.mxu0 %v9947_v43  ;;  %v12637_v42 = vld [vmem:[%s13881_s25 + $0x10] sm:$0xff]  }
0x12bb   : > { %v12616_v46 = vpop.permute.xlu1 %7091  ;;  %9677 = vmatprep.subr.bf16.mxu1 %v12637_v42  ;;  %9687 = vmatprep.subr.bf16.mxu0 %v12647_v34 }
0x12bc   : > { %14237 = vst [vmem:[#allocation37_spill] sm:$0xff] %v12616_v46 }
0x12bd   : > { %v12618_v23 = vpop.permute.xlu0 %7096 }
0x12bf   : > { %v12623_v7 = vpop.permute.xlu1 %7101 }
0x12c1   : > { %v12625_v11 = vpop.permute.xlu0 %7241 }
0x12c2   : > { %14238 = vst [vmem:[#allocation36_spill] sm:$0xff] %v12625_v11 }
0x12c3   : > { %v12630_v44 = vpop.permute.xlu1 %7246 }
0x12c5   : > { %v12632_v46 = vpop.permute.xlu0 %7251 }
0x12c6   : > { %14239 = vst [vmem:[#allocation45_spill] sm:$0xff] %v12632_v46 }
0x12c7   : > { %v12639_v61 = vpop.permute.xlu1 %7256 }
0x12c8   : > { %14240 = vst [vmem:[#allocation44_spill] sm:$0xff] %v12639_v61 }
0x12c9   : > { %v12641_v11 = vpop.permute.xlu0 %7106 }
0x12ca   : > { %14241 = vst [vmem:[#allocation73_spill] sm:$0xff] %v12641_v11 }
0x12cb   : > { %v12650_v43 = vpop.permute.xlu1 %7111 }
0x12cc   : > { %14242 = vst [vmem:[#allocation47_spill] sm:$0xff] %v12650_v43 }
0x12cd   : > { %v12652_v46 = vpop.permute.xlu0 %7116 }
0x12ce   : > { %14243 = vst [vmem:[#allocation46_spill] sm:$0xff] %v12652_v46 }
0x12cf   : > { %v12654_v40 = vpop.permute.xlu1 %7121 }
0x12d0   : > { %14244 = vst [vmem:[#allocation72_spill] sm:$0xff] %v12654_v40 }
0x12d1   : > { %v12656_v28 = vpop.permute.xlu0 %7261 }
0x12d2   : > { %14245 = vst [vmem:[#allocation49_spill] sm:$0xff] %v12656_v28 }
0x12d3   : > { %v12658_v61 = vpop.permute.xlu1 %7266 }
0x12d4   : > { %14246 = vst [vmem:[#allocation48_spill] sm:$0xff] %v12658_v61 }
0x12d5   : > { %v12660_v11 = vpop.permute.xlu0 %7271 }
0x12d6   : > { %14247 = vst [vmem:[#allocation55_spill] sm:$0xff] %v12660_v11 }
0x12d7   : > { %v7277_v53 = vpop.permute.xlu1 %7276 }
0x12d9   : > { %v12662_v21 = vpop.permute.xlu0 %7396 }
0x12da   : > { %14248 = vst [vmem:[#allocation54_spill] sm:$0xff] %v12662_v21 }
0x12db   : > { %v12664_v56 = vpop.permute.xlu1 %7401 }
0x12dc   : > { %14249 = vst [vmem:[#allocation51_spill] sm:$0xff] %v12664_v56 }
0x12dd   : > { %v12666_v27 = vpop.permute.xlu0 %7406 }
0x12de   : > { %14250 = vst [vmem:[#allocation50_spill] sm:$0xff] %v12666_v27 }
0x12df   : > { %v12668_v10 = vpop.permute.xlu1 %7411 }
0x12e0   : > { %14251 = vst [vmem:[#allocation57_spill] sm:$0xff] %v12668_v10 }
0x12e1   : > { %v12670_v43 = vpop.permute.xlu0 %7551 }
0x12e2   : > { %14252 = vst [vmem:[#allocation56_spill] sm:$0xff] %v12670_v43 }
0x12e3   : > { %v12672_v46 = vpop.permute.xlu1 %7556 }
0x12e4   : > { %14253 = vst [vmem:[#allocation63_spill] sm:$0xff] %v12672_v46 }
0x12e5   : > { %v12674_v40 = vpop.permute.xlu0 %7561 }
0x12e6   : > { %14254 = vst [vmem:[#allocation62_spill] sm:$0xff] %v12674_v40 }
0x12e7   : > { %v12676_v28 = vpop.permute.xlu1 %7566 }
0x12e8   : > { %14255 = vst [vmem:[#allocation53_spill] sm:$0xff] %v12676_v28 }
0x12e9   : > { %v12678_v61 = vpop.permute.xlu0 %7416 }
0x12ea   : > { %14256 = vst [vmem:[#allocation52_spill] sm:$0xff] %v12678_v61 }
0x12eb   : > { %v12680_v11 = vpop.permute.xlu1 %7421 }
0x12ec   : > { %14257 = vst [vmem:[#allocation59_spill] sm:$0xff] %v12680_v11 }
0x12ed   : > { %v12682_v48 = vpop.permute.xlu0 %7426 }
0x12ee   : > { %14258 = vst [vmem:[#allocation58_spill] sm:$0xff] %v12682_v48 }
0x12ef   : > { %v12684_v21 = vpop.permute.xlu1 %7431 }
0x12f0   : > { %14259 = vst [vmem:[#allocation65_spill] sm:$0xff] %v12684_v21 }
0x12f1   : > { %v12686_v56 = vpop.permute.xlu0 %7571 }
0x12f2   : > { %14260 = vst [vmem:[#allocation64_spill] sm:$0xff] %v12686_v56 }
0x12f3   : > { %v12688_v49 = vpop.permute.xlu1 %7576 }
0x12f4   : > { %14261 = vst [vmem:[#allocation71_spill] sm:$0xff] %v12688_v49 }
0x12f5   : > { %v12690_v24 = vpop.permute.xlu0 %7581 }
0x12f6   : > { %14262 = vst [vmem:[#allocation70_spill] sm:$0xff] %v12690_v24 }
0x12f7   : > { %v12692_v43 = vpop.permute.xlu1 %7586 }
0x12f8   : > { %14263 = vst [vmem:[#allocation61_spill] sm:$0xff] %v12692_v43 }
0x12f9   : > { %v12694_v46 = vpop.permute.xlu0 %7706 }
0x12fa   : > { %14264 = vst [vmem:[#allocation60_spill] sm:$0xff] %v12694_v46 }
0x12fb   : > { %v12696_v40 = vpop.permute.xlu1 %7711 }
0x12fc   : > { %14265 = vst [vmem:[#allocation67_spill] sm:$0xff] %v12696_v40 }
0x12fd   : > { %v12698_v28 = vpop.permute.xlu0 %7716 }
0x12ff   : > { %v12700_v61 = vpop.permute.xlu1 %7721 }
0x1301   : > { %v12702_v11 = vpop.permute.xlu0 %7861 }
0x1302   : > { %14266 = vst [vmem:[#allocation66_spill] sm:$0xff] %v12702_v11 }
0x1303   : > { %v12704_v48 = vpop.permute.xlu1 %7866 }
0x1304   : > { %14267 = vst [vmem:[#allocation69_spill] sm:$0xff] %v12704_v48 }
0x1305   : > { %v12706_v21 = vpop.permute.xlu0 %7871 }
0x1306   : > { %14268 = vst [vmem:[#allocation68_spill] sm:$0xff] %v12706_v21 }
0x1307   : > { %v12708_v56 = vpop.permute.xlu1 %7876 }
0x1308   : > { %14269 = vst [vmem:[#allocation75_spill] sm:$0xff] %v12708_v56 }
0x1309   : > { %v12710_v49 = vpop.permute.xlu0 %7726 }
0x130a   : > { %14270 = vst [vmem:[#allocation74_spill] sm:$0xff] %v12710_v49 }
0x130b   : > { %v12712_v24 = vpop.permute.xlu1 %7731 }
0x130c   : > { %14271 = vst [vmem:[#allocation77_spill] sm:$0xff] %v12712_v24 }
0x130d   : > { %v12714_v46 = vpop.permute.xlu0 %7736 }
0x130e   : > { %14272 = vst [vmem:[#allocation76_spill] sm:$0xff] %v12714_v46 }
0x130f   : > { %v12729_v10 = vpop.permute.xlu1 %7741 }
0x1310   : > { %14273 = vst [vmem:[#allocation80_spill] sm:$0xff] %v12729_v10 }
0x1358   : > { %v9651_v43 = vpop.f32.mrf.mxu0 }
0x1359   : > { %v5832_v40 = vadd.f32 %v9651_v43, %v12514_v39  ;;  %v12731_v43 = vpop.permute.xlu0 %7881 }
0x135a   : > { %v5799_v11 = vpop.f32.mrf.mxu0 }
0x135b   : > { %v5840_v48 = vadd.f32 %v5832_v40, %v11616_v25  ;;  %v5830_v21 = vadd.f32 %v5799_v11, %v12520_v5 }
0x135c   : > { %v9652_v56 = vpop.f32.mrf.mxu0 }
0x135d   : > { %v12725_v49 = vadd.f32 %v12720_v0, %v5840_v48  ;;  %v5838_v24 = vadd.f32 %v5830_v21, %v11614_v6  ;;  %v5833_v46 = vadd.f32 %v9652_v56, %v12524_v30  ;;  %v12778_v56 = vpop.permute.xlu0 %7891 }
0x135e   : > { %v5802_v39 = vpop.f32.mrf.mxu0  ;;  %14275 = vst [vmem:[#allocation81_spill] sm:$0xff] %v12778_v56 }
0x135f   : > { %v5863_v1 = vrot.slane %v12725_v49, 7  ;;  %v12735_v27 = vadd.f32 %v12720_v0, %v5838_v24  ;;  %v5841_v25 = vadd.f32 %v5833_v46, %v11622_v55  ;;  %v5831_v5 = vadd.f32 %v5802_v39, %v12528_v60 }
0x1360   : > { %v9655_v48 = vpop.f32.mrf.mxu0  ;;  %v12741_v6 = vmul.f32 %v12381_v16, %v12725_v49  ;;  %v12747_v11 = vmul.f32 %v12630_v44, %v12725_v49 }
0x1361   : > { %v12750_v24 = vadd.f32 %v12720_v0, %v5841_v25  ;;  %v5839_v55 = vadd.f32 %v5831_v5, %v11618_v38  ;;  %v5836_v60 = vadd.f32 %v9655_v48, %v12536_v13  ;;  %v12756_v46 = vmul.f32 %v12368_v17, %v12735_v27  ;;  %v12770_v5 = vpop.permute.xlu1 %7886  ;;  %v14276_v38 = vld [vmem:[#allocation12_spill] sm:$0xff] }
0x1362   : > { %14274 = vst [vmem:[#allocation13_spill] sm:$0xff] %v12747_v11  ;;  %v5815_v16 = vpop.f32.mrf.mxu0  ;;  %v5861_v40 = vrot.slane %v12735_v27, 7  ;;  %v12762_v44 = vmul.f32 %v7277_v53, %v12735_v27  ;;  %vm6348_vm10 = vcmp.lt.s32.totalorder %v14276_v38, 6 }
0x1363   : > { %v12767_v13 = vadd.f32 %v12720_v0, %v5839_v55  ;;  %v5844_v17 = vadd.f32 %v5836_v60, %v11632_v47  ;;  %v5834_v48 = vadd.f32 %v5815_v16, %v12540_v2  ;;  %v5992_v39 = vmul.f32 %v12433_v29, %v12750_v24 }
0x1364   : > { %v9656_v21 = vpop.f32.mrf.mxu0  ;;  %v5864_v53 = vrot.slane %v12750_v24, 7 }
0x1365   : > { %v12781_v55 = vadd.f32 %v12720_v0, %v5844_v17  ;;  %v5837_v47 = vadd.f32 %v9656_v21, %v12544_v41  ;;  %v5990_v60 = vmul.f32 %v12392_v12, %v12767_v13  ;;  %v5862_v2 = vrot.slane %v12767_v13, 7 }
0x1366   : > { %v5842_v16 = vadd.f32 %v5834_v48, %v11628_v57  ;;  %v5818_v29 = vpop.f32.mrf.mxu0  ;;  %v12790_v30 = vsel %vm1263_vm5, %v5863_v1, %v5864_v53  ;;  %v6170_v25 = vrot.slane %v12767_v13, 1  ;;  %v6341_v56 = vrot.slane %v12767_v13, 2 }
0x1367   : > { %v5845_v17 = vadd.f32 %v5837_v47, %v11638_v19  ;;  %v5835_v41 = vadd.f32 %v5818_v29, %v12550_v35  ;;  %v5997_v21 = vpack.c.bf16 %v12741_v6, %v5990_v60  ;;  %v5867_v12 = vrot.slane %v12781_v55, 7 }
0x1368   : > { %v12799_v10 = vadd.f32 %v12720_v0, %v5842_v16  ;;  %v12803_v57 = vsel %vm1263_vm5, %v5861_v40, %v5862_v2  ;;  %v12807_v48 = vsel %vm1263_vm5, %v5862_v2, %v5863_v1  ;;  %v5929_v19 = vmul.f32 %v12459_v63, %v12790_v30  ;;  %v12820_v16 = vpop.permute.xlu1 %7896 }
0x1369   : > { %v12812_v35 = vadd.f32 %v12720_v0, %v5845_v17  ;;  %v5843_v6 = vadd.f32 %v5835_v41, %v11636_v9  ;;  %v5927_v47 = vmul.f32 %v12423_v33, %v12803_v57  ;;  %v5928_v60 = vmul.f32 %v12412_v32, %v12807_v48  ;;  %14277 = vst [vmem:[#allocation12_spill] sm:$0xff] %v12820_v16  ;;  %v12833_v33 = vpop.permute.xlu0 %8016 }
0x136a   : > { %v5993_v1 = vmul.f32 %v12425_v62, %v12799_v10  ;;  %v5865_v63 = vrot.slane %v12799_v10, 7  ;;  %v12827_v2 = vmul.f32 %v12568_v36, %v12807_v48  ;;  %v12831_v9 = vmul.f32 %v12570_v3, %v12790_v30  ;;  %v14298_v3 = vld [vmem:[#allocation78_spill] sm:$0xff] }
0x136b   : > { %v12836_v32 = vadd.f32 %v12720_v0, %v5843_v6  ;;  %v5988_v29 = vmul.f32 %v12376_v31, %v12812_v35  ;;  %v5868_v62 = vrot.slane %v12812_v35, 7  ;;  %v5934_v17 = vpack.c.bf16 %v5928_v60, %v5927_v47 }
0x136c   : > { %v5998_v41 = vpack.c.bf16 %v5993_v1, %v5992_v39  ;;  %v12843_v36 = vsel %vm1263_vm5, %v5864_v53, %v5865_v63  ;;  %v12849_v16 = vmul.f32 %v12618_v23, %v12790_v30  ;;  %v12885_v60 = vpop.permute.xlu1 %8021 }
0x136d   : > { %v5996_v0 = vpack.c.bf16 %v12756_v46, %v5988_v29  ;;  %v12854_v31 = vsel %vm1263_vm5, %v5867_v12, %v5868_v62  ;;  %v12858_v39 = vsel %vm1263_vm5, %v5868_v62, %v5861_v40  ;;  %v5930_v53 = vmul.f32 %v12451_v51, %v12843_v36  ;;  %v12877_v40 = vld [vmem:[%s13881_s25 + $0x20] sm:$0xff]   ;;  %v8027_v62 = vpop.permute.xlu0 %8026 }
0x136e   : > { %14278 = vst [vmem:[#allocation82_spill] sm:$0xff] %v12849_v16  ;;  %v5925_v6 = vmul.f32 %v12407_v52, %v12854_v31  ;;  %v5926_v23 = vmul.f32 %v12394_v54, %v12858_v39  ;;  %v12868_v46 = vmul.f32 %v12623_v7, %v12843_v36  ;;  %v12872_v47 = vmul.f32 %v12698_v28, %v12843_v36 }
0x136f   : > { %9659 = vmatprep.mubr.msk.bf16.mxu1 %vm2603_vm6, %v5996_v0  ;;  %v5935_v51 = vpack.c.bf16 %v5930_v53, %v5929_v19  ;;  %v5994_v52 = vmul.f32 %v12449_v37, %v12836_v32  ;;  %v5995_v54 = vmul.f32 %v12438_v4, %v12781_v55  ;;  %v13970_v7 = vrot.slane %v12812_v35, 1 }
0x1370   : > { %14279 = vst [vmem:[#allocation83_spill] sm:$0xff] %v12868_v46  ;;  %9660 = vmatmul.mubr.msk.bf16.vlgmr.msra.gmra.mxu1 %vm2603_vm6, %v5997_v21  ;;  %v5933_v28 = vpack.c.bf16 %v5926_v23, %v5925_v6  ;;  %v14280_v29 = vrot.slane %v12725_v49, 1  ;;  %v14281_v37 = vrot.slane %v12735_v27, 1  ;;  %v13969_v23 = vrot.slane %v12812_v35, 2 }
0x1371   : > { %9663 = vmatprep.mubr.msk.bf16.mxu1 %vm2603_vm6, %v5998_v41  ;;  %9678 = vmatpush3.bf16.msra.mxu1 %v12637_v42  ;;  %v5999_v21 = vpack.c.bf16 %v5995_v54, %v5994_v52  ;;  %v12918_v41 = vld [vmem:[%s13881_s25 + $0x28] sm:$0xff]   ;;  %v14283_v52 = vrot.slane %v12725_v49, 2  ;;  %v6175_v16 = vrot.slane %v12781_v55, 1 }
0x1372   : > { %v12894_v19 = vsel %vm1565_vm4, %v6170_v25, %v14280_v29  ;;  %v12900_v4 = vsel %vm1565_vm4, %v14281_v37, %v6170_v25  ;;  %v14282_v0 = vmov %v14281_v37  ;;  %v5866_v25 = vrot.slane %v12836_v32, 7  ;;  %9669 = vmatprep.mubr.msk.bf16.mxu0 %vm2603_vm6, %v5933_v28  ;;  %9697 = vmatprep.subr.bf16.mxu1 %v12877_v40 }
0x1373   : > { %v12910_v53 = vsel %vm1565_vm4, %v13970_v7, %v14282_v0  ;;  %v6235_v6 = vmul.f32 %v12477_v22, %v12900_v4  ;;  %v12928_v54 = vsel %vm6348_vm10, %v6341_v56, %v14283_v52  ;;  %v14284_v22 = vrot.slane %v12735_v27, 2  ;;  %9670 = vmatmul.mubr.msk.bf16.vlgmr.msra.gmra.mxu0 %vm2603_vm6, %v5934_v17  ;;  %v14300_v7 = vld [vmem:[#allocation32_spill] sm:$0xff] }
0x1374   : > { %v6234_v42 = vmul.f32 %v12485_v50, %v12910_v53  ;;  %v12940_v50 = vsel %vm1263_vm5, %v5866_v25, %v5867_v12  ;;  %v12944_v28 = vsel %vm1263_vm5, %v5865_v63, %v5866_v25  ;;  %v14285_v0 = vrot.slane %v12750_v24, 1  ;;  %9673 = vmatprep.mubr.msk.bf16.mxu0 %vm2603_vm6, %v5935_v51  ;;  %9688 = vmatpush3.bf16.msra.mxu0 %v12647_v34  ;;  %v8032_v51 = vpop.permute.xlu1 %8031 }
0x1375   : > { %v12934_v29 = vsel %vm6348_vm10, %v14284_v22, %v6341_v56  ;;  %v14286_v56 = vrot.slane %v12725_v49, 1  ;;  %v5931_v63 = vmul.f32 %v12475_v58, %v12944_v28  ;;  %v5932_v17 = vmul.f32 %v12464_v59, %v12940_v50  ;;  %9707 = vmatprep.subr.bf16.mxu0 %v12918_v41 }
0x1376   : > { %v6407_v37 = vmul.f32 %v12503_v8, %v12934_v29  ;;  %v6242_v12 = vpack.c.bf16 %v6235_v6, %v6234_v42  ;;  %v6173_v8 = vrot.slane %v12799_v10, 1  ;;  %v12965_v25 = vmul.f32 %v12700_v61, %v12944_v28 }
0x1377   : > { %v12954_v52 = vsel %vm1565_vm4, %v14286_v56, %v14285_v0  ;;  %v12973_v34 = vsel %vm6348_vm10, %v13969_v23, %v14284_v22  ;;  %v6236_v58 = vmul.f32 %v12501_v18, %v12894_v19  ;;  %v5936_v6 = vpack.c.bf16 %v5932_v17, %v5931_v63  ;;  %v12989_v22 = vpop.permute.xlu0 %8171 }
0x1378   : > { %v6237_v59 = vmul.f32 %v12490_v14, %v12954_v52  ;;  %v6406_v61 = vmul.f32 %v12508_v45, %v12973_v34  ;;  %v6174_v42 = vrot.slane %v12836_v32, 1  ;;  %v12987_v56 = vsel %vm1565_vm4, %v14285_v0, %v6173_v8  ;;  %14287 = vst [vmem:[#allocation84_spill] sm:$0xff] %v12989_v22  ;;  %9664 = vmatmul.mubr.msk.bf16.gmra.mxu1 %vm2603_vm6, %v5999_v21  ;;  %v14318_v22 = vld [vmem:[#allocation24_spill] sm:$0xff] }
0x1379   : > { %v6238_v14 = vmul.f32 %v12534_v15, %v12987_v56  ;;  %v12995_v63 = vmul.f32 %v12586_v26, %v12954_v52  ;;  %v12999_v45 = vmul.f32 %v12588_v20, %v12987_v56  ;;  %v14292_v15 = vrot.slane %v12750_v24, 2  ;;  %9679 = vmatprep.mubr.msk.bf16.mxu1 %vm2603_vm6, %v6242_v12  ;;  %v14294_v20 = vld [vmem:[#allocation17_spill] sm:$0xff] }
0x137a   : > { %v6243_v18 = vpack.c.bf16 %v6237_v59, %v6236_v58  ;;  %v6414_v17 = vpack.c.bf16 %v6407_v37, %v6406_v61  ;;  %v13004_v0 = vsel %vm1565_vm4, %v6173_v8, %v6174_v42  ;;  %v14290_v58 = vld [vmem:[#allocation50_spill] sm:$0xff]  ;;  %v14293_v26 = vrot.slane %v12725_v49, 2  ;;  %v14295_v8 = vld [vmem:[#allocation57_spill] sm:$0xff] }
0x137b   : > { %14288 = vst [vmem:[#allocation85_spill] sm:$0xff] %v12995_v63  ;;  %14289 = vst [vmem:[#allocation86_spill] sm:$0xff] %v12999_v45  ;;  %v13008_v59 = vmul.f32 %v14290_v58, %v12987_v56  ;;  %v6239_v21 = vmul.f32 %v14294_v20, %v13004_v0  ;;  %v13025_v61 = vmul.f32 %v14295_v8, %v13004_v0  ;;  %v6344_v12 = vrot.slane %v12799_v10, 2  ;;  %v8182_v8 = vpop.permute.xlu0 %8181  ;;  %v14307_v63 = vld [vmem:[#allocation19_spill] sm:$0xff] }
0x137c   : > { %v13016_v1 = vsel %vm6348_vm10, %v14293_v26, %v14292_v15  ;;  %v13028_v58 = vmul.f32 %v8027_v62, %v13004_v0  ;;  %v6408_v23 = vmul.f32 %v14298_v3, %v12928_v54  ;;  %v14299_v15 = vld [vmem:[#allocation79_spill] sm:$0xff]  ;;  %v6345_v20 = vrot.slane %v12836_v32, 2  ;;  %9674 = vmatmul.mubr.msk.bf16.gmra.mxu0 %vm2603_vm6, %v5936_v6  ;;  %v13044_v3 = vpop.permute.xlu1 %8176 }
0x137d   : > { %14291 = vst [vmem:[#allocation50_spill] sm:$0xff] %v13008_v59  ;;  %14296 = vst [vmem:[#allocation17_spill] sm:$0xff] %v13025_v61  ;;  %v6409_v26 = vmul.f32 %v14299_v15, %v13016_v1  ;;  %v6244_v37 = vpack.c.bf16 %v6239_v21, %v6238_v14  ;;  %v13041_v62 = vmul.f32 %v14300_v7, %v13016_v1  ;;  %9689 = vmatprep.mubr.msk.bf16.mxu0 %vm2603_vm6, %v6414_v17  ;;  %v14305_v21 = vld [vmem:[#allocation22_spill] sm:$0xff]  ;;  %v14306_v59 = vld [vmem:[#allocation16_spill] sm:$0xff] }
0x137e   : > { %14297 = vst [vmem:[#allocation57_spill] sm:$0xff] %v13028_v58  ;;  %14302 = vst [vmem:[#allocation79_spill] sm:$0xff] %v13044_v3  ;;  %v6351_v46 = vsel %vm6348_vm10, %v6344_v12, %v6345_v20  ;;  %v14303_v6 = vrot.slane %v12750_v24, 2  ;;  %v6561_v7 = vmul.f32 %v14305_v21, %v12858_v39  ;;  %v14312_v3 = vld [vmem:[#allocation53_spill] sm:$0xff]  ;;  %v14315_v21 = vrot.slane %v12812_v35, 1 }
0x137f   : > { %14301 = vst [vmem:[#allocation78_spill] sm:$0xff] %v13041_v62  ;;  %v6415_v15 = vpack.c.bf16 %v6409_v26, %v6408_v23  ;;  %v6411_v45 = vmul.f32 %v14307_v63, %v6351_v46  ;;  %v14308_v23 = vld [vmem:[#allocation39_spill] sm:$0xff]  ;;  %v14310_v26 = vld [vmem:[#allocation62_spill] sm:$0xff]  ;;  %v13081_v63 = vsel %vm1565_vm4, %v6174_v42, %v6175_v16 }
0x1380   : > { %v13053_v14 = vsel %vm6348_vm10, %v14303_v6, %v6344_v12  ;;  %v13069_v12 = vmul.f32 %v14312_v3, %v6351_v46  ;;  %v13071_v6 = vmul.f32 %v8182_v8, %v6351_v46  ;;  %v14316_v3 = vld [vmem:[#allocation15_spill] sm:$0xff]  ;;  %9680 = vmatmul.mubr.msk.bf16.vlgmr.msra.gmra.mxu1 %vm2603_vm6, %v6243_v18  ;;  %v13098_v42 = vmul.f32 %v8032_v51, %v13081_v63 }
0x1381   : > { %14304 = vst [vmem:[#allocation32_spill] sm:$0xff] %v13053_v14  ;;  %v6410_v61 = vmul.f32 %v14306_v59, %v13053_v14  ;;  %v13062_v17 = vmul.f32 %v14308_v23, %v13053_v14  ;;  %v13066_v58 = vmul.f32 %v14310_v26, %v13053_v14  ;;  %v13077_v59 = vsel %vm1565_vm4, %v6175_v16, %v14315_v21  ;;  %v13086_v23 = vld [vmem:[%s13881_s25 + $0x30] sm:$0xff]   ;;  %v14319_v18 = vld [vmem:[#allocation23_spill] sm:$0xff] }
0x1382   : > { %14313 = vst [vmem:[#allocation19_spill] sm:$0xff] %v13069_v12  ;;  %14314 = vst [vmem:[#allocation39_spill] sm:$0xff] %v13071_v6  ;;  %v6240_v6 = vmul.f32 %v14316_v3, %v13081_v63  ;;  %v14317_v14 = vld [vmem:[#allocation14_spill] sm:$0xff]  ;;  %9683 = vmatprep.mubr.msk.bf16.mxu1 %vm2603_vm6, %v6244_v37  ;;  %9698 = vmatpush3.bf16.msra.mxu1 %v12877_v40  ;;  %v13109_v8 = vmul.f32 %v14319_v18, %v12843_v36  ;;  %v13114_v51 = vld [vmem:[%s13881_s25 + $0x38] sm:$0xff]  }
0x1383   : > { %14309 = vst [vmem:[#allocation22_spill] sm:$0xff] %v13062_v17  ;;  %14311 = vst [vmem:[#allocation16_spill] sm:$0xff] %v13066_v58  ;;  %v6416_v26 = vpack.c.bf16 %v6411_v45, %v6410_v61  ;;  %v6241_v21 = vmul.f32 %v14317_v14, %v13077_v59  ;;  %v6562_v45 = vmul.f32 %v14318_v22, %v12803_v57  ;;  %v6346_v61 = vrot.slane %v12781_v55, 2  ;;  %v8187_v22 = vpop.permute.xlu1 %8186  ;;  %v14321_v36 = vld [vmem:[#allocation31_spill] sm:$0xff] }
0x1384   : > { %v6667_v14 = vpack.c.bf16 %v12767_v13, %v12735_v27  ;;  %v14320_v58 = vrot.slane %v12812_v35, 2  ;;  %9717 = vmatprep.subr.bf16.mxu1 %v13086_v23  ;;  %9690 = vmatmul.mubr.msk.bf16.vlgmr.msra.gmra.mxu0 %vm2603_vm6, %v6415_v15  ;;  %v14325_v15 = vld [vmem:[#allocation30_spill] sm:$0xff] }
0x1385   : > { %v6245_v3 = vpack.c.bf16 %v6241_v21, %v6240_v6  ;;  %v6569_v16 = vpack.c.bf16 %v6562_v45, %v6561_v7  ;;  %v13124_v37 = vsel %vm6348_vm10, %v6345_v20, %v6346_v61  ;;  %v13128_v6 = vmul.f32 %v14321_v36, %v12944_v28  ;;  %v14322_v7 = vld [vmem:[#allocation18_spill] sm:$0xff]  ;;  %v14323_v45 = vld [vmem:[#allocation25_spill] sm:$0xff]  ;;  %9693 = vmatprep.mubr.msk.bf16.mxu0 %vm2603_vm6, %v6416_v26  ;;  %v14326_v36 = vld [vmem:[#allocation20_spill] sm:$0xff] }
0x1386   : > { %v13120_v40 = vsel %vm6348_vm10, %v6346_v61, %v14320_v58  ;;  %v6412_v21 = vmul.f32 %v14322_v7, %v13124_v37  ;;  %v13137_v58 = vmul.f32 %v8187_v22, %v13124_v37  ;;  %9708 = vmatpush3.bf16.msra.mxu0 %v12918_v41  ;;  %v13147_v61 = vmul.f32 %v14325_v15, %v12940_v50  ;;  %v14328_v41 = vld [vmem:[#allocation27_spill] sm:$0xff]  ;;  %v14329_v15 = vld [vmem:[#allocation26_spill] sm:$0xff] }
0x1387   : > { %v6413_v18 = vmul.f32 %v14323_v45, %v13120_v40  ;;  %v6571_v20 = vpack.c.bf16 %v13128_v6, %v13109_v8  ;;  %v13151_v7 = vmul.f32 %v14326_v36, %v12854_v31  ;;  %9727 = vmatprep.subr.bf16.mxu0 %v13114_v51  ;;  %v14327_v45 = vld [vmem:[#allocation21_spill] sm:$0xff]  ;;  %v13160_v26 = vmul.f32 %v14328_v41, %v12894_v19  ;;  %v14337_v6 = vld [vmem:[#allocation34_spill] sm:$0xff]  ;;  %v14343_v41 = vld [vmem:[#allocation35_spill] sm:$0xff] }
0x1388   : > { %14324 = vst [vmem:[#allocation62_spill] sm:$0xff] %v13137_v58  ;;  %v13156_v38 = vmul.f32 %v14327_v45, %v12900_v4  ;;  %v13168_v36 = vmul.f32 %v14329_v15, %v12934_v29  ;;  %v14333_v45 = vld [vmem:[#allocation38_spill] sm:$0xff]  ;;  %v14335_v8 = vld [vmem:[#allocation29_spill] sm:$0xff]  ;;  %v13185_v17 = vmul.f32 %v14337_v6, %v6351_v46  ;;  %9684 = vmatmul.mubr.msk.bf16.gmra.mxu1 %vm2603_vm6, %v6245_v3  ;;  %v14350_v3 = vld [vmem:[#allocation43_spill] sm:$0xff] }
0x1389   : > { %v6417_v22 = vpack.c.bf16 %v6413_v18, %v6412_v21  ;;  %v14331_v21 = vld [vmem:[#allocation33_spill] sm:$0xff]  ;;  %v13176_v12 = vmul.f32 %v14333_v45, %v13004_v0  ;;  %v13182_v62 = vmul.f32 %v14335_v8, %v13081_v63  ;;  %v13200_v8 = vmul.f32 %v14343_v41, %v12910_v53  ;;  %v14345_v46 = vld [vmem:[#allocation42_spill] sm:$0xff]  ;;  %9699 = vmatprep.mubr.msk.bf16.mxu1 %vm2603_vm6, %v6569_v16 }
0x138a   : > { %14330 = vst [vmem:[#allocation53_spill] sm:$0xff] %v13168_v36  ;;  %v13172_v18 = vmul.f32 %v14331_v21, %v12928_v54  ;;  %14338 = vst [vmem:[#allocation23_spill] sm:$0xff] %v13185_v17  ;;  %v14339_v15 = vld [vmem:[#allocation41_spill] sm:$0xff]  ;;  %v14341_v21 = vld [vmem:[#allocation28_spill] sm:$0xff]  ;;  %v13204_v6 = vmul.f32 %v14345_v46, %v12803_v57  ;;  %v13221_v46 = vpop.permute.xlu0 %8036 }
0x138b   : > { %14334 = vst [vmem:[#allocation14_spill] sm:$0xff] %v13176_v12  ;;  %14336 = vst [vmem:[#allocation24_spill] sm:$0xff] %v13182_v62  ;;  %v13189_v58 = vmul.f32 %v14339_v15, %v13124_v37  ;;  %v13196_v45 = vmul.f32 %v14341_v21, %v13077_v59  ;;  %v14347_v0 = vld [vmem:[#allocation37_spill] sm:$0xff]  ;;  %v14348_v36 = vld [vmem:[#allocation40_spill] sm:$0xff]  ;;  %v13227_v12 = vmul.f32 %v14350_v3, %v12973_v34 }
0x138c   : > { %14332 = vst [vmem:[#allocation15_spill] sm:$0xff] %v13172_v18  ;;  %14344 = vst [vmem:[#allocation25_spill] sm:$0xff] %v13200_v8  ;;  %v13213_v21 = vmul.f32 %v14347_v0, %v12807_v48  ;;  %v13217_v41 = vmul.f32 %v14348_v36, %v13120_v40  ;;  %v13219_v18 = vpop.permute.xlu1 %8041  ;;  %v14351_v15 = vld [vmem:[#allocation36_spill] sm:$0xff]  ;;  %v14353_v0 = vld [vmem:[#allocation73_spill] sm:$0xff]  ;;  %9694 = vmatmul.mubr.msk.bf16.gmra.mxu0 %vm2603_vm6, %v6417_v22 }
0x138d   : > { %14340 = vst [vmem:[#allocation31_spill] sm:$0xff] %v13189_v58  ;;  %14342 = vst [vmem:[#allocation18_spill] sm:$0xff] %v13196_v45  ;;  %v13231_v17 = vmul.f32 %v14351_v15, %v12767_v13  ;;  %v13235_v58 = vmul.f32 %v14353_v0, %v12944_v28  ;;  %v14355_v62 = vld [vmem:[#allocation47_spill] sm:$0xff]  ;;  %v14357_v3 = vld [vmem:[#allocation45_spill] sm:$0xff]  ;;  %9709 = vmatprep.mubr.msk.bf16.mxu0 %vm2603_vm6, %v6667_v14 }
0x138e   : > { %14346 = vst [vmem:[#allocation30_spill] sm:$0xff] %v13204_v6  ;;  %14349 = vst [vmem:[#allocation20_spill] sm:$0xff] %v13217_v41  ;;  %v13242_v16 = vmul.f32 %v14355_v62, %v12940_v50  ;;  %v13246_v45 = vmul.f32 %v14357_v3, %v12750_v24  ;;  %v14359_v15 = vld [vmem:[#allocation44_spill] sm:$0xff]  ;;  %v14361_v0 = vld [vmem:[#allocation49_spill] sm:$0xff]  ;;  %v13312_v41 = vpop.permute.xlu0 %8046 }
0x138f   : > { %14352 = vst [vmem:[#allocation21_spill] sm:$0xff] %v13231_v17  ;;  %14354 = vst [vmem:[#allocation27_spill] sm:$0xff] %v13235_v58  ;;  %v13250_v8 = vmul.f32 %v14359_v15, %v12799_v10  ;;  %v13259_v62 = vmul.f32 %v14361_v0, %v12836_v32  ;;  %v14363_v36 = vld [vmem:[#allocation48_spill] sm:$0xff]  ;;  %v14365_v6 = vld [vmem:[#allocation46_spill] sm:$0xff] }
0x1390   : > { %14356 = vst [vmem:[#allocation26_spill] sm:$0xff] %v13242_v16  ;;  %14358 = vst [vmem:[#allocation33_spill] sm:$0xff] %v13246_v45  ;;  %v13263_v3 = vmul.f32 %v14363_v36, %v12781_v55  ;;  %v13271_v28 = vmul.f32 %v14365_v6, %v12854_v31  ;;  %v14367_v22 = vld [vmem:[#allocation72_spill] sm:$0xff]  ;;  %v14368_v15 = vld [vmem:[#allocation54_spill] sm:$0xff] }
0x1391   : > { %14360 = vst [vmem:[#allocation38_spill] sm:$0xff] %v13250_v8  ;;  %14362 = vst [vmem:[#allocation29_spill] sm:$0xff] %v13259_v62  ;;  %v13275_v17 = vmul.f32 %v14367_v22, %v12858_v39  ;;  %v13280_v0 = vld [vmem:[%s13881_s25 + $0x40] sm:$0xff]   ;;  %v13286_v58 = vmul.f32 %v14368_v15, %v12894_v19  ;;  %v14369_v14 = vld [vmem:[#allocation51_spill] sm:$0xff] }
0x1392   : > { %14364 = vst [vmem:[#allocation34_spill] sm:$0xff] %v13263_v3  ;;  %14366 = vst [vmem:[#allocation41_spill] sm:$0xff] %v13271_v28  ;;  %v13290_v6 = vmul.f32 %v14369_v14, %v12954_v52  ;;  %v14370_v45 = vld [vmem:[#allocation55_spill] sm:$0xff]  ;;  %v14371_v16 = vld [vmem:[#allocation56_spill] sm:$0xff]  ;;  %v13310_v14 = vpop.permute.xlu1 %8051 }
0x1393   : > { %v13294_v22 = vmul.f32 %v14370_v45, %v12812_v35  ;;  %v13300_v11 = vmul.f32 %v14371_v16, %v12928_v54  ;;  %v14373_v36 = vld [vmem:[#allocation63_spill] sm:$0xff]  ;;  %v14374_v15 = vld [vmem:[#allocation52_spill] sm:$0xff]  ;;  %v14376_v45 = vpack.c.bf16 %v12831_v9, %v12827_v2  ;;  %v13335_v2 = vld [vmem:[%s13881_s25 + $0x48] sm:$0xff]  }
0x1394   : > { %v13304_v62 = vmul.f32 %v14373_v36, %v13016_v1  ;;  %v13308_v3 = vmul.f32 %v14374_v15, %v13081_v63  ;;  %v14377_v8 = vld [vmem:[#allocation59_spill] sm:$0xff]  ;;  %v14379_v63 = vld [vmem:[#allocation64_spill] sm:$0xff]  ;;  %v14381_v36 = vld [vmem:[#allocation58_spill] sm:$0xff] }
0x1395   : > { %14372 = vst [vmem:[#allocation28_spill] sm:$0xff] %v13300_v11  ;;  %9700 = vmatmul.mubr.msk.bf16.vlgmr.msra.gmra.mxu1 %vm2603_vm6, %v14376_v45  ;;  %v13324_v28 = vmul.f32 %v14377_v8, %v13077_v59  ;;  %v13328_v15 = vmul.f32 %v14379_v63, %v13124_v37  ;;  %v14380_v45 = vld [vmem:[#allocation71_spill] sm:$0xff]  ;;  %v13345_v37 = vmul.f32 %v14381_v36, %v12910_v53  ;;  %v14384_v16 = vld [vmem:[#allocation60_spill] sm:$0xff] }
0x1396   : > { %14375 = vst [vmem:[#allocation35_spill] sm:$0xff] %v13308_v3  ;;  %9703 = vmatprep.mubr.msk.bf16.mxu1 %vm2603_vm6, %v6571_v20  ;;  %9718 = vmatpush3.bf16.msra.mxu1 %v13086_v23  ;;  %v13341_v8 = vmul.f32 %v14380_v45, %v13120_v40  ;;  %v14383_v20 = vld [vmem:[#allocation65_spill] sm:$0xff]  ;;  %v13356_v9 = vmul.f32 %v14384_v16, %v12807_v48  ;;  %v14386_v45 = vld [vmem:[#allocation67_spill] sm:$0xff]  ;;  %v14389_v3 = vld [vmem:[#allocation70_spill] sm:$0xff] }
0x1397   : > { %14378 = vst [vmem:[#allocation42_spill] sm:$0xff] %v13324_v28  ;;  %14382 = vst [vmem:[#allocation37_spill] sm:$0xff] %v13345_v37  ;;  %9737 = vmatprep.subr.bf16.mxu1 %v13280_v0  ;;  %v13352_v63 = vmul.f32 %v14383_v20, %v12900_v4  ;;  %v13360_v11 = vmul.f32 %v14386_v45, %v12790_v30  ;;  %v14388_v36 = vpack.c.bf16 %v12750_v24, %v12725_v49  ;;  %v14390_v28 = vld [vmem:[#allocation61_spill] sm:$0xff]  ;;  %v14391_v16 = vld [vmem:[#allocation66_spill] sm:$0xff] }
0x1398   : > { %14385 = vst [vmem:[#allocation40_spill] sm:$0xff] %v13356_v9  ;;  %v13370_v20 = vmul.f32 %v14389_v3, %v12973_v34  ;;  %v13374_v48 = vmul.f32 %v14390_v28, %v12934_v29  ;;  %v13378_v30 = vmul.f32 %v14391_v16, %v12725_v49  ;;  %v14392_v45 = vpack.c.bf16 %v12836_v32, %v12799_v10  ;;  %v14393_v28 = vld [vmem:[#allocation69_spill] sm:$0xff]  ;;  %v8197_v3 = vpop.permute.xlu1 %8196  ;;  %v8192_v9 = vpop.permute.xlu0 %8191  ;;  %v14397_v49 = vld [vmem:[#allocation75_spill] sm:$0xff] }
0x1399   : > { %14387 = vst [vmem:[#allocation43_spill] sm:$0xff] %v13360_v11  ;;  %9710 = vmatmul.mubr.msk.bf16.vlgmr.msra.gmra.mxu0 %vm2603_vm6, %v14388_v36  ;;  %v13391_v23 = vmul.f32 %v14393_v28, %v12750_v24  ;;  %v14395_v36 = vld [vmem:[#allocation77_spill] sm:$0xff]  ;;  %v14396_v28 = vld [vmem:[#allocation68_spill] sm:$0xff]  ;;  %v13414_v16 = vmul.f32 %v14397_v49, %v12836_v32  ;;  %v14400_v32 = vpack.c.bf16 %v13151_v7, %v13147_v61 }
0x139a   : > { %9713 = vmatprep.mubr.msk.bf16.mxu0 %vm2603_vm6, %v14392_v45  ;;  %9728 = vmatpush3.bf16.msra.mxu0 %v13114_v51  ;;  %v14394_v51 = vld [vmem:[#allocation74_spill] sm:$0xff]  ;;  %v13404_v37 = vmul.f32 %v14395_v36, %v12854_v31  ;;  %v13410_v11 = vmul.f32 %v14396_v28, %v12799_v10  ;;  %v13424_v36 = vmul.f32 %v12770_v5, %v12812_v35  ;;  %v14399_v10 = vld [vmem:[#allocation80_spill] sm:$0xff]  ;;  %v14401_v49 = vld [vmem:[#allocation81_spill] sm:$0xff] }
0x139b   : > { %9747 = vmatprep.subr.bf16.mxu0 %v13335_v2  ;;  %v13400_v45 = vmul.f32 %v14394_v51, %v12940_v50  ;;  %v13418_v50 = vmul.f32 %v12731_v43, %v12781_v55  ;;  %v14398_v51 = vld [vmem:[#allocation76_spill] sm:$0xff]  ;;  %v13432_v28 = vmul.f32 %v14399_v10, %v12803_v57  ;;  %v13442_v5 = vmul.f32 %v12833_v33, %v12954_v52  ;;  %v14412_v33 = vld [vmem:[#allocation53_spill] sm:$0xff] }
0x139c   : > { %v13428_v24 = vmul.f32 %v14398_v51, %v12858_v39  ;;  %v7908_v43 = vpack.c.bf16 %v13414_v16, %v13410_v11  ;;  %v13446_v39 = vmul.f32 %v12885_v60, %v12987_v56  ;;  %v13450_v57 = vmul.f32 %v14401_v49, %v12735_v27  ;;  %v14403_v52 = vld [vmem:[#allocation12_spill] sm:$0xff]  ;;  %v14411_v27 = vld [vmem:[#allocation15_spill] sm:$0xff] }
0x139d   : > { %v7754_v31 = vpack.c.bf16 %v13404_v37, %v13400_v45  ;;  %9704 = vmatmul.mubr.msk.bf16.gmra.mxu1 %vm2603_vm6, %v14400_v32  ;;  %v14402_v61 = vpack.c.bf16 %v13160_v26, %v13156_v38  ;;  %v7909_v7 = vpack.c.bf16 %v13424_v36, %v13418_v50  ;;  %v13462_v51 = vmul.f32 %v14403_v52, %v12767_v13  ;;  %v14404_v60 = vld [vmem:[#allocation84_spill] sm:$0xff]  ;;  %v14406_v26 = vld [vmem:[#allocation79_spill] sm:$0xff]  ;;  %v14407_v32 = vld [vmem:[#allocation57_spill] sm:$0xff] }
0x139e   : > { %v13466_v56 = vmul.f32 %v14404_v60, %v13016_v1  ;;  %v14405_v38 = vld [vmem:[#allocation32_spill] sm:$0xff]  ;;  %v14408_v13 = vpack.c.bf16 %v12812_v35, %v12781_v55  ;;  %v13488_v52 = vmul.f32 %v13219_v18, %v12910_v53  ;;  %v14409_v60 = vld [vmem:[#allocation39_spill] sm:$0xff]  ;;  %v13493_v49 = vmul.f32 %v8192_v9, %v13120_v40 }
0x139f   : > { %9719 = vmatprep.mubr.msk.bf16.mxu1 %vm2603_vm6, %v14402_v61  ;;  %v13472_v10 = vmul.f32 %v14406_v26, %v14405_v38  ;;  %v13478_v61 = vmul.f32 %v13221_v46, %v13077_v59  ;;  %v7910_v1 = vpack.c.bf16 %v13462_v51, %v13450_v57  ;;  %v14410_v38 = vld [vmem:[#allocation62_spill] sm:$0xff]  ;;  %v8207_v59 = vpop.permute.xlu1 %8206  ;;  %v8202_v46 = vpop.permute.xlu0 %8201  ;;  %v14413_v55 = vpack.c.bf16 %v14411_v27, %v14412_v33 }
0x13a0   : > { %v8218_v26 = vpack.c.bf16 %v14410_v38, %v14409_v60  ;;  %v13506_v53 = vmul.f32 %v13312_v41, %v12900_v4  ;;  %v13510_v40 = vmul.f32 %v13310_v14, %v12894_v19  ;;  %v13515_v9 = vmul.f32 %v8202_v46, %v12934_v29  ;;  %v14414_v14 = vld [vmem:[#allocation86_spill] sm:$0xff]  ;;  %v14417_v29 = vld [vmem:[#allocation24_spill] sm:$0xff]  ;;  %v14424_v46 = vld [vmem:[#allocation23_spill] sm:$0xff] }
0x13a1   : > { %9714 = vmatmul.mubr.msk.bf16.gmra.mxu0 %vm2603_vm6, %v14408_v13  ;;  %v8217_v35 = vpack.c.bf16 %v13472_v10, %v13466_v56  ;;  %v13502_v13 = vmul.f32 %v8197_v3, %v12973_v34  ;;  %v8064_v18 = vpack.c.bf16 %v13488_v52, %v13478_v61  ;;  %v8216_v33 = vmul.f32 %v8207_v59, %v12928_v54  ;;  %v9956_v34 = vld [vmem:[%s13881_s25 + $0x50] sm:$0xff]   ;;  %v14415_v3 = vld [vmem:[#allocation85_spill] sm:$0xff]  ;;  %v9957_v10 = vld [vmem:[%s13881_s25 + $0x58] sm:$0xff]  }
0x13a2   : > { %9729 = vmatprep.mubr.msk.bf16.mxu0 %vm2603_vm6, %v14413_v55  ;;  %v8065_v41 = vpack.c.bf16 %v13510_v40, %v13506_v53  ;;  %v14416_v56 = vpack.c.bf16 %v14414_v14, %v14415_v3  ;;  %v14418_v27 = vld [vmem:[#allocation14_spill] sm:$0xff]  ;;  %v14423_v59 = vld [vmem:[#allocation31_spill] sm:$0xff]  ;;  %v14433_v3 = vld [vmem:[#allocation13_spill] sm:$0xff]  ;;  %v14474_v11 = vpack.c.bf16 %v13098_v42, %v14407_v32 }
0x13a3   : > { %v8219_v4 = vpack.c.bf16 %v13502_v13, %v13493_v49  ;;  %v8220_v19 = vpack.c.bf16 %v8216_v33, %v13515_v9  ;;  %v14419_v54 = vpack.c.bf16 %v14417_v29, %v14418_v27  ;;  %v14420_v49 = vld [vmem:[#allocation22_spill] sm:$0xff]  ;;  %v14425_v55 = vpack.c.bf16 %v14423_v59, %v14424_v46  ;;  %v14426_v13 = vld [vmem:[#allocation25_spill] sm:$0xff]  ;;  %v14431_v33 = vld [vmem:[#allocation20_spill] sm:$0xff] }
0x13a4   : > { %v14421_v61 = vld [vmem:[#allocation78_spill] sm:$0xff]  ;;  %v14432_v14 = vpack.c.bf16 %v13227_v12, %v14431_v33  ;;  %v14436_v27 = vld [vmem:[#allocation83_spill] sm:$0xff]  ;;  %v9959_v12 = vld [vmem:[%s13881_s25 + $0x68] sm:$0xff]   ;;  %v14451_v33 = vpack.c.bf16 %v12762_v44, %v13294_v22 }
0x13a5   : > { %9720 = vmatmul.mubr.msk.bf16.vlgmr.msra.gmra.mxu1 %vm2603_vm6, %v14416_v56  ;;  %v14422_v52 = vpack.c.bf16 %v14420_v49, %v14421_v61  ;;  %v14429_v40 = vld [vmem:[#allocation30_spill] sm:$0xff]  ;;  %v14434_v56 = vld [vmem:[#allocation21_spill] sm:$0xff]  ;;  %v14440_v61 = vld [vmem:[#allocation27_spill] sm:$0xff] }
0x13a6   : > { %9723 = vmatprep.mubr.msk.bf16.mxu1 %vm2603_vm6, %v14419_v54  ;;  %9738 = vmatpush3.bf16.msra.mxu1 %v13280_v0  ;;  %v14427_v0 = vld [vmem:[#allocation18_spill] sm:$0xff]  ;;  %v14430_v9 = vpack.c.bf16 %v13213_v21, %v14429_v40  ;;  %v14435_v29 = vpack.c.bf16 %v14433_v3, %v14434_v56  ;;  %v14443_v46 = vld [vmem:[#allocation33_spill] sm:$0xff]  ;;  %v9961_v44 = vld [vmem:[%s13881_s25 + $0x78] sm:$0xff]  }
0x13a7   : > { %9757 = vmatprep.subr.bf16.mxu1 %v9956_v34  ;;  %v14428_v53 = vpack.c.bf16 %v14426_v13, %v14427_v0  ;;  %v14437_v54 = vld [vmem:[#allocation82_spill] sm:$0xff]  ;;  %v14446_v0 = vld [vmem:[#allocation29_spill] sm:$0xff]  ;;  %v14461_v22 = vld [vmem:[#allocation16_spill] sm:$0xff] }
0x13a8   : > { %v14438_v49 = vpack.c.bf16 %v14436_v27, %v14437_v54  ;;  %v14439_v21 = vld [vmem:[#allocation26_spill] sm:$0xff]  ;;  %v14448_v40 = vld [vmem:[#allocation41_spill] sm:$0xff] }
0x13a9   : > { %9730 = vmatmul.mubr.msk.bf16.vlgmr.msra.gmra.mxu0 %vm2603_vm6, %v14422_v52  ;;  %v14441_v52 = vpack.c.bf16 %v14439_v21, %v14440_v61  ;;  %v14442_v59 = vld [vmem:[#allocation38_spill] sm:$0xff]  ;;  %v14464_v21 = vld [vmem:[#allocation37_spill] sm:$0xff]  ;;  %v14466_v61 = vld [vmem:[#allocation43_spill] sm:$0xff] }
0x13aa   : > { %9733 = vmatprep.mubr.msk.bf16.mxu0 %vm2603_vm6, %v14425_v55  ;;  %9748 = vmatpush3.bf16.msra.mxu0 %v13335_v2  ;;  %v9958_v2 = vld [vmem:[%s13881_s25 + $0x60] sm:$0xff]   ;;  %v14444_v55 = vpack.c.bf16 %v14442_v59, %v14443_v46  ;;  %v14445_v13 = vld [vmem:[#allocation34_spill] sm:$0xff]  ;;  %v14469_v46 = vpack.c.bf16 %v13374_v48, %v13370_v20 }
0x13ab   : > { %9767 = vmatprep.subr.bf16.mxu0 %v9957_v10  ;;  %v14455_v56 = vld [vmem:[#allocation50_spill] sm:$0xff] }
0x13ad   : > { %9724 = vmatmul.mubr.msk.bf16.gmra.mxu1 %vm2603_vm6, %v14428_v53  ;;  %v14447_v53 = vpack.c.bf16 %v14445_v13, %v14446_v0 }
0x13ae   : > { %9739 = vmatprep.mubr.msk.bf16.mxu1 %vm2603_vm6, %v14430_v9  ;;  %v14450_v9 = vpack.c.bf16 %v13290_v6, %v13286_v58  ;;  %v14457_v58 = vld [vmem:[#allocation42_spill] sm:$0xff]  ;;  %v14458_v6 = vld [vmem:[#allocation35_spill] sm:$0xff] }
0x13af   : > { %v14459_v27 = vpack.c.bf16 %v14457_v58, %v14458_v6 }
0x13b1   : > { %9734 = vmatmul.mubr.msk.bf16.gmra.mxu0 %vm2603_vm6, %v14432_v14  ;;  %v14452_v14 = vld [vmem:[#allocation28_spill] sm:$0xff] }
0x13b2   : > { %9749 = vmatprep.mubr.msk.bf16.mxu0 %vm2603_vm6, %v14435_v29  ;;  %v14453_v3 = vpack.c.bf16 %v13304_v62, %v14452_v14  ;;  %v14460_v62 = vld [vmem:[#allocation19_spill] sm:$0xff] }
0x13b3   : > { %v14462_v54 = vpack.c.bf16 %v14460_v62, %v14461_v22 }
0x13b5   : > { %9740 = vmatmul.mubr.msk.bf16.vlgmr.msra.gmra.mxu1 %vm2603_vm6, %v14438_v49  ;;  %v14463_v49 = vpack.c.bf16 %v13341_v8, %v13328_v15  ;;  %v14470_v15 = vpack.c.bf16 %v13391_v23, %v13378_v30  ;;  %v14471_v8 = vpack.c.bf16 %v12965_v25, %v12872_v47  ;;  %v14472_v47 = vpack.c.bf16 %v13432_v28, %v13428_v24 }
0x13b6   : > { %9743 = vmatprep.mubr.msk.bf16.mxu1 %vm2603_vm6, %v14441_v52  ;;  %9758 = vmatpush3.bf16.msra.mxu1 %v9956_v34  ;;  %v14449_v34 = vpack.c.bf16 %v13275_v17, %v14448_v40  ;;  %v9960_v17 = vld [vmem:[%s13881_s25 + $0x70] sm:$0xff]   ;;  %v14467_v52 = vld [vmem:[#allocation40_spill] sm:$0xff]  ;;  %v14473_v25 = vpack.c.bf16 %v13446_v39, %v13442_v5 }
0x13b7   : > { %9777 = vmatprep.subr.bf16.mxu1 %v9958_v2  ;;  %v14468_v59 = vpack.c.bf16 %v14466_v61, %v14467_v52 }
0x13b9   : > { %9750 = vmatmul.mubr.msk.bf16.vlgmr.msra.gmra.mxu0 %vm2603_vm6, %v14444_v55 }
0x13ba   : > { %9753 = vmatprep.mubr.msk.bf16.mxu0 %vm2603_vm6, %v14447_v53  ;;  %9768 = vmatpush3.bf16.msra.mxu0 %v9957_v10  ;;  %v14454_v10 = vld [vmem:[#allocation17_spill] sm:$0xff] }
0x13bb   : > { %9787 = vmatprep.subr.bf16.mxu0 %v9959_v12  ;;  %v14456_v29 = vpack.c.bf16 %v14454_v10, %v14455_v56 }
0x13bd   : > { %9744 = vmatmul.mubr.msk.bf16.gmra.mxu1 %vm2603_vm6, %v14449_v34 }
0x13be   : > { %9759 = vmatprep.mubr.msk.bf16.mxu1 %vm2603_vm6, %v14450_v9 }
0x13c1   : > { %9754 = vmatmul.mubr.msk.bf16.gmra.mxu0 %vm2603_vm6, %v14451_v33 }
0x13c2   : > { %9769 = vmatprep.mubr.msk.bf16.mxu0 %vm2603_vm6, %v14453_v3 }
0x13c5   : > { %9760 = vmatmul.mubr.msk.bf16.vlgmr.msra.gmra.mxu1 %vm2603_vm6, %v14456_v29 }
0x13c6   : > { %9763 = vmatprep.mubr.msk.bf16.mxu1 %vm2603_vm6, %v14459_v27  ;;  %9778 = vmatpush3.bf16.msra.mxu1 %v9958_v2  ;;  %v14465_v2 = vpack.c.bf16 %v13352_v63, %v14464_v21 }
0x13c7   : > { %9797 = vmatprep.subr.bf16.mxu1 %v9960_v17 }
0x13c9   : > { %9770 = vmatmul.mubr.msk.bf16.vlgmr.msra.gmra.mxu0 %vm2603_vm6, %v14462_v54 }
0x13ca   : > { %9773 = vmatprep.mubr.msk.bf16.mxu0 %vm2603_vm6, %v14463_v49  ;;  %9788 = vmatpush3.bf16.msra.mxu0 %v9959_v12 }
0x13cb   : > { %9807 = vmatprep.subr.bf16.mxu0 %v9961_v44 }
0x13cd   : > { %9764 = vmatmul.mubr.msk.bf16.gmra.mxu1 %vm2603_vm6, %v14465_v2 }
0x13ce   : > { %9779 = vmatprep.mubr.msk.bf16.mxu1 %vm2603_vm6, %v14468_v59 }
0x13d1   : > { %9774 = vmatmul.mubr.msk.bf16.gmra.mxu0 %vm2603_vm6, %v14469_v46 }
0x13d2   : > { %9789 = vmatprep.mubr.msk.bf16.mxu0 %vm2603_vm6, %v14470_v15 }
0x13d5   : > { %9780 = vmatmul.mubr.msk.bf16.vlgmr.msra.gmra.mxu1 %vm2603_vm6, %v14471_v8 }
0x13d6   : > { %9783 = vmatprep.mubr.msk.bf16.mxu1 %vm2603_vm6, %v7754_v31  ;;  %9798 = vmatpush3.bf16.msra.mxu1 %v9960_v17 }
0x13d9   : > { %9790 = vmatmul.mubr.msk.bf16.vlgmr.msra.gmra.mxu0 %vm2603_vm6, %v7908_v43 }
0x13da   : > { %9793 = vmatprep.mubr.msk.bf16.mxu0 %vm2603_vm6, %v7909_v7  ;;  %9808 = vmatpush3.bf16.msra.mxu0 %v9961_v44 }
0x13dd   : > { %9784 = vmatmul.mubr.msk.bf16.gmra.mxu1 %vm2603_vm6, %v14472_v47 }
0x13de   : > { %9799 = vmatprep.mubr.msk.bf16.mxu1 %vm2603_vm6, %v14473_v25 }
0x13e1   : > { %9794 = vmatmul.mubr.msk.bf16.gmra.mxu0 %vm2603_vm6, %v7910_v1 }
0x13e2   : > { %9809 = vmatprep.mubr.msk.bf16.mxu0 %vm2603_vm6, %v8217_v35  ;;  %v8315_v35 = vld [vmem:[%s13880_s24] sm:$0xff] }
0x13e5   : > { %9800 = vmatmul.mubr.msk.bf16.vlgmr.msra.gmra.mxu1 %vm2603_vm6, %v14474_v11 }
0x13e6   : > { %9803 = vmatprep.mubr.msk.bf16.mxu1 %vm2603_vm6, %v8064_v18 }
0x13e9   : > { %9810 = vmatmul.mubr.msk.bf16.vlgmr.msra.gmra.mxu0 %vm2603_vm6, %v8218_v26 }
0x13ea   : > { %9813 = vmatprep.mubr.msk.bf16.mxu0 %vm2603_vm6, %v8219_v4 }
0x13ed   : > { %9804 = vmatmul.mubr.msk.bf16.gmra.mxu1 %vm2603_vm6, %v8065_v41 }
0x13ee   : > { %9833 = vmatprep.mubr.msk.f32.mxu1 %vm4438_vm8, %v8315_v35 }
0x13f1   : > { %9814 = vmatmul.mubr.msk.bf16.gmra.mxu0 %vm2603_vm6, %v8220_v19 }
0x1430   : > { %v9661_v37 = vpop.f32.mrf.mxu1 }
0x1432   : > { %v6055_v23 = vpop.f32.mrf.mxu1 }
0x1433   : > { %v9671_v63 = vpop.f32.mrf.mxu0 }
0x1434   : > { %v6147_v20 = vadd.f32 %v9671_v63, %v9661_v37  ;;  %v9662_v42 = vpop.f32.mrf.mxu1 }
0x1435   : > { %v6138_v48 = vpop.f32.mrf.mxu0 }
0x1436   : > { %v6139_v30 = vadd.f32 %v6138_v48, %v6055_v23  ;;  %v6058_v16 = vpop.f32.mrf.mxu1 }
0x1437   : > { %v9672_v45 = vpop.f32.mrf.mxu0 }
0x1438   : > { %v6150_v24 = vadd.f32 %v9672_v45, %v9662_v42  ;;  %v9665_v50 = vpop.f32.mrf.mxu1 }
0x1439   : > { %v6141_v31 = vpop.f32.mrf.mxu0 }
0x143a   : > { %v6142_v36 = vadd.f32 %v6141_v31, %v6058_v16  ;;  %v6071_v28 = vpop.f32.mrf.mxu1 }
0x143c   : > { %v9675_v43 = vpop.f32.mrf.mxu0  ;;  %v9666_v39 = vpop.f32.mrf.mxu1 }
0x143d   : > { %v6163_v5 = vadd.f32 %v9675_v43, %v9665_v50 }
0x143e   : > { %v6154_v57 = vpop.f32.mrf.mxu0  ;;  %v6074_v51 = vpop.f32.mrf.mxu1 }
0x143f   : > { %v6155_v7 = vadd.f32 %v6154_v57, %v6071_v28 }
0x1440   : > { %v9676_v32 = vpop.f32.mrf.mxu0  ;;  %v9681_v60 = vpop.f32.mrf.mxu1 }
0x1441   : > { %v6166_v1 = vadd.f32 %v9676_v32, %v9666_v39  ;;  %v6334_v38 = vadd.f32 %v9681_v60, %v6147_v20 }
0x1442   : > { %v6157_v26 = vpop.f32.mrf.mxu0  ;;  %v6301_v4 = vpop.f32.mrf.mxu1 }
0x1443   : > { %v6158_v18 = vadd.f32 %v6157_v26, %v6074_v51  ;;  %v6332_v41 = vadd.f32 %v6301_v4, %v6139_v30 }
0x1444   : > { %v9691_v19 = vpop.f32.mrf.mxu0  ;;  %v9682_v55 = vpop.f32.mrf.mxu1 }
0x1445   : > { %v6506_v12 = vadd.f32 %v9691_v19, %v6334_v38  ;;  %v6335_v13 = vadd.f32 %v9682_v55, %v6150_v24 }
0x1446   : > { %v6473_v0 = vpop.f32.mrf.mxu0  ;;  %v6304_v40 = vpop.f32.mrf.mxu1 }
0x1447   : > { %v6504_v53 = vadd.f32 %v6473_v0, %v6332_v41  ;;  %v6333_v34 = vadd.f32 %v6304_v40, %v6142_v36 }
0x1448   : > { %v9692_v9 = vpop.f32.mrf.mxu0  ;;  %v9685_v14 = vpop.f32.mrf.mxu1 }
0x1449   : > { %v6507_v33 = vadd.f32 %v9692_v9, %v6335_v13  ;;  %v6338_v3 = vadd.f32 %v9685_v14, %v6163_v5 }
0x144a   : > { %v6476_v17 = vpop.f32.mrf.mxu0  ;;  %v6317_v56 = vpop.f32.mrf.mxu1 }
0x144b   : > { %v6505_v10 = vadd.f32 %v6476_v17, %v6333_v34  ;;  %v6336_v29 = vadd.f32 %v6317_v56, %v6155_v7 }
0x144c   : > { %v9695_v58 = vpop.f32.mrf.mxu0  ;;  %v9686_v27 = vpop.f32.mrf.mxu1 }
0x144d   : > { %v6510_v6 = vadd.f32 %v9695_v58, %v6338_v3  ;;  %v6339_v44 = vadd.f32 %v9686_v27, %v6166_v1 }
0x144e   : > { %v6489_v62 = vpop.f32.mrf.mxu0  ;;  %v6320_v54 = vpop.f32.mrf.mxu1 }
0x144f   : > { %v6508_v22 = vadd.f32 %v6489_v62, %v6336_v29  ;;  %v6337_v49 = vadd.f32 %v6320_v54, %v6158_v18 }
0x1450   : > { %v9696_v21 = vpop.f32.mrf.mxu0 }
0x1451   : > { %v13684_v2 = vadd.f32 %v9696_v21, %v6339_v44 }
0x1452   : > { %v6492_v59 = vpop.f32.mrf.mxu0 }
0x1453   : > { %v13686_v46 = vadd.f32 %v6492_v59, %v6337_v49 }
0x1455   : > { %v9701_v61 = vpop.f32.mrf.mxu1 }
0x1456   : > { %v6661_v52 = vadd.f32 %v9701_v61, %v6506_v12 }
0x1457   : > { %v6628_v15 = vpop.f32.mrf.mxu1 }
0x1458   : > { %v6659_v8 = vadd.f32 %v6628_v15, %v6504_v53 }
0x1459   : > { %v9711_v47 = vpop.f32.mrf.mxu0  ;;  %v9702_v11 = vpop.f32.mrf.mxu1 }
0x145a   : > { %v6759_v25 = vadd.f32 %v9711_v47, %v6661_v52  ;;  %v6662_v37 = vadd.f32 %v9702_v11, %v6507_v33 }
0x145b   : > { %v6726_v23 = vpop.f32.mrf.mxu0  ;;  %v6631_v20 = vpop.f32.mrf.mxu1 }
0x145c   : > { %v6757_v63 = vadd.f32 %v6726_v23, %v6659_v8  ;;  %v6660_v42 = vadd.f32 %v6631_v20, %v6505_v10 }
0x145d   : > { %v9712_v48 = vpop.f32.mrf.mxu0  ;;  %v9705_v16 = vpop.f32.mrf.mxu1 }
0x145e   : > { %v6760_v30 = vadd.f32 %v9712_v48, %v6662_v37  ;;  %v6665_v45 = vadd.f32 %v9705_v16, %v6510_v6 }
0x145f   : > { %v6729_v24 = vpop.f32.mrf.mxu0  ;;  %v6644_v31 = vpop.f32.mrf.mxu1 }
0x1460   : > { %v6758_v50 = vadd.f32 %v6729_v24, %v6660_v42  ;;  %v6663_v36 = vadd.f32 %v6644_v31, %v6508_v22 }
0x1461   : > { %v9715_v28 = vpop.f32.mrf.mxu0  ;;  %v9706_v5 = vpop.f32.mrf.mxu1 }
0x1462   : > { %v13688_v43 = vadd.f32 %v9715_v28, %v6665_v45  ;;  %v6666_v28 = vadd.f32 %v9706_v5, %v13684_v2 }
0x1463   : > { %v6742_v39 = vpop.f32.mrf.mxu0  ;;  %v6647_v7 = vpop.f32.mrf.mxu1 }
0x1464   : > { %v13690_v57 = vadd.f32 %v6742_v39, %v6663_v36 }
0x1465   : > { %v9716_v51 = vpop.f32.mrf.mxu0  ;;  %v9721_v32 = vpop.f32.mrf.mxu1 }
0x1466   : > { %v6914_v1 = vadd.f32 %v9721_v32, %v6759_v25 }
0x1467   : > { %v13692_v60 = vpop.f32.mrf.mxu0  ;;  %v6881_v38 = vpop.f32.mrf.mxu1 }
0x1468   : > { %v6912_v26 = vadd.f32 %v6881_v38, %v6757_v63  ;;  %v6664_v38 = vadd.f32 %v6647_v7, %v13686_v46 }
0x1469   : > { %v9731_v35 = vpop.f32.mrf.mxu0  ;;  %v9722_v4 = vpop.f32.mrf.mxu1 }
0x146a   : > { %v13694_v18 = vadd.f32 %v9731_v35, %v6914_v1  ;;  %v6915_v41 = vadd.f32 %v9722_v4, %v6760_v30  ;;  %v6764_v35 = vadd.f32 %v9716_v51, %v6666_v28 }
0x146b   : > { %v7036_v19 = vpop.f32.mrf.mxu0  ;;  %v6884_v55 = vpop.f32.mrf.mxu1 }
0x146c   : > { %v13696_v12 = vadd.f32 %v7036_v19, %v6912_v26  ;;  %v6913_v13 = vadd.f32 %v6884_v55, %v6758_v50 }
0x146d   : > { %v9732_v0 = vpop.f32.mrf.mxu0  ;;  %v9725_v40 = vpop.f32.mrf.mxu1 }
0x146e   : > { %v13698_v53 = vadd.f32 %v9732_v0, %v6915_v41  ;;  %v6918_v2 = vadd.f32 %v9725_v40, %v13688_v43 }
0x146f   : > { %v7039_v34 = vpop.f32.mrf.mxu0  ;;  %v6897_v33 = vpop.f32.mrf.mxu1 }
0x1470   : > { %v13700_v9 = vadd.f32 %v7039_v34, %v6913_v13  ;;  %v6762_v13 = vadd.f32 %v13692_v60, %v6664_v38  ;;  %v6916_v51 = vadd.f32 %v6897_v33, %v13690_v57 }
0x1471   : > { %v9735_v14 = vpop.f32.mrf.mxu0  ;;  %v9726_v3 = vpop.f32.mrf.mxu1 }
0x1472   : > { %v6919_v19 = vadd.f32 %v9726_v3, %v6764_v35  ;;  %v7073_v28 = vadd.f32 %v9735_v14, %v6918_v2 }
0x1473   : > { %v7052_v17 = vpop.f32.mrf.mxu0  ;;  %v6900_v10 = vpop.f32.mrf.mxu1 }
0x1474   : > { %v6917_v34 = vadd.f32 %v6900_v10, %v6762_v13  ;;  %v7071_v43 = vadd.f32 %v7052_v17, %v6916_v51 }
0x1475   : > { %v9736_v56 = vpop.f32.mrf.mxu0  ;;  %v13702_v29 = vpop.f32.mrf.mxu1 }
0x1476   : > { %v7074_v7 = vadd.f32 %v9736_v56, %v6919_v19  ;;  %v7224_v17 = vadd.f32 %v13702_v29, %v13694_v18 }
0x1477   : > { %v7055_v58 = vpop.f32.mrf.mxu0  ;;  %v13704_v6 = vpop.f32.mrf.mxu1 }
0x1479   : > { %v13706_v27 = vpop.f32.mrf.mxu0  ;;  %v13708_v44 = vpop.f32.mrf.mxu1 }
0x147a   : > { %v7225_v57 = vadd.f32 %v13708_v44, %v13698_v53  ;;  %v7379_v18 = vadd.f32 %v13706_v27, %v7224_v17 }
0x147b   : > { %v13710_v62 = vpop.f32.mrf.mxu0  ;;  %v13712_v22 = vpop.f32.mrf.mxu1 }
0x147d   : > { %v13714_v54 = vpop.f32.mrf.mxu0  ;;  %v9745_v49 = vpop.f32.mrf.mxu1 }
0x147e   : > { %v7380_v53 = vadd.f32 %v13714_v54, %v7225_v57 }
0x147f   : > { %v13716_v21 = vpop.f32.mrf.mxu0  ;;  %v7207_v61 = vpop.f32.mrf.mxu1 }
0x1480   : > { %v7226_v10 = vadd.f32 %v7207_v61, %v7071_v43 }
0x1481   : > { %v9755_v52 = vpop.f32.mrf.mxu0  ;;  %v9746_v59 = vpop.f32.mrf.mxu1 }
0x1482   : > { %v7229_v3 = vadd.f32 %v9746_v59, %v7074_v7 }
0x1483   : > { %v7362_v15 = vpop.f32.mrf.mxu0  ;;  %v7210_v8 = vpop.f32.mrf.mxu1 }
0x1484   : > { %v7381_v59 = vadd.f32 %v7362_v15, %v7226_v10 }
0x1485   : > { %v9756_v47 = vpop.f32.mrf.mxu0  ;;  %v13718_v25 = vpop.f32.mrf.mxu1 }
0x1486   : > { %v7534_v54 = vadd.f32 %v13718_v25, %v7379_v18 }
0x1487   : > { %v7365_v11 = vpop.f32.mrf.mxu0  ;;  %v13720_v37 = vpop.f32.mrf.mxu1 }
0x1489   : > { %v13722_v23 = vpop.f32.mrf.mxu0  ;;  %v13724_v63 = vpop.f32.mrf.mxu1 }
0x148a   : > { %v7535_v29 = vadd.f32 %v13724_v63, %v7380_v53  ;;  %v7689_v25 = vadd.f32 %v13722_v23, %v7534_v54 }
0x148b   : > { %v13726_v20 = vpop.f32.mrf.mxu0  ;;  %v13728_v42 = vpop.f32.mrf.mxu1 }
0x148c   : > { %14475 = vst [vmem:[#allocation36_spill] sm:$0xff] %v13726_v20  ;;  %v7228_v20 = vadd.f32 %v9745_v49, %v7073_v28 }
0x148d   : > { %v13730_v48 = vpop.f32.mrf.mxu0  ;;  %v9765_v30 = vpop.f32.mrf.mxu1 }
0x148e   : > { %v7383_v13 = vadd.f32 %v9755_v52, %v7228_v20  ;;  %v7223_v52 = vadd.f32 %v13712_v22, %v13700_v9  ;;  %v7690_v63 = vadd.f32 %v13730_v48, %v7535_v29 }
0x148f   : > { %v13732_v16 = vpop.f32.mrf.mxu0  ;;  %v7517_v45 = vpop.f32.mrf.mxu1 }
0x1490   : > { %v7538_v14 = vadd.f32 %v9765_v30, %v7383_v13  ;;  %v7536_v44 = vadd.f32 %v7517_v45, %v7381_v59  ;;  %v7378_v22 = vadd.f32 %v13716_v21, %v7223_v52 }
0x1491   : > { %v9775_v24 = vpop.f32.mrf.mxu0  ;;  %v9766_v50 = vpop.f32.mrf.mxu1 }
0x1493   : > { %v13734_v31 = vpop.f32.mrf.mxu0  ;;  %v7520_v36 = vpop.f32.mrf.mxu1 }
0x1494   : > { %v7691_v45 = vadd.f32 %v13734_v31, %v7536_v44 }
0x1495   : > { %v9776_v39 = vpop.f32.mrf.mxu0  ;;  %v13737_v32 = vpop.f32.mrf.mxu1 }
0x1496   : > { %14476 = vst [vmem:[#allocation73_spill] sm:$0xff] %v13737_v32  ;;  %v7384_v32 = vadd.f32 %v9756_v47, %v7229_v3 }
0x1497   : > { %v7675_v1 = vpop.f32.mrf.mxu0  ;;  %v13740_v26 = vpop.f32.mrf.mxu1 }
0x1498   : > { %14477 = vst [vmem:[#allocation47_spill] sm:$0xff] %v13740_v26  ;;  %v7539_v19 = vadd.f32 %v9766_v50, %v7384_v32  ;;  %v7222_v50 = vadd.f32 %v13704_v6, %v13696_v12  ;;  %v7533_v6 = vadd.f32 %v13728_v42, %v7378_v22 }
0x1499   : > { %v13742_v4 = vpop.f32.mrf.mxu0  ;;  %v13744_v41 = vpop.f32.mrf.mxu1 }
0x149a   : > { %14478 = vst [vmem:[#allocation45_spill] sm:$0xff] %v13742_v4  ;;  %v7694_v47 = vadd.f32 %v9776_v39, %v7539_v19  ;;  %v7377_v12 = vadd.f32 %v13710_v62, %v7222_v50  ;;  %v7845_v31 = vadd.f32 %v13744_v41, %v7690_v63  ;;  %v7688_v42 = vadd.f32 %v13732_v16, %v7533_v6 }
0x149b   : > { %v13746_v55 = vpop.f32.mrf.mxu0  ;;  %v13750_v5 = vpop.f32.mrf.mxu1 }
0x149c   : > { %14479 = vst [vmem:[#allocation44_spill] sm:$0xff] %v13746_v55  ;;  %14480 = vst [vmem:[#allocation49_spill] sm:$0xff] %v13750_v5  ;;  %v7072_v55 = vadd.f32 %v7055_v58, %v6917_v34  ;;  %v7532_v21 = vadd.f32 %v13720_v37, %v7377_v12 }
0x149d   : > { %v13752_v0 = vpop.f32.mrf.mxu0  ;;  %v9785_v46 = vpop.f32.mrf.mxu1 }
0x149e   : > { %14481 = vst [vmem:[#allocation48_spill] sm:$0xff] %v13752_v0  ;;  %v7227_v40 = vadd.f32 %v7210_v8, %v7072_v55 }
0x149f   : > { %v13754_v26 = vpop.f32.mrf.mxu0  ;;  %v7827_v4 = vpop.f32.mrf.mxu1 }
0x14a0   : > { %14482 = vst [vmem:[#allocation46_spill] sm:$0xff] %v13754_v26  ;;  %v7382_v33 = vadd.f32 %v7365_v11, %v7227_v40  ;;  %v7693_v11 = vadd.f32 %v9775_v24, %v7538_v14  ;;  %v14484_v40 = vld [vmem:[#allocation36_spill] sm:$0xff] }
0x14a1   : > { %v9795_v35 = vpop.f32.mrf.mxu0  ;;  %v9786_v60 = vpop.f32.mrf.mxu1  ;;  %v7687_v10 = vadd.f32 %v14484_v40, %v7532_v21  ;;  %v14488_v16 = vld [vmem:[#allocation45_spill] sm:$0xff] }
0x14a2   : > { %v7537_v8 = vadd.f32 %v7520_v36, %v7382_v33  ;;  %v7849_v32 = vadd.f32 %v9786_v60, %v7694_v47  ;;  %v7848_v36 = vadd.f32 %v9785_v46, %v7693_v11  ;;  %v14483_v60 = vld [vmem:[#allocation73_spill] sm:$0xff] }
0x14a3   : > { %v7982_v38 = vpop.f32.mrf.mxu0  ;;  %v7830_v5 = vpop.f32.mrf.mxu1  ;;  %v7844_v43 = vadd.f32 %v14483_v60, %v7689_v25  ;;  %v14485_v13 = vld [vmem:[#allocation49_spill] sm:$0xff]  ;;  %v14490_v44 = vld [vmem:[#allocation44_spill] sm:$0xff] }
0x14a4   : > { %v7692_v15 = vadd.f32 %v7675_v1, %v7537_v8  ;;  %v7846_v1 = vadd.f32 %v7827_v4, %v7691_v45  ;;  %v8003_v46 = vadd.f32 %v9795_v35, %v7848_v36  ;;  %v7843_v19 = vadd.f32 %v14485_v13, %v7688_v42 }
0x14a5   : > { %v9796_v0 = vpop.f32.mrf.mxu0  ;;  %v13757_v56 = vpop.f32.mrf.mxu1  ;;  %v14486_v57 = vld [vmem:[#allocation48_spill] sm:$0xff]  ;;  %v7999_v17 = vadd.f32 %v14488_v16, %v7844_v43 }
0x14a6   : > { %v7847_v24 = vadd.f32 %v7830_v5, %v7692_v15  ;;  %v8004_v34 = vadd.f32 %v9796_v0, %v7849_v32  ;;  %v8001_v48 = vadd.f32 %v7982_v38, %v7846_v1  ;;  %v8000_v23 = vadd.f32 %v14486_v57, %v7845_v31 }
0x14a7   : > { %v7985_v26 = vpop.f32.mrf.mxu0  ;;  %v13761_v58 = vpop.f32.mrf.mxu1  ;;  %v14489_v38 = vld [vmem:[#allocation46_spill] sm:$0xff]  ;;  %v8154_v47 = vadd.f32 %v13757_v56, %v7999_v17 }
0x14a8   : > { %v8002_v5 = vadd.f32 %v7985_v26, %v7847_v24  ;;  %v14487_v26 = vld [vmem:[#allocation47_spill] sm:$0xff]  ;;  %v7998_v52 = vadd.f32 %v14489_v38, %v7843_v19 }
0x14a9   : > { %v13763_v49 = vpop.f32.mrf.mxu0  ;;  %v9802_v61 = vpop.f32.mrf.mxu1  ;;  %v7842_v14 = vadd.f32 %v14487_v26, %v7687_v10 }
0x14aa   : > { %v8155_v59 = vadd.f32 %v9802_v61, %v8000_v23  ;;  %v8309_v61 = vadd.f32 %v13763_v49, %v8154_v47 }
0x14ab   : > { %v13769_v20 = vpop.f32.mrf.mxu0  ;;  %v8124_v30 = vpop.f32.mrf.mxu1  ;;  %v7997_v11 = vadd.f32 %v14490_v44, %v7842_v14 }
0x14ac   : > { %v8153_v50 = vadd.f32 %v8124_v30, %v7998_v52  ;;  %v8316_v30 = vld [vmem:[%s13880_s24 + $0x8] sm:$0xff] }
0x14ad   : > { %v9812_v55 = vpop.f32.mrf.mxu0  ;;  %v9805_v9 = vpop.f32.mrf.mxu1  ;;  %v8152_v18 = vadd.f32 %v13761_v58, %v7997_v11  ;;  %v8935_v58 = vld [vmem:[%s13882_s26] ss:$0 sm:$0xff] }
0x14ae   : > { %v8158_v3 = vadd.f32 %v9805_v9, %v8003_v46  ;;  %v8310_v32 = vadd.f32 %v9812_v55, %v8155_v59 }
0x14af   : > { %v8279_v39 = vpop.f32.mrf.mxu0  ;;  %v8137_v2 = vpop.f32.mrf.mxu1  ;;  %v8307_v56 = vadd.f32 %v13769_v20, %v8152_v18 }
0x14b0   : > { %v8156_v33 = vadd.f32 %v8137_v2, %v8001_v48  ;;  %v8308_v29 = vadd.f32 %v8279_v39, %v8153_v50 }
0x14b1   : > { %v9815_v27 = vpop.f32.mrf.mxu0  ;;  %v9806_v7 = vpop.f32.mrf.mxu1 }
0x14b2   : > { %v8159_v51 = vadd.f32 %v9806_v7, %v8004_v34  ;;  %v8313_v41 = vadd.f32 %v9815_v27, %v8158_v3 }
0x14b3   : > { %v8292_v28 = vpop.f32.mrf.mxu0  ;;  %v8140_v62 = vpop.f32.mrf.mxu1 }
0x14b4   : > { %v8157_v4 = vadd.f32 %v8140_v62, %v8002_v5  ;;  %v8311_v53 = vadd.f32 %v8292_v28, %v8156_v33 }
0x14b5   : > { %v9816_v0 = vpop.f32.mrf.mxu0 }
0x14b6   : > { %v8314_v35 = vadd.f32 %v9816_v0, %v8159_v51 }
0x14b7   : > { %v8295_v37 = vpop.f32.mrf.mxu0 }
0x14b8   : > { %9817 = vmatprep.subr.mxu1 %v8314_v35  ;;  %v8312_v8 = vadd.f32 %v8295_v37, %v8157_v4 }
0x14b9   : > { %9818 = vmatpush3.msra.mxu1 %v8314_v35 }
0x14ba   : > { %9819 = vmatprep.subr.mxu1 %v8313_v41 }
0x14bb   : > { %9820 = vmatpush3.msra.mxu1 %v8313_v41 }
0x14bc   : > { %9821 = vmatprep.subr.mxu1 %v8312_v8 }
0x14bd   : > { %9822 = vmatpush3.msra.mxu1 %v8312_v8 }
0x14be   : > { %9823 = vmatprep.subr.mxu1 %v8311_v53 }
0x14bf   : > { %9824 = vmatpush3.msra.mxu1 %v8311_v53 }
0x14c0   : > { %9825 = vmatprep.subr.mxu1 %v8310_v32 }
0x14c1   : > { %9826 = vmatpush3.msra.mxu1 %v8310_v32 }
0x14c2   : > { %9827 = vmatprep.subr.mxu1 %v8309_v61 }
0x14c3   : > { %9828 = vmatpush3.msra.mxu1 %v8309_v61 }
0x14c4   : > { %9829 = vmatprep.subr.mxu1 %v8308_v29 }
0x14c5   : > { %9830 = vmatpush3.msra.mxu1 %v8308_v29 }
0x14c6   : > { %9831 = vmatprep.subr.mxu1 %v8307_v56 }
0x14c7   : > { %9832 = vmatpush3.msra.mxu1 %v8307_v56 }
0x14c8   : > { %9834 = vmatmul.mubr.msk.f32.vlgmr.msra.gmra.mxu1 %vm4438_vm8, %v8316_v30 }
0x1588   : > { %v9835_v49 = vpop.f32.mrf.mxu1 }
0x1589   : > { %v8402_v20 = vadd.f32 %v9835_v49, %v8935_v58 }
0x158a   : > { %v8396_v55 = vpop.f32.mrf.mxu1 }
0x158b   : > { %8406 = vst.msk [vmem:[%s837_s11 + $0x8] sm:$0xff] %vm2603_vm6, %v8402_v20  ;;  %v8397_v15 = vadd.f32 %v8935_v58, %v8396_v55 }
0x158d   : > { %8405 = vst.msk [vmem:[%s837_s11] sm:$0xff] %vm2603_vm6, %v8397_v15 }
0x158e   : > { %10213 = shalt.err (!%p10210_p0)
}
0x158f   : > { %s10214_s5 = scalar_lea.hbm %s13813_s2, 256  ;;  %s10218_s3 = scalar_lea.hbm %s13883_s27, 512 }
0x1590   : > { %p10215_p1 = scmp.ne.s32.totalorder %s13813_s2, %s10214_s5  ;;  %p10219_p4 = scmp.lt.s32.totalorder %s13813_s2, %s13883_s27 }
0x1591   : > { %p10220_p7 = scmp.lt.s32.totalorder %s10218_s3, %s10214_s5 }
0x1592   : > { %p10216_p2 = pnand %p10215_p1, %p10464_p5 }
0x1593   : > { %p10221_p8 = por %p10220_p7, %p10219_p4 }
0x1594   : > { %p10217_p3 = pneg %p10216_p2 }
0x1596   : > { %p10222_p6 = pnand %p10221_p8, %p10217_p3 }
0x1598   : > { %10225 = shalt.err (!%p10222_p6)
}
0x1599   : > { %s10284_s12 = smov 128   ;;  %s10285_s9 = smov 8  }
0x159a   : > { %9870 = dma.vmem_to_hbm [thread:$0]  (%p10464_p5), %s13807_s6, 256, %s13813_s2, %s13816_s10, %s10284_s12, %s10284_s12, %s10285_s9  }
0x159b PF: > { %s14491_s29 = sld [smem:[#allocation11_spill]]  ;;  %p9882_p9 = scmp.ge.s32.totalorder %s10264_s30, 2 }
0x159c   : > { %s8436_s11 = sand.u32 1, %s10252_s7  }
0x159d   : > { %s8437_s5 = scalar_lea.sflag [#allocation4], %s8436_s11 }
0x15a1   : > { %p14492_p10 = scmp.ne.s32.totalorder %s14491_s29, 0 }
0x15a3   : > { %p9877_p11 = pnand %p9882_p9, %p14492_p10 }
0x15a5   : > { %p9878_p12 = pneg %p9877_p11 }
0x15a7   : > { %10247 = dma.done.wait (%p9878_p12), %s8437_s5, 256  }
0x15a8   : > { %10249 = vsyncadd (%p9878_p12), %s8437_s5, 4294967040  ;;  %s14493_s30 = sld [smem:[#allocation9_spill]]  ;;  %s14496_s7 = smov %s10256_s4 }
0x15a9   : > { %s14494_s0 = sld [smem:[#allocation8_spill]] }
0x15aa   : > { %s14495_s8 = sld [smem:[#allocation10_spill]] }
0x15ae   : > { %p38_p13 = scmp.ge.s32.totalorder %s14493_s30, 4  }
0x15af   : > { %s14497_s4 = smov %s14494_s0 }
0x15b0   :  { %40 = sbr.rel (!%p38_p13) target bundleno = 18 (0x12), region = 226 }
0x15b5   :  { %8442 = vsyncpa [#allocation3], 1 }
0x15b6   :  { %8444 = vsyncpa [#allocation3 + $0x1], 1 }
0x15b7   :  { %8445 = vsyncpa [#allocation4], 1 }
0x15b8   :  { %8447 = vsyncpa [#allocation4 + $0x1], 1 }

</bundles_post_ra>
